<compile_context>
chip_gen: v6e
topology: v6e:2x2x1
jax: 0.10.0
libtpu: 0.0.40
codegen_flags: <defaults>
</compile_context>

<pallas_src>
import functools

import numpy as np
import jax
import jax.numpy as jnp
from jax.experimental import pallas as pl
from jax.experimental.pallas import tpu as pltpu


def _cdiv(a, b):
    return -(-a // b)


def _round_up(x, m):
    return _cdiv(x, m) * m


def _subsample_indices(N, M):
    """Static sorted-position indices (mirrors np.linspace(...).astype(int))."""
    if N > M:
        return np.linspace(0, N - 1, num=M).astype(int), np.arange(M), M
    if N < M:
        return np.arange(N), np.linspace(0, M - 1, num=N).astype(int), N
    return np.arange(N), np.arange(N), N


def _swd_chunk_kernel(pred_full_ref, pred_chunk_ref, targ_full_ref,
                      targ_chunk_ref, pidx_ref, tidx_ref, out_ref,
                      sp_acc_ref, st_acc_ref, *,
                      chunk, num_chunks, cols_pred, cols_targ,
                      chunks_pred, chunks_targ):
    c = pl.program_id(1)
    cols_max = max(cols_pred, cols_targ)

    def init():
        sp_acc_ref[...] = jnp.zeros_like(sp_acc_ref)
        st_acc_ref[...] = jnp.zeros_like(st_acc_ref)

    if num_chunks == 1:
        init()
    else:
        pl.when(c == 0)(init)

    # Data-independent stable-sort tie-break (global j < global i), computed
    # once per chunk step and shared by the pred and target passes.
    start = c * chunk
    ci = start + jax.lax.broadcasted_iota(jnp.int32, (1, chunk, cols_max), 1)
    cj = jax.lax.broadcasted_iota(jnp.int32, (1, chunk, cols_max), 2)
    tri = cj < ci                                    # (1, chunk, cols_max)

    def accumulate(chunk_ref, full_ref, idx_ref, acc_ref, cols):
        # Fused: stable-rank via broadcast compare against all slots, rank==idx
        # selection against the (padded) linspace positions, partial-sum
        # accumulation.  Sorted / subsampled arrays are never materialized.
        x_c3 = chunk_ref[...][:, :, None]            # (PB, chunk, 1)
        x_a3 = full_ref[:, :cols][:, None, :]        # (PB, 1, cols)
        tri_s = tri if cols == cols_max else tri[:, :, :cols]
        less = jnp.logical_or(x_a3 < x_c3,
                              jnp.logical_and(x_a3 == x_c3, tri_s))
        rank = jnp.sum(less.astype(jnp.int32), axis=-1)          # (PB, chunk)
        sel = rank[:, :, None] == idx_ref[...][:, None, :]       # (PB, chunk, K_pad)
        acc_ref[...] += jnp.sum(jnp.where(sel, x_c3, 0.0), axis=1)

    def pred_side():
        accumulate(pred_chunk_ref, pred_full_ref, pidx_ref, sp_acc_ref, cols_pred)

    def targ_side():
        accumulate(targ_chunk_ref, targ_full_ref, tidx_ref, st_acc_ref, cols_targ)

    # Skip chunks that lie entirely in the +inf padding of the shorter side.
    if chunks_pred >= num_chunks:
        pred_side()
    else:
        pl.when(c < chunks_pred)(pred_side)
    if chunks_targ >= num_chunks:
        targ_side()
    else:
        pl.when(c < chunks_targ)(targ_side)

    def finalize():
        row_sums = jnp.sum(jnp.abs(sp_acc_ref[...] - st_acc_ref[...]),
                           axis=1, keepdims=True)                # (PB, 1)
        out_ref[...] = jnp.broadcast_to(row_sums, out_ref.shape)  # lane-dense

    if num_chunks == 1:
        finalize()
    else:
        pl.when(c == num_chunks - 1)(finalize)


def swd_loss(pred_codes, target_codes, *, num_proj=20, key=None, projs=None,
             block_rows=8, chunk=128):
    """Pallas implementation of SWD_Loss.forward for the num_proj > 0 branch."""
    assert num_proj > 0
    assert block_rows % 8 == 0 and chunk % 128 == 0
    N, D = pred_codes.shape
    M, D2 = target_codes.shape
    assert D == D2 and D > 1

    if projs is None:
        # torch.rand((num_proj, D)) equivalent; precompute and pass `projs=`
        # to hoist this out of the hot training step.
        if key is None:
            key = jax.random.PRNGKey(42)
        projs = jax.random.uniform(key, (num_proj, D), dtype=jnp.float32)

    pidx_np, tidx_np, K = _subsample_indices(N, M)

    # Projection hoisted to one small XLA matmul: O(P*D*(N+M)) flops is
    # negligible next to the O(P*(N^2+M^2)) compare; hoisting keeps the codes
    # out of the kernel's VMEM budget.
    pred_projs = projs.astype(jnp.float32) @ pred_codes.astype(jnp.float32).T
    targ_projs = projs.astype(jnp.float32) @ target_codes.astype(jnp.float32).T

    num_blocks = _cdiv(num_proj, block_rows)
    p_pad = num_blocks * block_rows

    cols_pred = _round_up(N, 128)          # static per-side compare width
    cols_targ = _round_up(M, 128)
    c_pad = _round_up(max(cols_pred, cols_targ), chunk)
    num_chunks = c_pad // chunk
    chunks_pred = _cdiv(N, chunk)          # chunks containing real pred slots
    chunks_targ = _cdiv(M, chunk)
    k_pad = _round_up(K, 128)

    def pad_projs(pp, n_real):
        # +inf sample padding: never counted by the rank compare, rank >= n_real
        # so never selected. Padded projection rows are all-zero -> contribute 0.
        pp = jnp.pad(pp, ((0, 0), (0, c_pad - n_real)), constant_values=np.inf)
        return jnp.pad(pp, ((0, p_pad - num_proj), (0, 0)), constant_values=0.0)

    pred_pad = pad_projs(pred_projs, N)
    targ_pad = pad_projs(targ_projs, M)

    def pad_idx(idx_np):
        buf = np.full((1, k_pad), -1, dtype=np.int32)   # -1 never equals a rank
        buf[0, :K] = idx_np
        return jnp.asarray(buf)

    pidx = pad_idx(pidx_np)
    tidx = pad_idx(tidx_np)

    kernel = functools.partial(
        _swd_chunk_kernel, chunk=chunk, num_chunks=num_chunks,
        cols_pred=cols_pred, cols_targ=cols_targ,
        chunks_pred=chunks_pred, chunks_targ=chunks_targ)

    # Explicit VMEM budget: double-buffered inputs/outputs + accumulators +
    # the bounded (block_rows, chunk, c_pad) compare intermediates; capped at
    # 64 MiB so the request is also valid on v7x.
    f32 = 4
    est = (2 * f32 * (2 * block_rows * c_pad + 2 * block_rows * chunk
                      + 2 * k_pad + block_rows * 128)
           + 2 * f32 * block_rows * k_pad
           + 3 * f32 * block_rows * chunk * max(c_pad, k_pad)
           + (8 << 20))
    vmem_limit = int(min(64 << 20, max(24 << 20, est)))

    cost = pl.CostEstimate(
        flops=int(2 * p_pad * c_pad * (6 * c_pad + 3 * k_pad)),
        transcendentals=0,
        bytes_accessed=int(f32 * (4 * p_pad * c_pad + 2 * k_pad + p_pad * 128)))

    out = pl.pallas_call(
        kernel,
        out_shape=jax.ShapeDtypeStruct((p_pad, 128), jnp.float32),
        grid=(num_blocks, num_chunks),
        in_specs=[
            pl.BlockSpec((block_rows, c_pad), lambda b, c: (b, 0)),  # pred full row
            pl.BlockSpec((block_rows, chunk), lambda b, c: (b, c)),  # pred i-chunk
            pl.BlockSpec((block_rows, c_pad), lambda b, c: (b, 0)),  # targ full row
            pl.BlockSpec((block_rows, chunk), lambda b, c: (b, c)),  # targ i-chunk
            pl.BlockSpec((1, k_pad), lambda b, c: (0, 0)),           # pred sorted idxs
            pl.BlockSpec((1, k_pad), lambda b, c: (0, 0)),           # targ sorted idxs
        ],
        out_specs=pl.BlockSpec((block_rows, 128), lambda b, c: (b, 0)),
        scratch_shapes=[pltpu.VMEM((block_rows, k_pad), jnp.float32),
                        pltpu.VMEM((block_rows, k_pad), jnp.float32)],
        compiler_params=pltpu.CompilerParams(
            dimension_semantics=("parallel", "arbitrary"),
            vmem_limit_bytes=vmem_limit),
        cost_estimate=cost,
    )(pred_pad, pred_pad, targ_pad, targ_pad, pidx, tidx)

    # mean-of-means == global sum / (num_proj * K); padded rows/lanes are 0.
    return jnp.sum(out[:, 0]) / float(num_proj * K)


def swd_loss_reference(pred_codes, target_codes, *, num_proj=20, key=None,
                       projs=None):
    """Plain-JAX reference mirroring the PyTorch forward."""
    if projs is None:
        if key is None:
            key = jax.random.PRNGKey(42)
        projs = jax.random.uniform(key, (num_proj, pred_codes.shape[1]),
                                   dtype=jnp.float32)
    pred_projs = projs @ pred_codes.astype(jnp.float32).T
    targ_projs = projs @ target_codes.astype(jnp.float32).T
    sp = jnp.sort(pred_projs, axis=-1)
    st = jnp.sort(targ_projs, axis=-1)
    if sp.shape[1] != st.shape[1]:
        if sp.shape[1] > st.shape[1]:
            idx = np.linspace(0, sp.shape[1] - 1, num=st.shape[1]).astype(int)
            sp = sp[:, idx]
        else:
            idx = np.linspace(0, st.shape[1] - 1, num=sp.shape[1]).astype(int)
            st = st[:, idx]
    return jnp.mean(jnp.mean(jnp.abs(sp - st), axis=1), axis=0)


if __name__ == "__main__":
    root = jax.random.PRNGKey(0)
    k1, k2, k3, k4, k5, kproj = jax.random.split(root, 6)

    # Hoisted projection matrix (generated once, reused across loss calls).
    projs = jax.random.uniform(kproj, (20, 8), dtype=jnp.float32)

    # Case 1: equal number of samples.
    pred = jax.random.normal(k1, (16, 8), dtype=jnp.float32)
    targ = jax.random.normal(k2, (16, 8), dtype=jnp.float32) + 0.5
    out1 = jax.block_until_ready(swd_loss(pred, targ, num_proj=20, projs=projs))
    ref1 = jax.block_until_ready(
        swd_loss_reference(pred, targ, num_proj=20, projs=projs))
    assert np.allclose(np.asarray(out1), np.asarray(ref1),
                       rtol=1e-4, atol=1e-5), (out1, ref1)

    # Case 2: mismatched sample counts (linspace subsampling path).
    targ2 = jax.random.normal(k3, (12, 8), dtype=jnp.float32) - 0.25
    out2 = jax.block_until_ready(swd_loss(pred, targ2, num_proj=20, projs=projs))
    ref2 = jax.block_until_ready(
        swd_loss_reference(pred, targ2, num_proj=20, projs=projs))
    assert np.allclose(np.asarray(out2), np.asarray(ref2),
                       rtol=1e-4, atol=1e-5), (out2, ref2)

    # Case 3: larger, unequal sizes -> exercises the multi-chunk grid axis,
    # the per-side chunk guards and the static per-side compare width.
    pred3 = jax.random.normal(k4, (300, 8), dtype=jnp.float32)
    targ3 = jax.random.normal(k5, (100, 8), dtype=jnp.float32) * 1.3 + 0.1
    out3 = jax.block_until_ready(swd_loss(pred3, targ3, num_proj=20, projs=projs))
    ref3 = jax.block_until_ready(
        swd_loss_reference(pred3, targ3, num_proj=20, projs=projs))
    assert np.allclose(np.asarray(out3), np.asarray(ref3),
                       rtol=1e-4, atol=1e-5), (out3, ref3)

    print("KERNEL_OK")
</pallas_src>

<mosaic_0001>
module attributes {stable_mosaic.version = 11 : i64} {
  func.func @_swd_chunk_kernel(%arg0: i32, %arg1: i32, %arg2: memref<8x128xf32, #tpu.memory_space<vmem>>, %arg3: memref<8x128xf32, #tpu.memory_space<vmem>>, %arg4: memref<8x128xf32, #tpu.memory_space<vmem>>, %arg5: memref<8x128xf32, #tpu.memory_space<vmem>>, %arg6: memref<1x128xi32, #tpu.memory_space<vmem>>, %arg7: memref<1x128xi32, #tpu.memory_space<vmem>>, %arg8: memref<8x128xf32, #tpu.memory_space<vmem>>, %arg9: memref<8x128xf32, #tpu.memory_space<vmem>>, %arg10: memref<8x128xf32, #tpu.memory_space<vmem>>) attributes {dimension_semantics = [#tpu.dimension_semantics<parallel>, #tpu.dimension_semantics<arbitrary>], iteration_bounds = array<i64: 3, 1>, scalar_prefetch = 0 : i64, scratch_operands = 2 : i64, tpu.core_type = #tpu.core_type<tc>, window_params = [{transform_indices = @transform_0, window_bounds = array<i64: 8, 128>}, {transform_indices = @transform_1, window_bounds = array<i64: 8, 128>}, {transform_indices = @transform_2, window_bounds = array<i64: 8, 128>}, {transform_indices = @transform_3, window_bounds = array<i64: 8, 128>}, {pipeline_mode = #tpu.pipeline_mode<synchronous>, transform_indices = @transform_4, window_bounds = array<i64: 1, 128>}, {pipeline_mode = #tpu.pipeline_mode<synchronous>, transform_indices = @transform_5, window_bounds = array<i64: 1, 128>}, {transform_indices = @transform_6, window_bounds = array<i64: 8, 128>}]} {
    %cst = arith.constant 0.000000e+00 : f32
    %0 = vector.broadcast %cst : f32 to vector<8x128xf32>
    %c0 = arith.constant 0 : index
    %c0_0 = arith.constant 0 : index
    %1 = vector.load %arg9[%c0, %c0_0] : memref<8x128xf32, #tpu.memory_space<vmem>>, vector<8x128xf32>
    tpu.vector_store %arg9[%c0, %c0_0], %0 {strides = array<i32>} : memref<8x128xf32, #tpu.memory_space<vmem>>, vector<8x128xf32>,
    %cst_1 = arith.constant 0.000000e+00 : f32
    %2 = vector.broadcast %cst_1 : f32 to vector<8x128xf32>
    %c0_2 = arith.constant 0 : index
    %c0_3 = arith.constant 0 : index
    %3 = vector.load %arg10[%c0_2, %c0_3] : memref<8x128xf32, #tpu.memory_space<vmem>>, vector<8x128xf32>
    tpu.vector_store %arg10[%c0_2, %c0_3], %2 {strides = array<i32>} : memref<8x128xf32, #tpu.memory_space<vmem>>, vector<8x128xf32>,
    %c128_i32 = arith.constant 128 : i32
    %4 = arith.muli %arg1, %c128_i32 : i32
    %5 = tpu.iota {dimensions = array<i32: 1>} : vector<1x128x128xi32>
    %6 = vector.broadcast %4 : i32 to vector<1x128x128xi32>
    %7 = arith.addi %6, %5 : vector<1x128x128xi32>
    %8 = tpu.iota {dimensions = array<i32: 2>} : vector<1x128x128xi32>
    %9 = arith.cmpi slt, %8, %7 : vector<1x128x128xi32>
    %c0_4 = arith.constant 0 : index
    %c0_5 = arith.constant 0 : index
    %10 = vector.load %arg3[%c0_4, %c0_5] : memref<8x128xf32, #tpu.memory_space<vmem>>, vector<8x128xf32>
    %11 = vector.shape_cast %10 : vector<8x128xf32> to vector<8x128x1xf32>
    %c0_6 = arith.constant 0 : index
    %c0_7 = arith.constant 0 : index
    %12 = vector.load %arg2[%c0_6, %c0_7] : memref<8x128xf32, #tpu.memory_space<vmem>>, vector<8x128xf32>
    %13 = vector.shape_cast %12 : vector<8x128xf32> to vector<8x1x128xf32>
    %14 = vector.broadcast %13 : vector<8x1x128xf32> to vector<8x128x128xf32>
    %15 = vector.broadcast %11 : vector<8x128x1xf32> to vector<8x128x128xf32>
    %16 = arith.cmpf olt, %14, %15 : vector<8x128x128xf32>
    %17 = vector.broadcast %13 : vector<8x1x128xf32> to vector<8x128x128xf32>
    %18 = vector.broadcast %11 : vector<8x128x1xf32> to vector<8x128x128xf32>
    %19 = arith.cmpf oeq, %17, %18 : vector<8x128x128xf32>
    %20 = vector.broadcast %9 : vector<1x128x128xi1> to vector<8x128x128xi1>
    %21 = arith.andi %19, %20 : vector<8x128x128xi1>
    %22 = arith.ori %16, %21 : vector<8x128x128xi1>
    %23 = arith.extui %22 : vector<8x128x128xi1> to vector<8x128x128xi32>
    %cst_8 = arith.constant dense<0> : vector<8x128xi32>
    %24 = vector.multi_reduction <add>, %23, %cst_8 [2] : vector<8x128x128xi32> to vector<8x128xi32>
    %25 = vector.shape_cast %24 : vector<8x128xi32> to vector<8x128x1xi32>
    %c0_9 = arith.constant 0 : index
    %c0_10 = arith.constant 0 : index
    %26 = vector.load %arg6[%c0_9, %c0_10] : memref<1x128xi32, #tpu.memory_space<vmem>>, vector<1x128xi32>
    %27 = vector.shape_cast %26 : vector<1x128xi32> to vector<1x1x128xi32>
    %28 = vector.broadcast %25 : vector<8x128x1xi32> to vector<8x128x128xi32>
    %29 = vector.broadcast %27 : vector<1x1x128xi32> to vector<8x128x128xi32>
    %30 = arith.cmpi eq, %28, %29 : vector<8x128x128xi32>
    %c0_11 = arith.constant 0 : index
    %c0_12 = arith.constant 0 : index
    %31 = vector.load %arg9[%c0_11, %c0_12] : memref<8x128xf32, #tpu.memory_space<vmem>>, vector<8x128xf32>
    %cst_13 = arith.constant 0.000000e+00 : f32
    %32 = vector.shape_cast %11 : vector<8x128x1xf32> to vector<8x128x1xf32>
    %33 = vector.broadcast %32 : vector<8x128x1xf32> to vector<8x128x128xf32>
    %34 = vector.broadcast %cst_13 : f32 to vector<8x128x128xf32>
    %35 = arith.select %30, %33, %34 : vector<8x128x128xi1>, vector<8x128x128xf32>
    %cst_14 = arith.constant dense<0.000000e+00> : vector<8x128xf32>
    %36 = vector.multi_reduction <add>, %35, %cst_14 [1] : vector<8x128x128xf32> to vector<8x128xf32>
    %37 = arith.addf %31, %36 : vector<8x128xf32>
    %c0_15 = arith.constant 0 : index
    %c0_16 = arith.constant 0 : index
    %38 = vector.load %arg9[%c0_15, %c0_16] : memref<8x128xf32, #tpu.memory_space<vmem>>, vector<8x128xf32>
    tpu.vector_store %arg9[%c0_15, %c0_16], %37 {strides = array<i32>} : memref<8x128xf32, #tpu.memory_space<vmem>>, vector<8x128xf32>,
    %c0_17 = arith.constant 0 : index
    %c0_18 = arith.constant 0 : index
    %39 = vector.load %arg5[%c0_17, %c0_18] : memref<8x128xf32, #tpu.memory_space<vmem>>, vector<8x128xf32>
    %40 = vector.shape_cast %39 : vector<8x128xf32> to vector<8x128x1xf32>
    %c0_19 = arith.constant 0 : index
    %c0_20 = arith.constant 0 : index
    %41 = vector.load %arg4[%c0_19, %c0_20] : memref<8x128xf32, #tpu.memory_space<vmem>>, vector<8x128xf32>
    %42 = vector.shape_cast %41 : vector<8x128xf32> to vector<8x1x128xf32>
    %43 = vector.broadcast %42 : vector<8x1x128xf32> to vector<8x128x128xf32>
    %44 = vector.broadcast %40 : vector<8x128x1xf32> to vector<8x128x128xf32>
    %45 = arith.cmpf olt, %43, %44 : vector<8x128x128xf32>
    %46 = vector.broadcast %42 : vector<8x1x128xf32> to vector<8x128x128xf32>
    %47 = vector.broadcast %40 : vector<8x128x1xf32> to vector<8x128x128xf32>
    %48 = arith.cmpf oeq, %46, %47 : vector<8x128x128xf32>
    %49 = vector.broadcast %9 : vector<1x128x128xi1> to vector<8x128x128xi1>
    %50 = arith.andi %48, %49 : vector<8x128x128xi1>
    %51 = arith.ori %45, %50 : vector<8x128x128xi1>
    %52 = arith.extui %51 : vector<8x128x128xi1> to vector<8x128x128xi32>
    %cst_21 = arith.constant dense<0> : vector<8x128xi32>
    %53 = vector.multi_reduction <add>, %52, %cst_21 [2] : vector<8x128x128xi32> to vector<8x128xi32>
    %54 = vector.shape_cast %53 : vector<8x128xi32> to vector<8x128x1xi32>
    %c0_22 = arith.constant 0 : index
    %c0_23 = arith.constant 0 : index
    %55 = vector.load %arg7[%c0_22, %c0_23] : memref<1x128xi32, #tpu.memory_space<vmem>>, vector<1x128xi32>
    %56 = vector.shape_cast %55 : vector<1x128xi32> to vector<1x1x128xi32>
    %57 = vector.broadcast %54 : vector<8x128x1xi32> to vector<8x128x128xi32>
    %58 = vector.broadcast %56 : vector<1x1x128xi32> to vector<8x128x128xi32>
    %59 = arith.cmpi eq, %57, %58 : vector<8x128x128xi32>
    %c0_24 = arith.constant 0 : index
    %c0_25 = arith.constant 0 : index
    %60 = vector.load %arg10[%c0_24, %c0_25] : memref<8x128xf32, #tpu.memory_space<vmem>>, vector<8x128xf32>
    %cst_26 = arith.constant 0.000000e+00 : f32
    %61 = vector.shape_cast %40 : vector<8x128x1xf32> to vector<8x128x1xf32>
    %62 = vector.broadcast %61 : vector<8x128x1xf32> to vector<8x128x128xf32>
    %63 = vector.broadcast %cst_26 : f32 to vector<8x128x128xf32>
    %64 = arith.select %59, %62, %63 : vector<8x128x128xi1>, vector<8x128x128xf32>
    %cst_27 = arith.constant dense<0.000000e+00> : vector<8x128xf32>
    %65 = vector.multi_reduction <add>, %64, %cst_27 [1] : vector<8x128x128xf32> to vector<8x128xf32>
    %66 = arith.addf %60, %65 : vector<8x128xf32>
    %c0_28 = arith.constant 0 : index
    %c0_29 = arith.constant 0 : index
    %67 = vector.load %arg10[%c0_28, %c0_29] : memref<8x128xf32, #tpu.memory_space<vmem>>, vector<8x128xf32>
    tpu.vector_store %arg10[%c0_28, %c0_29], %66 {strides = array<i32>} : memref<8x128xf32, #tpu.memory_space<vmem>>, vector<8x128xf32>,
    %c0_30 = arith.constant 0 : index
    %c0_31 = arith.constant 0 : index
    %68 = vector.load %arg9[%c0_30, %c0_31] : memref<8x128xf32, #tpu.memory_space<vmem>>, vector<8x128xf32>
    %c0_32 = arith.constant 0 : index
    %c0_33 = arith.constant 0 : index
    %69 = vector.load %arg10[%c0_32, %c0_33] : memref<8x128xf32, #tpu.memory_space<vmem>>, vector<8x128xf32>
    %70 = arith.subf %68, %69 : vector<8x128xf32>
    %71 = math.absf %70 : vector<8x128xf32>
    %cst_34 = arith.constant dense<0.000000e+00> : vector<8xf32>
    %72 = vector.multi_reduction <add>, %71, %cst_34 [1] : vector<8x128xf32> to vector<8xf32>
    %73 = vector.shape_cast %72 : vector<8xf32> to vector<8x1xf32>
    %74 = vector.shape_cast %73 : vector<8x1xf32> to vector<8x1xf32>
    %75 = vector.broadcast %74 : vector<8x1xf32> to vector<8x128xf32>
    %c0_35 = arith.constant 0 : index
    %c0_36 = arith.constant 0 : index
    %76 = vector.load %arg8[%c0_35, %c0_36] : memref<8x128xf32, #tpu.memory_space<vmem>>, vector<8x128xf32>
    tpu.vector_store %arg8[%c0_35, %c0_36], %75 {strides = array<i32>} : memref<8x128xf32, #tpu.memory_space<vmem>>, vector<8x128xf32>,
    return
  }
  func.func @transform_0(%arg0: i32, %arg1: i32) -> (i32, i32) {
    %c0_i32 = arith.constant 0 : i32
    %c0_i32_0 = arith.constant 0 : i32
    return %arg0, %c0_i32 : i32, i32
  }
  func.func @transform_1(%arg0: i32, %arg1: i32) -> (i32, i32) {
    %c0_i32 = arith.constant 0 : i32
    return %arg0, %arg1 : i32, i32
  }
  func.func @transform_2(%arg0: i32, %arg1: i32) -> (i32, i32) {
    %c0_i32 = arith.constant 0 : i32
    %c0_i32_0 = arith.constant 0 : i32
    return %arg0, %c0_i32 : i32, i32
  }
  func.func @transform_3(%arg0: i32, %arg1: i32) -> (i32, i32) {
    %c0_i32 = arith.constant 0 : i32
    return %arg0, %arg1 : i32, i32
  }
  func.func @transform_4(%arg0: i32, %arg1: i32) -> (i32, i32) {
    %c0_i32 = arith.constant 0 : i32
    %c0_i32_0 = arith.constant 0 : i32
    %c0_i32_1 = arith.constant 0 : i32
    return %c0_i32, %c0_i32_0 : i32, i32
  }
  func.func @transform_5(%arg0: i32, %arg1: i32) -> (i32, i32) {
    %c0_i32 = arith.constant 0 : i32
    %c0_i32_0 = arith.constant 0 : i32
    %c0_i32_1 = arith.constant 0 : i32
    return %c0_i32, %c0_i32_0 : i32, i32
  }
  func.func @transform_6(%arg0: i32, %arg1: i32) -> (i32, i32) {
    %c0_i32 = arith.constant 0 : i32
    %c0_i32_0 = arith.constant 0 : i32
    return %arg0, %c0_i32 : i32, i32
  }
}

</mosaic_0001>

<bundles_post_ra>
// kernel: tpu_custom_call.1
= control target key start
LH: loop header
LB: loop body
LE: loop exit
PB: predicated region body
PF: predicated region fallthrough
CT: control target
= control target key end

     0   :  { %s14120_s0 = inlined_call_operand.hbm [shape: f32[24,128], index: 0, kind: input, shape index: {}]   ;;  %s14121_s1 = inlined_call_operand.hbm [shape: f32[24,128], index: 1, kind: input, shape index: {}]   ;;  %s14122_s2 = inlined_call_operand.hbm [shape: f32[24,128], index: 2, kind: input, shape index: {}]   ;;  %s14123_s3 = inlined_call_operand.hbm [shape: f32[24,128], index: 3, kind: input, shape index: {}]   ;;  %s14124_s4 = inlined_call_operand.vmem [shape: s32[1,128], index: 4, kind: input, shape index: {}]   ;;  %s14125_s5 = inlined_call_operand.vmem [shape: s32[1,128], index: 5, kind: input, shape index: {}]   ;;  %s14126_s6 = inlined_call_operand.hbm [shape: f32[24,128], index: 6, kind: output, shape index: {}]  }
   0x1   :  { %14568 = sst [smem:[#allocation281_spill]] %s14121_s1 }
   0x2   :  { %11 = vsyncpa [#allocation5], 0 }
   0x3   :  { %13 = vsyncpa [#allocation5 + $0x1], 0 }
   0x4   :  { %14 = vsyncpa [#allocation8], 0 }
   0x5   :  { %16 = vsyncpa [#allocation8 + $0x1], 0 }
   0x6   :  { %17 = vsyncpa [#allocation11], 0 }
   0x7   :  { %19 = vsyncpa [#allocation11 + $0x1], 0 }
   0x8   :  { %20 = vsyncpa [#allocation6], 0 }
   0x9   :  { %22 = vsyncpa [#allocation6 + $0x1], 0  ;;  %s7518_s21 = smov 0   ;;  %s7520_s22 = smov 0  }
   0xa   :  { %s7522_s23 = smov 0   ;;  %s7524_s24 = smov 0  }
   0xb   :  { %s7526_s25 = smov 0   ;;  %s7528_s26 = smov 0  }
   0xc LB: > { %14569 = sst [smem:[#allocation17_spill]] %s7454_s21  ;;  %s7549_s27 = sadd.s32 4294967295, %s7474_s26   ;;  %s7474_s26 = sphi %s7528_s26, %s28_s26   ;;  %s7470_s25 = sphi %s7526_s25, %s16100_s25   ;;  %s7466_s24 = sphi %s7524_s24, %s16099_s24   ;;  %s7462_s23 = sphi %s7522_s23, %s16098_s23   ;;  %s7458_s22 = sphi %s7520_s22, %s16102_s22   ;;  %s7454_s21 = sphi %s7518_s21, %s16101_s21  }
   0xd   : > { %14570 = sst [smem:[#allocation18_spill]] %s7462_s23  ;;  %s7159_s28 = sadd.s32 4294967294, %s7474_s26  }
   0xe   : > { %14571 = sst [smem:[#allocation19_spill]] %s7470_s25  ;;  %s40_s29 = sadd.s32 1, %s7470_s25 }
   0xf   : > { %s47_s30 = sadd.s32 1, %s7462_s23  ;;  %p42_p0 = scmp.ge.s32.totalorder %s40_s29, 3 }
  0x10   : > { %p54_p1 = scmp.ne.s32.totalorder %s7462_s23, %s7458_s22  ;;  %p55_p2 = scmp.eq.s32.totalorder %s7474_s26, 0 }
  0x11   : > { %p60_p3 = scmp.ne.s32.totalorder %s7458_s22, %s7454_s21  ;;  %s16104_s29 = smov (%p42_p0, %s40_s29), 0 }
  0x12   : > { %14572 = sst [smem:[#allocation20_spill]] %s16104_s29  ;;  %p7561_p4 = por %p55_p2, %p54_p1 }
  0x13   : > { %p61_p5 = scmp.eq.s32.totalorder %s7549_s27, 0  ;;  %s44_s8 = ssub.s32 %s7470_s25, %s16104_s29 }
  0x14   : > { %p208_p6 = scmp.eq.s32.totalorder %s7549_s27, 2  ;;  %p45_p7 = scmp.eq.s32.totalorder %s44_s8, 0 }
  0x15   : > { %p7569_p8 = por %p61_p5, %p60_p3  ;;  %p214_p10 = scmp.eq.s32.totalorder %s7159_s28, 2 }
  0x16   : > { %p7573_p9 = por %p208_p6, %p54_p1  ;;  %p7209_p12 = scmp.lt.s32.totalorder %s7474_s26, 3 }
  0x17   : > { %s7578_s11 = scalar_select %p45_p7, %s7462_s23, %s47_s30  }
  0x18   : > { %p7580_p11 = por %p214_p10, %p60_p3  ;;  %s7586_s13 = sand.u32 1, %s7462_s23  }
  0x19   : > { %14576 = sst [smem:[#allocation21_spill]] %s7578_s11  ;;  %s7589_s14 = sshll.u32 %s7586_s13, 3 }
  0x1a   : > { %s14577_s12 = scalar_select %p7580_p11, 1, 0 }
  0x1b   : > { %s7592_s15 = sshll.u32 %s7470_s25, 7  ;;  %p7596_p13 = pnand %p7209_p12, %p7561_p4 }
  0x1c   : > { %14578 = sst [smem:[#allocation22_spill]] %s14577_s12  ;;  %s258_s17 = sand.u32 1, %s7474_s26  }
  0x1d   : > { %s14580_s1 = sld [smem:[#allocation281_spill]]  ;;  %s262_s28 = scalar_lea.vmem [#allocation7], %s7589_s14 }
  0x1e   : > { %s270_s30 = sshll.u32 %s262_s28, 4  ;;  %p7170_p0 = scmp.ge.s32.totalorder %s7474_s26, 1  ;;  %s271_s30 = int_to_ptr.vmem [resolvable:$true] %s270_s30 }
  0x1f   : > { %p312_p1 = scmp.lt.s32.totalorder %s7474_s26, 4  ;;  %s7608_s8 = scalar_lea.sflag [#allocation8], %s258_s17 }
  0x20   : > { %p7276_p2 = pneg %p7596_p13  ;;  %s7287_s7 = scalar_lea.vmem %s271_s30, 128 }
  0x21   : > { %p7288_p3 = scmp.ne.s32.totalorder %s271_s30, %s7287_s7  ;;  %s7476_s29 = smov [#allocation7]  }
  0x22   : > { %s7292_s25 = sshll.u32 %s7476_s29, 4  ;;  %s7293_s25 = int_to_ptr.vmem [resolvable:$false] %s7292_s25 }
  0x23   : > { %s268_s20 = scalar_lea.hbm %s14580_s1, %s7592_s15  ;;  %p7290_p4 = pnand %p7288_p3, %p7276_p2 }
  0x24   : > { %s7294_s18 = scalar_lea.vmem %s7293_s25, 256  ;;  %p7295_p6 = scmp.lt.s32.totalorder %s271_s30, %s7293_s25 }
  0x25   : > { %p7291_p5 = pneg %p7290_p4  ;;  %p7296_p7 = scmp.lt.s32.totalorder %s7294_s18, %s7287_s7 }
  0x27   : > { %p7297_p10 = por %p7296_p7, %p7295_p6 }
  0x29   : > { %p7298_p12 = pnand %p7297_p10, %p7291_p5 }
  0x2b   : > { %7301 = shalt.err (!%p7298_p12)
}
  0x2c   : > { %7198 = dma.hbm_to_vmem [thread:$0]  (!%p7596_p13), %s268_s20, 128, %s271_s30, %s7608_s8  }
  0x2d   : > { %p7622_p3 = pnand %p7170_p0, %p312_p1  ;;  %s249_s19 = scalar_lea.hbm %s14120_s0, %s7592_s15 }
  0x2e   : > { %s244_s28 = scalar_lea.vmem [#allocation4], %s7589_s14  ;;  %s286_s11 = scalar_lea.hbm %s14122_s2, %s7592_s15 }
  0x2f   : > { %s251_s7 = sshll.u32 %s244_s28, 4  ;;  %s241_s23 = scalar_lea.sflag [#allocation5], %s7586_s13  ;;  %s252_s7 = int_to_ptr.vmem [resolvable:$true] %s251_s7 }
  0x30   : > { %s7315_s12 = scalar_lea.vmem %s252_s7, 128  ;;  %s7477_s20 = smov [#allocation4]  }
  0x31   : > { %p7316_p4 = scmp.ne.s32.totalorder %s252_s7, %s7315_s12  ;;  %s7320_s30 = sshll.u32 %s7477_s20, 4  ;;  %s7321_s30 = int_to_ptr.vmem [resolvable:$false] %s7320_s30 }
  0x32   : > { %s7322_s21 = scalar_lea.vmem %s7321_s30, 256  ;;  %p7323_p5 = scmp.lt.s32.totalorder %s252_s7, %s7321_s30 }
  0x33   : > { %p7318_p0 = pnand %p7316_p4, %p7276_p2  ;;  %p7324_p6 = scmp.lt.s32.totalorder %s7322_s21, %s7315_s12 }
  0x35   : > { %p7319_p1 = pneg %p7318_p0  ;;  %p7325_p7 = por %p7324_p6, %p7323_p5 }
  0x37   : > { %p7326_p10 = pnand %p7325_p7, %p7319_p1 }
  0x39   : > { %7329 = shalt.err (!%p7326_p10)
}
  0x3a   : > { %7195 = dma.hbm_to_vmem [thread:$0]  (!%p7596_p13), %s249_s19, 128, %s252_s7, %s241_s23  }
  0x3b   : > { %s281_s1 = scalar_lea.vmem [#allocation9], %s7589_s14  ;;  %s7478_s28 = smov [#allocation9]  }
  0x3c   : > { %s288_s25 = sshll.u32 %s281_s1, 4  ;;  %s7348_s18 = sshll.u32 %s7478_s28, 4  ;;  %s289_s25 = int_to_ptr.vmem [resolvable:$true] %s288_s25  ;;  %s7349_s18 = int_to_ptr.vmem [resolvable:$false] %s7348_s18 }
  0x3d   : > { %s7343_s17 = scalar_lea.vmem %s289_s25, 128  ;;  %s7350_s21 = scalar_lea.vmem %s7349_s18, 256 }
  0x3e   : > { %p7344_p12 = scmp.ne.s32.totalorder %s289_s25, %s7343_s17  ;;  %p7351_p1 = scmp.lt.s32.totalorder %s289_s25, %s7349_s18 }
  0x3f   : > { %p7352_p5 = scmp.lt.s32.totalorder %s7350_s21, %s7343_s17 }
  0x40   : > { %p7346_p4 = pnand %p7344_p12, %p7276_p2 }
  0x41   : > { %p7353_p6 = por %p7352_p5, %p7351_p1 }
  0x42   : > { %p7347_p0 = pneg %p7346_p4 }
  0x44   : > { %p7354_p7 = pnand %p7353_p6, %p7347_p0 }
  0x46   : > { %7357 = shalt.err (!%p7354_p7)
}
  0x47   : > { %7201 = dma.hbm_to_vmem [thread:$0]  (!%p7596_p13), %s286_s11, 128, %s289_s25, %s7608_s8  }
  0x48   : > { %s305_s20 = scalar_lea.hbm %s14123_s3, %s7592_s15  ;;  %s299_s30 = scalar_lea.vmem [#allocation10], %s7589_s14 }
  0x49   : > { %s307_s1 = sshll.u32 %s299_s30, 4  ;;  %s296_s17 = scalar_lea.sflag [#allocation11], %s7586_s13  ;;  %s308_s1 = int_to_ptr.vmem [resolvable:$true] %s307_s1 }
  0x4a   : > { %s7371_s28 = scalar_lea.vmem %s308_s1, 128  ;;  %s7479_s18 = smov [#allocation10]  }
  0x4b   : > { %p7372_p10 = scmp.ne.s32.totalorder %s308_s1, %s7371_s28  ;;  %s7376_s21 = sshll.u32 %s7479_s18, 4  ;;  %s7377_s21 = int_to_ptr.vmem [resolvable:$false] %s7376_s21 }
  0x4c   : > { %s7378_s23 = scalar_lea.vmem %s7377_s21, 256  ;;  %p7379_p0 = scmp.lt.s32.totalorder %s308_s1, %s7377_s21 }
  0x4d   : > { %p7374_p12 = pnand %p7372_p10, %p7276_p2  ;;  %p7380_p1 = scmp.lt.s32.totalorder %s7378_s23, %s7371_s28 }
  0x4f   : > { %p7375_p4 = pneg %p7374_p12  ;;  %p7381_p5 = por %p7380_p1, %p7379_p0 }
  0x51   : > { %p7382_p6 = pnand %p7381_p5, %p7375_p4 }
  0x53   : > { %7385 = shalt.err (!%p7382_p6)
}
  0x54   : > { %7204 = dma.hbm_to_vmem [thread:$0]  (!%p7596_p13), %s305_s20, 128, %s308_s1, %s296_s17  }
  0x55   : > { %316 = sbr.rel (%p7622_p3) target bundleno = 2030 (0x7ee), region = 44 }
  0x5a   : > { %s7667_s11 = sand.u32 1, %s7458_s22  }
  0x5b   : > { %s7670_s13 = sshll.u32 %s7667_s11, 3  ;;  %s319_s14 = scalar_lea.sflag [#allocation5], %s7667_s11 }
  0x5c   : > { %s322_s15 = scalar_lea.vmem [#allocation4], %s7670_s13 }
  0x5d   : > { %7437 = dma.done.wait (%p7569_p8), %s319_s14, 128  }
  0x5e   : > { %7439 = vsyncadd (%p7569_p8), %s319_s14, 4294967168  ;;  %s327_s16 = sand.u32 1, %s7549_s27   ;;  %s331_s29 = scalar_lea.vmem [#allocation7], %s7670_s13 }
  0x5f   : > { %s328_s8 = scalar_lea.sflag [#allocation8], %s327_s16 }
  0x60   : > { %7441 = dma.done.wait (%p7569_p8), %s328_s8, 256  }
  0x61   : > { %7443 = vsyncadd (%p7569_p8), %s328_s8, 4294967040  ;;  %s340_s25 = scalar_lea.vmem [#allocation9], %s7670_s13  ;;  %s346_s12 = scalar_lea.sflag [#allocation11], %s7667_s11 }
  0x62   : > { %s349_s19 = scalar_lea.vmem [#allocation10], %s7670_s13 }
  0x63   : > { %7445 = dma.done.wait (%p7569_p8), %s346_s12, 128  }
  0x64   : > { %7447 = vsyncadd (%p7569_p8), %s346_s12, 4294967168  ;;  %v14138_v0 = vlaneseq  ;;  %v7480_v1 = vmov 1966171168   ;;  %v7697_v6 = vld [vmem:[%s331_s29] sm:$0xff]  ;;  %v7699_v7 = vld [vmem:[%s322_s15] sm:$0xff]  ;;  %s392_s20 = scalar_lea.vmem [#allocation12], %s7670_s13 }
  0x65   : > { %v989_v2 = vunpack.c.l.s4 %v7480_v1  ;;  %v987_v8 = vcombine.high %v7699_v7, %v7699_v7  ;;  %v4276_v10 = vld [vmem:[%s340_s25] sm:$0xff]  ;;  %s7012_s30 = sshll.u32 %s392_s20, 4  ;;  %s7179_s1 = sshll.u32 %s7466_s24, 7  ;;  %s14076_s30 = int_to_ptr.vmem [resolvable:$true] %s7012_s30 }
  0x66   : > { %v7692_v3 = vshrl.u32 %v14138_v0, 7  ;;  %v4278_v12 = vcombine.high %v4276_v10, %v4276_v10  ;;  %s7010_s18 = scalar_lea.hbm %s14126_s6, %s7179_s1  ;;  %s6999_s21 = scalar_lea.sflag [#allocation6], %s7667_s11 }
  0x67   : > { %v990_v5 = vunpack.c.0.s8 %v989_v2  ;;  %s7386_s23 = scalar_lea.vmem %s14076_s30, 128  ;;  %s7482_s13 = smov [#allocation12]  }
  0x68   : > { %14582 = vst [vmem:[#allocation23_spill] sm:$0xff] %v7692_v3  ;;  %v7695_v4 = vsub.s32 0, %v7692_v3  ;;  %v14137_v21 = vsub.s32 1, %v7692_v3  ;;  %v14136_v23 = vsub.s32 2, %v7692_v3  ;;  %v14135_v25 = vsub.s32 3, %v7692_v3  ;;  %p7387_p8 = scmp.ne.s32.totalorder %s14076_s30, %s7386_s23  ;;  %s7390_s14 = sshll.u32 %s7482_s13, 4  ;;  %s7391_s14 = int_to_ptr.vmem [resolvable:$false] %s7390_s14 }
  0x69   : > { %v7704_v9 = vsub.s32 %v990_v5, %v7692_v3  ;;  %v14134_v31 = vsub.s32 4, %v7692_v3  ;;  %v14133_v49 = vsub.s32 5, %v7692_v3  ;;  %s7392_s24 = scalar_lea.vmem %s7391_s14, 256  ;;  %p7393_p3 = scmp.lt.s32.totalorder %s14076_s30, %s7391_s14 }
  0x6a   : > { %v452_v11 = vrot.slane %v7697_v6, %v7695_v4  ;;  %v519_v22 = vrot.slane %v7697_v6, %v14137_v21  ;;  %v586_v24 = vrot.slane %v7697_v6, %v14136_v23  ;;  %v653_v26 = vrot.slane %v7697_v6, %v14135_v25  ;;  %p7388_p13 = pnand %p7387_p8, %p7573_p9  ;;  %p7394_p7 = scmp.lt.s32.totalorder %s7392_s24, %s7386_s23 }
  0x6b   : > { %14583 = vst [vmem:[#allocation24_spill] sm:$0xff] %v7704_v9  ;;  %v1001_v13 = vrot.slane %v987_v8, %v7704_v9  ;;  %v4292_v14 = vrot.slane %v4278_v12, %v7704_v9  ;;  %v720_v34 = vrot.slane %v7697_v6, %v14134_v31  ;;  %v787_v52 = vrot.slane %v7697_v6, %v14133_v49 }
  0x6c   : > { %462 = vbcast.lane.b32.xlu1 %v452_v11, 272  ;;  %454 = vbcast.lane.b32.xlu0 %v452_v11, 256  ;;  %v14132_v8 = vsub.s32 6, %v7692_v3  ;;  %v14147_v21 = vsub.s32 7, %v7692_v3  ;;  %p7389_p2 = pneg %p7388_p13  ;;  %p7395_p10 = por %p7394_p7, %p7393_p3 }
  0x6d   : > { %v1003_v15 = vcombine.high %v1001_v13, %v1001_v13  ;;  %v7713_v16 = vrot.slane %v1001_v13, %v7704_v9  ;;  %v4294_v17 = vcombine.high %v4292_v14, %v4292_v14  ;;  %v7716_v18 = vrot.slane %v4292_v14, %v7704_v9 }
  0x6e   : > { %v854_v12 = vrot.slane %v7697_v6, %v14132_v8  ;;  %p7396_p12 = pnand %p7395_p10, %p7389_p2 }
  0x6f   : > { %14584 = vst [vmem:[#allocation25_spill] sm:$0xff] %v7713_v16  ;;  %14585 = vst [vmem:[#allocation26_spill] sm:$0xff] %v7716_v18  ;;  %v7719_v19 = vrot.slane %v1003_v15, %v7704_v9  ;;  %v7722_v20 = vrot.slane %v4294_v17, %v7704_v9  ;;  %v921_v18 = vrot.slane %v7697_v6, %v14147_v21 }
  0x70   : > { %466 = vbcast.lane.b32.xlu1 %v452_v11, 280  ;;  %458 = vbcast.lane.b32.xlu0 %v452_v11, 264 }
  0x71   : > { %14586 = vst [vmem:[#allocation27_spill] sm:$0xff] %v7719_v19  ;;  %14587 = vst [vmem:[#allocation28_spill] sm:$0xff] %v7722_v20 }
  0x74   : > { %474 = vbcast.lane.b32.xlu1 %v452_v11, 296  ;;  %470 = vbcast.lane.b32.xlu0 %v452_v11, 288 }
  0x78   : > { %482 = vbcast.lane.b32.xlu1 %v452_v11, 312  ;;  %478 = vbcast.lane.b32.xlu0 %v452_v11, 304 }
  0x7c   : > { %490 = vbcast.lane.b32.xlu1 %v452_v11, 328  ;;  %486 = vbcast.lane.b32.xlu0 %v452_v11, 320 }
  0x80   : > { %498 = vbcast.lane.b32.xlu1 %v452_v11, 344  ;;  %494 = vbcast.lane.b32.xlu0 %v452_v11, 336 }
  0x84   : > { %506 = vbcast.lane.b32.xlu1 %v452_v11, 360  ;;  %502 = vbcast.lane.b32.xlu0 %v452_v11, 352 }
  0x88   : > { %514 = vbcast.lane.b32.xlu1 %v452_v11, 376  ;;  %510 = vbcast.lane.b32.xlu0 %v452_v11, 368 }
  0x8c   : > { %525 = vbcast.lane.b32.xlu1 %v519_v22, 264  ;;  %521 = vbcast.lane.b32.xlu0 %v519_v22, 256 }
  0x90   : > { %533 = vbcast.lane.b32.xlu1 %v519_v22, 280  ;;  %529 = vbcast.lane.b32.xlu0 %v519_v22, 272 }
  0x94   : > { %541 = vbcast.lane.b32.xlu1 %v519_v22, 296  ;;  %537 = vbcast.lane.b32.xlu0 %v519_v22, 288 }
  0x98   : > { %549 = vbcast.lane.b32.xlu1 %v519_v22, 312  ;;  %545 = vbcast.lane.b32.xlu0 %v519_v22, 304 }
  0x9c   : > { %557 = vbcast.lane.b32.xlu1 %v519_v22, 328  ;;  %553 = vbcast.lane.b32.xlu0 %v519_v22, 320 }
  0xa0   : > { %565 = vbcast.lane.b32.xlu1 %v519_v22, 344  ;;  %561 = vbcast.lane.b32.xlu0 %v519_v22, 336 }
  0xa4   : > { %573 = vbcast.lane.b32.xlu1 %v519_v22, 360  ;;  %569 = vbcast.lane.b32.xlu0 %v519_v22, 352 }
  0xa8   : > { %581 = vbcast.lane.b32.xlu1 %v519_v22, 376  ;;  %577 = vbcast.lane.b32.xlu0 %v519_v22, 368 }
  0xac   : > { %592 = vbcast.lane.b32.xlu1 %v586_v24, 264  ;;  %588 = vbcast.lane.b32.xlu0 %v586_v24, 256 }
  0xb0   : > { %600 = vbcast.lane.b32.xlu1 %v586_v24, 280  ;;  %596 = vbcast.lane.b32.xlu0 %v586_v24, 272 }
  0xb4   : > { %608 = vbcast.lane.b32.xlu1 %v586_v24, 296  ;;  %604 = vbcast.lane.b32.xlu0 %v586_v24, 288 }
  0xb8   : > { %616 = vbcast.lane.b32.xlu1 %v586_v24, 312  ;;  %612 = vbcast.lane.b32.xlu0 %v586_v24, 304 }
  0xbc   : > { %624 = vbcast.lane.b32.xlu1 %v586_v24, 328  ;;  %620 = vbcast.lane.b32.xlu0 %v586_v24, 320 }
  0xc0   : > { %632 = vbcast.lane.b32.xlu1 %v586_v24, 344  ;;  %628 = vbcast.lane.b32.xlu0 %v586_v24, 336 }
  0xc4   : > { %640 = vbcast.lane.b32.xlu1 %v586_v24, 360  ;;  %636 = vbcast.lane.b32.xlu0 %v586_v24, 352 }
  0xc8   : > { %648 = vbcast.lane.b32.xlu1 %v586_v24, 376  ;;  %644 = vbcast.lane.b32.xlu0 %v586_v24, 368 }
  0xcc   : > { %659 = vbcast.lane.b32.xlu1 %v653_v26, 264  ;;  %655 = vbcast.lane.b32.xlu0 %v653_v26, 256 }
  0xd0   : > { %667 = vbcast.lane.b32.xlu1 %v653_v26, 280  ;;  %663 = vbcast.lane.b32.xlu0 %v653_v26, 272 }
  0xd4   : > { %675 = vbcast.lane.b32.xlu1 %v653_v26, 296  ;;  %671 = vbcast.lane.b32.xlu0 %v653_v26, 288 }
  0xd8   : > { %683 = vbcast.lane.b32.xlu1 %v653_v26, 312  ;;  %679 = vbcast.lane.b32.xlu0 %v653_v26, 304 }
  0xdc   : > { %691 = vbcast.lane.b32.xlu1 %v653_v26, 328  ;;  %687 = vbcast.lane.b32.xlu0 %v653_v26, 320 }
  0xde   : > { %v7736_v27 = vpop.permute.xlu0 %454  ;;  %v7738_v28 = vpop.permute.xlu1 %462 }
  0xdf   : > { %14588 = vst [vmem:[#allocation29_spill] sm:$0xff] %v7736_v27  ;;  %14589 = vst [vmem:[#allocation30_spill] sm:$0xff] %v7738_v28 }
  0xe0   : > { %699 = vbcast.lane.b32.xlu1 %v653_v26, 344  ;;  %695 = vbcast.lane.b32.xlu0 %v653_v26, 336 }
  0xe2   : > { %v7740_v29 = vpop.permute.xlu1 %466  ;;  %v7742_v30 = vpop.permute.xlu0 %458 }
  0xe3   : > { %14590 = vst [vmem:[#allocation31_spill] sm:$0xff] %v7740_v29  ;;  %14591 = vst [vmem:[#allocation32_spill] sm:$0xff] %v7742_v30 }
  0xe4   : > { %707 = vbcast.lane.b32.xlu1 %v653_v26, 360  ;;  %703 = vbcast.lane.b32.xlu0 %v653_v26, 352 }
  0xe6   : > { %v7745_v32 = vpop.permute.xlu1 %474  ;;  %v7747_v33 = vpop.permute.xlu0 %470 }
  0xe7   : > { %14592 = vst [vmem:[#allocation33_spill] sm:$0xff] %v7745_v32  ;;  %14593 = vst [vmem:[#allocation34_spill] sm:$0xff] %v7747_v33 }
  0xe8   : > { %715 = vbcast.lane.b32.xlu1 %v653_v26, 376  ;;  %711 = vbcast.lane.b32.xlu0 %v653_v26, 368 }
  0xea   : > { %v7752_v35 = vpop.permute.xlu1 %482  ;;  %v7754_v36 = vpop.permute.xlu0 %478 }
  0xeb   : > { %14594 = vst [vmem:[#allocation35_spill] sm:$0xff] %v7752_v35  ;;  %14595 = vst [vmem:[#allocation36_spill] sm:$0xff] %v7754_v36 }
  0xec   : > { %726 = vbcast.lane.b32.xlu1 %v720_v34, 264  ;;  %722 = vbcast.lane.b32.xlu0 %v720_v34, 256 }
  0xee   : > { %v7756_v37 = vpop.permute.xlu1 %490  ;;  %v7758_v38 = vpop.permute.xlu0 %486 }
  0xef   : > { %14596 = vst [vmem:[#allocation37_spill] sm:$0xff] %v7756_v37  ;;  %14597 = vst [vmem:[#allocation38_spill] sm:$0xff] %v7758_v38 }
  0xf0   : > { %734 = vbcast.lane.b32.xlu1 %v720_v34, 280  ;;  %730 = vbcast.lane.b32.xlu0 %v720_v34, 272 }
  0xf2   : > { %v7760_v39 = vpop.permute.xlu1 %498  ;;  %v7762_v40 = vpop.permute.xlu0 %494 }
  0xf3   : > { %14598 = vst [vmem:[#allocation39_spill] sm:$0xff] %v7762_v40 }
  0xf4   : > { %742 = vbcast.lane.b32.xlu1 %v720_v34, 296  ;;  %738 = vbcast.lane.b32.xlu0 %v720_v34, 288 }
  0xf6   : > { %v7764_v41 = vpop.permute.xlu1 %506  ;;  %v7766_v42 = vpop.permute.xlu0 %502 }
  0xf7   : > { %14599 = vst [vmem:[#allocation40_spill] sm:$0xff] %v7766_v42 }
  0xf8   : > { %750 = vbcast.lane.b32.xlu1 %v720_v34, 312  ;;  %746 = vbcast.lane.b32.xlu0 %v720_v34, 304 }
  0xfa   : > { %v7768_v43 = vpop.permute.xlu1 %514  ;;  %v7770_v44 = vpop.permute.xlu0 %510 }
  0xfc   : > { %758 = vbcast.lane.b32.xlu1 %v720_v34, 328  ;;  %754 = vbcast.lane.b32.xlu0 %v720_v34, 320 }
  0xfe   : > { %v7772_v45 = vpop.permute.xlu1 %525  ;;  %v7774_v46 = vpop.permute.xlu0 %521 }
 0x100   : > { %766 = vbcast.lane.b32.xlu1 %v720_v34, 344  ;;  %762 = vbcast.lane.b32.xlu0 %v720_v34, 336 }
 0x102   : > { %v7776_v47 = vpop.permute.xlu1 %533  ;;  %v7778_v48 = vpop.permute.xlu0 %529 }
 0x104   : > { %774 = vbcast.lane.b32.xlu1 %v720_v34, 360  ;;  %770 = vbcast.lane.b32.xlu0 %v720_v34, 352 }
 0x106   : > { %v7781_v50 = vpop.permute.xlu1 %541  ;;  %v7783_v51 = vpop.permute.xlu0 %537 }
 0x108   : > { %782 = vbcast.lane.b32.xlu1 %v720_v34, 376  ;;  %778 = vbcast.lane.b32.xlu0 %v720_v34, 368 }
 0x10a   : > { %v7788_v53 = vpop.permute.xlu1 %549  ;;  %v7790_v54 = vpop.permute.xlu0 %545 }
 0x10c   : > { %793 = vbcast.lane.b32.xlu1 %v787_v52, 264  ;;  %789 = vbcast.lane.b32.xlu0 %v787_v52, 256 }
 0x10e   : > { %v7792_v55 = vpop.permute.xlu1 %557  ;;  %v7794_v56 = vpop.permute.xlu0 %553 }
 0x110   : > { %801 = vbcast.lane.b32.xlu1 %v787_v52, 280  ;;  %797 = vbcast.lane.b32.xlu0 %v787_v52, 272 }
 0x112   : > { %v7796_v57 = vpop.permute.xlu1 %565  ;;  %v7798_v58 = vpop.permute.xlu0 %561 }
 0x113   : > { %14600 = vst [vmem:[#allocation41_spill] sm:$0xff] %v7796_v57 }
 0x114   : > { %809 = vbcast.lane.b32.xlu1 %v787_v52, 296  ;;  %805 = vbcast.lane.b32.xlu0 %v787_v52, 288 }
 0x116   : > { %v7800_v59 = vpop.permute.xlu1 %573  ;;  %v7802_v60 = vpop.permute.xlu0 %569 }
 0x117   : > { %14601 = vst [vmem:[#allocation42_spill] sm:$0xff] %v7800_v59  ;;  %14602 = vst [vmem:[#allocation43_spill] sm:$0xff] %v7802_v60 }
 0x118   : > { %817 = vbcast.lane.b32.xlu1 %v787_v52, 312  ;;  %813 = vbcast.lane.b32.xlu0 %v787_v52, 304 }
 0x11a   : > { %v7804_v61 = vpop.permute.xlu1 %581  ;;  %v7806_v62 = vpop.permute.xlu0 %577 }
 0x11b   : > { %14603 = vst [vmem:[#allocation44_spill] sm:$0xff] %v7804_v61  ;;  %14604 = vst [vmem:[#allocation45_spill] sm:$0xff] %v7806_v62 }
 0x11c   : > { %825 = vbcast.lane.b32.xlu1 %v787_v52, 328  ;;  %821 = vbcast.lane.b32.xlu0 %v787_v52, 320 }
 0x11e   : > { %v7808_v63 = vpop.permute.xlu1 %592  ;;  %v7810_v1 = vpop.permute.xlu0 %588 }
 0x11f   : > { %14605 = vst [vmem:[#allocation46_spill] sm:$0xff] %v7808_v63  ;;  %14606 = vst [vmem:[#allocation47_spill] sm:$0xff] %v7810_v1 }
 0x120   : > { %833 = vbcast.lane.b32.xlu1 %v787_v52, 344  ;;  %829 = vbcast.lane.b32.xlu0 %v787_v52, 336 }
 0x122   : > { %v7812_v2 = vpop.permute.xlu1 %600  ;;  %v7814_v5 = vpop.permute.xlu0 %596 }
 0x123   : > { %14607 = vst [vmem:[#allocation48_spill] sm:$0xff] %v7812_v2  ;;  %14608 = vst [vmem:[#allocation49_spill] sm:$0xff] %v7814_v5 }
 0x124   : > { %841 = vbcast.lane.b32.xlu1 %v787_v52, 360  ;;  %837 = vbcast.lane.b32.xlu0 %v787_v52, 352 }
 0x126   : > { %v7817_v10 = vpop.permute.xlu1 %608  ;;  %v7819_v11 = vpop.permute.xlu0 %604 }
 0x127   : > { %14609 = vst [vmem:[#allocation50_spill] sm:$0xff] %v7817_v10  ;;  %14610 = vst [vmem:[#allocation51_spill] sm:$0xff] %v7819_v11 }
 0x128   : > { %849 = vbcast.lane.b32.xlu1 %v787_v52, 376  ;;  %845 = vbcast.lane.b32.xlu0 %v787_v52, 368 }
 0x12a   : > { %v7824_v13 = vpop.permute.xlu1 %616  ;;  %v7826_v14 = vpop.permute.xlu0 %612 }
 0x12b   : > { %14611 = vst [vmem:[#allocation52_spill] sm:$0xff] %v7824_v13  ;;  %14612 = vst [vmem:[#allocation53_spill] sm:$0xff] %v7826_v14 }
 0x12c   : > { %860 = vbcast.lane.b32.xlu1 %v854_v12, 264  ;;  %856 = vbcast.lane.b32.xlu0 %v854_v12, 256 }
 0x12e   : > { %v7828_v15 = vpop.permute.xlu1 %624  ;;  %v7830_v17 = vpop.permute.xlu0 %620 }
 0x12f   : > { %14613 = vst [vmem:[#allocation54_spill] sm:$0xff] %v7828_v15  ;;  %14614 = vst [vmem:[#allocation55_spill] sm:$0xff] %v7830_v17 }
 0x130   : > { %868 = vbcast.lane.b32.xlu1 %v854_v12, 280  ;;  %864 = vbcast.lane.b32.xlu0 %v854_v12, 272 }
 0x132   : > { %v7832_v22 = vpop.permute.xlu1 %632  ;;  %v7834_v24 = vpop.permute.xlu0 %628 }
 0x133   : > { %14615 = vst [vmem:[#allocation56_spill] sm:$0xff] %v7832_v22  ;;  %14616 = vst [vmem:[#allocation57_spill] sm:$0xff] %v7834_v24 }
 0x134   : > { %876 = vbcast.lane.b32.xlu1 %v854_v12, 296  ;;  %872 = vbcast.lane.b32.xlu0 %v854_v12, 288 }
 0x136   : > { %v7836_v26 = vpop.permute.xlu1 %640  ;;  %v7838_v34 = vpop.permute.xlu0 %636 }
 0x137   : > { %14617 = vst [vmem:[#allocation58_spill] sm:$0xff] %v7836_v26  ;;  %14618 = vst [vmem:[#allocation59_spill] sm:$0xff] %v7838_v34 }
 0x138   : > { %884 = vbcast.lane.b32.xlu1 %v854_v12, 312  ;;  %880 = vbcast.lane.b32.xlu0 %v854_v12, 304 }
 0x13a   : > { %v7840_v52 = vpop.permute.xlu1 %648  ;;  %v7842_v8 = vpop.permute.xlu0 %644 }
 0x13b   : > { %14619 = vst [vmem:[#allocation60_spill] sm:$0xff] %v7840_v52  ;;  %14620 = vst [vmem:[#allocation61_spill] sm:$0xff] %v7842_v8  ;;  %v14663_v8 = vmov 0  }
 0x13c   : > { %892 = vbcast.lane.b32.xlu1 %v854_v12, 328  ;;  %888 = vbcast.lane.b32.xlu0 %v854_v12, 320 }
 0x13e   : > { %v7844_v49 = vpop.permute.xlu1 %659  ;;  %v7846_v31 = vpop.permute.xlu0 %655 }
 0x13f   : > { %14621 = vst [vmem:[#allocation62_spill] sm:$0xff] %v7844_v49  ;;  %14622 = vst [vmem:[#allocation63_spill] sm:$0xff] %v7846_v31  ;;  %v401_v31 = vadd.s32 32, %v7692_v3 }
 0x140   : > { %900 = vbcast.lane.b32.xlu1 %v854_v12, 344  ;;  %896 = vbcast.lane.b32.xlu0 %v854_v12, 336 }
 0x142   : > { %v7848_v25 = vpop.permute.xlu1 %667  ;;  %v7850_v23 = vpop.permute.xlu0 %663 }
 0x143   : > { %14623 = vst [vmem:[#allocation64_spill] sm:$0xff] %v7848_v25  ;;  %14624 = vst [vmem:[#allocation65_spill] sm:$0xff] %v7850_v23 }
 0x144   : > { %908 = vbcast.lane.b32.xlu1 %v854_v12, 360  ;;  %904 = vbcast.lane.b32.xlu0 %v854_v12, 352 }
 0x146   : > { %v7853_v0 = vpop.permute.xlu1 %675  ;;  %v7855_v20 = vpop.permute.xlu0 %671 }
 0x147   : > { %14625 = vst [vmem:[#allocation66_spill] sm:$0xff] %v7853_v0  ;;  %14626 = vst [vmem:[#allocation67_spill] sm:$0xff] %v7855_v20 }
 0x148   : > { %916 = vbcast.lane.b32.xlu1 %v854_v12, 376  ;;  %912 = vbcast.lane.b32.xlu0 %v854_v12, 368 }
 0x14a   : > { %v7860_v19 = vpop.permute.xlu1 %683  ;;  %v7862_v16 = vpop.permute.xlu0 %679 }
 0x14b   : > { %14627 = vst [vmem:[#allocation68_spill] sm:$0xff] %v7860_v19  ;;  %14628 = vst [vmem:[#allocation69_spill] sm:$0xff] %v7862_v16  ;;  %v400_v16 = vadd.s32 24, %v7692_v3 }
 0x14c   : > { %927 = vbcast.lane.b32.xlu1 %v921_v18, 264  ;;  %923 = vbcast.lane.b32.xlu0 %v921_v18, 256 }
 0x14e   : > { %v7864_v25 = vpop.permute.xlu1 %691  ;;  %v7866_v23 = vpop.permute.xlu0 %687 }
 0x14f   : > { %14629 = vst [vmem:[#allocation70_spill] sm:$0xff] %v7864_v25  ;;  %14630 = vst [vmem:[#allocation71_spill] sm:$0xff] %v7866_v23 }
 0x150   : > { %935 = vbcast.lane.b32.xlu1 %v921_v18, 280  ;;  %931 = vbcast.lane.b32.xlu0 %v921_v18, 272 }
 0x152   : > { %v7868_v0 = vpop.permute.xlu1 %699  ;;  %v7870_v20 = vpop.permute.xlu0 %695 }
 0x153   : > { %14631 = vst [vmem:[#allocation72_spill] sm:$0xff] %v7868_v0  ;;  %14632 = vst [vmem:[#allocation73_spill] sm:$0xff] %v7870_v20 }
 0x154   : > { %943 = vbcast.lane.b32.xlu1 %v921_v18, 296  ;;  %939 = vbcast.lane.b32.xlu0 %v921_v18, 288 }
 0x156   : > { %v7872_v6 = vpop.permute.xlu1 %707  ;;  %v7874_v12 = vpop.permute.xlu0 %703 }
 0x157   : > { %14633 = vst [vmem:[#allocation74_spill] sm:$0xff] %v7872_v6  ;;  %14634 = vst [vmem:[#allocation75_spill] sm:$0xff] %v7874_v12 }
 0x158   : > { %951 = vbcast.lane.b32.xlu1 %v921_v18, 312  ;;  %947 = vbcast.lane.b32.xlu0 %v921_v18, 304 }
 0x15a   : > { %v7876_v21 = vpop.permute.xlu1 %715  ;;  %v7878_v19 = vpop.permute.xlu0 %711 }
 0x15b   : > { %14635 = vst [vmem:[#allocation76_spill] sm:$0xff] %v7876_v21  ;;  %14636 = vst [vmem:[#allocation77_spill] sm:$0xff] %v7878_v19  ;;  %v7894_v21 = vrot.slane %v7699_v7, %v7704_v9 }
 0x15c   : > { %959 = vbcast.lane.b32.xlu1 %v921_v18, 328  ;;  %955 = vbcast.lane.b32.xlu0 %v921_v18, 320 }
 0x15e   : > { %v7880_v25 = vpop.permute.xlu1 %726  ;;  %v7882_v23 = vpop.permute.xlu0 %722 }
 0x15f   : > { %14637 = vst [vmem:[#allocation78_spill] sm:$0xff] %v7880_v25  ;;  %14638 = vst [vmem:[#allocation79_spill] sm:$0xff] %v7882_v23 }
 0x160   : > { %967 = vbcast.lane.b32.xlu1 %v921_v18, 344  ;;  %963 = vbcast.lane.b32.xlu0 %v921_v18, 336 }
 0x162   : > { %v7884_v0 = vpop.permute.xlu1 %734  ;;  %v7886_v20 = vpop.permute.xlu0 %730 }
 0x163   : > { %14639 = vst [vmem:[#allocation80_spill] sm:$0xff] %v7884_v0  ;;  %14640 = vst [vmem:[#allocation81_spill] sm:$0xff] %v7886_v20  ;;  %v7902_v0 = vrot.slane %v7894_v21, %v7704_v9 }
 0x164   : > { %975 = vbcast.lane.b32.xlu1 %v921_v18, 360  ;;  %971 = vbcast.lane.b32.xlu0 %v921_v18, 352 }
 0x166   : > { %v7888_v6 = vpop.permute.xlu1 %742  ;;  %v7890_v12 = vpop.permute.xlu0 %738 }
 0x167   : > { %14641 = vst [vmem:[#allocation82_spill] sm:$0xff] %v7888_v6  ;;  %14642 = vst [vmem:[#allocation83_spill] sm:$0xff] %v7890_v12  ;;  %v7910_v6 = vrot.slane %v7902_v0, %v7695_v4 }
 0x168   : > { %983 = vbcast.lane.b32.xlu1 %v921_v18, 376  ;;  %979 = vbcast.lane.b32.xlu0 %v921_v18, 368  ;;  %v14647_v18 = vlaneseq }
 0x169   : > { %vm1204_vm1 = vcmp.eq.f32.partialorder %v7910_v6, %v7736_v27  ;;  %vm1076_vm2 = vcmp.lt.f32.partialorder %v7910_v6, %v7736_v27  ;;  %vm1205_vm5 = vcmp.eq.f32.partialorder %v7910_v6, %v7742_v30  ;;  %vm1077_vm7 = vcmp.lt.f32.partialorder %v7910_v6, %v7742_v30 }
 0x16a   : > { %v7896_v25 = vpop.permute.xlu1 %750  ;;  %v7898_v23 = vpop.permute.xlu0 %746  ;;  %v7913_v12 = vand.u32 127, %v14647_v18  ;;  %v399_v18 = vadd.s32 16, %v7692_v3  ;;  %vm1206_vm10 = vcmp.eq.f32.partialorder %v7910_v6, %v7738_v28  ;;  %vm1078_vm12 = vcmp.lt.f32.partialorder %v7910_v6, %v7738_v28 }
 0x16b   : > { %14643 = vst [vmem:[#allocation84_spill] sm:$0xff] %v7896_v25  ;;  %14644 = vst [vmem:[#allocation85_spill] sm:$0xff] %v7898_v23  ;;  %v14650_v23 = vmov 0  ;;  %vm1207_vm15 = vcmp.eq.f32.partialorder %v7910_v6, %v7740_v29  ;;  %v14664_v28 = vmov 0 }
 0x16c   : > { %vm7921_vm0 = vcmp.lt.s32.totalorder %v7913_v12, %v7692_v3  ;;  %vm7951_vm9 = vcmp.lt.s32.totalorder %v7913_v12, %v399_v18  ;;  %vm7966_vm14 = vcmp.lt.s32.totalorder %v7913_v12, %v400_v16  ;;  %v14660_v18 = vmov 0 }
 0x16d   : > { %v14651_v23 = vsel %vm7921_vm0, 4294967295, %v14650_v23  ;;  %vm1364_vm3 = vmand %vm1204_vm1, %vm7921_vm0  ;;  %v14661_v18 = vsel %vm7966_vm14, 4294967295, %v14660_v18  ;;  %v402_v16 = vadd.s32 40, %v7692_v3 }
 0x16e   : > { %v7904_v20 = vpop.permute.xlu0 %754  ;;  %v7906_v19 = vpop.permute.xlu1 %758  ;;  %vm1492_vm6 = vmor %vm1076_vm2, %vm1364_vm3  ;;  %vm1079_vm2 = vcmp.lt.f32.partialorder %v7910_v6, %v7740_v29 }
 0x16f   : > { %14645 = vst [vmem:[#allocation86_spill] sm:$0xff] %v7904_v20  ;;  %14646 = vst [vmem:[#allocation87_spill] sm:$0xff] %v7906_v19  ;;  %v398_v20 = vadd.s32 8, %v7692_v3 }
 0x170   : > { %vm1366_vm13 = vmand %vm1206_vm10, %vm7951_vm9 }
 0x171   : > { %vm7936_vm4 = vcmp.lt.s32.totalorder %v7913_v12, %v398_v20  ;;  %v14657_v20 = vmov 0  ;;  %vm1494_vm1 = vmor %vm1078_vm12, %vm1366_vm13  ;;  %vm1209_vm12 = vcmp.eq.f32.partialorder %v7910_v6, %v7745_v32 }
 0x172   : > { %v7915_v7 = vpop.permute.xlu0 %762  ;;  %v7917_v25 = vpop.permute.xlu1 %766  ;;  %vm1365_vm8 = vmand %vm1205_vm5, %vm7936_vm4  ;;  %v14658_v20 = vsel %vm7951_vm9, 4294967295, %v14657_v20  ;;  %vm7982_vm5 = vcmp.lt.s32.totalorder %v7913_v12, %v401_v31  ;;  %v1622_v29 = vsel %vm1494_vm1, 1, %v14663_v8  ;;  %v14667_v31 = vmov 0 }
 0x173   : > { %14648 = vst [vmem:[#allocation88_spill] sm:$0xff] %v7915_v7  ;;  %14649 = vst [vmem:[#allocation89_spill] sm:$0xff] %v7917_v25  ;;  %v14653_v25 = vmov 0  ;;  %v14665_v28 = vsel %vm7982_vm5, 4294967295, %v14664_v28  ;;  %v1772_v22 = vand.u32 65535, %v1622_v29 }
 0x174   : > { %v14654_v25 = vsel %vm7936_vm4, 4294967295, %v14653_v25  ;;  %vm1493_vm11 = vmor %vm1077_vm7, %vm1365_vm8  ;;  %vm1080_vm8 = vcmp.lt.f32.partialorder %v7910_v6, %v7747_v33 }
 0x175   : > { %v1621_v26 = vsel %vm1493_vm11, 1, %v14663_v8  ;;  %vm1367_vm3 = vmand %vm1207_vm15, %vm7966_vm14  ;;  %vm7996_vm11 = vcmp.lt.s32.totalorder %v7913_v12, %v402_v16  ;;  %vm1081_vm15 = vcmp.lt.f32.partialorder %v7910_v6, %v7745_v32  ;;  %v1773_v16 = vshrl.u32 %v1622_v29, 16 }
 0x176   : > { %v7928_v19 = vpop.permute.xlu0 %770  ;;  %v7942_v7 = vpop.permute.xlu1 %774  ;;  %v1760_v34 = vand.u32 65535, %v1621_v26  ;;  %vm1495_vm7 = vmor %vm1079_vm2, %vm1367_vm3  ;;  %v14668_v31 = vsel %vm7996_vm11, 4294967295, %v14667_v31  ;;  %v1761_v27 = vshrl.u32 %v1621_v26, 16  ;;  %vm1210_vm3 = vcmp.eq.f32.partialorder %v7910_v6, %v7754_v36 }
 0x177   : > { %14652 = vst [vmem:[#allocation90_spill] sm:$0xff] %v7928_v19  ;;  %14655 = vst [vmem:[#allocation91_spill] sm:$0xff] %v7942_v7  ;;  %v14175_v7 = vmov 0   ;;  %v14674_v29 = vmov 0 }
 0x178   : > { %v1620_v49 = vsel %vm1492_vm6, 1, %v14175_v7  ;;  %vm1208_vm6 = vcmp.eq.f32.partialorder %v7910_v6, %v7747_v33  ;;  %v1623_v33 = vsel %vm1495_vm7, 1, %v14663_v8  ;;  %vm1369_vm1 = vmand %vm1209_vm12, %vm7996_vm11  ;;  %vm1082_vm7 = vcmp.lt.f32.partialorder %v7910_v6, %v7754_v36 }
 0x179   : > { %v1748_v7 = vand.u32 65535, %v1620_v49  ;;  %vm1368_vm10 = vmand %vm1208_vm6, %vm7982_vm5  ;;  %vm1211_vm12 = vcmp.eq.f32.partialorder %v7910_v6, %v7752_v35 }
 0x17a   : > { %v7948_v19 = vpop.permute.xlu0 %778  ;;  %vm1496_vm13 = vmor %vm1080_vm8, %vm1368_vm10 }
 0x17b   : > { %14656 = vst [vmem:[#allocation92_spill] sm:$0xff] %v7948_v19  ;;  %v7963_v19 = vpop.permute.xlu1 %782  ;;  %v1624_v24 = vsel %vm1496_vm13, 1, %v14663_v8  ;;  %vm1497_vm6 = vmor %vm1081_vm15, %vm1369_vm1  ;;  %vm1083_vm15 = vcmp.lt.f32.partialorder %v7910_v6, %v7752_v35 }
 0x17c   : > { %14659 = vst [vmem:[#allocation93_spill] sm:$0xff] %v7963_v19  ;;  %v1749_v19 = vshrl.u32 %v1620_v49, 16  ;;  %v403_v49 = vadd.s32 48, %v7692_v3 }
 0x17e   : > { %v7973_v52 = vpop.permute.xlu0 %789  ;;  %vm8011_vm2 = vcmp.lt.s32.totalorder %v7913_v12, %v403_v49  ;;  %v1775_v49 = vcvt.s32.f32 %v1773_v16 }
 0x17f   : > { %14662 = vst [vmem:[#allocation94_spill] sm:$0xff] %v7973_v52  ;;  %v1750_v52 = vcvt.s32.f32 %v1748_v7  ;;  %v7988_v30 = vpop.permute.xlu1 %793  ;;  %vm1370_vm8 = vmand %vm1210_vm3, %vm8011_vm2 }
 0x180   : > { %14666 = vst [vmem:[#allocation95_spill] sm:$0xff] %v7988_v30  ;;  %v1751_v30 = vcvt.s32.f32 %v1749_v19  ;;  %v14670_v19 = vmov 0  ;;  %vm1498_vm13 = vmor %vm1082_vm7, %vm1370_vm8  ;;  %vm1084_vm8 = vcmp.lt.f32.partialorder %v7910_v6, %v7758_v38 }
 0x181   : > { %v14671_v19 = vsel %vm8011_vm2, 4294967295, %v14670_v19  ;;  %v1626_v35 = vsel %vm1498_vm13, 1, %v14663_v8  ;;  %vm1213_vm13 = vcmp.eq.f32.partialorder %v7910_v6, %v7756_v37 }
 0x182   : > { %v8001_v7 = vpop.permute.xlu0 %797 }
 0x183   : > { %14669 = vst [vmem:[#allocation96_spill] sm:$0xff] %v8001_v7  ;;  %v8016_v26 = vpop.permute.xlu1 %801  ;;  %v1784_v7 = vand.u32 65535, %v1623_v33 }
 0x184   : > { %14672 = vst [vmem:[#allocation97_spill] sm:$0xff] %v8016_v26  ;;  %v1625_v26 = vsel %vm1497_vm6, 1, %v14663_v8  ;;  %vm1212_vm6 = vcmp.eq.f32.partialorder %v7910_v6, %v7758_v38 }
 0x186   : > { %v8020_v32 = vpop.permute.xlu0 %805 }
 0x187   : > { %1752 = vadd.xlane.f32.xlu0 %v1750_v52  ;;  %v1762_v52 = vcvt.s32.f32 %v1760_v34  ;;  %v404_v34 = vadd.s32 56, %v7692_v3  ;;  %14673 = vst [vmem:[#allocation98_spill] sm:$0xff] %v8020_v32  ;;  %v8035_v32 = vpop.permute.xlu1 %809 }
 0x188   : > { %14676 = vst [vmem:[#allocation99_spill] sm:$0xff] %v8035_v32  ;;  %v1808_v32 = vand.u32 65535, %v1625_v26 }
 0x189   : > { %vm8028_vm10 = vcmp.lt.s32.totalorder %v7913_v12, %v404_v34 }
 0x18a   : > { %v14675_v29 = vsel %vm8028_vm10, 4294967295, %v14674_v29  ;;  %vm1371_vm1 = vmand %vm1211_vm12, %vm8028_vm10  ;;  %v8048_v34 = vpop.permute.xlu0 %813 }
 0x18b   : > { %1764 = vadd.xlane.f32.xlu0 %v1762_v52  ;;  %v1774_v52 = vcvt.s32.f32 %v1772_v22  ;;  %v1785_v22 = vshrl.u32 %v1623_v33, 16  ;;  %v14677_v33 = vmov 0  ;;  %14679 = vst [vmem:[#allocation100_spill] sm:$0xff] %v8048_v34  ;;  %vm1499_vm7 = vmor %vm1083_vm15, %vm1371_vm1  ;;  %v1820_v34 = vand.u32 65535, %v1626_v35 }
 0x18c   : > { %1754 = vadd.xlane.f32.xlu1 %v1751_v30  ;;  %v1763_v30 = vcvt.s32.f32 %v1761_v27  ;;  %v405_v27 = vadd.s32 64, %v7692_v3  ;;  %v1627_v36 = vsel %vm1499_vm7, 1, %v14663_v8  ;;  %vm1085_vm1 = vcmp.lt.f32.partialorder %v7910_v6, %v7756_v37 }
 0x18d   : > { %v1787_v16 = vcvt.s32.f32 %v1785_v22  ;;  %v407_v22 = vadd.s32 80, %v7692_v3  ;;  %vm1214_vm7 = vcmp.eq.f32.partialorder %v7910_v6, %v7762_v40 }
 0x18e   : > { %vm8043_vm3 = vcmp.lt.s32.totalorder %v7913_v12, %v405_v27  ;;  %v14680_v27 = vmov 0  ;;  %v8067_v38 = vpop.permute.xlu0 %821 }
 0x18f   : > { %1766 = vadd.xlane.f32.xlu0 %v1763_v30  ;;  %v1786_v30 = vcvt.s32.f32 %v1784_v7  ;;  %v14678_v33 = vsel %vm8043_vm3, 4294967295, %v14677_v33  ;;  %v406_v7 = vadd.s32 72, %v7692_v3  ;;  %vm1372_vm12 = vmand %vm1212_vm6, %vm8043_vm3  ;;  %14684 = vst [vmem:[#allocation103_spill] sm:$0xff] %v8067_v38  ;;  %vm8075_vm3 = vcmp.lt.s32.totalorder %v7913_v12, %v407_v22 }
 0x190   : > { %1776 = vadd.xlane.f32.xlu1 %v1774_v52  ;;  %v1796_v52 = vand.u32 65535, %v1624_v24  ;;  %vm1500_vm15 = vmor %vm1084_vm8, %vm1372_vm12  ;;  %vm1086_vm12 = vcmp.lt.f32.partialorder %v7910_v6, %v7762_v40  ;;  %v14688_v22 = vmov 0 }
 0x191   : > { %vm8058_vm10 = vcmp.lt.s32.totalorder %v7913_v12, %v406_v7 }
 0x192   : > { %v14681_v27 = vsel %vm8058_vm10, 4294967295, %v14680_v27  ;;  %vm1373_vm6 = vmand %vm1213_vm13, %vm8058_vm10 }
 0x193   : > { %1778 = vadd.xlane.f32.xlu0 %v1775_v49  ;;  %v1798_v49 = vcvt.s32.f32 %v1796_v52  ;;  %14682 = vst [vmem:[#allocation101_spill] sm:$0xff] %v14681_v27  ;;  %v1809_v52 = vshrl.u32 %v1625_v26, 16  ;;  %v14685_v26 = vmov 0  ;;  %vm1501_vm8 = vmor %vm1085_vm1, %vm1373_vm6  ;;  %vm1087_vm6 = vcmp.lt.f32.partialorder %v7910_v6, %v7760_v39 }
 0x194   : > { %1788 = vadd.xlane.f32.xlu1 %v1786_v30  ;;  %v1797_v30 = vshrl.u32 %v1624_v24, 16  ;;  %v8063_v24 = vpop.permute.xlu1 %817  ;;  %v14686_v26 = vsel %vm8075_vm3, 4294967295, %v14685_v26  ;;  %vm1374_vm13 = vmand %vm1214_vm7, %vm8075_vm3  ;;  %v1629_v40 = vsel %vm1501_vm8, 1, %v14663_v8  ;;  %vm1216_vm8 = vcmp.eq.f32.partialorder %v7910_v6, %v7766_v42 }
 0x195   : > { %14683 = vst [vmem:[#allocation102_spill] sm:$0xff] %v8063_v24  ;;  %v1811_v7 = vcvt.s32.f32 %v1809_v52  ;;  %v1628_v24 = vsel %vm1500_vm15, 1, %v14663_v8  ;;  %v1833_v52 = vshrl.u32 %v1627_v36, 16  ;;  %vm1215_vm15 = vcmp.eq.f32.partialorder %v7910_v6, %v7760_v39  ;;  %vm1502_vm1 = vmor %vm1086_vm12, %vm1374_vm13 }
 0x196   : > { %v1630_v15 = vsel %vm1502_vm1, 1, %v14663_v8  ;;  %vm1088_vm13 = vcmp.lt.f32.partialorder %v7910_v6, %v7766_v42  ;;  %vm1217_vm1 = vcmp.eq.f32.partialorder %v7910_v6, %v7764_v41 }
 0x197   : > { %1790 = vadd.xlane.f32.xlu0 %v1787_v16  ;;  %v1799_v16 = vcvt.s32.f32 %v1797_v30  ;;  %v1822_v30 = vcvt.s32.f32 %v1820_v34  ;;  %v8095_v34 = vpop.permute.xlu0 %829 }
 0x198   : > { %1800 = vadd.xlane.f32.xlu1 %v1798_v49  ;;  %v1810_v49 = vcvt.s32.f32 %v1808_v32  ;;  %v408_v32 = vadd.s32 88, %v7692_v3  ;;  %v8082_v38 = vpop.permute.xlu1 %825  ;;  %14690 = vst [vmem:[#allocation105_spill] sm:$0xff] %v8095_v34  ;;  %v1856_v34 = vand.u32 65535, %v1629_v40 }
 0x199   : > { %14687 = vst [vmem:[#allocation104_spill] sm:$0xff] %v8082_v38  ;;  %v1844_v38 = vand.u32 65535, %v1628_v24 }
 0x19a   : > { %vm8090_vm10 = vcmp.lt.s32.totalorder %v7913_v12, %v408_v32  ;;  %v410_v32 = vadd.s32 104, %v7692_v3 }
 0x19b   : > { %1802 = vadd.xlane.f32.xlu0 %v1799_v16  ;;  %v1821_v16 = vshrl.u32 %v1626_v35, 16  ;;  %v14689_v22 = vsel %vm8090_vm10, 4294967295, %v14688_v22  ;;  %v409_v35 = vadd.s32 96, %v7692_v3  ;;  %vm1375_vm7 = vmand %vm1215_vm15, %vm8090_vm10  ;;  %v8114_v37 = vpop.permute.xlu0 %837 }
 0x19c   : > { %1812 = vadd.xlane.f32.xlu1 %v1810_v49  ;;  %v1832_v49 = vand.u32 65535, %v1627_v36  ;;  %v14691_v36 = vmov 0  ;;  %14694 = vst [vmem:[#allocation107_spill] sm:$0xff] %v8114_v37  ;;  %vm1503_vm12 = vmor %vm1087_vm6, %vm1375_vm7  ;;  %vm8127_vm10 = vcmp.lt.s32.totalorder %v7913_v12, %v410_v32  ;;  %vm1089_vm7 = vcmp.lt.f32.partialorder %v7910_v6, %v7764_v41 }
 0x19d   : > { %vm8105_vm3 = vcmp.lt.s32.totalorder %v7913_v12, %v409_v35  ;;  %v1002_v35 = vcombine.high %v7894_v21, %v7894_v21  ;;  %v1857_v21 = vshrl.u32 %v1629_v40, 16  ;;  %v14698_v40 = vmov 0 }
 0x19e   : > { %v14692_v36 = vsel %vm8105_vm3, 4294967295, %v14691_v36  ;;  %vm1376_vm15 = vmand %vm1216_vm8, %vm8105_vm3 }
 0x19f   : > { %1814 = vadd.xlane.f32.xlu0 %v1811_v7  ;;  %v1823_v7 = vcvt.s32.f32 %v1821_v16  ;;  %v8110_v16 = vpop.permute.xlu1 %833  ;;  %v8138_v42 = vrot.slane %v1002_v35, %v7704_v9  ;;  %vm1504_vm6 = vmor %vm1088_vm13, %vm1376_vm15  ;;  %v8150_v32 = vpop.permute.xlu0 %845  ;;  %vm1090_vm15 = vcmp.lt.f32.partialorder %v7910_v6, %v7770_v44 }
 0x1a0   : > { %1824 = vadd.xlane.f32.xlu1 %v1822_v30  ;;  %v1834_v30 = vcvt.s32.f32 %v1832_v49  ;;  %14693 = vst [vmem:[#allocation106_spill] sm:$0xff] %v8110_v16  ;;  %v1835_v49 = vcvt.s32.f32 %v1833_v52  ;;  %v1631_v16 = vsel %vm1503_vm12, 1, %v14663_v8  ;;  %vm1377_vm8 = vmand %vm1217_vm1, %vm8127_vm10  ;;  %vm1218_vm12 = vcmp.eq.f32.partialorder %v7910_v6, %v7770_v44 }
 0x1a1   : > { %14700 = vst [vmem:[#allocation109_spill] sm:$0xff] %v8150_v32  ;;  %v1632_v9 = vsel %vm1504_vm6, 1, %v14663_v8  ;;  %vm1505_vm13 = vmor %vm1089_vm7, %vm1377_vm8  ;;  %vm1219_vm6 = vcmp.eq.f32.partialorder %v7910_v6, %v7768_v43  ;;  %vm1091_vm8 = vcmp.lt.f32.partialorder %v7910_v6, %v7768_v43 }
 0x1a3   : > { %1826 = vadd.xlane.f32.xlu0 %v1823_v7  ;;  %v1846_v7 = vcvt.s32.f32 %v1844_v38  ;;  %v14695_v38 = vmov 0  ;;  %v8134_v37 = vpop.permute.xlu1 %841  ;;  %v8172_v32 = vpop.permute.xlu0 %856 }
 0x1a4   : > { %1836 = vadd.xlane.f32.xlu1 %v1834_v30  ;;  %v1845_v30 = vshrl.u32 %v1628_v24, 16  ;;  %v14696_v38 = vsel %vm8127_vm10, 4294967295, %v14695_v38  ;;  %v411_v24 = vadd.s32 112, %v7692_v3  ;;  %14697 = vst [vmem:[#allocation108_spill] sm:$0xff] %v8134_v37  ;;  %14705 = vst [vmem:[#allocation112_spill] sm:$0xff] %v8172_v32  ;;  %v1633_v37 = vsel %vm1505_vm13, 1, %v14663_v8 }
 0x1a6   : > { %v1847_v52 = vcvt.s32.f32 %v1845_v30  ;;  %vm8145_vm3 = vcmp.lt.s32.totalorder %v7913_v12, %v411_v24  ;;  %v1859_v30 = vcvt.s32.f32 %v1857_v21  ;;  %v8157_v24 = vrot.slane %v8138_v42, %v7695_v4 }
 0x1a7   : > { %1838 = vadd.xlane.f32.xlu0 %v1835_v49  ;;  %v1858_v49 = vcvt.s32.f32 %v1856_v34  ;;  %v14699_v40 = vsel %vm8145_vm3, 4294967295, %v14698_v40  ;;  %v412_v34 = vadd.s32 120, %v7692_v3  ;;  %vm1378_vm1 = vmand %vm1218_vm12, %vm8145_vm3  ;;  %v14701_v21 = vmov 0  ;;  %v8188_v6 = vpop.permute.xlu0 %864 }
 0x1a8   : > { %1848 = vadd.xlane.f32.xlu1 %v1846_v7  ;;  %v1868_v7 = vand.u32 65535, %v1630_v15  ;;  %v1892_v3 = vand.u32 65535, %v1632_v9  ;;  %vm1506_vm7 = vmor %vm1090_vm15, %vm1378_vm1  ;;  %vm1220_vm3 = vcmp.eq.f32.partialorder %v8157_v24, %v7774_v46  ;;  %vm1092_vm15 = vcmp.lt.f32.partialorder %v8157_v24, %v7774_v46  ;;  %14707 = vst [vmem:[#allocation114_spill] sm:$0xff] %v8188_v6 }
 0x1a9   : > { %vm8164_vm10 = vcmp.lt.s32.totalorder %v7913_v12, %v412_v34  ;;  %v1893_v34 = vshrl.u32 %v1632_v9, 16  ;;  %v1634_v32 = vsel %vm1506_vm7, 1, %v14663_v8  ;;  %vm1380_vm1 = vmand %vm1220_vm3, %vm7921_vm0 }
 0x1aa   : > { %v1870_v35 = vcvt.s32.f32 %v1868_v7  ;;  %v14702_v21 = vsel %vm8164_vm10, 4294967295, %v14701_v21  ;;  %v1881_v7 = vshrl.u32 %v1631_v16, 16  ;;  %vm1379_vm12 = vmand %vm1219_vm6, %vm8164_vm10  ;;  %vm1221_vm6 = vcmp.eq.f32.partialorder %v8157_v24, %v7772_v45 }
 0x1ab   : > { %1850 = vadd.xlane.f32.xlu0 %v1847_v52  ;;  %v1869_v52 = vshrl.u32 %v1630_v15, 16  ;;  %14703 = vst [vmem:[#allocation110_spill] sm:$0xff] %v14702_v21  ;;  %v8168_v15 = vpop.permute.xlu1 %849  ;;  %vm1507_vm13 = vmor %vm1091_vm8, %vm1379_vm12  ;;  %vm1093_vm8 = vcmp.lt.f32.partialorder %v8157_v24, %v7772_v45  ;;  %vm1222_vm12 = vcmp.eq.f32.partialorder %v8157_v24, %v7778_v48  ;;  %v8201_v6 = vpop.permute.xlu0 %872 }
 0x1ac   : > { %1860 = vadd.xlane.f32.xlu1 %v1858_v49  ;;  %v1880_v49 = vand.u32 65535, %v1631_v16  ;;  %14704 = vst [vmem:[#allocation111_spill] sm:$0xff] %v8168_v15  ;;  %v1883_v12 = vcvt.s32.f32 %v1881_v7  ;;  %v1894_v16 = vcvt.s32.f32 %v1892_v3  ;;  %v1905_v7 = vshrl.u32 %v1633_v37, 16  ;;  %vm1508_vm7 = vmor %vm1092_vm15, %vm1380_vm1 }
 0x1ad   : > { %v1895_v3 = vcvt.s32.f32 %v1893_v34  ;;  %vm1381_vm3 = vmand %vm1221_vm6, %vm7936_vm4  ;;  %v1917_v34 = vshrl.u32 %v1634_v32, 16  ;;  %14709 = vst [vmem:[#allocation116_spill] sm:$0xff] %v8201_v6  ;;  %vm1094_vm15 = vcmp.lt.f32.partialorder %v8157_v24, %v7778_v48  ;;  %vm1223_vm6 = vcmp.eq.f32.partialorder %v8157_v24, %v7776_v47 }
 0x1ae   : > { %vm1382_vm1 = vmand %vm1222_vm12, %vm7951_vm9  ;;  %vm1224_vm12 = vcmp.eq.f32.partialorder %v8157_v24, %v7783_v51 }
 0x1af   : > { %1862 = vadd.xlane.f32.xlu0 %v1859_v30  ;;  %v1871_v30 = vcvt.s32.f32 %v1869_v52  ;;  %v1904_v52 = vand.u32 65535, %v1633_v37  ;;  %v1907_v37 = vcvt.s32.f32 %v1905_v7 }
 0x1b0   : > { %1872 = vadd.xlane.f32.xlu1 %v1870_v35  ;;  %v1882_v35 = vcvt.s32.f32 %v1880_v49  ;;  %v8181_v49 = vpop.permute.xlu1 %860 }
 0x1b1   : > { %14706 = vst [vmem:[#allocation113_spill] sm:$0xff] %v8181_v49  ;;  %v1906_v9 = vcvt.s32.f32 %v1904_v52 }
 0x1b3   : > { %1874 = vadd.xlane.f32.xlu0 %v1871_v30  ;;  %v1916_v30 = vand.u32 65535, %v1634_v32 }
 0x1b4   : > { %1884 = vadd.xlane.f32.xlu1 %v1882_v35  ;;  %v1635_v35 = vsel %vm1507_vm13, 1, %v14663_v8  ;;  %vm1509_vm13 = vmor %vm1093_vm8, %vm1381_vm3  ;;  %vm1095_vm8 = vcmp.lt.f32.partialorder %v8157_v24, %v7776_v47 }
 0x1b5   : > { %v1928_v52 = vand.u32 65535, %v1635_v35  ;;  %v1929_v7 = vshrl.u32 %v1635_v35, 16  ;;  %v1637_v6 = vsel %vm1509_vm13, 1, %v14663_v8  ;;  %vm1383_vm3 = vmand %vm1223_vm6, %vm7966_vm14  ;;  %v8217_v35 = vpop.permute.xlu0 %880  ;;  %vm1225_vm6 = vcmp.eq.f32.partialorder %v8157_v24, %v7781_v50 }
 0x1b6   : > { %14711 = vst [vmem:[#allocation118_spill] sm:$0xff] %v8217_v35  ;;  %vm1511_vm13 = vmor %vm1095_vm8, %vm1383_vm3  ;;  %vm1097_vm8 = vcmp.lt.f32.partialorder %v8157_v24, %v7781_v50 }
 0x1b7   : > { %1886 = vadd.xlane.f32.xlu0 %v1883_v12  ;;  %v8197_v12 = vpop.permute.xlu1 %868  ;;  %v1930_v32 = vcvt.s32.f32 %v1928_v52  ;;  %v1952_v52 = vand.u32 65535, %v1637_v6  ;;  %vm1385_vm3 = vmand %vm1225_vm6, %vm7996_vm11  ;;  %vm1227_vm6 = vcmp.eq.f32.partialorder %v8157_v24, %v7788_v53 }
 0x1b8   : > { %1896 = vadd.xlane.f32.xlu1 %v1894_v16  ;;  %14708 = vst [vmem:[#allocation115_spill] sm:$0xff] %v8197_v12  ;;  %v1918_v16 = vcvt.s32.f32 %v1916_v30 }
 0x1b9   : > { %v8230_v35 = vpop.permute.xlu0 %888 }
 0x1ba   : > { %14713 = vst [vmem:[#allocation120_spill] sm:$0xff] %v8230_v35 }
 0x1bb   : > { %1898 = vadd.xlane.f32.xlu0 %v1895_v3  ;;  %v1636_v3 = vsel %vm1508_vm7, 1, %v14663_v8  ;;  %v8210_v12 = vpop.permute.xlu1 %876  ;;  %vm1510_vm7 = vmor %vm1094_vm15, %vm1382_vm1  ;;  %vm1096_vm15 = vcmp.lt.f32.partialorder %v8157_v24, %v7783_v51 }
 0x1bc   : > { %1908 = vadd.xlane.f32.xlu1 %v1906_v9  ;;  %v1919_v9 = vcvt.s32.f32 %v1917_v34  ;;  %v1940_v30 = vand.u32 65535, %v1636_v3  ;;  %14710 = vst [vmem:[#allocation117_spill] sm:$0xff] %v8210_v12  ;;  %v1941_v34 = vshrl.u32 %v1636_v3, 16  ;;  %v1638_v12 = vsel %vm1510_vm7, 1, %v14663_v8  ;;  %vm1384_vm1 = vmand %vm1224_vm12, %vm7982_vm5 }
 0x1bd   : > { %v1954_v3 = vcvt.s32.f32 %v1952_v52  ;;  %vm1512_vm7 = vmor %vm1096_vm15, %vm1384_vm1  ;;  %vm1226_vm12 = vcmp.eq.f32.partialorder %v8157_v24, %v7790_v54  ;;  %vm1098_vm15 = vcmp.lt.f32.partialorder %v8157_v24, %v7790_v54 }
 0x1be   : > { %v1640_v35 = vsel %vm1512_vm7, 1, %v14663_v8  ;;  %vm1386_vm1 = vmand %vm1226_vm12, %vm8011_vm2  ;;  %vm1228_vm2 = vcmp.eq.f32.partialorder %v8157_v24, %v7794_v56 }
 0x1bf   : > { %1910 = vadd.xlane.f32.xlu0 %v1907_v37  ;;  %v1931_v37 = vcvt.s32.f32 %v1929_v7  ;;  %v1953_v7 = vshrl.u32 %v1637_v6, 16  ;;  %vm1514_vm7 = vmor %vm1098_vm15, %vm1386_vm1  ;;  %vm1100_vm15 = vcmp.lt.f32.partialorder %v8157_v24, %v7794_v56  ;;  %vm14719_vm1 = vnez %v14678_v33 }
 0x1c0   : > { %1920 = vadd.xlane.f32.xlu1 %v1918_v16  ;;  %v1942_v16 = vcvt.s32.f32 %v1940_v30  ;;  %v1964_v30 = vand.u32 65535, %v1638_v12 }
 0x1c1   : > { %v1955_v6 = vcvt.s32.f32 %v1953_v7  ;;  %v8246_v7 = vpop.permute.xlu0 %896 }
 0x1c2   : > { %14715 = vst [vmem:[#allocation122_spill] sm:$0xff] %v8246_v7 }
 0x1c3   : > { %1922 = vadd.xlane.f32.xlu0 %v1919_v9  ;;  %v8226_v9 = vpop.permute.xlu1 %884 }
 0x1c4   : > { %1932 = vadd.xlane.f32.xlu1 %v1930_v32  ;;  %14712 = vst [vmem:[#allocation119_spill] sm:$0xff] %v8226_v9  ;;  %v1943_v32 = vcvt.s32.f32 %v1941_v34  ;;  %v1965_v34 = vshrl.u32 %v1638_v12, 16 }
 0x1c5   : > { %v8259_v7 = vpop.permute.xlu0 %904 }
 0x1c6   : > { %v1967_v12 = vcvt.s32.f32 %v1965_v34  ;;  %v1989_v34 = vshrl.u32 %v1640_v35, 16  ;;  %14718 = vst [vmem:[#allocation124_spill] sm:$0xff] %v8259_v7 }
 0x1c7   : > { %1934 = vadd.xlane.f32.xlu0 %v1931_v37  ;;  %v1639_v37 = vsel %vm1511_vm13, 1, %v14663_v8  ;;  %v8239_v9 = vpop.permute.xlu1 %892  ;;  %vm1513_vm13 = vmor %vm1097_vm8, %vm1385_vm3  ;;  %vm1099_vm8 = vcmp.lt.f32.partialorder %v8157_v24, %v7788_v53  ;;  %vm14716_vm3 = vnez %v14675_v29 }
 0x1c8   : > { %1944 = vadd.xlane.f32.xlu1 %v1942_v16  ;;  %v1966_v16 = vcvt.s32.f32 %v1964_v30  ;;  %v1976_v52 = vand.u32 65535, %v1639_v37  ;;  %14714 = vst [vmem:[#allocation121_spill] sm:$0xff] %v8239_v9  ;;  %v1988_v30 = vand.u32 65535, %v1640_v35  ;;  %v1641_v9 = vsel %vm1513_vm13, 1, %v14663_v8  ;;  %vm1387_vm12 = vmand %vm1227_vm6, %vm14716_vm3 }
 0x1c9   : > { %vm1515_vm13 = vmor %vm1099_vm8, %vm1387_vm12  ;;  %vm1229_vm3 = vcmp.eq.f32.partialorder %v8157_v24, %v7792_v55  ;;  %vm1101_vm8 = vcmp.lt.f32.partialorder %v8157_v24, %v7792_v55  ;;  %vm14721_vm12 = vnez %v14681_v27 }
 0x1ca   : > { %vm1388_vm6 = vmand %vm1228_vm2, %vm14719_vm1  ;;  %v1643_v7 = vsel %vm1515_vm13, 1, %v14663_v8  ;;  %vm1230_vm1 = vcmp.eq.f32.partialorder %v8157_v24, %v7798_v58 }
 0x1cb   : > { %1946 = vadd.xlane.f32.xlu0 %v1943_v32  ;;  %v1977_v32 = vshrl.u32 %v1639_v37, 16  ;;  %vm1389_vm2 = vmand %vm1229_vm3, %vm14721_vm12  ;;  %vm1231_vm12 = vcmp.eq.f32.partialorder %v8157_v24, %v7796_v57 }
 0x1cc   : > { %1956 = vadd.xlane.f32.xlu1 %v1954_v3  ;;  %v1978_v3 = vcvt.s32.f32 %v1976_v52  ;;  %v2000_v52 = vand.u32 65535, %v1641_v9  ;;  %vm1517_vm13 = vmor %vm1101_vm8, %vm1389_vm2  ;;  %vm1103_vm8 = vcmp.lt.f32.partialorder %v8157_v24, %v7796_v57 }
 0x1cd   : > { %v1979_v37 = vcvt.s32.f32 %v1977_v32  ;;  %v2001_v32 = vshrl.u32 %v1641_v9, 16  ;;  %v8275_v9 = vpop.permute.xlu0 %912 }
 0x1ce   : > { %v2002_v35 = vcvt.s32.f32 %v2000_v52  ;;  %14722 = vst [vmem:[#allocation126_spill] sm:$0xff] %v8275_v9  ;;  %v2024_v52 = vand.u32 65535, %v1643_v7 }
 0x1cf   : > { %1958 = vadd.xlane.f32.xlu0 %v1955_v6  ;;  %v8255_v6 = vpop.permute.xlu1 %900 }
 0x1d0   : > { %1968 = vadd.xlane.f32.xlu1 %v1966_v16  ;;  %14717 = vst [vmem:[#allocation123_spill] sm:$0xff] %v8255_v6  ;;  %v1990_v16 = vcvt.s32.f32 %v1988_v30 }
 0x1d1   : > { %v8288_v9 = vpop.permute.xlu0 %923 }
 0x1d2   : > { %14725 = vst [vmem:[#allocation128_spill] sm:$0xff] %v8288_v9 }
 0x1d3   : > { %1970 = vadd.xlane.f32.xlu0 %v1967_v12  ;;  %v1642_v12 = vsel %vm1514_vm7, 1, %v14663_v8  ;;  %v8268_v6 = vpop.permute.xlu1 %908  ;;  %vm1516_vm7 = vmor %vm1100_vm15, %vm1388_vm6  ;;  %vm1102_vm15 = vcmp.lt.f32.partialorder %v8157_v24, %v7798_v58  ;;  %vm14723_vm6 = vnez %v14686_v26 }
 0x1d4   : > { %1980 = vadd.xlane.f32.xlu1 %v1978_v3  ;;  %v1991_v3 = vcvt.s32.f32 %v1989_v34  ;;  %v2012_v30 = vand.u32 65535, %v1642_v12  ;;  %14720 = vst [vmem:[#allocation125_spill] sm:$0xff] %v8268_v6  ;;  %v2013_v34 = vshrl.u32 %v1642_v12, 16  ;;  %v1644_v6 = vsel %vm1516_vm7, 1, %v14663_v8  ;;  %vm1390_vm3 = vmand %vm1230_vm1, %vm14723_vm6 }
 0x1d5   : > { %v2026_v12 = vcvt.s32.f32 %v2024_v52  ;;  %vm1518_vm7 = vmor %vm1102_vm15, %vm1390_vm3  ;;  %vm14726_vm1 = vnez %v14689_v22  ;;  %vm1232_vm6 = vcmp.eq.f32.partialorder %v8157_v24, %v7802_v60  ;;  %vm1104_vm15 = vcmp.lt.f32.partialorder %v8157_v24, %v7802_v60 }
 0x1d6   : > { %vm1391_vm2 = vmand %vm1231_vm12, %vm14726_vm1  ;;  %v1646_v9 = vsel %vm1518_vm7, 1, %v14663_v8  ;;  %vm14728_vm3 = vnez %v14692_v36  ;;  %vm1233_vm1 = vcmp.eq.f32.partialorder %v8157_v24, %v7800_v59 }
 0x1d7   : > { %1982 = vadd.xlane.f32.xlu0 %v1979_v37  ;;  %v2003_v37 = vcvt.s32.f32 %v2001_v32  ;;  %v2025_v32 = vshrl.u32 %v1643_v7, 16  ;;  %vm1392_vm12 = vmand %vm1232_vm6, %vm14728_vm3  ;;  %vm1105_vm6 = vcmp.lt.f32.partialorder %v8157_v24, %v7800_v59  ;;  %vm1234_vm3 = vcmp.eq.f32.partialorder %v8157_v24, %v7806_v62 }
 0x1d8   : > { %1992 = vadd.xlane.f32.xlu1 %v1990_v16  ;;  %v2014_v16 = vcvt.s32.f32 %v2012_v30  ;;  %v2036_v30 = vand.u32 65535, %v1644_v6  ;;  %vm1520_vm7 = vmor %vm1104_vm15, %vm1392_vm12  ;;  %vm14733_vm15 = vnez %v14699_v40 }
 0x1d9   : > { %v2027_v7 = vcvt.s32.f32 %v2025_v32  ;;  %v8304_v32 = vpop.permute.xlu0 %931  ;;  %vm1394_vm12 = vmand %vm1234_vm3, %vm14733_vm15 }
 0x1da   : > { %14729 = vst [vmem:[#allocation130_spill] sm:$0xff] %v8304_v32  ;;  %v1648_v32 = vsel %vm1520_vm7, 1, %v14663_v8 }
 0x1db   : > { %1994 = vadd.xlane.f32.xlu0 %v1991_v3  ;;  %v8284_v3 = vpop.permute.xlu1 %916 }
 0x1dc   : > { %2004 = vadd.xlane.f32.xlu1 %v2002_v35  ;;  %14724 = vst [vmem:[#allocation127_spill] sm:$0xff] %v8284_v3  ;;  %v2015_v35 = vcvt.s32.f32 %v2013_v34  ;;  %v2037_v34 = vshrl.u32 %v1644_v6, 16 }
 0x1de   : > { %v2039_v6 = vcvt.s32.f32 %v2037_v34 }
 0x1df   : > { %2006 = vadd.xlane.f32.xlu0 %v2003_v37  ;;  %v1645_v37 = vsel %vm1517_vm13, 1, %v14663_v8  ;;  %v8297_v3 = vpop.permute.xlu1 %927  ;;  %vm1519_vm13 = vmor %vm1103_vm8, %vm1391_vm2  ;;  %vm14730_vm8 = vnez %v14696_v38 }
 0x1e0   : > { %2016 = vadd.xlane.f32.xlu1 %v2014_v16  ;;  %v2038_v16 = vcvt.s32.f32 %v2036_v30  ;;  %v2048_v52 = vand.u32 65535, %v1645_v37  ;;  %14727 = vst [vmem:[#allocation129_spill] sm:$0xff] %v8297_v3  ;;  %v2060_v30 = vand.u32 65535, %v1646_v9  ;;  %v1647_v3 = vsel %vm1519_vm13, 1, %v14663_v8  ;;  %vm1393_vm2 = vmand %vm1233_vm1, %vm14730_vm8 }
 0x1e1   : > { %vm1521_vm13 = vmor %vm1105_vm6, %vm1393_vm2  ;;  %vm1106_vm1 = vcmp.lt.f32.partialorder %v8157_v24, %v7806_v62  ;;  %vm1235_vm8 = vcmp.eq.f32.partialorder %v8157_v24, %v7804_v61  ;;  %vm1107_vm6 = vcmp.lt.f32.partialorder %v8157_v24, %v7804_v61 }
 0x1e2   : > { %v2062_v34 = vcvt.s32.f32 %v2060_v30  ;;  %vm1522_vm7 = vmor %vm1106_vm1, %vm1394_vm12 }
 0x1e3   : > { %2018 = vadd.xlane.f32.xlu0 %v2015_v35  ;;  %v2049_v35 = vshrl.u32 %v1645_v37, 16  ;;  %v8315_v37 = vpop.permute.xlu1 %935  ;;  %vm1395_vm3 = vmand %vm1235_vm8, %vm8164_vm10 }
 0x1e4   : > { %2028 = vadd.xlane.f32.xlu1 %v2026_v12  ;;  %v2050_v12 = vcvt.s32.f32 %v2048_v52  ;;  %14731 = vst [vmem:[#allocation131_spill] sm:$0xff] %v8315_v37  ;;  %v2061_v52 = vshrl.u32 %v1646_v9, 16 }
 0x1e6   : > { %v2063_v9 = vcvt.s32.f32 %v2061_v52  ;;  %v2085_v52 = vshrl.u32 %v1648_v32, 16 }
 0x1e7   : > { %2030 = vadd.xlane.f32.xlu0 %v2027_v7  ;;  %v1032_v7 = vcombine.high %v7902_v0, %v7902_v0  ;;  %v8331_v37 = vpop.permute.xlu1 %943 }
 0x1e8   : > { %2040 = vadd.xlane.f32.xlu1 %v2038_v16  ;;  %v2051_v16 = vcvt.s32.f32 %v2049_v35  ;;  %v2073_v35 = vshrl.u32 %v1647_v3, 16  ;;  %14734 = vst [vmem:[#allocation133_spill] sm:$0xff] %v8331_v37  ;;  %v1650_v37 = vsel %vm1522_vm7, 1, %v14663_v8 }
 0x1e9   : > { %v8323_v0 = vrot.slane %v1032_v7, %v7695_v4 }
 0x1ea   : > { %v2075_v7 = vcvt.s32.f32 %v2073_v35 }
 0x1eb   : > { %2042 = vadd.xlane.f32.xlu0 %v2039_v6  ;;  %v2072_v6 = vand.u32 65535, %v1647_v3  ;;  %vm1236_vm2 = vcmp.eq.f32.partialorder %v8323_v0, %v7810_v1  ;;  %vm1108_vm1 = vcmp.lt.f32.partialorder %v8323_v0, %v7810_v1  ;;  %v8347_v24 = vpop.permute.xlu1 %951  ;;  %vm1237_vm12 = vcmp.eq.f32.partialorder %v8323_v0, %v7808_v63  ;;  %v14756_v1 = vld [vmem:[#allocation57_spill] sm:$0xff] }
 0x1ec   : > { %2052 = vadd.xlane.f32.xlu1 %v2050_v12  ;;  %v8319_v12 = vpop.permute.xlu0 %939  ;;  %vm1396_vm8 = vmand %vm1236_vm2, %vm7921_vm0  ;;  %14736 = vst [vmem:[#allocation135_spill] sm:$0xff] %v8347_v24  ;;  %vm1238_vm2 = vcmp.eq.f32.partialorder %v8323_v0, %v7814_v5 }
 0x1ed   : > { %14732 = vst [vmem:[#allocation132_spill] sm:$0xff] %v8319_v12  ;;  %v2074_v30 = vcvt.s32.f32 %v2072_v6  ;;  %v2084_v12 = vand.u32 65535, %v1648_v32  ;;  %vm1524_vm7 = vmor %vm1108_vm1, %vm1396_vm8  ;;  %vm1110_vm1 = vcmp.lt.f32.partialorder %v8323_v0, %v7814_v5 }
 0x1ee   : > { %vm1398_vm8 = vmand %vm1238_vm2, %vm7951_vm9  ;;  %vm1240_vm2 = vcmp.eq.f32.partialorder %v8323_v0, %v7819_v11 }
 0x1ef   : > { %2054 = vadd.xlane.f32.xlu0 %v2051_v16  ;;  %v1649_v16 = vsel %vm1521_vm13, 1, %v14663_v8  ;;  %vm1523_vm13 = vmor %vm1107_vm6, %vm1395_vm3  ;;  %vm1109_vm6 = vcmp.lt.f32.partialorder %v8323_v0, %v7808_v63  ;;  %v8360_v24 = vpop.permute.xlu1 %959 }
 0x1f0   : > { %2064 = vadd.xlane.f32.xlu1 %v2062_v34  ;;  %v8338_v3 = vpop.permute.xlu0 %947  ;;  %v2086_v34 = vcvt.s32.f32 %v2084_v12  ;;  %v2096_v6 = vand.u32 65535, %v1649_v16  ;;  %v2097_v35 = vshrl.u32 %v1649_v16, 16  ;;  %v2087_v12 = vcvt.s32.f32 %v2085_v52  ;;  %vm1397_vm3 = vmand %vm1237_vm12, %vm7936_vm4  ;;  %14738 = vst [vmem:[#allocation137_spill] sm:$0xff] %v8360_v24 }
 0x1f1   : > { %14735 = vst [vmem:[#allocation134_spill] sm:$0xff] %v8338_v3  ;;  %v2109_v52 = vshrl.u32 %v1650_v37, 16  ;;  %vm1239_vm12 = vcmp.eq.f32.partialorder %v8323_v0, %v7812_v2 }
 0x1f2   : > { %v2098_v32 = vcvt.s32.f32 %v2096_v6  ;;  %v2099_v16 = vcvt.s32.f32 %v2097_v35 }
 0x1f3   : > { %2066 = vadd.xlane.f32.xlu0 %v2063_v9  ;;  %v2108_v9 = vand.u32 65535, %v1650_v37  ;;  %v2111_v37 = vcvt.s32.f32 %v2109_v52 }
 0x1f4   : > { %2076 = vadd.xlane.f32.xlu1 %v2074_v30  ;;  %v8351_v30 = vpop.permute.xlu0 %955 }
 0x1f5   : > { %14737 = vst [vmem:[#allocation136_spill] sm:$0xff] %v8351_v30  ;;  %v1652_v30 = vsel %vm1524_vm7, 1, %v14663_v8  ;;  %vm1526_vm7 = vmor %vm1110_vm1, %vm1398_vm8  ;;  %vm1112_vm8 = vcmp.lt.f32.partialorder %v8323_v0, %v7819_v11 }
 0x1f6   : > { %v2133_v52 = vshrl.u32 %v1652_v30, 16 }
 0x1f7   : > { %2078 = vadd.xlane.f32.xlu0 %v2075_v7  ;;  %v1651_v7 = vsel %vm1523_vm13, 1, %v14663_v8  ;;  %vm1525_vm13 = vmor %vm1109_vm6, %vm1397_vm3  ;;  %vm1111_vm6 = vcmp.lt.f32.partialorder %v8323_v0, %v7812_v2 }
 0x1f8   : > { %2088 = vadd.xlane.f32.xlu1 %v2086_v34  ;;  %v2110_v34 = vcvt.s32.f32 %v2108_v9  ;;  %v2120_v6 = vand.u32 65535, %v1651_v7  ;;  %v8367_v35 = vpop.permute.xlu0 %963  ;;  %v2132_v9 = vand.u32 65535, %v1652_v30  ;;  %v1653_v24 = vsel %vm1525_vm13, 1, %v14663_v8  ;;  %vm1399_vm3 = vmand %vm1239_vm12, %vm7966_vm14 }
 0x1f9   : > { %14739 = vst [vmem:[#allocation138_spill] sm:$0xff] %v8367_v35  ;;  %vm1241_vm13 = vcmp.eq.f32.partialorder %v8323_v0, %v7817_v10  ;;  %vm1527_vm1 = vmor %vm1111_vm6, %vm1399_vm3  ;;  %v2145_v30 = vshrl.u32 %v1653_v24, 16  ;;  %vm1242_vm3 = vcmp.eq.f32.partialorder %v8323_v0, %v7826_v14 }
 0x1fa   : > { %vm1400_vm12 = vmand %vm1240_vm2, %vm7982_vm5 }
 0x1fb   : > { %2090 = vadd.xlane.f32.xlu0 %v2087_v12  ;;  %v2121_v12 = vshrl.u32 %v1651_v7, 16  ;;  %vm1401_vm14 = vmand %vm1241_vm13, %vm7996_vm11  ;;  %vm1114_vm13 = vcmp.lt.f32.partialorder %v8323_v0, %v7826_v14 }
 0x1fc   : > { %2100 = vadd.xlane.f32.xlu1 %v2098_v32  ;;  %v2122_v32 = vcvt.s32.f32 %v2120_v6  ;;  %v2144_v6 = vand.u32 65535, %v1653_v24  ;;  %v8380_v35 = vpop.permute.xlu0 %971  ;;  %vm1528_vm6 = vmor %vm1112_vm8, %vm1400_vm12  ;;  %v2147_v24 = vcvt.s32.f32 %v2145_v30  ;;  %vm1243_vm8 = vcmp.eq.f32.partialorder %v8323_v0, %v7824_v13 }
 0x1fd   : > { %v2123_v7 = vcvt.s32.f32 %v2121_v12  ;;  %14741 = vst [vmem:[#allocation140_spill] sm:$0xff] %v8380_v35  ;;  %v2135_v12 = vcvt.s32.f32 %v2133_v52  ;;  %v1656_v3 = vsel %vm1528_vm6, 1, %v14663_v8  ;;  %vm1115_vm12 = vcmp.lt.f32.partialorder %v8323_v0, %v7824_v13  ;;  %v14749_v13 = vld [vmem:[#allocation54_spill] sm:$0xff] }
 0x1ff   : > { %2102 = vadd.xlane.f32.xlu0 %v2099_v16  ;;  %v8376_v16 = vpop.permute.xlu1 %967 }
 0x200   : > { %2112 = vadd.xlane.f32.xlu1 %v2110_v34  ;;  %14740 = vst [vmem:[#allocation139_spill] sm:$0xff] %v8376_v16  ;;  %v2134_v34 = vcvt.s32.f32 %v2132_v9  ;;  %v1655_v16 = vsel %vm1527_vm1, 1, %v14663_v8  ;;  %vm14744_vm1 = vnez %v14671_v19 }
 0x201   : > { %vm1402_vm11 = vmand %vm1242_vm3, %vm14744_vm1  ;;  %v2169_v30 = vshrl.u32 %v1655_v16, 16  ;;  %vm1244_vm3 = vcmp.eq.f32.partialorder %v8323_v0, %v7830_v17 }
 0x203   : > { %2114 = vadd.xlane.f32.xlu0 %v2111_v37  ;;  %v1654_v37 = vsel %vm1526_vm7, 1, %v14663_v8  ;;  %v8391_v35 = vpop.permute.xlu1 %975  ;;  %vm1113_vm7 = vcmp.lt.f32.partialorder %v8323_v0, %v7817_v10  ;;  %v2171_v49 = vcvt.s32.f32 %v2169_v30 }
 0x204   : > { %2124 = vadd.xlane.f32.xlu1 %v2122_v32  ;;  %v2146_v32 = vcvt.s32.f32 %v2144_v6  ;;  %v2156_v9 = vand.u32 65535, %v1654_v37  ;;  %14742 = vst [vmem:[#allocation141_spill] sm:$0xff] %v8391_v35  ;;  %v2157_v52 = vshrl.u32 %v1654_v37, 16  ;;  %v2168_v6 = vand.u32 65535, %v1655_v16  ;;  %vm1529_vm2 = vmor %vm1113_vm7, %vm1401_vm14 }
 0x205   : > { %v1657_v35 = vsel %vm1529_vm2, 1, %v14663_v8  ;;  %vm1530_vm14 = vmor %vm1114_vm13, %vm1402_vm11  ;;  %vm14746_vm7 = vnez %v14675_v29  ;;  %vm1245_vm2 = vcmp.eq.f32.partialorder %v8323_v0, %v14749_v13  ;;  %vm1116_vm13 = vcmp.lt.f32.partialorder %v8323_v0, %v7830_v17 }
 0x206   : > { %v2159_v37 = vcvt.s32.f32 %v2157_v52  ;;  %vm1403_vm6 = vmand %vm1243_vm8, %vm14746_vm7  ;;  %v2192_v15 = vand.u32 65535, %v1657_v35  ;;  %vm14750_vm8 = vnez %v14678_v33  ;;  %v2193_v10 = vshrl.u32 %v1657_v35, 16 }
 0x207   : > { %2126 = vadd.xlane.f32.xlu0 %v2123_v7  ;;  %v8398_v7 = vpop.permute.xlu0 %979  ;;  %vm8417_vm11 = vmor %vm1115_vm12, %vm1403_vm6  ;;  %vm14753_vm12 = vnez %v14681_v27 }
 0x208   : > { %2136 = vadd.xlane.f32.xlu1 %v2134_v34  ;;  %14743 = vst [vmem:[#allocation142_spill] sm:$0xff] %v8398_v7  ;;  %v2158_v34 = vcvt.s32.f32 %v2156_v9  ;;  %v2170_v9 = vcvt.s32.f32 %v2168_v6  ;;  %v2180_v7 = vand.u32 65535, %v1656_v3  ;;  %v1658_v6 = vsel %vm1530_vm14, 1, %v14663_v8  ;;  %vm8427_vm7 = vmand %vm1244_vm3, %vm14750_vm8 }
 0x209   : > { %v2204_v11 = vand.u32 65535, %v1658_v6  ;;  %vm1117_vm14 = vcmp.lt.f32.partialorder %v8323_v0, %v14749_v13  ;;  %vm8446_vm6 = vmand %vm1245_vm2, %vm14753_vm12 }
 0x20a   : > { %v2182_v52 = vcvt.s32.f32 %v2180_v7  ;;  %vm1532_vm3 = vmor %vm1116_vm13, %vm8427_vm7 }
 0x20b   : > { %2138 = vadd.xlane.f32.xlu0 %v2135_v12  ;;  %v8407_v12 = vpop.permute.xlu1 %983  ;;  %vm8463_vm12 = vmor %vm1117_vm14, %vm8446_vm6  ;;  %vm14760_vm14 = vnez %v14686_v26 }
 0x20c   : > { %2148 = vadd.xlane.f32.xlu1 %v2146_v32  ;;  %14745 = vst [vmem:[#allocation143_spill] sm:$0xff] %v8407_v12  ;;  %v2181_v12 = vshrl.u32 %v1656_v3, 16  ;;  %v1660_v3 = vsel %vm1532_vm3, 1, %v14663_v8  ;;  %vm14770_vm3 = vcmp.lt.f32.partialorder %v8323_v0, %v14756_v1 }
 0x20d   : > { %v2228_v61 = vand.u32 65535, %v1660_v3 }
 0x20f   : > { %2150 = vadd.xlane.f32.xlu0 %v2147_v24 }
 0x210   : > { %2160 = vadd.xlane.f32.xlu1 %v2158_v34  ;;  %v1753_v32 = vpop.xlane.xlu0 %1752 }
 0x213   : > { %2162 = vadd.xlane.f32.xlu0 %v2159_v37  ;;  %v1756_v37 = vcvt.f32.s32 %v1753_v32  ;;  %v2194_v32 = vcvt.s32.f32 %v2192_v15  ;;  %v2205_v15 = vshrl.u32 %v1658_v6, 16 }
 0x214   : > { %2172 = vadd.xlane.f32.xlu1 %v2170_v9  ;;  %v1765_v24 = vpop.xlane.xlu0 %1764 }
 0x215   : > { %v1755_v34 = vpop.xlane.xlu1 %1754  ;;  %v1768_v14 = vcvt.f32.s32 %v1765_v24 }
 0x216   : > { %v1757_v16 = vcvt.f32.s32 %v1755_v34  ;;  %v2183_v34 = vcvt.s32.f32 %v2181_v12 }
 0x217   : > { %2174 = vadd.xlane.f32.xlu0 %v2171_v49  ;;  %v1659_v49 = vsel %vm8417_vm11, 1, %v14663_v8  ;;  %vm1246_vm11 = vcmp.eq.f32.partialorder %v8323_v0, %v14756_v1 }
 0x218   : > { %v1758_v9 = vshll.u32 %v1757_v16, 16  ;;  %2184 = vadd.xlane.f32.xlu1 %v2182_v52  ;;  %v1767_v7 = vpop.xlane.xlu0 %1766  ;;  %v8437_v16 = vld [vmem:[%s14124_s4] ss:$0 sm:$0xff]  ;;  %v2216_v63 = vand.u32 65535, %v1659_v49  ;;  %v2217_v35 = vshrl.u32 %v1659_v49, 16  ;;  %vm8478_vm6 = vmand %vm1246_vm11, %vm14760_vm14  ;;  %v1661_v49 = vsel %vm8463_vm12, 1, %v14663_v8 }
 0x219   : > { %v1777_v30 = vpop.xlane.xlu1 %1776  ;;  %v1769_v5 = vcvt.f32.s32 %v1767_v7  ;;  %v2206_v7 = vcvt.s32.f32 %v2204_v11  ;;  %v2207_v11 = vcvt.s32.f32 %v2205_v15  ;;  %vm14766_vm11 = vnez %v14689_v22  ;;  %vm1534_vm14 = vmor %vm14770_vm3, %vm8478_vm6 }
 0x21a   : > { %v1759_v2 = vadd.s32 %v1758_v9, %v1756_v37  ;;  %v2195_v9 = vcvt.s32.f32 %v2193_v10  ;;  %v14759_v10 = vld [vmem:[#allocation56_spill] sm:$0xff]  ;;  %v2240_v62 = vand.u32 65535, %v1661_v49  ;;  %vm14775_vm3 = vnez %v14692_v36 }
 0x21b   : > { %v1770_v12 = vshll.u32 %v1769_v5, 16  ;;  %2186 = vadd.xlane.f32.xlu0 %v2183_v34  ;;  %vm1247_vm13 = vcmp.eq.f32.partialorder %v8323_v0, %v14759_v10  ;;  %v1780_v34 = vcvt.f32.s32 %v1777_v30 }
 0x21c   : > { %2196 = vadd.xlane.f32.xlu1 %v2194_v32  ;;  %v1779_v52 = vpop.xlane.xlu0 %1778  ;;  %vm14764_vm7 = vcmp.eq.s32.totalorder %v1759_v2, %v8437_v16 }
 0x21d   : > { %v1789_v37 = vpop.xlane.xlu1 %1788  ;;  %v1771_v24 = vadd.s32 %v1770_v12, %v1768_v14  ;;  %v1781_v5 = vcvt.f32.s32 %v1779_v52  ;;  %v14763_v12 = vld [vmem:[#allocation29_spill] sm:$0xff]  ;;  %v14765_v52 = vld [vmem:[#allocation32_spill] sm:$0xff] }
 0x21e   : > { %v3418_v15 = vsel %vm14764_vm7, %v14763_v12, 0.0  ;;  %v1792_v6 = vcvt.f32.s32 %v1789_v37  ;;  %v2230_v37 = vcvt.s32.f32 %v2228_v61  ;;  %v2241_v61 = vshrl.u32 %v1661_v49, 16 }
 0x21f   : > { %vm3290_vm2 = vcmp.eq.s32.totalorder %v1771_v24, %v8437_v16  ;;  %v1782_v32 = vshll.u32 %v1781_v5, 16  ;;  %2198 = vadd.xlane.f32.xlu0 %v2195_v9  ;;  %v2218_v9 = vcvt.s32.f32 %v2216_v63  ;;  %v14769_v63 = vld [vmem:[#allocation59_spill] sm:$0xff] }
 0x220   : > { %2208 = vadd.xlane.f32.xlu1 %v2206_v7  ;;  %v3419_v24 = vsel %vm3290_vm2, %v14765_v52, 0.0  ;;  %v1791_v30 = vpop.xlane.xlu0 %1790  ;;  %vm8496_vm2 = vmand %vm1247_vm13, %vm14766_vm11  ;;  %vm14772_vm13 = vcmp.lt.f32.partialorder %v8323_v0, %v14759_v10  ;;  %vm1120_vm6 = vcmp.lt.f32.partialorder %v8323_v0, %v14769_v63 }
 0x221   : > { %v1801_v5 = vpop.xlane.xlu1 %1800  ;;  %v3546_v7 = vadd.f32 %v3419_v24, %v3418_v15  ;;  %v1783_v13 = vadd.s32 %v1782_v32, %v1780_v34  ;;  %v1793_v17 = vcvt.f32.s32 %v1791_v30  ;;  %v14771_v32 = vld [vmem:[#allocation30_spill] sm:$0xff]  ;;  %v2219_v24 = vcvt.s32.f32 %v2217_v35  ;;  %vm8514_vm7 = vmor %vm14772_vm13, %vm8496_vm2 }
 0x222   : > { %v2229_v30 = vshrl.u32 %v1660_v3, 16  ;;  %v1662_v3 = vsel %vm1534_vm14, 1, %v14663_v8  ;;  %v14779_v35 = vld [vmem:[#allocation58_spill] sm:$0xff]  ;;  %v1804_v14 = vcvt.f32.s32 %v1801_v5  ;;  %v1663_v49 = vsel %vm8514_vm7, 1, %v14663_v8 }
 0x223   : > { %vm3291_vm12 = vcmp.eq.s32.totalorder %v1783_v13, %v8437_v16  ;;  %v1794_v34 = vshll.u32 %v1793_v17, 16  ;;  %2210 = vadd.xlane.f32.xlu0 %v2207_v11  ;;  %vm1249_vm2 = vcmp.eq.f32.partialorder %v8323_v0, %v14779_v35  ;;  %v2252_v57 = vand.u32 65535, %v1662_v3 }
 0x224   : > { %2220 = vadd.xlane.f32.xlu1 %v2218_v9  ;;  %v3420_v12 = vsel %vm3291_vm12, %v14771_v32, 0.0  ;;  %v1803_v15 = vpop.xlane.xlu0 %1802  ;;  %vm14776_vm12 = vcmp.eq.f32.partialorder %v8323_v0, %v14769_v63  ;;  %v2231_v32 = vcvt.s32.f32 %v2229_v30  ;;  %v2243_v5 = vcvt.s32.f32 %v2241_v61 }
 0x225   : > { %v1813_v52 = vpop.xlane.xlu1 %1812  ;;  %v3547_v59 = vadd.f32 %v3546_v7, %v3420_v12  ;;  %v1795_v60 = vadd.s32 %v1794_v34, %v1792_v6  ;;  %v1805_v13 = vcvt.f32.s32 %v1803_v15  ;;  %vm8525_vm11 = vmand %vm14776_vm12, %vm14775_vm3  ;;  %v14780_v7 = vld [vmem:[#allocation31_spill] sm:$0xff]  ;;  %v2242_v12 = vcvt.s32.f32 %v2240_v62 }
 0x226   : > { %vm8542_vm14 = vmor %vm1120_vm6, %vm8525_vm11  ;;  %v1034_v62 = vcombine.high %v8138_v42, %v8138_v42  ;;  %vm1121_vm12 = vcmp.lt.f32.partialorder %v8323_v0, %v14779_v35  ;;  %vm14783_vm7 = vnez %v14696_v38  ;;  %v2253_v42 = vshrl.u32 %v1662_v3, 16  ;;  %v14788_v3 = vld [vmem:[#allocation60_spill] sm:$0xff] }
 0x227   : > { %vm3292_vm13 = vcmp.eq.s32.totalorder %v1795_v60, %v8437_v16  ;;  %v1806_v9 = vshll.u32 %v1805_v13, 16  ;;  %2222 = vadd.xlane.f32.xlu0 %v2219_v24  ;;  %v1816_v24 = vcvt.f32.s32 %v1813_v52  ;;  %v14786_v13 = vld [vmem:[#allocation61_spill] sm:$0xff]  ;;  %v2254_v52 = vcvt.s32.f32 %v2252_v57 }
 0x228   : > { %2232 = vadd.xlane.f32.xlu1 %v2230_v37  ;;  %v3421_v2 = vsel %vm3292_vm13, %v14780_v7, 0.0  ;;  %v1815_v6 = vpop.xlane.xlu0 %1814  ;;  %vm8555_vm13 = vmand %vm1249_vm2, %vm14783_vm7  ;;  %v14787_v37 = vld [vmem:[#allocation34_spill] sm:$0xff]  ;;  %vm14791_vm2 = vcmp.eq.f32.partialorder %v8323_v0, %v14786_v13 }
 0x229   : > { %v1825_v34 = vpop.xlane.xlu1 %1824  ;;  %v3548_v15 = vadd.f32 %v3547_v59, %v3421_v2  ;;  %v1807_v10 = vadd.s32 %v1806_v9, %v1804_v14  ;;  %v1817_v1 = vcvt.f32.s32 %v1815_v6  ;;  %v2264_v14 = vand.u32 65535, %v1663_v49  ;;  %vm8588_vm7 = vmand %vm14791_vm2, %vm14733_vm15 }
 0x22a   : > { %v1664_v9 = vsel %vm8542_vm14, 1, %v14663_v8  ;;  %v2265_v6 = vshrl.u32 %v1663_v49, 16  ;;  %vm1122_vm14 = vcmp.lt.f32.partialorder %v8323_v0, %v14786_v13  ;;  %v1828_v57 = vcvt.f32.s32 %v1825_v34 }
 0x22b   : > { %vm3293_vm11 = vcmp.eq.s32.totalorder %v1807_v10, %v8437_v16  ;;  %v1818_v30 = vshll.u32 %v1817_v1, 16  ;;  %2234 = vadd.xlane.f32.xlu0 %v2231_v32  ;;  %v8567_v1 = vrot.slane %v1034_v62, %v7695_v4 }
 0x22c   : > { %2244 = vadd.xlane.f32.xlu1 %v2242_v12  ;;  %v3422_v17 = vsel %vm3293_vm11, %v14787_v37, 0.0  ;;  %v1827_v11 = vpop.xlane.xlu0 %1826  ;;  %vm8576_vm11 = vmor %vm1121_vm12, %vm8555_vm13  ;;  %v2276_v37 = vand.u32 65535, %v1664_v9  ;;  %vm1123_vm12 = vcmp.lt.f32.partialorder %v8323_v0, %v14788_v3  ;;  %vm14795_vm13 = vcmp.eq.f32.partialorder %v8323_v0, %v14788_v3 }
 0x22d   : > { %v1837_v61 = vpop.xlane.xlu1 %1836  ;;  %v3549_v7 = vadd.f32 %v3548_v15, %v3422_v17  ;;  %v1819_v2 = vadd.s32 %v1818_v30, %v1816_v24  ;;  %v1829_v10 = vcvt.f32.s32 %v1827_v11  ;;  %v14794_v15 = vld [vmem:[#allocation33_spill] sm:$0xff]  ;;  %v2255_v24 = vcvt.s32.f32 %v2253_v42 }
 0x22e   : > { %v2266_v30 = vcvt.s32.f32 %v2264_v14  ;;  %v1665_v11 = vsel %vm8576_vm11, 1, %v14663_v8  ;;  %v2277_v42 = vshrl.u32 %v1664_v9, 16  ;;  %v1840_v14 = vcvt.f32.s32 %v1837_v61  ;;  %vm1538_vm11 = vmor %vm1122_vm14, %vm8588_vm7  ;;  %v14799_v9 = vld [vmem:[#allocation63_spill] sm:$0xff] }
 0x22f   : > { %vm3294_vm6 = vcmp.eq.s32.totalorder %v1819_v2, %v8437_v16  ;;  %v1830_v12 = vshll.u32 %v1829_v10, 16  ;;  %2246 = vadd.xlane.f32.xlu0 %v2243_v5  ;;  %v14798_v10 = vld [vmem:[#allocation36_spill] sm:$0xff]  ;;  %vm1124_vm14 = vcmp.lt.f32.partialorder %v8567_v1, %v14799_v9 }
 0x230   : > { %2256 = vadd.xlane.f32.xlu1 %v2254_v52  ;;  %v3423_v60 = vsel %vm3294_vm6, %v14794_v15, 0.0  ;;  %v1839_v62 = vpop.xlane.xlu0 %1838  ;;  %vm8603_vm6 = vmand %vm14795_vm13, %vm8164_vm10  ;;  %v2278_v15 = vcvt.s32.f32 %v2276_v37  ;;  %vm1252_vm13 = vcmp.eq.f32.partialorder %v8567_v1, %v14799_v9  ;;  %v1666_v37 = vsel %vm1538_vm11, 1, %v14663_v8 }
 0x231   : > { %v1849_v59 = vpop.xlane.xlu1 %1848  ;;  %v3550_v34 = vadd.f32 %v3549_v7, %v3423_v60  ;;  %v1831_v17 = vadd.s32 %v1830_v12, %v1828_v57  ;;  %v1841_v5 = vcvt.f32.s32 %v1839_v62  ;;  %v2267_v12 = vcvt.s32.f32 %v2265_v6  ;;  %vm8621_vm10 = vmor %vm1123_vm12, %vm8603_vm6 }
 0x232   : > { %v2288_v60 = vand.u32 65535, %v1665_v11  ;;  %v2279_v6 = vcvt.s32.f32 %v2277_v42  ;;  %vm8633_vm12 = vmand %vm1252_vm13, %vm7921_vm0 }
 0x233   : > { %vm3295_vm2 = vcmp.eq.s32.totalorder %v1831_v17, %v8437_v16  ;;  %v1842_v7 = vshll.u32 %v1841_v5, 16  ;;  %2258 = vadd.xlane.f32.xlu0 %v2255_v24  ;;  %v14805_v5 = vld [vmem:[#allocation35_spill] sm:$0xff] }
 0x234   : > { %2268 = vadd.xlane.f32.xlu1 %v2266_v30  ;;  %v3424_v52 = vsel %vm3295_vm2, %v14798_v10, 0.0  ;;  %v1851_v32 = vpop.xlane.xlu0 %1850  ;;  %v14802_v30 = vld [vmem:[#allocation62_spill] sm:$0xff]  ;;  %v2289_v10 = vshrl.u32 %v1665_v11, 16  ;;  %v14808_v11 = vld [vmem:[#allocation65_spill] sm:$0xff] }
 0x235   : > { %v1861_v57 = vpop.xlane.xlu1 %1860  ;;  %v3551_v61 = vadd.f32 %v3550_v34, %v3424_v52  ;;  %v1843_v62 = vadd.s32 %v1842_v7, %v1840_v14  ;;  %v1853_v24 = vcvt.f32.s32 %v1851_v32  ;;  %vm1253_vm7 = vcmp.eq.f32.partialorder %v8567_v1, %v14802_v30 }
 0x236   : > { %v1852_v34 = vcvt.f32.s32 %v1849_v59  ;;  %v2290_v7 = vcvt.s32.f32 %v2288_v60  ;;  %v1667_v52 = vsel %vm8621_vm10, 1, %v14663_v8  ;;  %vm1125_vm6 = vcmp.lt.f32.partialorder %v8567_v1, %v14802_v30  ;;  %vm8648_vm11 = vmand %vm1253_vm7, %vm7936_vm4 }
 0x237   : > { %vm3296_vm2 = vcmp.eq.s32.totalorder %v1843_v62, %v8437_v16  ;;  %v1854_v17 = vshll.u32 %v1853_v24, 16  ;;  %2270 = vadd.xlane.f32.xlu0 %v2267_v12  ;;  %vm1254_vm13 = vcmp.eq.f32.partialorder %v8567_v1, %v14808_v11  ;;  %v1864_v60 = vcvt.f32.s32 %v1861_v57  ;;  %v14809_v24 = vld [vmem:[#allocation38_spill] sm:$0xff]  ;;  %vm8666_vm7 = vmor %vm1125_vm6, %vm8648_vm11 }
 0x238   : > { %2280 = vadd.xlane.f32.xlu1 %v2278_v15  ;;  %v3425_v2 = vsel %vm3296_vm2, %v14805_v5, 0.0  ;;  %v1863_v42 = vpop.xlane.xlu0 %1862  ;;  %v2300_v15 = vand.u32 65535, %v1666_v37  ;;  %vm1540_vm2 = vmor %vm1124_vm14, %vm8633_vm12  ;;  %v2291_v5 = vcvt.s32.f32 %v2289_v10  ;;  %vm1126_vm14 = vcmp.lt.f32.partialorder %v8567_v1, %v14808_v11  ;;  %v14814_v10 = vld [vmem:[#allocation64_spill] sm:$0xff] }
 0x239   : > { %v1873_v14 = vpop.xlane.xlu1 %1872  ;;  %v3552_v59 = vadd.f32 %v3551_v61, %v3425_v2  ;;  %v1855_v32 = vadd.s32 %v1854_v17, %v1852_v34  ;;  %v1865_v12 = vcvt.f32.s32 %v1863_v42  ;;  %v2301_v2 = vshrl.u32 %v1666_v37, 16  ;;  %vm8677_vm12 = vmand %vm1254_vm13, %vm7951_vm9 }
 0x23a   : > { %v2312_v42 = vand.u32 65535, %v1667_v52  ;;  %v2302_v57 = vcvt.s32.f32 %v2300_v15  ;;  %v2313_v0 = vshrl.u32 %v1667_v52, 16  ;;  %vm1255_vm6 = vcmp.eq.f32.partialorder %v8567_v1, %v14814_v10  ;;  %v14815_v15 = vld [vmem:[#allocation37_spill] sm:$0xff]  ;;  %vm1542_vm13 = vmor %vm1126_vm14, %vm8677_vm12 }
 0x23b   : > { %vm3297_vm10 = vcmp.eq.s32.totalorder %v1855_v32, %v8437_v16  ;;  %v1866_v61 = vshll.u32 %v1865_v12, 16  ;;  %2282 = vadd.xlane.f32.xlu0 %v2279_v6  ;;  %v1669_v52 = vsel %vm8666_vm7, 1, %v14663_v8 }
 0x23c   : > { %2292 = vadd.xlane.f32.xlu1 %v2290_v7  ;;  %v3426_v49 = vsel %vm3297_vm10, %v14809_v24, 0.0  ;;  %v1875_v34 = vpop.xlane.xlu0 %1874  ;;  %v1668_v7 = vsel %vm1540_vm2, 1, %v14663_v8  ;;  %v2303_v24 = vcvt.s32.f32 %v2301_v2  ;;  %vm1127_vm10 = vcmp.lt.f32.partialorder %v8567_v1, %v14814_v10 }
 0x23d   : > { %v1885_v17 = vpop.xlane.xlu1 %1884  ;;  %v3553_v3 = vadd.f32 %v3552_v59, %v3426_v49  ;;  %v1867_v13 = vadd.s32 %v1866_v61, %v1864_v60  ;;  %v1877_v32 = vcvt.f32.s32 %v1875_v34  ;;  %v1876_v59 = vcvt.f32.s32 %v1873_v14 }
 0x23e   : > { %v2314_v49 = vcvt.s32.f32 %v2312_v42  ;;  %v2324_v35 = vand.u32 65535, %v1668_v7  ;;  %vm14816_vm2 = vnez %v14661_v18  ;;  %v1888_v14 = vcvt.f32.s32 %v1885_v17  ;;  %v14819_v42 = vld [vmem:[#allocation67_spill] sm:$0xff] }
 0x23f   : > { %vm3298_vm11 = vcmp.eq.s32.totalorder %v1867_v13, %v8437_v16  ;;  %v1878_v12 = vshll.u32 %v1877_v32, 16  ;;  %2294 = vadd.xlane.f32.xlu0 %v2291_v5  ;;  %v2315_v13 = vcvt.s32.f32 %v2313_v0  ;;  %vm8701_vm7 = vmand %vm1255_vm6, %vm14816_vm2  ;;  %v2325_v2 = vshrl.u32 %v1668_v7, 16  ;;  %v14820_v32 = vld [vmem:[#allocation39_spill] sm:$0xff] }
 0x240   : > { %2304 = vadd.xlane.f32.xlu1 %v2302_v57  ;;  %v3427_v62 = vsel %vm3298_vm11, %v14815_v15, 0.0  ;;  %v1887_v60 = vpop.xlane.xlu0 %1886  ;;  %vm1256_vm14 = vcmp.eq.f32.partialorder %v8567_v1, %v14819_v42  ;;  %v2336_v0 = vand.u32 65535, %v1669_v52  ;;  %vm8717_vm6 = vmor %vm1127_vm10, %vm8701_vm7  ;;  %vm14826_vm7 = vnez %v14668_v31 }
 0x241   : > { %v1897_v61 = vpop.xlane.xlu1 %1896  ;;  %v3554_v34 = vadd.f32 %v3553_v3, %v3427_v62  ;;  %v1879_v30 = vadd.s32 %v1878_v12, %v1876_v59  ;;  %v1889_v9 = vcvt.f32.s32 %v1887_v60  ;;  %v1670_v59 = vsel %vm1542_vm13, 1, %v14663_v8  ;;  %vm8729_vm12 = vmand %vm1256_vm14, %vm7982_vm5 }
 0x242   : > { %v2326_v60 = vcvt.s32.f32 %v2324_v35  ;;  %v1900_v7 = vcvt.f32.s32 %v1897_v61  ;;  %v2327_v3 = vcvt.s32.f32 %v2325_v2  ;;  %v2349_v2 = vshrl.u32 %v1670_v59, 16 }
 0x243   : > { %vm3299_vm11 = vcmp.eq.s32.totalorder %v1879_v30, %v8437_v16  ;;  %v1890_v5 = vshll.u32 %v1889_v9, 16  ;;  %2306 = vadd.xlane.f32.xlu0 %v2303_v24  ;;  %v14821_v30 = vld [vmem:[#allocation66_spill] sm:$0xff]  ;;  %v2337_v9 = vshrl.u32 %v1669_v52, 16 }
 0x244   : > { %2316 = vadd.xlane.f32.xlu1 %v2314_v49  ;;  %v3428_v57 = vsel %vm3299_vm11, %v14820_v32, 0.0  ;;  %v1899_v6 = vpop.xlane.xlu0 %1898  ;;  %vm14827_vm14 = vcmp.eq.f32.partialorder %v8567_v1, %v14821_v30 }
 0x245   : > { %v1909_v37 = vpop.xlane.xlu1 %1908  ;;  %v3555_v12 = vadd.f32 %v3554_v34, %v3428_v57  ;;  %v1891_v15 = vadd.s32 %v1890_v5, %v1888_v14  ;;  %v1901_v62 = vcvt.f32.s32 %v1899_v6  ;;  %v2338_v14 = vcvt.s32.f32 %v2336_v0 }
 0x246   : > { %v2348_v5 = vand.u32 65535, %v1670_v59  ;;  %v1671_v57 = vsel %vm8717_vm6, 1, %v14663_v8  ;;  %v1912_v6 = vcvt.f32.s32 %v1909_v37  ;;  %vm14830_vm6 = vcmp.lt.f32.partialorder %v8567_v1, %v14819_v42  ;;  %v14832_v59 = vld [vmem:[#allocation69_spill] sm:$0xff] }
 0x247   : > { %vm3300_vm11 = vcmp.eq.s32.totalorder %v1891_v15, %v8437_v16  ;;  %v1902_v35 = vshll.u32 %v1901_v62, 16  ;;  %2318 = vadd.xlane.f32.xlu0 %v2315_v13  ;;  %vm1544_vm10 = vmor %vm14830_vm6, %vm8729_vm12  ;;  %v2339_v17 = vcvt.s32.f32 %v2337_v9  ;;  %v2351_v9 = vcvt.s32.f32 %v2349_v2 }
 0x248   : > { %2328 = vadd.xlane.f32.xlu1 %v2326_v60  ;;  %v3429_v49 = vsel %vm3300_vm11, %v7760_v39, 0.0  ;;  %v1911_v52 = vpop.xlane.xlu0 %1910  ;;  %vm8744_vm11 = vmand %vm14827_vm14, %vm14826_vm7  ;;  %vm1258_vm14 = vcmp.eq.f32.partialorder %v8567_v1, %v14832_v59  ;;  %vm14833_vm7 = vcmp.lt.f32.partialorder %v8567_v1, %v14821_v30 }
 0x249   : > { %v1921_v34 = vpop.xlane.xlu1 %1920  ;;  %v3556_v61 = vadd.f32 %v3555_v12, %v3429_v49  ;;  %v1903_v32 = vadd.s32 %v1902_v35, %v1900_v7  ;;  %v1913_v13 = vcvt.f32.s32 %v1911_v52  ;;  %v14831_v12 = vld [vmem:[#allocation40_spill] sm:$0xff]  ;;  %v2350_v7 = vcvt.s32.f32 %v2348_v5  ;;  %vm8762_vm5 = vmor %vm14833_vm7, %vm8744_vm11 }
 0x24a   : > { %v2360_v35 = vand.u32 65535, %v1671_v57  ;;  %v1924_v5 = vcvt.f32.s32 %v1921_v34  ;;  %vm8774_vm7 = vmand %vm1258_vm14, %vm14744_vm1  ;;  %vm14839_vm11 = vnez %v14675_v29 }
 0x24b   : > { %vm3301_vm13 = vcmp.eq.s32.totalorder %v1903_v32, %v8437_v16  ;;  %v1914_v0 = vshll.u32 %v1913_v13, 16  ;;  %2330 = vadd.xlane.f32.xlu0 %v2327_v3  ;;  %v14836_v3 = vld [vmem:[#allocation68_spill] sm:$0xff] }
 0x24c   : > { %2340 = vadd.xlane.f32.xlu1 %v2338_v14  ;;  %v3430_v15 = vsel %vm3301_vm13, %v14831_v12, 0.0  ;;  %v1923_v62 = vpop.xlane.xlu0 %1922  ;;  %vm1259_vm12 = vcmp.eq.f32.partialorder %v8567_v1, %v14836_v3  ;;  %v1672_v14 = vsel %vm1544_vm10, 1, %v14663_v8  ;;  %vm1130_vm13 = vcmp.lt.f32.partialorder %v8567_v1, %v14832_v59 }
 0x24d   : > { %v1933_v60 = vpop.xlane.xlu1 %1932  ;;  %v3557_v37 = vadd.f32 %v3556_v61, %v3430_v15  ;;  %v1915_v49 = vadd.s32 %v1914_v0, %v1912_v6  ;;  %v1925_v52 = vcvt.f32.s32 %v1923_v62  ;;  %v2362_v6 = vcvt.s32.f32 %v2360_v35  ;;  %vm8789_vm14 = vmand %vm1259_vm12, %vm14839_vm11 }
 0x24e   : > { %v2361_v0 = vshrl.u32 %v1671_v57, 16  ;;  %v1673_v12 = vsel %vm8762_vm5, 1, %v14663_v8  ;;  %v14842_v57 = vld [vmem:[#allocation71_spill] sm:$0xff]  ;;  %vm1546_vm10 = vmor %vm1130_vm13, %vm8774_vm7  ;;  %vm14843_vm12 = vcmp.lt.f32.partialorder %v8567_v1, %v14836_v3 }
 0x24f   : > { %vm3302_vm6 = vcmp.eq.s32.totalorder %v1915_v49, %v8437_v16  ;;  %v1926_v61 = vshll.u32 %v1925_v52, 16  ;;  %2342 = vadd.xlane.f32.xlu0 %v2339_v17  ;;  %v2372_v17 = vand.u32 65535, %v1672_v14  ;;  %vm1132_vm13 = vcmp.lt.f32.partialorder %v8567_v1, %v14842_v57 }
 0x250   : > { %2352 = vadd.xlane.f32.xlu1 %v2350_v7  ;;  %v3431_v13 = vsel %vm3302_vm6, %v7764_v41, 0.0  ;;  %v1935_v39 = vpop.xlane.xlu0 %1934  ;;  %v1936_v7 = vcvt.f32.s32 %v1933_v60  ;;  %v2363_v24 = vcvt.s32.f32 %v2361_v0  ;;  %vm8807_vm6 = vmor %vm14843_vm12, %vm8789_vm14  ;;  %vm14846_vm7 = vcmp.eq.f32.partialorder %v8567_v1, %v14842_v57 }
 0x251   : > { %v1945_v2 = vpop.xlane.xlu1 %1944  ;;  %v3558_v34 = vadd.f32 %v3557_v37, %v3431_v13  ;;  %v1927_v15 = vadd.s32 %v1926_v61, %v1924_v5  ;;  %v1937_v62 = vcvt.f32.s32 %v1935_v39  ;;  %v2373_v5 = vshrl.u32 %v1672_v14, 16  ;;  %v14849_v14 = vld [vmem:[#allocation70_spill] sm:$0xff] }
 0x252   : > { %v2384_v61 = vand.u32 65535, %v1673_v12  ;;  %v2374_v60 = vcvt.s32.f32 %v2372_v17  ;;  %vm1261_vm11 = vcmp.eq.f32.partialorder %v8567_v1, %v14849_v14  ;;  %v1674_v32 = vsel %vm1546_vm10, 1, %v14663_v8 }
 0x253   : > { %vm3303_vm5 = vcmp.eq.s32.totalorder %v1927_v15, %v8437_v16  ;;  %v1938_v35 = vshll.u32 %v1937_v62, 16  ;;  %2354 = vadd.xlane.f32.xlu0 %v2351_v9  ;;  %vm1133_vm12 = vcmp.lt.f32.partialorder %v8567_v1, %v14849_v14 }
 0x254   : > { %2364 = vadd.xlane.f32.xlu1 %v2362_v6  ;;  %v3432_v37 = vsel %vm3303_vm5, %v7770_v44, 0.0  ;;  %v1947_v49 = vpop.xlane.xlu0 %1946  ;;  %vm8818_vm5 = vmand %vm14846_vm7, %vm14750_vm8  ;;  %v1948_v6 = vcvt.f32.s32 %v1945_v2  ;;  %vm14850_vm7 = vnez %v14681_v27 }
 0x255   : > { %v1957_v52 = vpop.xlane.xlu1 %1956  ;;  %v3559_v13 = vadd.f32 %v3558_v34, %v3432_v37  ;;  %v1939_v39 = vadd.s32 %v1938_v35, %v1936_v7  ;;  %v1949_v15 = vcvt.f32.s32 %v1947_v49  ;;  %v2385_v34 = vshrl.u32 %v1673_v12, 16  ;;  %vm1548_vm10 = vmor %vm1132_vm13, %vm8818_vm5 }
 0x256   : > { %v2375_v7 = vcvt.s32.f32 %v2373_v5  ;;  %v2386_v35 = vcvt.s32.f32 %v2384_v61  ;;  %v1675_v37 = vsel %vm8807_vm6, 1, %v14663_v8  ;;  %vm8844_vm6 = vmand %vm1261_vm11, %vm14850_vm7  ;;  %v1960_v2 = vcvt.f32.s32 %v1957_v52  ;;  %v14853_v5 = vld [vmem:[#allocation73_spill] sm:$0xff] }
 0x257   : > { %vm3304_vm14 = vcmp.eq.s32.totalorder %v1939_v39, %v8437_v16  ;;  %v1950_v0 = vshll.u32 %v1949_v15, 16  ;;  %2366 = vadd.xlane.f32.xlu0 %v2363_v24  ;;  %v2396_v39 = vand.u32 65535, %v1674_v32  ;;  %v2397_v24 = vshrl.u32 %v1674_v32, 16  ;;  %vm8861_vm13 = vmor %vm1133_vm12, %vm8844_vm6 }
 0x258   : > { %2376 = vadd.xlane.f32.xlu1 %v2374_v60  ;;  %v3433_v62 = vsel %vm3304_vm14, %v7768_v43, 0.0  ;;  %v1959_v17 = vpop.xlane.xlu0 %1958  ;;  %v2387_v15 = vcvt.s32.f32 %v2385_v34  ;;  %v2408_v60 = vand.u32 65535, %v1675_v37  ;;  %v1676_v9 = vsel %vm1548_vm10, 1, %v14663_v8 }
 0x259   : > { %v1969_v41 = vpop.xlane.xlu1 %1968  ;;  %v8830_v49 = vadd.f32 %v3559_v13, %v3433_v62  ;;  %v1951_v3 = vadd.s32 %v1950_v0, %v1948_v6  ;;  %v1961_v59 = vcvt.f32.s32 %v1959_v17  ;;  %v2398_v0 = vcvt.s32.f32 %v2396_v39 }
 0x25a   : > { %v2409_v52 = vshrl.u32 %v1675_v37, 16  ;;  %v1972_v34 = vcvt.f32.s32 %v1969_v41  ;;  %v2399_v17 = vcvt.s32.f32 %v2397_v24  ;;  %vm14857_vm11 = vnez %v14686_v26 }
 0x25b   : > { %v1962_v12 = vshll.u32 %v1961_v59, 16  ;;  %2378 = vadd.xlane.f32.xlu0 %v2375_v7  ;;  %v14854_v59 = vld [vmem:[#allocation72_spill] sm:$0xff]  ;;  %vm14858_vm14 = vcmp.eq.f32.partialorder %v8567_v1, %v14853_v5  ;;  %vm14861_vm12 = vcmp.eq.s32.totalorder %v1951_v3, %v8437_v16  ;;  %v2410_v43 = vcvt.s32.f32 %v2408_v60 }
 0x25c   : > { %2388 = vadd.xlane.f32.xlu1 %v2386_v35  ;;  %v1971_v61 = vpop.xlane.xlu0 %1970  ;;  %vm8871_vm5 = vmand %vm14858_vm14, %vm14857_vm11  ;;  %v3434_v35 = vsel %vm14861_vm12, %v7774_v46, 0.0  ;;  %vm14862_vm14 = vnez %v14689_v22  ;;  %vm14863_vm12 = vcmp.eq.f32.partialorder %v8567_v1, %v14854_v59  ;;  %v2421_v46 = vshrl.u32 %v1676_v9, 16 }
 0x25d   : > { %v1981_v13 = vpop.xlane.xlu1 %1980  ;;  %v1963_v44 = vadd.s32 %v1962_v12, %v1960_v2  ;;  %v1973_v6 = vcvt.f32.s32 %v1971_v61  ;;  %v2420_v2 = vand.u32 65535, %v1676_v9  ;;  %v2411_v32 = vcvt.s32.f32 %v2409_v52  ;;  %v14867_v9 = vld [vmem:[#allocation75_spill] sm:$0xff] }
 0x25e   : > { %v1984_v3 = vcvt.f32.s32 %v1981_v13  ;;  %v2423_v52 = vcvt.s32.f32 %v2421_v46 }
 0x25f   : > { %vm3306_vm10 = vcmp.eq.s32.totalorder %v1963_v44, %v8437_v16  ;;  %v1974_v62 = vshll.u32 %v1973_v6, 16  ;;  %2390 = vadd.xlane.f32.xlu0 %v2387_v15  ;;  %v1677_v15 = vsel %vm8861_vm13, 1, %v14663_v8  ;;  %vm14866_vm13 = vcmp.lt.f32.partialorder %v8567_v1, %v14853_v5 }
 0x260   : > { %2400 = vadd.xlane.f32.xlu1 %v2398_v0  ;;  %v3435_v37 = vsel %vm3306_vm10, %v7772_v45, 0.0  ;;  %v1983_v41 = vpop.xlane.xlu0 %1982  ;;  %vm8889_vm10 = vmand %vm14863_vm12, %vm14862_vm14  ;;  %vm1264_vm12 = vcmp.eq.f32.partialorder %v8567_v1, %v14867_v9  ;;  %vm14868_vm14 = vcmp.lt.f32.partialorder %v8567_v1, %v14854_v59  ;;  %v2433_v46 = vshrl.u32 %v1677_v15, 16 }
 0x261   : > { %v1993_v39 = vpop.xlane.xlu1 %1992  ;;  %v3567_v12 = vadd.f32 %v3435_v37, %v3434_v35  ;;  %v1975_v24 = vadd.s32 %v1974_v62, %v1972_v34  ;;  %v1985_v61 = vcvt.f32.s32 %v1983_v41  ;;  %vm1550_vm6 = vmor %vm14866_vm13, %vm8871_vm5  ;;  %v2422_v34 = vcvt.s32.f32 %v2420_v2 }
 0x262   : > { %v2432_v62 = vand.u32 65535, %v1677_v15  ;;  %vm8907_vm7 = vmor %vm14868_vm14, %vm8889_vm10  ;;  %v1678_v37 = vsel %vm1550_vm6, 1, %v14663_v8  ;;  %v1996_v41 = vcvt.f32.s32 %v1993_v39  ;;  %vm14874_vm10 = vnez %v14696_v38  ;;  %v14877_v15 = vld [vmem:[#allocation77_spill] sm:$0xff] }
 0x263   : > { %vm3307_vm11 = vcmp.eq.s32.totalorder %v1975_v24, %v8437_v16  ;;  %v1986_v60 = vshll.u32 %v1985_v61, 16  ;;  %2402 = vadd.xlane.f32.xlu0 %v2399_v17  ;;  %vm8919_vm14 = vmand %vm1264_vm12, %vm14775_vm3  ;;  %v2435_v7 = vcvt.s32.f32 %v2433_v46 }
 0x264   : > { %2412 = vadd.xlane.f32.xlu1 %v2410_v43  ;;  %v3436_v44 = vsel %vm3307_vm11, %v7778_v48, 0.0  ;;  %v1995_v6 = vpop.xlane.xlu0 %1994  ;;  %v14871_v48 = vld [vmem:[#allocation74_spill] sm:$0xff]  ;;  %vm1136_vm11 = vcmp.lt.f32.partialorder %v8567_v1, %v14867_v9  ;;  %v2434_v45 = vcvt.s32.f32 %v2432_v62 }
 0x265   : > { %v2005_v0 = vpop.xlane.xlu1 %2004  ;;  %v3568_v13 = vadd.f32 %v3567_v12, %v3436_v44  ;;  %v1987_v35 = vadd.s32 %v1986_v60, %v1984_v3  ;;  %v1997_v17 = vcvt.f32.s32 %v1995_v6  ;;  %vm1265_vm5 = vcmp.eq.f32.partialorder %v8567_v1, %v14871_v48  ;;  %vm8946_vm6 = vmor %vm1136_vm11, %vm8919_vm14 }
 0x266   : > { %v1679_v3 = vsel %vm8907_vm7, 1, %v14663_v8  ;;  %v2444_v6 = vand.u32 65535, %v1678_v37  ;;  %vm8934_vm12 = vmand %vm1265_vm5, %vm14874_vm10  ;;  %vm14880_vm5 = vcmp.lt.f32.partialorder %v8567_v1, %v14871_v48  ;;  %vm1138_vm14 = vcmp.lt.f32.partialorder %v8567_v1, %v14877_v15 }
 0x267   : > { %vm3308_vm13 = vcmp.eq.s32.totalorder %v1987_v35, %v8437_v16  ;;  %v1998_v43 = vshll.u32 %v1997_v17, 16  ;;  %2414 = vadd.xlane.f32.xlu0 %v2411_v32  ;;  %v2008_v32 = vcvt.f32.s32 %v2005_v0  ;;  %vm8956_vm11 = vmor %vm14880_vm5, %vm8934_vm12  ;;  %v2457_v46 = vshrl.u32 %v1679_v3, 16 }
 0x268   : > { %2424 = vadd.xlane.f32.xlu1 %v2422_v34  ;;  %v3437_v12 = vsel %vm3308_vm13, %v7776_v47, 0.0  ;;  %v2007_v24 = vpop.xlane.xlu0 %2006  ;;  %vm1266_vm13 = vcmp.eq.f32.partialorder %v8567_v1, %v14877_v15 }
 0x269   : > { %v2017_v61 = vpop.xlane.xlu1 %2016  ;;  %v3569_v39 = vadd.f32 %v3568_v13, %v3437_v12  ;;  %v1999_v60 = vadd.s32 %v1998_v43, %v1996_v41  ;;  %v2009_v44 = vcvt.f32.s32 %v2007_v24  ;;  %v2445_v41 = vshrl.u32 %v1678_v37, 16 }
 0x26a   : > { %v2456_v43 = vand.u32 65535, %v1679_v3  ;;  %v2446_v24 = vcvt.s32.f32 %v2444_v6  ;;  %v1681_v3 = vsel %vm8956_vm11, 1, %v14663_v8 }
 0x26b   : > { %vm3309_vm7 = vcmp.eq.s32.totalorder %v1999_v60, %v8437_v16  ;;  %v2010_v34 = vshll.u32 %v2009_v44, 16  ;;  %2426 = vadd.xlane.f32.xlu0 %v2423_v52  ;;  %v14886_v60 = vld [vmem:[#allocation76_spill] sm:$0xff]  ;;  %v2020_v44 = vcvt.f32.s32 %v2017_v61  ;;  %v2480_v2 = vand.u32 65535, %v1681_v3 }
 0x26c   : > { %2436 = vadd.xlane.f32.xlu1 %v2434_v45  ;;  %v3438_v13 = vsel %vm3309_vm7, %v7783_v51, 0.0  ;;  %v2019_v35 = vpop.xlane.xlu0 %2018  ;;  %v14883_v51 = vld [vmem:[#allocation25_spill] sm:$0xff]  ;;  %vm8971_vm7 = vmand %vm1266_vm13, %vm14733_vm15  ;;  %vm1267_vm12 = vcmp.eq.f32.partialorder %v8567_v1, %v14886_v60  ;;  %vm1139_vm13 = vcmp.lt.f32.partialorder %v8567_v1, %v14886_v60 }
 0x26d   : > { %v2029_v17 = vpop.xlane.xlu1 %2028  ;;  %v3570_v0 = vadd.f32 %v3569_v39, %v3438_v13  ;;  %v2011_v12 = vadd.s32 %v2010_v34, %v2008_v32  ;;  %v2021_v52 = vcvt.f32.s32 %v2019_v35  ;;  %v8962_v45 = vrot.slane %v14883_v51, %v7695_v4 }
 0x26e   : > { %v1680_v39 = vsel %vm8946_vm6, 1, %v14663_v8  ;;  %v2447_v13 = vcvt.s32.f32 %v2445_v41  ;;  %v2458_v35 = vcvt.s32.f32 %v2456_v43  ;;  %vm1554_vm6 = vmor %vm1138_vm14, %vm8971_vm7 }
 0x26f   : > { %vm3310_vm5 = vcmp.eq.s32.totalorder %v2011_v12, %v8437_v16  ;;  %v2022_v6 = vshll.u32 %v2021_v52, 16  ;;  %2438 = vadd.xlane.f32.xlu0 %v2435_v7  ;;  %v2468_v59 = vand.u32 65535, %v1680_v39  ;;  %v2032_v7 = vcvt.f32.s32 %v2029_v17 }
 0x270   : > { %2448 = vadd.xlane.f32.xlu1 %v2446_v24  ;;  %v3439_v47 = vsel %vm3310_vm5, %v7781_v50, 0.0  ;;  %v2031_v32 = vpop.xlane.xlu0 %2030  ;;  %v2459_v50 = vcvt.s32.f32 %v2457_v46  ;;  %vm14887_vm5 = vnez %v14702_v21  ;;  %v2469_v43 = vshrl.u32 %v1680_v39, 16 }
 0x271   : > { %v2041_v34 = vpop.xlane.xlu1 %2040  ;;  %v3571_v62 = vadd.f32 %v3570_v0, %v3439_v47  ;;  %v2023_v48 = vadd.s32 %v2022_v6, %v2020_v44  ;;  %v2033_v9 = vcvt.f32.s32 %v2031_v32  ;;  %vm8997_vm11 = vmand %vm1267_vm12, %vm14887_vm5  ;;  %v14890_v0 = vld [vmem:[#allocation79_spill] sm:$0xff]  ;;  %v1682_v37 = vsel %vm1554_vm6, 1, %v14663_v8 }
 0x272   : > { %vm1268_vm14 = vcmp.eq.f32.partialorder %v8962_v45, %v14890_v0  ;;  %v2470_v47 = vcvt.s32.f32 %v2468_v59  ;;  %vm9013_vm12 = vmor %vm1139_vm13, %vm8997_vm11  ;;  %v2044_v17 = vcvt.f32.s32 %v2041_v34 }
 0x273   : > { %vm3311_vm15 = vcmp.eq.s32.totalorder %v2023_v48, %v8437_v16  ;;  %v2034_v41 = vshll.u32 %v2033_v9, 16  ;;  %2450 = vadd.xlane.f32.xlu0 %v2447_v13  ;;  %v14891_v48 = vld [vmem:[#allocation78_spill] sm:$0xff]  ;;  %v2481_v9 = vshrl.u32 %v1681_v3, 16  ;;  %vm9025_vm7 = vmand %vm1268_vm14, %vm7921_vm0  ;;  %v2482_v3 = vcvt.s32.f32 %v2480_v2 }
 0x274   : > { %2460 = vadd.xlane.f32.xlu1 %v2458_v35  ;;  %v3440_v12 = vsel %vm3311_vm15, %v7790_v54, 0.0  ;;  %v2043_v52 = vpop.xlane.xlu0 %2042  ;;  %vm1140_vm15 = vcmp.lt.f32.partialorder %v8962_v45, %v14890_v0  ;;  %v2471_v35 = vcvt.s32.f32 %v2469_v43  ;;  %vm1141_vm13 = vcmp.lt.f32.partialorder %v8962_v45, %v14891_v48  ;;  %v14960_v0 = vld [vmem:[#allocation91_spill] sm:$0xff] }
 0x275   : > { %v2053_v24 = vpop.xlane.xlu1 %2052  ;;  %v3572_v46 = vadd.f32 %v3571_v62, %v3440_v12  ;;  %v2035_v44 = vadd.s32 %v2034_v41, %v2032_v7  ;;  %v2045_v6 = vcvt.f32.s32 %v2043_v52  ;;  %v2492_v62 = vand.u32 65535, %v1682_v37 }
 0x276   : > { %v1683_v7 = vsel %vm9013_vm12, 1, %v14663_v8  ;;  %vm14896_vm11 = vcmp.eq.f32.partialorder %v8962_v45, %v14891_v48  ;;  %v2493_v41 = vshrl.u32 %v1682_v37, 16  ;;  %v2056_v43 = vcvt.f32.s32 %v2053_v24  ;;  %vm1556_vm12 = vmor %vm1140_vm15, %vm9025_vm7  ;;  %v14899_v37 = vld [vmem:[#allocation81_spill] sm:$0xff] }
 0x277   : > { %vm3312_vm6 = vcmp.eq.s32.totalorder %v2035_v44, %v8437_v16  ;;  %v2046_v59 = vshll.u32 %v2045_v6, 16  ;;  %2462 = vadd.xlane.f32.xlu0 %v2459_v50  ;;  %vm9040_vm14 = vmand %vm14896_vm11, %vm7936_vm4  ;;  %v2483_v44 = vcvt.s32.f32 %v2481_v9  ;;  %v2494_v6 = vcvt.s32.f32 %v2492_v62 }
 0x278   : > { %2472 = vadd.xlane.f32.xlu1 %v2470_v47  ;;  %v3441_v39 = vsel %vm3312_vm6, %v7788_v53, 0.0  ;;  %v2055_v32 = vpop.xlane.xlu0 %2054  ;;  %v2504_v47 = vand.u32 65535, %v1683_v7  ;;  %vm1270_vm11 = vcmp.eq.f32.partialorder %v8962_v45, %v14899_v37  ;;  %vm9058_vm4 = vmor %vm1141_vm13, %vm9040_vm14  ;;  %v2495_v9 = vcvt.s32.f32 %v2493_v41 }
 0x279   : > { %v2065_v13 = vpop.xlane.xlu1 %2064  ;;  %v3573_v34 = vadd.f32 %v3572_v46, %v3441_v39  ;;  %v2047_v61 = vadd.s32 %v2046_v59, %v2044_v17  ;;  %v2057_v50 = vcvt.f32.s32 %v2055_v32  ;;  %v1684_v1 = vsel %vm1556_vm12, 1, %v14663_v8  ;;  %vm9070_vm13 = vmand %vm1270_vm11, %vm7951_vm9 }
 0x27a   : > { %vm1142_vm15 = vcmp.lt.f32.partialorder %v8962_v45, %v14899_v37  ;;  %v2068_v39 = vcvt.f32.s32 %v2065_v13 }
 0x27b   : > { %vm3313_vm6 = vcmp.eq.s32.totalorder %v2047_v61, %v8437_v16  ;;  %v2058_v12 = vshll.u32 %v2057_v50, 16  ;;  %2474 = vadd.xlane.f32.xlu0 %v2471_v35  ;;  %v2506_v61 = vcvt.s32.f32 %v2504_v47  ;;  %v2505_v50 = vshrl.u32 %v1683_v7, 16  ;;  %v14907_v7 = vld [vmem:[#allocation83_spill] sm:$0xff] }
 0x27c   : > { %2484 = vadd.xlane.f32.xlu1 %v2482_v3  ;;  %v3442_v52 = vsel %vm3313_vm6, %v7794_v56, 0.0  ;;  %v2067_v2 = vpop.xlane.xlu0 %2066  ;;  %v14902_v56 = vld [vmem:[#allocation80_spill] sm:$0xff]  ;;  %vm1272_vm11 = vcmp.eq.f32.partialorder %v8962_v45, %v14907_v7 }
 0x27d   : > { %v2077_v46 = vpop.xlane.xlu1 %2076  ;;  %v3574_v24 = vadd.f32 %v3573_v34, %v3442_v52  ;;  %v2059_v54 = vadd.s32 %v2058_v12, %v2056_v43  ;;  %v2069_v17 = vcvt.f32.s32 %v2067_v2  ;;  %vm1271_vm7 = vcmp.eq.f32.partialorder %v8962_v45, %v14902_v56  ;;  %v9094_v12 = vld [vmem:[%s14124_s4] ss:$0 sm:$0xff] }
 0x27e   : > { %v2516_v43 = vand.u32 65535, %v1684_v1  ;;  %vm1143_vm14 = vcmp.lt.f32.partialorder %v8962_v45, %v14902_v56  ;;  %vm9085_vm12 = vmand %vm1271_vm7, %vm14816_vm2  ;;  %v2080_v52 = vcvt.f32.s32 %v2077_v46 }
 0x27f   : > { %vm3314_vm6 = vcmp.eq.s32.totalorder %v2059_v54, %v8437_v16  ;;  %v2070_v32 = vshll.u32 %v2069_v17, 16  ;;  %2486 = vadd.xlane.f32.xlu0 %v2483_v44  ;;  %v1685_v16 = vsel %vm9058_vm4, 1, %v14663_v8  ;;  %vm1558_vm7 = vmor %vm1142_vm15, %vm9070_vm13  ;;  %v2517_v54 = vshrl.u32 %v1684_v1, 16 }
 0x280   : > { %2496 = vadd.xlane.f32.xlu1 %v2494_v6  ;;  %v3443_v3 = vsel %vm3314_vm6, %v7792_v55, 0.0  ;;  %v2079_v62 = vpop.xlane.xlu0 %2078  ;;  %v2528_v17 = vand.u32 65535, %v1685_v16  ;;  %v2518_v46 = vcvt.s32.f32 %v2516_v43  ;;  %vm9108_vm6 = vmor %vm1143_vm14, %vm9085_vm12  ;;  %vm1144_vm15 = vcmp.lt.f32.partialorder %v8962_v45, %v14907_v7  ;;  %v14946_v7 = vld [vmem:[#allocation89_spill] sm:$0xff] }
 0x281   : > { %v2089_v34 = vpop.xlane.xlu1 %2088  ;;  %v3575_v13 = vadd.f32 %v3574_v24, %v3443_v3  ;;  %v2071_v53 = vadd.s32 %v2070_v32, %v2068_v39  ;;  %v2081_v41 = vcvt.f32.s32 %v2079_v62  ;;  %v2507_v24 = vcvt.s32.f32 %v2505_v50  ;;  %v14913_v3 = vld [vmem:[#allocation82_spill] sm:$0xff]  ;;  %v14914_v50 = vld [vmem:[#allocation41_spill] sm:$0xff] }
 0x282   : > { %vm14910_vm13 = vnez %v14665_v28  ;;  %v2529_v1 = vshrl.u32 %v1685_v16, 16  ;;  %v1686_v35 = vsel %vm1558_vm7, 1, %v14663_v8  ;;  %vm1273_vm14 = vcmp.eq.f32.partialorder %v8962_v45, %v14913_v3 }
 0x283   : > { %vm3315_vm4 = vcmp.eq.s32.totalorder %v2071_v53, %v9094_v12  ;;  %v2082_v2 = vshll.u32 %v2081_v41, 16  ;;  %2498 = vadd.xlane.f32.xlu0 %v2495_v9  ;;  %v2092_v62 = vcvt.f32.s32 %v2089_v34  ;;  %v2519_v43 = vcvt.s32.f32 %v2517_v54 }
 0x284   : > { %2508 = vadd.xlane.f32.xlu1 %v2506_v61  ;;  %v3444_v44 = vsel %vm3315_vm4, %v7798_v58, 0.0  ;;  %v2091_v6 = vpop.xlane.xlu0 %2090  ;;  %vm9119_vm4 = vmand %vm1272_vm11, %vm14910_vm13  ;;  %v2530_v55 = vcvt.s32.f32 %v2528_v17  ;;  %v1687_v16 = vsel %vm9108_vm6, 1, %v14663_v8  ;;  %vm1145_vm7 = vcmp.lt.f32.partialorder %v8962_v45, %v14913_v3 }
 0x285   : > { %v2101_v47 = vpop.xlane.xlu1 %2100  ;;  %v3576_v59 = vadd.f32 %v3575_v13, %v3444_v44  ;;  %v2083_v39 = vadd.s32 %v2082_v2, %v2080_v52  ;;  %v2093_v32 = vcvt.f32.s32 %v2091_v6  ;;  %v2540_v6 = vand.u32 65535, %v1686_v35  ;;  %vm1560_vm11 = vmor %vm1144_vm15, %vm9119_vm4 }
 0x286   : > { %v2531_v34 = vcvt.s32.f32 %v2529_v1  ;;  %v2104_v54 = vcvt.f32.s32 %v2101_v47  ;;  %v2552_v1 = vand.u32 65535, %v1687_v16  ;;  %v14920_v47 = vld [vmem:[#allocation84_spill] sm:$0xff] }
 0x287   : > { %vm3316_vm12 = vcmp.eq.s32.totalorder %v2083_v39, %v9094_v12  ;;  %v2094_v61 = vshll.u32 %v2093_v32, 16  ;;  %2510 = vadd.xlane.f32.xlu0 %v2507_v24  ;;  %v14918_v39 = vld [vmem:[#allocation85_spill] sm:$0xff]  ;;  %v14919_v32 = vld [vmem:[#allocation43_spill] sm:$0xff]  ;;  %vm1275_vm15 = vcmp.eq.f32.partialorder %v8962_v45, %v14920_v47 }
 0x288   : > { %2520 = vadd.xlane.f32.xlu1 %v2518_v46  ;;  %v3445_v13 = vsel %vm3316_vm12, %v14914_v50, 0.0  ;;  %v2103_v53 = vpop.xlane.xlu0 %2102  ;;  %vm14915_vm12 = vnez %v14668_v31 }
 0x289   : > { %v2113_v41 = vpop.xlane.xlu1 %2112  ;;  %v3577_v52 = vadd.f32 %v3576_v59, %v3445_v13  ;;  %v2095_v2 = vadd.s32 %v2094_v61, %v2092_v62  ;;  %v2105_v44 = vcvt.f32.s32 %v2103_v53  ;;  %vm9143_vm6 = vmand %vm1273_vm14, %vm14915_vm12  ;;  %v2541_v59 = vshrl.u32 %v1686_v35, 16 }
 0x28a   : > { %v1688_v62 = vsel %vm1560_vm11, 1, %v14663_v8  ;;  %v2542_v53 = vcvt.s32.f32 %v2540_v6  ;;  %v2553_v35 = vshrl.u32 %v1687_v16, 16  ;;  %vm14923_vm11 = vcmp.eq.f32.partialorder %v8962_v45, %v14918_v39  ;;  %v14926_v6 = vld [vmem:[#allocation42_spill] sm:$0xff] }
 0x28b   : > { %vm3317_vm13 = vcmp.eq.s32.totalorder %v2095_v2, %v9094_v12  ;;  %v2106_v17 = vshll.u32 %v2105_v44, 16  ;;  %2522 = vadd.xlane.f32.xlu0 %v2519_v43  ;;  %vm9172_vm4 = vmand %vm14923_vm11, %vm14744_vm1  ;;  %v2116_v16 = vcvt.f32.s32 %v2113_v41  ;;  %v2543_v2 = vcvt.s32.f32 %v2541_v59 }
 0x28c   : > { %2532 = vadd.xlane.f32.xlu1 %v2530_v55  ;;  %v3446_v46 = vsel %vm3317_vm13, %v14919_v32, 0.0  ;;  %v2115_v9 = vpop.xlane.xlu0 %2114  ;;  %vm9163_vm13 = vmor %vm1145_vm7, %vm9143_vm6  ;;  %v3561_v44 = vrot.slane %v8830_v49, 4  ;;  %v2554_v32 = vcvt.s32.f32 %v2552_v1  ;;  %vm14927_vm7 = vnez %v14675_v29 }
 0x28d   : > { %v2125_v58 = vpop.xlane.xlu1 %2124  ;;  %v3578_v61 = vadd.f32 %v3577_v52, %v3446_v46  ;;  %v2107_v50 = vadd.s32 %v2106_v17, %v2104_v54  ;;  %v2117_v13 = vcvt.f32.s32 %v2115_v9  ;;  %v2564_v46 = vand.u32 65535, %v1688_v62  ;;  %vm9184_vm6 = vmand %vm1275_vm15, %vm14927_vm7 }
 0x28e   : > { %v2555_v1 = vcvt.s32.f32 %v2553_v35  ;;  %vm14931_vm15 = vcmp.lt.f32.partialorder %v8962_v45, %v14918_v39  ;;  %v2128_v43 = vcvt.f32.s32 %v2125_v58  ;;  %v14935_v35 = vld [vmem:[#allocation45_spill] sm:$0xff] }
 0x28f   : > { %vm3318_vm14 = vcmp.eq.s32.totalorder %v2107_v50, %v9094_v12  ;;  %v2118_v52 = vshll.u32 %v2117_v13, 16  ;;  %2534 = vadd.xlane.f32.xlu0 %v2531_v34  ;;  %v1689_v50 = vsel %vm9163_vm13, 1, %v14663_v8  ;;  %v14930_v13 = vld [vmem:[#allocation87_spill] sm:$0xff]  ;;  %vm9198_vm11 = vmor %vm14931_vm15, %vm9172_vm4  ;;  %vm14936_vm4 = vcmp.lt.f32.partialorder %v8962_v45, %v14920_v47 }
 0x290   : > { %2544 = vadd.xlane.f32.xlu1 %v2542_v53  ;;  %v3447_v24 = vsel %vm3318_vm14, %v14926_v6, 0.0  ;;  %v2127_v54 = vpop.xlane.xlu0 %2126  ;;  %vm1277_vm14 = vcmp.eq.f32.partialorder %v8962_v45, %v14930_v13  ;;  %v2565_v53 = vshrl.u32 %v1688_v62, 16  ;;  %v3562_v62 = vadd.f32 %v3561_v44, %v8830_v49  ;;  %vm1563_vm13 = vmor %vm14936_vm4, %vm9184_vm6 }
 0x291   : > { %v2137_v17 = vpop.xlane.xlu1 %2136  ;;  %v3579_v41 = vadd.f32 %v3578_v61, %v3447_v24  ;;  %v2119_v34 = vadd.s32 %v2118_v52, %v2116_v16  ;;  %v2129_v59 = vcvt.f32.s32 %v2127_v54  ;;  %v14934_v61 = vld [vmem:[#allocation86_spill] sm:$0xff]  ;;  %v2566_v54 = vcvt.s32.f32 %v2564_v46 }
 0x292   : > { %vm1276_vm7 = vcmp.eq.f32.partialorder %v8962_v45, %v14934_v61  ;;  %v2576_v39 = vand.u32 65535, %v1689_v50  ;;  %v2567_v44 = vcvt.s32.f32 %v2565_v53  ;;  %v2140_v46 = vcvt.f32.s32 %v2137_v17  ;;  %v14942_v53 = vld [vmem:[#allocation44_spill] sm:$0xff] }
 0x293   : > { %vm3319_vm1 = vcmp.eq.s32.totalorder %v2119_v34, %v9094_v12  ;;  %v2130_v16 = vshll.u32 %v2129_v59, 16  ;;  %2546 = vadd.xlane.f32.xlu0 %v2543_v2  ;;  %v1690_v2 = vsel %vm9198_vm11, 1, %v14663_v8  ;;  %vm9222_vm15 = vmand %vm1276_vm7, %vm14750_vm8  ;;  %vm14939_vm11 = vnez %v14681_v27 }
 0x294   : > { %2556 = vadd.xlane.f32.xlu1 %v2554_v32  ;;  %v3448_v55 = vsel %vm3319_vm1, %v14935_v35, 0.0  ;;  %v2139_v52 = vpop.xlane.xlu0 %2138  ;;  %vm1148_vm1 = vcmp.lt.f32.partialorder %v8962_v45, %v14934_v61  ;;  %v2577_v32 = vshrl.u32 %v1689_v50, 16  ;;  %vm9235_vm7 = vmand %vm1277_vm14, %vm14939_vm11  ;;  %v3563_v6 = vrot.slane %v3562_v62, 2 }
 0x295   : > { %v2149_v24 = vpop.xlane.xlu1 %2148  ;;  %v3580_v3 = vadd.f32 %v3579_v41, %v3448_v55  ;;  %v2131_v34 = vadd.s32 %v2130_v16, %v2128_v43  ;;  %v2141_v58 = vcvt.f32.s32 %v2139_v52  ;;  %v1691_v41 = vsel %vm1563_vm13, 1, %v14663_v8  ;;  %vm9247_vm14 = vmor %vm1148_vm1, %vm9222_vm15 }
 0x296   : > { %v2578_v17 = vcvt.s32.f32 %v2576_v39  ;;  %v2588_v35 = vand.u32 65535, %v1690_v2  ;;  %v2600_v47 = vand.u32 65535, %v1691_v41  ;;  %v2601_v39 = vshrl.u32 %v1691_v41, 16 }
 0x297   : > { %vm3320_vm4 = vcmp.eq.s32.totalorder %v2131_v34, %v9094_v12  ;;  %v2142_v9 = vshll.u32 %v2141_v58, 16  ;;  %2558 = vadd.xlane.f32.xlu0 %v2555_v1  ;;  %v14943_v1 = vld [vmem:[#allocation88_spill] sm:$0xff]  ;;  %v2579_v58 = vcvt.s32.f32 %v2577_v32  ;;  %vm14947_vm1 = vcmp.lt.f32.partialorder %v8962_v45, %v14930_v13 }
 0x298   : > { %2568 = vadd.xlane.f32.xlu1 %v2566_v54  ;;  %v3449_v50 = vsel %vm3320_vm4, %v14942_v53, 0.0  ;;  %v2151_v43 = vpop.xlane.xlu0 %2150  ;;  %v2589_v53 = vshrl.u32 %v1690_v2, 16  ;;  %vm1565_vm15 = vmor %vm14947_vm1, %vm9235_vm7  ;;  %vm1150_vm6 = vcmp.lt.f32.partialorder %v8962_v45, %v14943_v1  ;;  %vm14948_vm11 = vnez %v14686_v26 }
 0x299   : > { %v2161_v16 = vpop.xlane.xlu1 %2160  ;;  %v3581_v55 = vadd.f32 %v3580_v3, %v3449_v50  ;;  %v2143_v52 = vadd.s32 %v2142_v9, %v2140_v46  ;;  %v2153_v54 = vcvt.f32.s32 %v2151_v43  ;;  %v2152_v46 = vcvt.f32.s32 %v2149_v24 }
 0x29a   : > { %vm14949_vm13 = vcmp.eq.f32.partialorder %v8962_v45, %v14943_v1  ;;  %v3564_v24 = vadd.f32 %v3563_v6, %v3562_v62  ;;  %v2590_v9 = vcvt.s32.f32 %v2588_v35  ;;  %v1692_v41 = vsel %vm9247_vm14, 1, %v14663_v8 }
 0x29b   : > { %v3582_v3 = vrot.slane %v3581_v55, 4  ;;  %v2154_v49 = vshll.u32 %v2153_v54, 16  ;;  %2570 = vadd.xlane.f32.xlu0 %v2567_v44  ;;  %vm9267_vm4 = vmand %vm14949_vm13, %vm14948_vm11  ;;  %vm3321_vm7 = vcmp.eq.s32.totalorder %v2143_v52, %v9094_v12  ;;  %v2602_v54 = vcvt.s32.f32 %v2600_v47  ;;  %v14953_v52 = vld [vmem:[#allocation46_spill] sm:$0xff] }
 0x29c   : > { %2580 = vadd.xlane.f32.xlu1 %v2578_v17  ;;  %v2163_v44 = vpop.xlane.xlu0 %2162  ;;  %v2591_v17 = vcvt.s32.f32 %v2589_v53  ;;  %v2603_v13 = vcvt.s32.f32 %v2601_v39  ;;  %v9276_v61 = vsel %vm1565_vm15, 1, %v14663_v8  ;;  %v2164_v62 = vcvt.f32.s32 %v2161_v16  ;;  %vm1566_vm14 = vmor %vm1150_vm6, %vm9267_vm4 }
 0x29d   : > { %v2173_v32 = vpop.xlane.xlu1 %2172  ;;  %v3583_v59 = vadd.f32 %v3582_v3, %v3581_v55  ;;  %v2155_v50 = vadd.s32 %v2154_v49, %v2152_v46  ;;  %v2165_v43 = vcvt.f32.s32 %v2163_v44  ;;  %v3565_v35 = vrot.slane %v3564_v24, 1  ;;  %v14952_v55 = vld [vmem:[#allocation47_spill] sm:$0xff] }
 0x29e   : > { %v3450_v47 = vsel %vm3321_vm7, %v14952_v55, 0.0  ;;  %v2612_v3 = vand.u32 65535, %v1692_v41  ;;  %v2613_v2 = vshrl.u32 %v1692_v41, 16  ;;  %vm14955_vm6 = vnez %v14689_v22 }
 0x29f   : > { %v3584_v56 = vrot.slane %v3583_v59, 2  ;;  %vm3322_vm13 = vcmp.eq.s32.totalorder %v2155_v50, %v9094_v12  ;;  %v2166_v6 = vshll.u32 %v2165_v43, 16  ;;  %2582 = vadd.xlane.f32.xlu0 %v2579_v58  ;;  %v14954_v58 = vld [vmem:[#allocation90_spill] sm:$0xff]  ;;  %v1694_v50 = vsel %vm1566_vm14, 1, %v14663_v8 }
 0x2a0   : > { %2592 = vadd.xlane.f32.xlu1 %v2590_v9  ;;  %v3451_v34 = vsel %vm3322_vm13, %v14953_v52, 0.0  ;;  %v2175_v53 = vpop.xlane.xlu0 %2174  ;;  %v2624_v9 = vand.u32 65535, %v9276_v61  ;;  %vm14956_vm4 = vcmp.eq.f32.partialorder %v8962_v45, %v14946_v7  ;;  %v3566_v41 = vadd.f32 %v3565_v35, %v3564_v24 }
 0x2a1   : > { %v2185_v39 = vpop.xlane.xlu1 %2184  ;;  %v3585_v46 = vadd.f32 %v3584_v56, %v3583_v59  ;;  %v3588_v49 = vadd.f32 %v3451_v34, %v3450_v47  ;;  %v2167_v16 = vadd.s32 %v2166_v6, %v2164_v62  ;;  %v2177_v44 = vcvt.f32.s32 %v2175_v53  ;;  %vm9295_vm15 = vmand %vm14956_vm4, %vm14955_vm6  ;;  %v14959_v6 = vld [vmem:[#allocation49_spill] sm:$0xff] }
 0x2a2   : > { %v2176_v59 = vcvt.f32.s32 %v2173_v32  ;;  %vm14317_vm13 = vcmask 1041409   ;;  %v2614_v34 = vcvt.s32.f32 %v2612_v3  ;;  %v2625_v32 = vshrl.u32 %v9276_v61, 16  ;;  %v14967_v3 = vld [vmem:[#allocation48_spill] sm:$0xff]  ;;  %v14976_v61 = vld [vmem:[#allocation27_spill] sm:$0xff] }
 0x2a3   : > { %v3586_v56 = vrot.slane %v3585_v46, 1  ;;  %vm3323_vm7 = vcmp.eq.s32.totalorder %v2167_v16, %v9094_v12  ;;  %v2178_v62 = vshll.u32 %v2177_v44, 16  ;;  %2594 = vadd.xlane.f32.xlu0 %v2591_v17  ;;  %vm14964_vm14 = vcmp.eq.f32.partialorder %v8962_v45, %v14954_v58 }
 0x2a4   : > { %2604 = vadd.xlane.f32.xlu1 %v2602_v54  ;;  %v3452_v55 = vsel %vm3323_vm7, %v14959_v6, 0.0  ;;  %v2187_v47 = vpop.xlane.xlu0 %2186  ;;  %vm14961_vm7 = vcmp.lt.f32.partialorder %v8962_v45, %v14946_v7  ;;  %v2188_v54 = vcvt.f32.s32 %v2185_v39  ;;  %vm9324_vm4 = vmand %vm14964_vm14, %vm14775_vm3  ;;  %v2615_v44 = vcvt.s32.f32 %v2613_v2 }
 0x2a5   : > { %v2197_v52 = vpop.xlane.xlu1 %2196  ;;  %v3587_v53 = vadd.f32 %v3586_v56, %v3585_v46  ;;  %v3589_v1 = vadd.f32 %v3588_v49, %v3452_v55  ;;  %v2179_v37 = vadd.s32 %v2178_v62, %v2176_v59  ;;  %v2189_v48 = vcvt.f32.s32 %v2187_v47  ;;  %vm9311_vm1 = vmor %vm14961_vm7, %vm9295_vm15  ;;  %v14972_v62 = vld [vmem:[#allocation51_spill] sm:$0xff] }
 0x2a6   : > { %v2626_v43 = vcvt.s32.f32 %v2624_v9  ;;  %v1695_v56 = vsel %vm9311_vm1, 1, %v14663_v8  ;;  %vm1153_vm15 = vcmp.lt.f32.partialorder %v8962_v45, %v14960_v0  ;;  %v2637_v2 = vshrl.u32 %v1694_v50, 16 }
 0x2a7   : > { %v9316_v17 = vsel %vm14317_vm13, %v3587_v53, %v3566_v41  ;;  %vm3324_vm6 = vcmp.eq.s32.totalorder %v2179_v37, %v9094_v12  ;;  %v2190_v35 = vshll.u32 %v2189_v48, 16  ;;  %2606 = vadd.xlane.f32.xlu0 %v2603_v13  ;;  %v2636_v37 = vand.u32 65535, %v1694_v50  ;;  %v14973_v50 = vld [vmem:[#allocation92_spill] sm:$0xff] }
 0x2a8   : > { %2616 = vadd.xlane.f32.xlu1 %v2614_v34  ;;  %v3453_v46 = vsel %vm3324_vm6, %v14967_v3, 0.0  ;;  %v2199_v49 = vpop.xlane.xlu0 %2198  ;;  %vm14968_vm6 = vcmp.eq.f32.partialorder %v8962_v45, %v14960_v0  ;;  %vm14971_vm1 = vcmp.lt.f32.partialorder %v8962_v45, %v14954_v58  ;;  %v2627_v47 = vcvt.s32.f32 %v2625_v32  ;;  %v14977_v3 = vld [vmem:[#allocation93_spill] sm:$0xff] }
 0x2a9   : > { %v2209_v16 = vpop.xlane.xlu1 %2208  ;;  %v3590_v39 = vadd.f32 %v3589_v1, %v3453_v46  ;;  %v2191_v48 = vadd.s32 %v2190_v35, %v2188_v54  ;;  %v2201_v13 = vcvt.f32.s32 %v2199_v49  ;;  %vm9339_vm14 = vmand %vm14968_vm6, %vm14874_vm10  ;;  %v2200_v1 = vcvt.f32.s32 %v2197_v52 }
 0x2aa   : > { %vm1568_vm13 = vmor %vm14971_vm1, %vm9324_vm4  ;;  %v2638_v34 = vcvt.s32.f32 %v2636_v37  ;;  %v2648_v53 = vand.u32 65535, %v1695_v56  ;;  %vm1282_vm6 = vcmp.eq.f32.partialorder %v8962_v45, %v14973_v50  ;;  %v9363_v32 = vrot.slane %v14976_v61, %v7695_v4 }
 0x2ab   : > { %vm3325_vm7 = vcmp.eq.s32.totalorder %v2191_v48, %v9094_v12  ;;  %v2202_v9 = vshll.u32 %v2201_v13, 16  ;;  %2618 = vadd.xlane.f32.xlu0 %v2615_v44  ;;  %vm9357_vm10 = vmor %vm1153_vm15, %vm9339_vm14  ;;  %vm1283_vm4 = vcmp.eq.f32.partialorder %v8962_v45, %v14977_v3  ;;  %v2639_v46 = vcvt.s32.f32 %v2637_v2 }
 0x2ac   : > { %2628 = vadd.xlane.f32.xlu1 %v2626_v43  ;;  %v3454_v41 = vsel %vm3325_vm7, %v14972_v62, 0.0  ;;  %v2211_v6 = vpop.xlane.xlu0 %2210  ;;  %v1696_v49 = vsel %vm1568_vm13, 1, %v14663_v8  ;;  %vm1154_vm7 = vcmp.lt.f32.partialorder %v8962_v45, %v14973_v50  ;;  %v2212_v44 = vcvt.f32.s32 %v2209_v16 }
 0x2ad   : > { %v2221_v55 = vpop.xlane.xlu1 %2220  ;;  %v3591_v52 = vadd.f32 %v3590_v39, %v3454_v41  ;;  %v2203_v24 = vadd.s32 %v2202_v9, %v2200_v1  ;;  %v2213_v54 = vcvt.f32.s32 %v2211_v6  ;;  %vm14978_vm15 = vnez %v14699_v40  ;;  %v14981_v39 = vld [vmem:[#allocation50_spill] sm:$0xff] }
 0x2ae   : > { %vm9376_vm14 = vmand %vm1282_vm6, %vm14978_vm15  ;;  %v2650_v2 = vcvt.s32.f32 %v2648_v53  ;;  %v2649_v1 = vshrl.u32 %v1695_v56, 16  ;;  %v1697_v16 = vsel %vm9357_vm10, 1, %v14663_v8  ;;  %v2660_v6 = vand.u32 65535, %v1696_v49  ;;  %v14984_v56 = vld [vmem:[#allocation94_spill] sm:$0xff] }
 0x2af   : > { %vm3326_vm1 = vcmp.eq.s32.totalorder %v2203_v24, %v9094_v12  ;;  %v2214_v43 = vshll.u32 %v2213_v54, 16  ;;  %2630 = vadd.xlane.f32.xlu0 %v2627_v47  ;;  %vm9391_vm6 = vmand %vm1283_vm4, %vm14887_vm5  ;;  %vm14986_vm4 = vcmp.lt.f32.partialorder %v8962_v45, %v14977_v3  ;;  %v2673_v37 = vshrl.u32 %v1697_v16, 16  ;;  %v14992_v45 = vld [vmem:[#allocation95_spill] sm:$0xff] }
 0x2b0   : > { %2640 = vadd.xlane.f32.xlu1 %v2638_v34  ;;  %v3455_v48 = vsel %vm3326_vm1, %v14981_v39, 0.0  ;;  %v2223_v13 = vpop.xlane.xlu0 %2222  ;;  %v2224_v34 = vcvt.f32.s32 %v2221_v55  ;;  %vm1570_vm13 = vmor %vm1154_vm7, %vm9376_vm14  ;;  %v2672_v39 = vand.u32 65535, %v1697_v16  ;;  %v2662_v55 = vcvt.s32.f32 %v2660_v6 }
 0x2b1   : > { %v2233_v59 = vpop.xlane.xlu1 %2232  ;;  %v3592_v9 = vadd.f32 %v3591_v52, %v3455_v48  ;;  %v2215_v62 = vadd.s32 %v2214_v43, %v2212_v44  ;;  %v2225_v41 = vcvt.f32.s32 %v2223_v13  ;;  %v14985_v52 = vld [vmem:[#allocation53_spill] sm:$0xff]  ;;  %v2651_v44 = vcvt.s32.f32 %v2649_v1  ;;  %vm9409_vm1 = vmor %vm14986_vm4, %vm9391_vm6 }
 0x2b2   : > { %v2661_v43 = vshrl.u32 %v1696_v49, 16  ;;  %vm1156_vm7 = vcmp.lt.f32.partialorder %v9363_v32, %v14984_v56  ;;  %vm14989_vm14 = vcmp.eq.f32.partialorder %v9363_v32, %v14984_v56  ;;  %vm1285_vm6 = vcmp.eq.f32.partialorder %v9363_v32, %v14992_v45 }
 0x2b3   : > { %vm3327_vm10 = vcmp.eq.s32.totalorder %v2215_v62, %v9094_v12  ;;  %v2226_v53 = vshll.u32 %v2225_v41, 16  ;;  %2642 = vadd.xlane.f32.xlu0 %v2639_v46  ;;  %v2236_v1 = vcvt.f32.s32 %v2233_v59  ;;  %v14993_v41 = vld [vmem:[#allocation52_spill] sm:$0xff]  ;;  %v1699_v16 = vsel %vm9409_vm1, 1, %v14663_v8 }
 0x2b4   : > { %2652 = vadd.xlane.f32.xlu1 %v2650_v2  ;;  %v3456_v24 = vsel %vm3327_vm10, %v14985_v52, 0.0  ;;  %v2235_v54 = vpop.xlane.xlu0 %2234  ;;  %vm9420_vm10 = vmand %vm14989_vm14, %vm7921_vm0  ;;  %v1698_v2 = vsel %vm1570_vm13, 1, %v14663_v8  ;;  %v2674_v52 = vcvt.s32.f32 %v2672_v39  ;;  %vm1157_vm14 = vcmp.lt.f32.partialorder %v9363_v32, %v14992_v45 }
 0x2b5   : > { %v2245_v35 = vpop.xlane.xlu1 %2244  ;;  %v3593_v48 = vadd.f32 %v3592_v9, %v3456_v24  ;;  %v2227_v13 = vadd.s32 %v2226_v53, %v2224_v34  ;;  %v2237_v62 = vcvt.f32.s32 %v2235_v54  ;;  %v2663_v53 = vcvt.s32.f32 %v2661_v43  ;;  %vm1572_vm13 = vmor %vm1156_vm7, %vm9420_vm10 }
 0x2b6   : > { %v2684_v50 = vand.u32 65535, %v1698_v2  ;;  %v2675_v59 = vcvt.s32.f32 %v2673_v37  ;;  %v2248_v43 = vcvt.f32.s32 %v2245_v35  ;;  %v2696_v37 = vand.u32 65535, %v1699_v16 }
 0x2b7   : > { %vm3328_vm4 = vcmp.eq.s32.totalorder %v2227_v13, %v9094_v12  ;;  %v2238_v9 = vshll.u32 %v2237_v62, 16  ;;  %2654 = vadd.xlane.f32.xlu0 %v2651_v44  ;;  %v14997_v13 = vld [vmem:[#allocation96_spill] sm:$0xff]  ;;  %v14998_v62 = vld [vmem:[#allocation55_spill] sm:$0xff] }
 0x2b8   : > { %2664 = vadd.xlane.f32.xlu1 %v2662_v55  ;;  %v3457_v6 = vsel %vm3328_vm4, %v14993_v41, 0.0  ;;  %v2247_v47 = vpop.xlane.xlu0 %2246  ;;  %vm14994_vm4 = vnez %v14654_v25  ;;  %vm1286_vm7 = vcmp.eq.f32.partialorder %v9363_v32, %v14997_v13 }
 0x2b9   : > { %v2257_v34 = vpop.xlane.xlu1 %2256  ;;  %v3594_v24 = vadd.f32 %v3593_v48, %v3457_v6  ;;  %v2239_v54 = vadd.s32 %v2238_v9, %v2236_v1  ;;  %v2249_v3 = vcvt.f32.s32 %v2247_v47  ;;  %vm9444_vm1 = vmand %vm1285_vm6, %vm14994_vm4  ;;  %v2685_v48 = vshrl.u32 %v1698_v2, 16 }
 0x2ba   : > { %v1700_v1 = vsel %vm1572_vm13, 1, %v14663_v8  ;;  %v2686_v47 = vcvt.s32.f32 %v2684_v50  ;;  %vm9460_vm6 = vmor %vm1157_vm14, %vm9444_vm1  ;;  %v2260_v2 = vcvt.f32.s32 %v2257_v34 }
 0x2bb   : > { %vm3329_vm0 = vcmp.eq.s32.totalorder %v2239_v54, %v9094_v12  ;;  %v2250_v39 = vshll.u32 %v2249_v3, 16  ;;  %2666 = vadd.xlane.f32.xlu0 %v2663_v53  ;;  %v14999_v54 = vld [vmem:[#allocation97_spill] sm:$0xff]  ;;  %v2697_v3 = vshrl.u32 %v1699_v16, 16  ;;  %vm9472_vm10 = vmand %vm1286_vm7, %vm7951_vm9 }
 0x2bc   : > { %2676 = vadd.xlane.f32.xlu1 %v2674_v52  ;;  %v3458_v55 = vsel %vm3329_vm0, %v14998_v62, 0.0  ;;  %v2259_v46 = vpop.xlane.xlu0 %2258  ;;  %vm1158_vm0 = vcmp.lt.f32.partialorder %v9363_v32, %v14997_v13  ;;  %v15004_v52 = vld [vmem:[#allocation54_spill] sm:$0xff]  ;;  %v2708_v62 = vand.u32 65535, %v1700_v1  ;;  %vm1159_vm14 = vcmp.lt.f32.partialorder %v9363_v32, %v14999_v54 }
 0x2bd   : > { %v2269_v49 = vpop.xlane.xlu1 %2268  ;;  %v3595_v9 = vadd.f32 %v3594_v24, %v3458_v55  ;;  %v2251_v41 = vadd.s32 %v2250_v39, %v2248_v43  ;;  %v2261_v6 = vcvt.f32.s32 %v2259_v46  ;;  %v2687_v43 = vcvt.s32.f32 %v2685_v48 }
 0x2be   : > { %v2698_v39 = vcvt.s32.f32 %v2696_v37  ;;  %v1701_v46 = vsel %vm9460_vm6, 1, %v14663_v8  ;;  %vm15005_vm1 = vcmp.eq.f32.partialorder %v9363_v32, %v14999_v54  ;;  %v2709_v48 = vshrl.u32 %v1700_v1, 16  ;;  %vm1574_vm6 = vmor %vm1158_vm0, %vm9472_vm10  ;;  %v15009_v1 = vld [vmem:[#allocation98_spill] sm:$0xff] }
 0x2bf   : > { %vm3330_vm13 = vcmp.eq.s32.totalorder %v2251_v41, %v9094_v12  ;;  %v2262_v50 = vshll.u32 %v2261_v6, 16  ;;  %2678 = vadd.xlane.f32.xlu0 %v2675_v59  ;;  %vm9487_vm7 = vmand %vm15005_vm1, %vm14816_vm2  ;;  %v2272_v37 = vcvt.f32.s32 %v2269_v49  ;;  %v15008_v6 = vld [vmem:[#allocation57_spill] sm:$0xff]  ;;  %vm1288_vm1 = vcmp.eq.f32.partialorder %v9363_v32, %v15009_v1  ;;  %v15016_v41 = vld [vmem:[#allocation56_spill] sm:$0xff] }
 0x2c0   : > { %2688 = vadd.xlane.f32.xlu1 %v2686_v47  ;;  %v3459_v16 = vsel %vm3330_vm13, %v15004_v52, 0.0  ;;  %v2271_v24 = vpop.xlane.xlu0 %2270  ;;  %v2710_v52 = vcvt.s32.f32 %v2708_v62  ;;  %vm9505_vm2 = vmor %vm1159_vm14, %vm9487_vm7  ;;  %v1702_v62 = vsel %vm1574_vm6, 1, %v14663_v8  ;;  %vm1160_vm0 = vcmp.lt.f32.partialorder %v9363_v32, %v15009_v1 }
 0x2c1   : > { %v2281_v44 = vpop.xlane.xlu1 %2280  ;;  %v3596_v34 = vadd.f32 %v3595_v9, %v3459_v16  ;;  %v2263_v55 = vadd.s32 %v2262_v50, %v2260_v2  ;;  %v2273_v59 = vcvt.f32.s32 %v2271_v24  ;;  %v2699_v50 = vcvt.s32.f32 %v2697_v3 }
 0x2c2   : > { %v2720_v16 = vand.u32 65535, %v1701_v46  ;;  %v2711_v3 = vcvt.s32.f32 %v2709_v48  ;;  %vm15013_vm14 = vnez %v14665_v28 }
 0x2c3   : > { %vm3331_vm13 = vcmp.eq.s32.totalorder %v2263_v55, %v9094_v12  ;;  %v2274_v9 = vshll.u32 %v2273_v59, 16  ;;  %2690 = vadd.xlane.f32.xlu0 %v2687_v43  ;;  %vm9517_vm7 = vmand %vm1288_vm1, %vm15013_vm14 }
 0x2c4   : > { %2700 = vadd.xlane.f32.xlu1 %v2698_v39  ;;  %v3460_v47 = vsel %vm3331_vm13, %v15008_v6, 0.0  ;;  %v2283_v35 = vpop.xlane.xlu0 %2282  ;;  %v15012_v39 = vld [vmem:[#allocation99_spill] sm:$0xff]  ;;  %v2722_v6 = vcvt.s32.f32 %v2720_v16  ;;  %vm1576_vm6 = vmor %vm1160_vm0, %vm9517_vm7  ;;  %vm15023_vm7 = vnez %v14671_v19 }
 0x2c5   : > { %v2293_v2 = vpop.xlane.xlu1 %2292  ;;  %v3597_v49 = vadd.f32 %v3596_v34, %v3460_v47  ;;  %v2275_v24 = vadd.s32 %v2274_v9, %v2272_v37  ;;  %v2285_v43 = vcvt.f32.s32 %v2283_v35  ;;  %vm1289_vm10 = vcmp.eq.f32.partialorder %v9363_v32, %v15012_v39 }
 0x2c6   : > { %v2284_v34 = vcvt.f32.s32 %v2281_v44  ;;  %v2721_v47 = vshrl.u32 %v1701_v46, 16  ;;  %v1703_v35 = vsel %vm9505_vm2, 1, %v14663_v8  ;;  %vm9532_vm1 = vmand %vm1289_vm10, %vm14915_vm12  ;;  %v15019_v46 = vld [vmem:[#allocation100_spill] sm:$0xff]  ;;  %v2296_v16 = vcvt.f32.s32 %v2293_v2 }
 0x2c7   : > { %vm3332_vm13 = vcmp.eq.s32.totalorder %v2275_v24, %v9094_v12  ;;  %v2286_v55 = vshll.u32 %v2285_v43, 16  ;;  %2702 = vadd.xlane.f32.xlu0 %v2699_v50  ;;  %vm15020_vm10 = vcmp.lt.f32.partialorder %v9363_v32, %v15012_v39  ;;  %vm1162_vm0 = vcmp.lt.f32.partialorder %v9363_v32, %v15019_v46 }
 0x2c8   : > { %2712 = vadd.xlane.f32.xlu1 %v2710_v52  ;;  %v3461_v37 = vsel %vm3332_vm13, %v15016_v41, 0.0  ;;  %v2295_v48 = vpop.xlane.xlu0 %2294  ;;  %v2732_v52 = vand.u32 65535, %v1702_v62  ;;  %v2723_v41 = vcvt.s32.f32 %v2721_v47  ;;  %vm9550_vm13 = vmor %vm15020_vm10, %vm9532_vm1  ;;  %v1704_v59 = vsel %vm1576_vm6, 1, %v14663_v8 }
 0x2c9   : > { %v2305_v9 = vpop.xlane.xlu1 %2304  ;;  %v3598_v44 = vadd.f32 %v3597_v49, %v3461_v37  ;;  %v2287_v24 = vadd.s32 %v2286_v55, %v2284_v34  ;;  %v2297_v50 = vcvt.f32.s32 %v2295_v48  ;;  %v2733_v37 = vshrl.u32 %v1702_v62, 16 }
 0x2ca   : > { %v2744_v48 = vand.u32 65535, %v1703_v35  ;;  %v2734_v2 = vcvt.s32.f32 %v2732_v52  ;;  %v2745_v62 = vshrl.u32 %v1703_v35, 16  ;;  %v2308_v47 = vcvt.f32.s32 %v2305_v9 }
 0x2cb   : > { %vm3333_vm2 = vcmp.eq.s32.totalorder %v2287_v24, %v9094_v12  ;;  %v2298_v49 = vshll.u32 %v2297_v50, 16  ;;  %2714 = vadd.xlane.f32.xlu0 %v2711_v3  ;;  %v15028_v50 = vld [vmem:[#allocation58_spill] sm:$0xff]  ;;  %v1705_v35 = vsel %vm9550_vm13, 1, %v14663_v8  ;;  %v2756_v56 = vand.u32 65535, %v1704_v59  ;;  %v15036_v3 = vld [vmem:[#allocation61_spill] sm:$0xff] }
 0x2cc   : > { %2724 = vadd.xlane.f32.xlu1 %v2722_v6  ;;  %v3462_v53 = vsel %vm3333_vm2, %v14769_v63, 0.0  ;;  %v2307_v34 = vpop.xlane.xlu0 %2306  ;;  %vm15024_vm2 = vcmp.eq.f32.partialorder %v9363_v32, %v15019_v46  ;;  %v15027_v6 = vld [vmem:[#allocation102_spill] sm:$0xff]  ;;  %v2747_v9 = vcvt.s32.f32 %v2745_v62 }
 0x2cd   : > { %v2317_v55 = vpop.xlane.xlu1 %2316  ;;  %v3599_v54 = vadd.f32 %v3598_v44, %v3462_v53  ;;  %v2299_v13 = vadd.s32 %v2298_v49, %v2296_v16  ;;  %v2309_v24 = vcvt.f32.s32 %v2307_v34  ;;  %vm9561_vm12 = vmand %vm15024_vm2, %vm15023_vm7  ;;  %vm1291_vm1 = vcmp.eq.f32.partialorder %v9363_v32, %v15027_v6 }
 0x2ce   : > { %v2735_v49 = vcvt.s32.f32 %v2733_v37  ;;  %v2746_v53 = vcvt.s32.f32 %v2744_v48  ;;  %vm9578_vm6 = vmor %vm1162_vm0, %vm9561_vm12  ;;  %v15034_v37 = vld [vmem:[#allocation103_spill] sm:$0xff]  ;;  %v2320_v48 = vcvt.f32.s32 %v2317_v55 }
 0x2cf   : > { %vm3334_vm10 = vcmp.eq.s32.totalorder %v2299_v13, %v9094_v12  ;;  %v2310_v44 = vshll.u32 %v2309_v24, 16  ;;  %2726 = vadd.xlane.f32.xlu0 %v2723_v41  ;;  %v2757_v41 = vshrl.u32 %v1704_v59, 16  ;;  %v1706_v62 = vsel %vm9578_vm6, 1, %v14663_v8  ;;  %v15047_v13 = vld [vmem:[#allocation60_spill] sm:$0xff] }
 0x2d0   : > { %2736 = vadd.xlane.f32.xlu1 %v2734_v2  ;;  %v3463_v52 = vsel %vm3334_vm10, %v15028_v50, 0.0  ;;  %v2319_v43 = vpop.xlane.xlu0 %2318  ;;  %vm15031_vm10 = vnez %v14675_v29  ;;  %v15035_v2 = vld [vmem:[#allocation104_spill] sm:$0xff]  ;;  %v2768_v50 = vand.u32 65535, %v1705_v35  ;;  %vm15040_vm6 = vcmp.eq.f32.partialorder %v9363_v32, %v15034_v37 }
 0x2d1   : > { %v2329_v16 = vpop.xlane.xlu1 %2328  ;;  %v3600_v34 = vadd.f32 %v3599_v54, %v3463_v52  ;;  %v2311_v39 = vadd.s32 %v2310_v44, %v2308_v47  ;;  %v2321_v1 = vcvt.f32.s32 %v2319_v43  ;;  %vm9589_vm13 = vmand %vm1291_vm1, %vm15031_vm10  ;;  %vm15037_vm1 = vcmp.lt.f32.partialorder %v9363_v32, %v15027_v6 }
 0x2d2   : > { %vm9607_vm12 = vmor %vm15037_vm1, %vm9589_vm13  ;;  %vm1165_vm10 = vcmp.lt.f32.partialorder %v9363_v32, %v15035_v2  ;;  %vm15043_vm1 = vnez %v14681_v27 }
 0x2d3   : > { %vm3335_vm0 = vcmp.eq.s32.totalorder %v2311_v39, %v9094_v12  ;;  %v2322_v24 = vshll.u32 %v2321_v1, 16  ;;  %2738 = vadd.xlane.f32.xlu0 %v2735_v49  ;;  %v2758_v39 = vcvt.s32.f32 %v2756_v56  ;;  %vm9618_vm2 = vmand %vm15040_vm6, %vm14750_vm8  ;;  %v2769_v56 = vshrl.u32 %v1705_v35, 16  ;;  %v15050_v1 = vld [vmem:[#allocation105_spill] sm:$0xff] }
 0x2d4   : > { %2748 = vadd.xlane.f32.xlu1 %v2746_v53  ;;  %v3464_v63 = vsel %vm3335_vm0, %v15036_v3, 0.0  ;;  %v2331_v47 = vpop.xlane.xlu0 %2330  ;;  %v2332_v49 = vcvt.f32.s32 %v2329_v16  ;;  %vm15044_vm0 = vcmp.eq.f32.partialorder %v9363_v32, %v15035_v2  ;;  %v2770_v3 = vcvt.s32.f32 %v2768_v50 }
 0x2d5   : > { %v2341_v44 = vpop.xlane.xlu1 %2340  ;;  %v3601_v59 = vadd.f32 %v3600_v34, %v3464_v63  ;;  %v2323_v52 = vadd.s32 %v2322_v24, %v2320_v48  ;;  %v2333_v43 = vcvt.f32.s32 %v2331_v47  ;;  %vm9630_vm7 = vmand %vm15044_vm0, %vm15043_vm1  ;;  %v2759_v24 = vcvt.s32.f32 %v2757_v41 }
 0x2d6   : > { %v2780_v63 = vand.u32 65535, %v1706_v62  ;;  %vm15048_vm0 = vcmp.lt.f32.partialorder %v9363_v32, %v15034_v37  ;;  %v2344_v50 = vcvt.f32.s32 %v2341_v44  ;;  %vm1294_vm1 = vcmp.eq.f32.partialorder %v9363_v32, %v15050_v1 }
 0x2d7   : > { %vm3336_vm13 = vcmp.eq.s32.totalorder %v2323_v52, %v9094_v12  ;;  %v2334_v53 = vshll.u32 %v2333_v43, 16  ;;  %2750 = vadd.xlane.f32.xlu0 %v2747_v9  ;;  %v1707_v52 = vsel %vm9607_vm12, 1, %v14663_v8  ;;  %vm1580_vm6 = vmor %vm15048_vm0, %vm9618_vm2  ;;  %v2771_v43 = vcvt.s32.f32 %v2769_v56 }
 0x2d8   : > { %2760 = vadd.xlane.f32.xlu1 %v2758_v39  ;;  %v3465_v35 = vsel %vm3336_vm13, %v15047_v13, 0.0  ;;  %v2343_v54 = vpop.xlane.xlu0 %2342  ;;  %v2781_v39 = vshrl.u32 %v1706_v62, 16  ;;  %v15049_v13 = vld [vmem:[#allocation106_spill] sm:$0xff]  ;;  %vm1581_vm12 = vmor %vm1165_vm10, %vm9630_vm7  ;;  %v2782_v62 = vcvt.s32.f32 %v2780_v63  ;;  %vm1166_vm0 = vcmp.lt.f32.partialorder %v9363_v32, %v15050_v1 }
 0x2d9   : > { %v2353_v48 = vpop.xlane.xlu1 %2352  ;;  %v3602_v16 = vadd.f32 %v3601_v59, %v3465_v35  ;;  %v2335_v47 = vadd.s32 %v2334_v53, %v2332_v49  ;;  %v2345_v9 = vcvt.f32.s32 %v2343_v54  ;;  %vm1295_vm13 = vcmp.eq.f32.partialorder %v9363_v32, %v15049_v13  ;;  %vm9667_vm10 = vmand %vm1294_vm1, %vm14948_vm11 }
 0x2da   : > { %v2792_v49 = vand.u32 65535, %v1707_v52  ;;  %v9653_v53 = vsel %vm1580_vm6, 1, %v14663_v8  ;;  %v2783_v34 = vcvt.s32.f32 %v2781_v39  ;;  %v2356_v63 = vcvt.f32.s32 %v2353_v48  ;;  %v15054_v39 = vld [vmem:[#allocation62_spill] sm:$0xff] }
 0x2db   : > { %v3603_v41 = vrot.slane %v3602_v16, 4  ;;  %v2346_v59 = vshll.u32 %v2345_v9, 16  ;;  %2762 = vadd.xlane.f32.xlu0 %v2759_v24  ;;  %vm3337_vm2 = vcmp.eq.s32.totalorder %v2335_v47, %v9094_v12  ;;  %v2793_v24 = vshrl.u32 %v1707_v52, 16  ;;  %v15053_v47 = vld [vmem:[#allocation63_spill] sm:$0xff] }
 0x2dc   : > { %2772 = vadd.xlane.f32.xlu1 %v2770_v3  ;;  %v2355_v55 = vpop.xlane.xlu0 %2354  ;;  %v9659_v3 = vsel %vm1581_vm12, 1, %v14663_v8  ;;  %v3466_v52 = vsel %vm3337_vm2, %v15053_v47, 0.0  ;;  %v2804_v48 = vand.u32 65535, %v9653_v53  ;;  %vm1167_vm6 = vcmp.lt.f32.partialorder %v9363_v32, %v15049_v13 }
 0x2dd   : > { %v2365_v56 = vpop.xlane.xlu1 %2364  ;;  %v3604_v44 = vadd.f32 %v3603_v41, %v3602_v16  ;;  %v2347_v35 = vadd.s32 %v2346_v59, %v2344_v50  ;;  %v2357_v54 = vcvt.f32.s32 %v2355_v55  ;;  %v2794_v55 = vcvt.s32.f32 %v2792_v49 }
 0x2de   : > { %vm15055_vm1 = vnez %v14689_v22  ;;  %v2795_v49 = vcvt.s32.f32 %v2793_v24 }
 0x2df   : > { %v3605_v9 = vrot.slane %v3604_v44, 2  ;;  %vm3338_vm7 = vcmp.eq.s32.totalorder %v2347_v35, %v9094_v12  ;;  %v2358_v2 = vshll.u32 %v2357_v54, 16  ;;  %2774 = vadd.xlane.f32.xlu0 %v2771_v43  ;;  %vm9681_vm12 = vmand %vm1295_vm13, %vm15055_vm1 }
 0x2e0   : > { %2784 = vadd.xlane.f32.xlu1 %v2782_v62  ;;  %v3467_v41 = vsel %vm3338_vm7, %v15054_v39, 0.0  ;;  %v2367_v50 = vpop.xlane.xlu0 %2366  ;;  %v15058_v39 = vld [vmem:[#allocation107_spill] sm:$0xff]  ;;  %vm9694_vm13 = vmor %vm1166_vm0, %vm9667_vm10 }
 0x2e1   : > { %v2377_v59 = vpop.xlane.xlu1 %2376  ;;  %v3606_v43 = vadd.f32 %v3605_v9, %v3604_v44  ;;  %v3609_v62 = vadd.f32 %v3467_v41, %v3466_v52  ;;  %v2359_v35 = vadd.s32 %v2358_v2, %v2356_v63  ;;  %v2369_v54 = vcvt.f32.s32 %v2367_v50  ;;  %vm9705_vm0 = vmor %vm1167_vm6, %vm9681_vm12 }
 0x2e2   : > { %v2805_v44 = vshrl.u32 %v9653_v53, 16  ;;  %v2368_v9 = vcvt.f32.s32 %v2365_v56  ;;  %v2806_v50 = vcvt.s32.f32 %v2804_v48  ;;  %vm1168_vm10 = vcmp.lt.f32.partialorder %v9363_v32, %v15058_v39  ;;  %v15066_v48 = vld [vmem:[#allocation108_spill] sm:$0xff] }
 0x2e3   : > { %v3607_v2 = vrot.slane %v3606_v43, 1  ;;  %vm3339_vm7 = vcmp.eq.s32.totalorder %v2359_v35, %v9094_v12  ;;  %v2370_v63 = vshll.u32 %v2369_v54, 16  ;;  %2786 = vadd.xlane.f32.xlu0 %v2783_v34  ;;  %v2816_v12 = vand.u32 65535, %v9659_v3  ;;  %v9729_v54 = vld [vmem:[%s14124_s4] ss:$0 sm:$0xff] }
 0x2e4   : > { %2796 = vadd.xlane.f32.xlu1 %v2794_v55  ;;  %v3468_v24 = vsel %vm3339_vm7, %v14808_v11, 0.0  ;;  %v2379_v41 = vpop.xlane.xlu0 %2378  ;;  %vm15063_vm7 = vcmp.eq.f32.partialorder %v9363_v32, %v15058_v39  ;;  %vm1297_vm1 = vcmp.eq.f32.partialorder %v9363_v32, %v15066_v48  ;;  %v2380_v47 = vcvt.f32.s32 %v2377_v59 }
 0x2e5   : > { %v2389_v53 = vpop.xlane.xlu1 %2388  ;;  %v3608_v56 = vadd.f32 %v3607_v2, %v3606_v43  ;;  %v3610_v34 = vadd.f32 %v3609_v62, %v3468_v24  ;;  %v2371_v55 = vadd.s32 %v2370_v63, %v2368_v9  ;;  %v2381_v35 = vcvt.f32.s32 %v2379_v41  ;;  %vm9716_vm2 = vmand %vm15063_vm7, %vm14775_vm3 }
 0x2e6   : > { %v2817_v43 = vshrl.u32 %v9659_v3, 16  ;;  %v1710_v62 = vsel %vm9694_vm13, 1, %v14663_v8  ;;  %vm15067_vm12 = vcmask 1042434   ;;  %v2807_v24 = vcvt.s32.f32 %v2805_v44  ;;  %vm9745_vm13 = vmor %vm1168_vm10, %vm9716_vm2 }
 0x2e7   : > { %vm3340_vm6 = vcmp.eq.s32.totalorder %v2371_v55, %v9729_v54  ;;  %v2382_v2 = vshll.u32 %v2381_v35, 16  ;;  %2798 = vadd.xlane.f32.xlu0 %v2795_v49  ;;  %v9734_v9 = vsel %vm15067_vm12, %v3608_v56, %v9316_v17  ;;  %v2818_v41 = vcvt.s32.f32 %v2816_v12  ;;  %v15073_v56 = vld [vmem:[#allocation109_spill] sm:$0xff] }
 0x2e8   : > { %2808 = vadd.xlane.f32.xlu1 %v2806_v50  ;;  %v3469_v3 = vsel %vm3340_vm6, %v14814_v10, 0.0  ;;  %v2391_v63 = vpop.xlane.xlu0 %2390  ;;  %v1711_v13 = vsel %vm9705_vm0, 1, %v14663_v8  ;;  %v2828_v35 = vand.u32 65535, %v1710_v62  ;;  %v1033_v10 = vcombine.high %v14883_v51, %v14883_v51 }
 0x2e9   : > { %v2401_v52 = vpop.xlane.xlu1 %2400  ;;  %v3611_v1 = vadd.f32 %v3610_v34, %v3469_v3  ;;  %v2383_v55 = vadd.s32 %v2382_v2, %v2380_v47  ;;  %v2393_v59 = vcvt.f32.s32 %v2391_v63  ;;  %vm1169_vm7 = vcmp.lt.f32.partialorder %v9363_v32, %v15066_v48 }
 0x2ea   : > { %v2819_v49 = vcvt.s32.f32 %v2817_v43  ;;  %vm15070_vm0 = vnez %v14696_v38  ;;  %v2392_v50 = vcvt.f32.s32 %v2389_v53  ;;  %v2829_v51 = vshrl.u32 %v1710_v62, 16  ;;  %v15074_v62 = vld [vmem:[#allocation111_spill] sm:$0xff] }
 0x2eb   : > { %vm9758_vm6 = vmand %vm1297_vm1, %vm15070_vm0  ;;  %vm3341_vm2 = vcmp.eq.s32.totalorder %v2383_v55, %v9729_v54  ;;  %v2394_v12 = vshll.u32 %v2393_v59, 16  ;;  %2810 = vadd.xlane.f32.xlu0 %v2807_v24  ;;  %vm1298_vm10 = vcmp.eq.f32.partialorder %v9363_v32, %v15073_v56  ;;  %v2840_v43 = vand.u32 65535, %v1711_v13 }
 0x2ec   : > { %2820 = vadd.xlane.f32.xlu1 %v2818_v41  ;;  %v3470_v34 = vsel %vm3341_vm2, %v14819_v42, 0.0  ;;  %v2403_v16 = vpop.xlane.xlu0 %2402  ;;  %v1712_v47 = vsel %vm9745_vm13, 1, %v14663_v8  ;;  %v2830_v53 = vcvt.s32.f32 %v2828_v35  ;;  %v9770_v24 = vrot.slane %v1033_v10, %v7695_v4  ;;  %vm9779_vm12 = vmor %vm1169_vm7, %vm9758_vm6 }
 0x2ed   : > { %v2413_v11 = vpop.xlane.xlu1 %2412  ;;  %v3612_v2 = vadd.f32 %v3611_v1, %v3470_v34  ;;  %v2395_v3 = vadd.s32 %v2394_v12, %v2392_v50  ;;  %v2405_v63 = vcvt.f32.s32 %v2403_v16  ;;  %v2841_v41 = vshrl.u32 %v1711_v13, 16  ;;  %vm9791_vm1 = vmand %vm1298_vm10, %vm14978_vm15 }
 0x2ee   : > { %vm1170_vm13 = vcmp.lt.f32.partialorder %v9363_v32, %v15073_v56  ;;  %v2404_v1 = vcvt.f32.s32 %v2401_v52  ;;  %v2831_v10 = vcvt.s32.f32 %v2829_v51  ;;  %v2842_v44 = vcvt.s32.f32 %v2840_v43 }
 0x2ef   : > { %vm3342_vm2 = vcmp.eq.s32.totalorder %v2395_v3, %v9729_v54  ;;  %v2406_v55 = vshll.u32 %v2405_v63, 16  ;;  %2822 = vadd.xlane.f32.xlu0 %v2819_v49  ;;  %v2852_v50 = vand.u32 65535, %v1712_v47  ;;  %v1713_v34 = vsel %vm9779_vm12, 1, %v14663_v8  ;;  %vm1586_vm12 = vmor %vm1170_vm13, %vm9791_vm1 }
 0x2f0   : > { %2832 = vadd.xlane.f32.xlu1 %v2830_v53  ;;  %v3471_v59 = vsel %vm3342_vm2, %v14821_v30, 0.0  ;;  %v2415_v35 = vpop.xlane.xlu0 %2414  ;;  %vm1171_vm7 = vcmp.lt.f32.partialorder %v9363_v32, %v15074_v62  ;;  %vm15079_vm6 = vcmp.eq.f32.partialorder %v9363_v32, %v15074_v62  ;;  %v2853_v51 = vshrl.u32 %v1712_v47, 16  ;;  %v15083_v47 = vld [vmem:[#allocation112_spill] sm:$0xff] }
 0x2f1   : > { %v2425_v17 = vpop.xlane.xlu1 %2424  ;;  %v3613_v52 = vadd.f32 %v3612_v2, %v3471_v59  ;;  %v2407_v12 = vadd.s32 %v2406_v55, %v2404_v1  ;;  %v2417_v49 = vcvt.f32.s32 %v2415_v35  ;;  %vm9806_vm10 = vmand %vm15079_vm6, %vm14887_vm5  ;;  %v2416_v16 = vcvt.f32.s32 %v2413_v11  ;;  %v15082_v2 = vld [vmem:[#allocation69_spill] sm:$0xff] }
 0x2f2   : > { %v2843_v42 = vcvt.s32.f32 %v2841_v41  ;;  %v2854_v1 = vcvt.s32.f32 %v2852_v50  ;;  %v2864_v55 = vand.u32 65535, %v1713_v34  ;;  %vm1300_vm6 = vcmp.eq.f32.partialorder %v9770_v24, %v15083_v47  ;;  %vm9824_vm5 = vmor %vm1171_vm7, %vm9806_vm10 }
 0x2f3   : > { %vm3343_vm2 = vcmp.eq.s32.totalorder %v2407_v12, %v9729_v54  ;;  %v2418_v43 = vshll.u32 %v2417_v49, 16  ;;  %2834 = vadd.xlane.f32.xlu0 %v2831_v10  ;;  %v15086_v10 = vld [vmem:[#allocation113_spill] sm:$0xff]  ;;  %v2855_v41 = vcvt.s32.f32 %v2853_v51  ;;  %vm1172_vm13 = vcmp.lt.f32.partialorder %v9770_v24, %v15083_v47  ;;  %v15090_v12 = vld [vmem:[#allocation68_spill] sm:$0xff] }
 0x2f4   : > { %2844 = vadd.xlane.f32.xlu1 %v2842_v44  ;;  %v3472_v3 = vsel %vm3343_vm2, %v15082_v2, 0.0  ;;  %v2427_v63 = vpop.xlane.xlu0 %2426  ;;  %vm1301_vm1 = vcmp.eq.f32.partialorder %v9770_v24, %v15086_v10  ;;  %v1714_v44 = vsel %vm1586_vm12, 1, %v14663_v8  ;;  %v2428_v50 = vcvt.f32.s32 %v2425_v17 }
 0x2f5   : > { %v2437_v53 = vpop.xlane.xlu1 %2436  ;;  %v3614_v11 = vadd.f32 %v3613_v52, %v3472_v3  ;;  %v2419_v59 = vadd.s32 %v2418_v43, %v2416_v16  ;;  %v2429_v35 = vcvt.f32.s32 %v2427_v63  ;;  %vm15087_vm7 = vnez %v14651_v23 }
 0x2f6   : > { %vm9836_vm10 = vmand %vm1300_vm6, %vm15087_vm7  ;;  %v2866_v16 = vcvt.s32.f32 %v2864_v55  ;;  %v2865_v43 = vshrl.u32 %v1713_v34, 16  ;;  %v1715_v2 = vsel %vm9824_vm5, 1, %v14663_v8  ;;  %v15093_v34 = vld [vmem:[#allocation114_spill] sm:$0xff]  ;;  %v2440_v55 = vcvt.f32.s32 %v2437_v53 }
 0x2f7   : > { %vm3344_vm2 = vcmp.eq.s32.totalorder %v2419_v59, %v9729_v54  ;;  %v2430_v52 = vshll.u32 %v2429_v35, 16  ;;  %2846 = vadd.xlane.f32.xlu0 %v2843_v42  ;;  %v2876_v42 = vand.u32 65535, %v1714_v44  ;;  %vm9851_vm6 = vmand %vm1301_vm1, %vm14994_vm4  ;;  %vm15094_vm1 = vcmp.lt.f32.partialorder %v9770_v24, %v15086_v10 }
 0x2f8   : > { %2856 = vadd.xlane.f32.xlu1 %v2854_v1  ;;  %v3473_v49 = vsel %vm3344_vm2, %v15090_v12, 0.0  ;;  %v2439_v30 = vpop.xlane.xlu0 %2438  ;;  %vm1588_vm12 = vmor %vm1172_vm13, %vm9836_vm10  ;;  %v2888_v12 = vand.u32 65535, %v1715_v2  ;;  %vm1174_vm13 = vcmp.lt.f32.partialorder %v9770_v24, %v15093_v34  ;;  %vm15097_vm10 = vcmp.eq.f32.partialorder %v9770_v24, %v15093_v34 }
 0x2f9   : > { %v2449_v51 = vpop.xlane.xlu1 %2448  ;;  %v3615_v17 = vadd.f32 %v3614_v11, %v3473_v49  ;;  %v2431_v3 = vadd.s32 %v2430_v52, %v2428_v50  ;;  %v2441_v63 = vcvt.f32.s32 %v2439_v30  ;;  %v2867_v50 = vcvt.s32.f32 %v2865_v43  ;;  %vm9869_vm2 = vmor %vm15094_vm1, %vm9851_vm6 }
 0x2fa   : > { %v2877_v52 = vshrl.u32 %v1714_v44, 16  ;;  %v2878_v53 = vcvt.s32.f32 %v2876_v42  ;;  %v2889_v44 = vshrl.u32 %v1715_v2, 16  ;;  %v1716_v32 = vsel %vm1588_vm12, 1, %v14663_v8 }
 0x2fb   : > { %vm3345_vm5 = vcmp.eq.s32.totalorder %v2431_v3, %v9729_v54  ;;  %v2442_v11 = vshll.u32 %v2441_v63, 16  ;;  %2858 = vadd.xlane.f32.xlu0 %v2855_v41  ;;  %v2452_v43 = vcvt.f32.s32 %v2449_v51  ;;  %v1717_v2 = vsel %vm9869_vm2, 1, %v14663_v8 }
 0x2fc   : > { %2868 = vadd.xlane.f32.xlu1 %v2866_v16  ;;  %v3474_v59 = vsel %vm3345_vm5, %v14842_v57, 0.0  ;;  %v2451_v35 = vpop.xlane.xlu0 %2450  ;;  %vm9880_vm5 = vmand %vm15097_vm10, %vm7951_vm9  ;;  %v15100_v16 = vld [vmem:[#allocation115_spill] sm:$0xff]  ;;  %v2900_v56 = vand.u32 65535, %v1716_v32  ;;  %v2912_v41 = vand.u32 65535, %v1717_v2 }
 0x2fd   : > { %v2461_v13 = vpop.xlane.xlu1 %2460  ;;  %v3616_v49 = vadd.f32 %v3615_v17, %v3474_v59  ;;  %v2443_v30 = vadd.s32 %v2442_v11, %v2440_v55  ;;  %v2453_v3 = vcvt.f32.s32 %v2451_v35  ;;  %vm1303_vm6 = vcmp.eq.f32.partialorder %v9770_v24, %v15100_v16  ;;  %vm1590_vm12 = vmor %vm1174_vm13, %vm9880_vm5 }
 0x2fe   : > { %v2879_v55 = vcvt.s32.f32 %v2877_v52  ;;  %v2890_v11 = vcvt.s32.f32 %v2888_v12  ;;  %vm1175_vm10 = vcmp.lt.f32.partialorder %v9770_v24, %v15100_v16  ;;  %v2901_v12 = vshrl.u32 %v1716_v32, 16 }
 0x2ff   : > { %vm3346_vm1 = vcmp.eq.s32.totalorder %v2443_v30, %v9729_v54  ;;  %v2454_v17 = vshll.u32 %v2453_v3, 16  ;;  %2870 = vadd.xlane.f32.xlu0 %v2867_v50  ;;  %v2464_v50 = vcvt.f32.s32 %v2461_v13  ;;  %v1718_v57 = vsel %vm1590_vm12, 1, %v14663_v8 }
 0x300   : > { %2880 = vadd.xlane.f32.xlu1 %v2878_v53  ;;  %v3475_v63 = vsel %vm3346_vm1, %v14849_v14, 0.0  ;;  %v2463_v42 = vpop.xlane.xlu0 %2462  ;;  %v2891_v14 = vcvt.s32.f32 %v2889_v44  ;;  %vm15101_vm1 = vnez %v14661_v18  ;;  %v2914_v51 = vcvt.s32.f32 %v2912_v41 }
 0x301   : > { %v2473_v1 = vpop.xlane.xlu1 %2472  ;;  %v3617_v59 = vadd.f32 %v3616_v49, %v3475_v63  ;;  %v2455_v35 = vadd.s32 %v2454_v17, %v2452_v43  ;;  %v2465_v62 = vcvt.f32.s32 %v2463_v42  ;;  %vm9904_vm2 = vmand %vm1303_vm6, %vm15101_vm1  ;;  %v15104_v49 = vld [vmem:[#allocation116_spill] sm:$0xff]  ;;  %v2902_v63 = vcvt.s32.f32 %v2900_v56  ;;  %v15105_v42 = vld [vmem:[#allocation117_spill] sm:$0xff] }
 0x302   : > { %vm1304_vm13 = vcmp.eq.f32.partialorder %v9770_v24, %v15104_v49  ;;  %vm9920_vm6 = vmor %vm1175_vm10, %vm9904_vm2  ;;  %v2476_v13 = vcvt.f32.s32 %v2473_v1  ;;  %vm15111_vm10 = vnez %v14668_v31  ;;  %vm15112_vm2 = vcmp.eq.f32.partialorder %v9770_v24, %v15105_v42 }
 0x303   : > { %vm3347_vm9 = vcmp.eq.s32.totalorder %v2455_v35, %v9729_v54  ;;  %v2466_v52 = vshll.u32 %v2465_v62, 16  ;;  %2882 = vadd.xlane.f32.xlu0 %v2879_v55  ;;  %v2913_v62 = vshrl.u32 %v1717_v2, 16  ;;  %vm9928_vm12 = vmand %vm1304_vm13, %vm15013_vm14  ;;  %v15110_v55 = vld [vmem:[#allocation72_spill] sm:$0xff]  ;;  %v2903_v35 = vcvt.s32.f32 %v2901_v12 }
 0x304   : > { %2892 = vadd.xlane.f32.xlu1 %v2890_v11  ;;  %v3476_v30 = vsel %vm3347_vm9, %v14853_v5, 0.0  ;;  %v2475_v3 = vpop.xlane.xlu0 %2474  ;;  %vm1176_vm9 = vcmp.lt.f32.partialorder %v9770_v24, %v15104_v49  ;;  %vm9939_vm13 = vmand %vm15112_vm2, %vm15111_vm10  ;;  %vm15120_vm14 = vnez %v14671_v19 }
 0x305   : > { %v2485_v53 = vpop.xlane.xlu1 %2484  ;;  %v3618_v44 = vadd.f32 %v3617_v59, %v3476_v30  ;;  %v2467_v43 = vadd.s32 %v2466_v52, %v2464_v50  ;;  %v2477_v17 = vcvt.f32.s32 %v2475_v3  ;;  %v2924_v50 = vand.u32 65535, %v1718_v57  ;;  %vm9953_vm2 = vmor %vm1176_vm9, %vm9928_vm12 }
 0x306   : > { %v1719_v3 = vsel %vm9920_vm6, 1, %v14663_v8  ;;  %v2915_v12 = vcvt.s32.f32 %v2913_v62  ;;  %v15118_v62 = vld [vmem:[#allocation75_spill] sm:$0xff] }
 0x307   : > { %vm3348_vm5 = vcmp.eq.s32.totalorder %v2467_v43, %v9729_v54  ;;  %v2478_v32 = vshll.u32 %v2477_v17, 16  ;;  %2894 = vadd.xlane.f32.xlu0 %v2891_v14  ;;  %v2925_v17 = vshrl.u32 %v1718_v57, 16  ;;  %v15119_v57 = vld [vmem:[#allocation119_spill] sm:$0xff] }
 0x308   : > { %2904 = vadd.xlane.f32.xlu1 %v2902_v63  ;;  %v3477_v11 = vsel %vm3348_vm5, %v15110_v55, 0.0  ;;  %v2487_v2 = vpop.xlane.xlu0 %2486  ;;  %vm1177_vm5 = vcmp.lt.f32.partialorder %v9770_v24, %v15105_v42  ;;  %v15117_v63 = vld [vmem:[#allocation118_spill] sm:$0xff]  ;;  %v2936_v55 = vand.u32 65535, %v1719_v3  ;;  %vm1307_vm12 = vcmp.eq.f32.partialorder %v9770_v24, %v15119_v57 }
 0x309   : > { %v2497_v59 = vpop.xlane.xlu1 %2496  ;;  %v3619_v1 = vadd.f32 %v3618_v44, %v3477_v11  ;;  %v2479_v30 = vadd.s32 %v2478_v32, %v2476_v13  ;;  %v2489_v14 = vcvt.f32.s32 %v2487_v2  ;;  %v2488_v44 = vcvt.f32.s32 %v2485_v53  ;;  %vm1593_vm9 = vmor %vm1177_vm5, %vm9939_vm13 }
 0x30a   : > { %vm1306_vm6 = vcmp.eq.f32.partialorder %v9770_v24, %v15117_v63  ;;  %v2926_v32 = vcvt.s32.f32 %v2924_v50  ;;  %v1720_v53 = vsel %vm9953_vm2, 1, %v14663_v8  ;;  %v2500_v50 = vcvt.f32.s32 %v2497_v59 }
 0x30b   : > { %vm3349_vm10 = vcmp.eq.s32.totalorder %v2479_v30, %v9729_v54  ;;  %v2490_v43 = vshll.u32 %v2489_v14, 16  ;;  %2906 = vadd.xlane.f32.xlu0 %v2903_v35  ;;  %v2937_v35 = vshrl.u32 %v1719_v3, 16  ;;  %vm9975_vm1 = vmand %vm1306_vm6, %vm15120_vm14  ;;  %v2927_v3 = vcvt.s32.f32 %v2925_v17 }
 0x30c   : > { %2916 = vadd.xlane.f32.xlu1 %v2914_v51  ;;  %v3478_v5 = vsel %vm3349_vm10, %v15118_v62, 0.0  ;;  %v2499_v56 = vpop.xlane.xlu0 %2498  ;;  %vm1178_vm10 = vcmp.lt.f32.partialorder %v9770_v24, %v15117_v63  ;;  %v2938_v42 = vcvt.s32.f32 %v2936_v55  ;;  %v2949_v55 = vshrl.u32 %v1720_v53, 16 }
 0x30d   : > { %v2509_v13 = vpop.xlane.xlu1 %2508  ;;  %v3620_v11 = vadd.f32 %v3619_v1, %v3478_v5  ;;  %v2491_v2 = vadd.s32 %v2490_v43, %v2488_v44  ;;  %v2501_v49 = vcvt.f32.s32 %v2499_v56  ;;  %v15123_v1 = vld [vmem:[#allocation74_spill] sm:$0xff]  ;;  %v2948_v44 = vand.u32 65535, %v1720_v53  ;;  %vm9991_vm6 = vmor %vm1178_vm10, %vm9975_vm1 }
 0x30e   : > { %v1721_v43 = vsel %vm1593_vm9, 1, %v14663_v8  ;;  %vm15127_vm9 = vnez %v14675_v29  ;;  %v2512_v17 = vcvt.f32.s32 %v2509_v13  ;;  %vm15132_vm10 = vcmp.lt.f32.partialorder %v9770_v24, %v15119_v57 }
 0x30f   : > { %vm3350_vm2 = vcmp.eq.s32.totalorder %v2491_v2, %v9729_v54  ;;  %v2502_v52 = vshll.u32 %v2501_v49, 16  ;;  %2918 = vadd.xlane.f32.xlu0 %v2915_v12  ;;  %v15124_v2 = vld [vmem:[#allocation120_spill] sm:$0xff]  ;;  %v2939_v49 = vcvt.s32.f32 %v2937_v35  ;;  %v2951_v59 = vcvt.s32.f32 %v2949_v55 }
 0x310   : > { %2928 = vadd.xlane.f32.xlu1 %v2926_v32  ;;  %v3479_v30 = vsel %vm3350_vm2, %v15123_v1, 0.0  ;;  %v2511_v14 = vpop.xlane.xlu0 %2510  ;;  %vm1308_vm5 = vcmp.eq.f32.partialorder %v9770_v24, %v15124_v2  ;;  %vm10000_vm2 = vmand %vm1307_vm12, %vm15127_vm9 }
 0x311   : > { %v2521_v41 = vpop.xlane.xlu1 %2520  ;;  %v3621_v62 = vadd.f32 %v3620_v11, %v3479_v30  ;;  %v2503_v5 = vadd.s32 %v2502_v52, %v2500_v50  ;;  %v2513_v56 = vcvt.f32.s32 %v2511_v14  ;;  %v2950_v50 = vcvt.s32.f32 %v2948_v44  ;;  %vm10013_vm12 = vmand %vm1308_vm5, %vm14750_vm8 }
 0x312   : > { %v2960_v52 = vand.u32 65535, %v1721_v43  ;;  %v2961_v30 = vshrl.u32 %v1721_v43, 16  ;;  %v2524_v44 = vcvt.f32.s32 %v2521_v41 }
 0x313   : > { %vm3351_vm13 = vcmp.eq.s32.totalorder %v2503_v5, %v9729_v54  ;;  %v2514_v32 = vshll.u32 %v2513_v56, 16  ;;  %2930 = vadd.xlane.f32.xlu0 %v2927_v3  ;;  %v15135_v3 = vld [vmem:[#allocation121_spill] sm:$0xff] }
 0x314   : > { %2940 = vadd.xlane.f32.xlu1 %v2938_v42  ;;  %v3480_v11 = vsel %vm3351_vm13, %v14877_v15, 0.0  ;;  %v2523_v35 = vpop.xlane.xlu0 %2522  ;;  %v1722_v15 = vsel %vm9991_vm6, 1, %v14663_v8  ;;  %vm10025_vm13 = vmor %vm15132_vm10, %vm10000_vm2  ;;  %vm1309_vm5 = vcmp.eq.f32.partialorder %v9770_v24, %v15135_v3  ;;  %v2962_v12 = vcvt.s32.f32 %v2960_v52 }
 0x315   : > { %v2533_v51 = vpop.xlane.xlu1 %2532  ;;  %v3622_v42 = vadd.f32 %v3621_v62, %v3480_v11  ;;  %v2515_v53 = vadd.s32 %v2514_v32, %v2512_v17  ;;  %v2525_v1 = vcvt.f32.s32 %v2523_v35  ;;  %v2972_v17 = vand.u32 65535, %v1722_v15 }
 0x316   : > { %vm15136_vm6 = vcmp.lt.f32.partialorder %v9770_v24, %v15124_v2  ;;  %v1723_v41 = vsel %vm10025_vm13, 1, %v14663_v8  ;;  %vm15137_vm10 = vnez %v14681_v27  ;;  %v2973_v55 = vshrl.u32 %v1722_v15, 16 }
 0x317   : > { %vm3352_vm1 = vcmp.eq.s32.totalorder %v2515_v53, %v9729_v54  ;;  %v2526_v62 = vshll.u32 %v2525_v1, 16  ;;  %2942 = vadd.xlane.f32.xlu0 %v2939_v49  ;;  %vm1596_vm2 = vmor %vm15136_vm6, %vm10013_vm12  ;;  %v2963_v49 = vcvt.s32.f32 %v2961_v30  ;;  %v2536_v52 = vcvt.f32.s32 %v2533_v51  ;;  %v15140_v53 = vld [vmem:[#allocation122_spill] sm:$0xff] }
 0x318   : > { %2952 = vadd.xlane.f32.xlu1 %v2950_v50  ;;  %v3481_v43 = vsel %vm3352_vm1, %v14886_v60, 0.0  ;;  %v2535_v5 = vpop.xlane.xlu0 %2534  ;;  %vm1181_vm1 = vcmp.lt.f32.partialorder %v9770_v24, %v15135_v3  ;;  %vm10048_vm8 = vmand %vm1309_vm5, %vm15137_vm10  ;;  %vm1310_vm12 = vcmp.eq.f32.partialorder %v9770_v24, %v15140_v53  ;;  %vm15149_vm6 = vnez %v14689_v22  ;;  %v15167_v60 = vld [vmem:[#allocation83_spill] sm:$0xff] }
 0x319   : > { %v2545_v56 = vpop.xlane.xlu1 %2544  ;;  %v3623_v32 = vadd.f32 %v3622_v42, %v3481_v43  ;;  %v2527_v11 = vadd.s32 %v2526_v62, %v2524_v44  ;;  %v2537_v35 = vcvt.f32.s32 %v2535_v5  ;;  %v1724_v42 = vsel %vm1596_vm2, 1, %v14663_v8  ;;  %vm10061_vm5 = vmor %vm1181_vm1, %vm10048_vm8 }
 0x31a   : > { %v2974_v44 = vcvt.s32.f32 %v2972_v17  ;;  %v2984_v62 = vand.u32 65535, %v1723_v41  ;;  %v2985_v43 = vshrl.u32 %v1723_v41, 16  ;;  %v2996_v17 = vand.u32 65535, %v1724_v42  ;;  %vm10075_vm8 = vmand %vm1310_vm12, %vm14948_vm11 }
 0x31b   : > { %v3624_v50 = vrot.slane %v3623_v32, 4  ;;  %v2538_v13 = vshll.u32 %v2537_v35, 16  ;;  %2954 = vadd.xlane.f32.xlu0 %v2951_v59  ;;  %v15143_v59 = vld [vmem:[#allocation123_spill] sm:$0xff]  ;;  %v2548_v35 = vcvt.f32.s32 %v2545_v56  ;;  %vm15147_vm1 = vcmp.eq.s32.totalorder %v2527_v11, %v9729_v54 }
 0x31c   : > { %2964 = vadd.xlane.f32.xlu1 %v2962_v12  ;;  %v2547_v1 = vpop.xlane.xlu0 %2546  ;;  %vm1311_vm2 = vcmp.eq.f32.partialorder %v9770_v24, %v15143_v59  ;;  %v2975_v12 = vcvt.s32.f32 %v2973_v55  ;;  %v2997_v51 = vshrl.u32 %v1724_v42, 16  ;;  %vm15155_vm11 = vcmp.lt.f32.partialorder %v9770_v24, %v15143_v59 }
 0x31d   : > { %v2557_v14 = vpop.xlane.xlu1 %2556  ;;  %v3625_v5 = vadd.f32 %v3624_v50, %v3623_v32  ;;  %v2539_v30 = vadd.s32 %v2538_v13, %v2536_v52  ;;  %v2549_v15 = vcvt.f32.s32 %v2547_v1  ;;  %v15146_v50 = vld [vmem:[#allocation79_spill] sm:$0xff]  ;;  %v15148_v52 = vld [vmem:[#allocation78_spill] sm:$0xff] }
 0x31e   : > { %v3482_v55 = vsel %vm15147_vm1, %v15146_v50, 0.0  ;;  %v2998_v50 = vcvt.s32.f32 %v2996_v17  ;;  %vm15152_vm1 = vcmp.lt.f32.partialorder %v9770_v24, %v15140_v53 }
 0x31f   : > { %v3626_v32 = vrot.slane %v3625_v5, 2  ;;  %vm3354_vm13 = vcmp.eq.s32.totalorder %v2539_v30, %v9729_v54  ;;  %v2550_v41 = vshll.u32 %v2549_v15, 16  ;;  %2966 = vadd.xlane.f32.xlu0 %v2963_v49  ;;  %v2986_v30 = vcvt.s32.f32 %v2984_v62  ;;  %vm1598_vm12 = vmor %vm15152_vm1, %vm10075_vm8 }
 0x320   : > { %2976 = vadd.xlane.f32.xlu1 %v2974_v44  ;;  %v3483_v13 = vsel %vm3354_vm13, %v15148_v52, 0.0  ;;  %v2559_v1 = vpop.xlane.xlu0 %2558  ;;  %v1725_v49 = vsel %vm10061_vm5, 1, %v14663_v8  ;;  %vm10093_vm13 = vmand %vm1311_vm2, %vm15149_vm6  ;;  %v2987_v62 = vcvt.s32.f32 %v2985_v43  ;;  %vm14350_vm6 = vcmask 1043459  }
 0x321   : > { %v2569_v56 = vpop.xlane.xlu1 %2568  ;;  %v3627_v44 = vadd.f32 %v3626_v32, %v3625_v5  ;;  %v3630_v15 = vadd.f32 %v3483_v13, %v3482_v55  ;;  %v2551_v3 = vadd.s32 %v2550_v41, %v2548_v35  ;;  %v2561_v2 = vcvt.f32.s32 %v2559_v1  ;;  %v15153_v35 = vld [vmem:[#allocation124_spill] sm:$0xff]  ;;  %v15154_v41 = vld [vmem:[#allocation81_spill] sm:$0xff]  ;;  %vm10111_vm10 = vmor %vm15155_vm11, %vm10093_vm13 }
 0x322   : > { %v2560_v5 = vcvt.f32.s32 %v2557_v14  ;;  %vm1312_vm2 = vcmp.eq.f32.partialorder %v9770_v24, %v15153_v35  ;;  %v3008_v55 = vand.u32 65535, %v1725_v49  ;;  %vm1184_vm8 = vcmp.lt.f32.partialorder %v9770_v24, %v15153_v35  ;;  %v15158_v13 = vld [vmem:[#allocation125_spill] sm:$0xff] }
 0x323   : > { %v3628_v52 = vrot.slane %v3627_v44, 1  ;;  %vm3355_vm5 = vcmp.eq.s32.totalorder %v2551_v3, %v9729_v54  ;;  %v2562_v32 = vshll.u32 %v2561_v2, 16  ;;  %2978 = vadd.xlane.f32.xlu0 %v2975_v12  ;;  %v2999_v1 = vcvt.s32.f32 %v2997_v51  ;;  %vm10130_vm11 = vmand %vm1312_vm2, %vm14775_vm3  ;;  %v15161_v51 = vld [vmem:[#allocation80_spill] sm:$0xff] }
 0x324   : > { %2988 = vadd.xlane.f32.xlu1 %v2986_v30  ;;  %v3484_v43 = vsel %vm3355_vm5, %v15154_v41, 0.0  ;;  %v2571_v17 = vpop.xlane.xlu0 %2570  ;;  %vm1313_vm5 = vcmp.eq.f32.partialorder %v9770_v24, %v15158_v13  ;;  %v1726_v30 = vsel %vm1598_vm12, 1, %v14663_v8  ;;  %v3010_v41 = vcvt.s32.f32 %v3008_v55  ;;  %v15164_v55 = vld [vmem:[#allocation126_spill] sm:$0xff] }
 0x325   : > { %v2581_v42 = vpop.xlane.xlu1 %2580  ;;  %v3629_v3 = vadd.f32 %v3628_v52, %v3627_v44  ;;  %v3631_v14 = vadd.f32 %v3630_v15, %v3484_v43  ;;  %v2563_v2 = vadd.s32 %v2562_v32, %v2560_v5  ;;  %v2573_v12 = vcvt.f32.s32 %v2571_v17  ;;  %vm10147_vm13 = vmand %vm1313_vm5, %vm15070_vm0 }
 0x326   : > { %v2572_v44 = vcvt.f32.s32 %v2569_v56  ;;  %vm1185_vm12 = vcmp.lt.f32.partialorder %v9770_v24, %v15158_v13  ;;  %vm1186_vm5 = vcmp.lt.f32.partialorder %v9770_v24, %v15164_v55 }
 0x327   : > { %vm3356_vm1 = vcmp.eq.s32.totalorder %v2563_v2, %v9729_v54  ;;  %v2574_v15 = vshll.u32 %v2573_v12, 16  ;;  %2990 = vadd.xlane.f32.xlu0 %v2987_v62  ;;  %v10123_v11 = vsel %vm14350_vm6, %v3629_v3, %v9734_v9  ;;  %v3009_v62 = vshrl.u32 %v1725_v49, 16 }
 0x328   : > { %3000 = vadd.xlane.f32.xlu1 %v2998_v50  ;;  %v3485_v5 = vsel %vm3356_vm1, %v15161_v51, 0.0  ;;  %v2583_v32 = vpop.xlane.xlu0 %2582  ;;  %v1727_v9 = vsel %vm10111_vm10, 1, %v14663_v8  ;;  %v3020_v3 = vand.u32 65535, %v1726_v30  ;;  %v1035_v2 = vcombine.high %v14976_v61, %v14976_v61  ;;  %vm10159_vm1 = vmor %vm1184_vm8, %vm10130_vm11 }
 0x329   : > { %v2593_v56 = vpop.xlane.xlu1 %2592  ;;  %v3632_v50 = vadd.f32 %v3631_v14, %v3485_v5  ;;  %v2575_v43 = vadd.s32 %v2574_v15, %v2572_v44  ;;  %v2585_v17 = vcvt.f32.s32 %v2583_v32  ;;  %vm1314_vm10 = vcmp.eq.f32.partialorder %v9770_v24, %v15164_v55  ;;  %vm10169_vm8 = vmor %vm1185_vm12, %vm10147_vm13 }
 0x32a   : > { %v2584_v14 = vcvt.f32.s32 %v2581_v42  ;;  %v3011_v5 = vcvt.s32.f32 %v3009_v62  ;;  %v3021_v32 = vshrl.u32 %v1726_v30, 16  ;;  %vm10183_vm11 = vmand %vm1314_vm10, %vm14978_vm15  ;;  %v3033_v62 = vshrl.u32 %v1727_v9, 16 }
 0x32b   : > { %vm3357_vm2 = vcmp.eq.s32.totalorder %v2575_v43, %v9729_v54  ;;  %v2586_v12 = vshll.u32 %v2585_v17, 16  ;;  %3002 = vadd.xlane.f32.xlu0 %v2999_v1  ;;  %v3032_v43 = vand.u32 65535, %v1727_v9  ;;  %v1729_v9 = vsel %vm10169_vm8, 1, %v14663_v8  ;;  %vm1602_vm10 = vmor %vm1186_vm5, %vm10183_vm11 }
 0x32c   : > { %3012 = vadd.xlane.f32.xlu1 %v3010_v41  ;;  %v3486_v44 = vsel %vm3357_vm2, %v15167_v60, 0.0  ;;  %v2595_v15 = vpop.xlane.xlu0 %2594  ;;  %v3022_v41 = vcvt.s32.f32 %v3020_v3  ;;  %v10174_v60 = vrot.slane %v1035_v2, %v7695_v4  ;;  %v15172_v3 = vld [vmem:[#allocation127_spill] sm:$0xff]  ;;  %v2596_v2 = vcvt.f32.s32 %v2593_v56 }
 0x32d   : > { %v2605_v51 = vpop.xlane.xlu1 %2604  ;;  %v3633_v42 = vadd.f32 %v3632_v50, %v3486_v44  ;;  %v2587_v17 = vadd.s32 %v2586_v12, %v2584_v14  ;;  %v2597_v1 = vcvt.f32.s32 %v2595_v15  ;;  %v1728_v50 = vsel %vm10159_vm1, 1, %v14663_v8  ;;  %v15173_v14 = vld [vmem:[#allocation82_spill] sm:$0xff] }
 0x32e   : > { %vm1315_vm12 = vcmp.eq.f32.partialorder %v9770_v24, %v15172_v3  ;;  %v3023_v13 = vcvt.s32.f32 %v3021_v32  ;;  %v3034_v35 = vcvt.s32.f32 %v3032_v43  ;;  %v3044_v57 = vand.u32 65535, %v1728_v50 }
 0x32f   : > { %vm3358_vm13 = vcmp.eq.s32.totalorder %v2587_v17, %v9729_v54  ;;  %v2598_v49 = vshll.u32 %v2597_v1, 16  ;;  %3014 = vadd.xlane.f32.xlu0 %v3011_v5  ;;  %vm1187_vm2 = vcmp.lt.f32.partialorder %v9770_v24, %v15172_v3  ;;  %v3035_v56 = vcvt.s32.f32 %v3033_v62  ;;  %v15177_v17 = vld [vmem:[#allocation128_spill] sm:$0xff]  ;;  %v15178_v1 = vld [vmem:[#allocation85_spill] sm:$0xff] }
 0x330   : > { %3024 = vadd.xlane.f32.xlu1 %v3022_v41  ;;  %v3487_v12 = vsel %vm3358_vm13, %v15173_v14, 0.0  ;;  %v2607_v44 = vpop.xlane.xlu0 %2606  ;;  %vm15174_vm1 = vnez %v14702_v21  ;;  %v2608_v32 = vcvt.f32.s32 %v2605_v51  ;;  %vm1316_vm5 = vcmp.eq.f32.partialorder %v10174_v60, %v15177_v17  ;;  %v15184_v51 = vld [vmem:[#allocation84_spill] sm:$0xff] }
 0x331   : > { %v2617_v15 = vpop.xlane.xlu1 %2616  ;;  %v3634_v61 = vadd.f32 %v3633_v42, %v3487_v12  ;;  %v2599_v59 = vadd.s32 %v2598_v49, %v2596_v2  ;;  %v2609_v53 = vcvt.f32.s32 %v2607_v44  ;;  %vm10209_vm8 = vmand %vm1315_vm12, %vm15174_vm1  ;;  %v3045_v42 = vshrl.u32 %v1728_v50, 16 }
 0x332   : > { %v3056_v62 = vand.u32 65535, %v1729_v9  ;;  %v1730_v2 = vsel %vm1602_vm10, 1, %v14663_v8  ;;  %v3046_v44 = vcvt.s32.f32 %v3044_v57  ;;  %vm10225_vm12 = vmor %vm1187_vm2, %vm10209_vm8  ;;  %vm1188_vm10 = vcmp.lt.f32.partialorder %v10174_v60, %v15177_v17 }
 0x333   : > { %vm3359_vm13 = vcmp.eq.s32.totalorder %v2599_v59, %v9729_v54  ;;  %v2610_v43 = vshll.u32 %v2609_v53, 16  ;;  %3026 = vadd.xlane.f32.xlu0 %v3023_v13  ;;  %v15179_v59 = vld [vmem:[#allocation129_spill] sm:$0xff]  ;;  %v3057_v53 = vshrl.u32 %v1729_v9, 16  ;;  %v2620_v13 = vcvt.f32.s32 %v2617_v15  ;;  %vm10237_vm6 = vmand %vm1316_vm5, %vm15087_vm7 }
 0x334   : > { %3036 = vadd.xlane.f32.xlu1 %v3034_v35  ;;  %v3488_v41 = vsel %vm3359_vm13, %v15178_v1, 0.0  ;;  %v2619_v52 = vpop.xlane.xlu0 %2618  ;;  %vm1317_vm11 = vcmp.eq.f32.partialorder %v10174_v60, %v15179_v59  ;;  %v3047_v5 = vcvt.s32.f32 %v3045_v42  ;;  %vm1189_vm2 = vcmp.lt.f32.partialorder %v10174_v60, %v15179_v59 }
 0x335   : > { %v2629_v30 = vpop.xlane.xlu1 %2628  ;;  %v3635_v49 = vadd.f32 %v3634_v61, %v3488_v41  ;;  %v2611_v14 = vadd.s32 %v2610_v43, %v2608_v32  ;;  %v2621_v12 = vcvt.f32.s32 %v2619_v52  ;;  %v3058_v32 = vcvt.s32.f32 %v3056_v62  ;;  %vm10252_vm8 = vmand %vm1317_vm11, %vm14994_vm4 }
 0x336   : > { %v3068_v43 = vand.u32 65535, %v1730_v2  ;;  %v1731_v41 = vsel %vm10225_vm12, 1, %v14663_v8  ;;  %v3069_v42 = vshrl.u32 %v1730_v2, 16  ;;  %v2632_v62 = vcvt.f32.s32 %v2629_v30  ;;  %vm1604_vm12 = vmor %vm1188_vm10, %vm10237_vm6  ;;  %v15188_v2 = vld [vmem:[#allocation130_spill] sm:$0xff] }
 0x337   : > { %vm3360_vm13 = vcmp.eq.s32.totalorder %v2611_v14, %v9729_v54  ;;  %v2622_v57 = vshll.u32 %v2621_v12, 16  ;;  %3038 = vadd.xlane.f32.xlu0 %v3035_v56  ;;  %v15187_v14 = vld [vmem:[#allocation86_spill] sm:$0xff]  ;;  %vm1318_vm11 = vcmp.eq.f32.partialorder %v10174_v60, %v15188_v2 }
 0x338   : > { %3048 = vadd.xlane.f32.xlu1 %v3046_v44  ;;  %v3489_v50 = vsel %vm3360_vm13, %v15184_v51, 0.0  ;;  %v2631_v9 = vpop.xlane.xlu0 %2630  ;;  %v3080_v51 = vand.u32 65535, %v1731_v41  ;;  %vm10270_vm13 = vmor %vm1189_vm2, %vm10252_vm8  ;;  %vm15192_vm2 = vnez %v14658_v20 }
 0x339   : > { %v2641_v61 = vpop.xlane.xlu1 %2640  ;;  %v3636_v15 = vadd.f32 %v3635_v49, %v3489_v50  ;;  %v2623_v1 = vadd.s32 %v2622_v57, %v2620_v13  ;;  %v2633_v56 = vcvt.f32.s32 %v2631_v9  ;;  %v3059_v13 = vcvt.s32.f32 %v3057_v53  ;;  %vm10282_vm8 = vmand %vm1318_vm11, %vm15192_vm2 }
 0x33a   : > { %v3070_v57 = vcvt.s32.f32 %v3068_v43  ;;  %v3071_v53 = vcvt.s32.f32 %v3069_v42  ;;  %v2644_v43 = vcvt.f32.s32 %v2641_v61  ;;  %vm15196_vm11 = vnez %v14661_v18 }
 0x33b   : > { %vm3361_vm5 = vcmp.eq.s32.totalorder %v2623_v1, %v9729_v54  ;;  %v2634_v49 = vshll.u32 %v2633_v56, 16  ;;  %3050 = vadd.xlane.f32.xlu0 %v3047_v5  ;;  %v15191_v5 = vld [vmem:[#allocation131_spill] sm:$0xff] }
 0x33c   : > { %3060 = vadd.xlane.f32.xlu1 %v3058_v32  ;;  %v3490_v12 = vsel %vm3361_vm5, %v15187_v14, 0.0  ;;  %v2643_v44 = vpop.xlane.xlu0 %2642  ;;  %vm1319_vm6 = vcmp.eq.f32.partialorder %v10174_v60, %v15191_v5  ;;  %v1732_v32 = vsel %vm1604_vm12, 1, %v14663_v8  ;;  %v15195_v56 = vld [vmem:[#allocation87_spill] sm:$0xff]  ;;  %v3081_v14 = vshrl.u32 %v1731_v41, 16  ;;  %v15199_v41 = vld [vmem:[#allocation132_spill] sm:$0xff] }
 0x33d   : > { %v2653_v35 = vpop.xlane.xlu1 %2652  ;;  %v3637_v30 = vadd.f32 %v3636_v15, %v3490_v12  ;;  %v2635_v50 = vadd.s32 %v2634_v49, %v2632_v62  ;;  %v2645_v9 = vcvt.f32.s32 %v2643_v44  ;;  %v3082_v49 = vcvt.s32.f32 %v3080_v51 }
 0x33e   : > { %v1733_v12 = vsel %vm10270_vm13, 1, %v14663_v8  ;;  %v2656_v51 = vcvt.f32.s32 %v2653_v35  ;;  %vm15200_vm12 = vcmp.lt.f32.partialorder %v10174_v60, %v15188_v2 }
 0x33f   : > { %vm3362_vm5 = vcmp.eq.s32.totalorder %v2635_v50, %v9729_v54  ;;  %v2646_v15 = vshll.u32 %v2645_v9, 16  ;;  %3062 = vadd.xlane.f32.xlu0 %v3059_v13  ;;  %vm1606_vm2 = vmor %vm15200_vm12, %vm10282_vm8  ;;  %v15201_v9 = vld [vmem:[#allocation88_spill] sm:$0xff]  ;;  %vm1192_vm8 = vcmp.lt.f32.partialorder %v10174_v60, %v15199_v41  ;;  %vm15205_vm12 = vnez %v14665_v28 }
 0x340   : > { %3072 = vadd.xlane.f32.xlu1 %v3070_v57  ;;  %v3491_v52 = vsel %vm3362_vm5, %v15195_v56, 0.0  ;;  %v2655_v42 = vpop.xlane.xlu0 %2654  ;;  %v3092_v57 = vand.u32 65535, %v1732_v32  ;;  %vm10297_vm5 = vmand %vm1319_vm6, %vm15196_vm11  ;;  %v3083_v56 = vcvt.s32.f32 %v3081_v14  ;;  %vm15202_vm6 = vcmp.lt.f32.partialorder %v10174_v60, %v15191_v5  ;;  %v15209_v14 = vld [vmem:[#allocation133_spill] sm:$0xff] }
 0x341   : > { %v2665_v62 = vpop.xlane.xlu1 %2664  ;;  %v3638_v61 = vadd.f32 %v3637_v30, %v3491_v52  ;;  %v2647_v44 = vadd.s32 %v2646_v15, %v2644_v43  ;;  %v2657_v13 = vcvt.f32.s32 %v2655_v42  ;;  %v3093_v52 = vshrl.u32 %v1732_v32, 16  ;;  %vm10315_vm10 = vmor %vm15202_vm6, %vm10297_vm5 }
 0x342   : > { %v3104_v42 = vand.u32 65535, %v1733_v12  ;;  %v3094_v35 = vcvt.s32.f32 %v3092_v57  ;;  %v3105_v1 = vshrl.u32 %v1733_v12, 16  ;;  %vm1321_vm5 = vcmp.eq.f32.partialorder %v10174_v60, %v15209_v14 }
 0x343   : > { %vm3363_vm13 = vcmp.eq.s32.totalorder %v2647_v44, %v9729_v54  ;;  %v2658_v30 = vshll.u32 %v2657_v13, 16  ;;  %3074 = vadd.xlane.f32.xlu0 %v3071_v53  ;;  %v1735_v12 = vsel %vm10315_vm10, 1, %v14663_v8  ;;  %vm15210_vm10 = vnez %v14668_v31 }
 0x344   : > { %3084 = vadd.xlane.f32.xlu1 %v3082_v49  ;;  %v3492_v24 = vsel %vm3363_vm13, %v15201_v9, 0.0  ;;  %v2667_v43 = vpop.xlane.xlu0 %2666  ;;  %vm15206_vm13 = vcmp.eq.f32.partialorder %v10174_v60, %v15199_v41  ;;  %v1734_v49 = vsel %vm1606_vm2, 1, %v14663_v8  ;;  %v3106_v9 = vcvt.s32.f32 %v3104_v42 }
 0x345   : > { %v2677_v15 = vpop.xlane.xlu1 %2676  ;;  %v3639_v3 = vadd.f32 %v3638_v61, %v3492_v24  ;;  %v2659_v55 = vadd.s32 %v2658_v30, %v2656_v51  ;;  %v2669_v44 = vcvt.f32.s32 %v2667_v43  ;;  %vm10326_vm11 = vmand %vm15206_vm13, %vm15205_vm12  ;;  %v2668_v61 = vcvt.f32.s32 %v2665_v62 }
 0x346   : > { %v3095_v30 = vcvt.s32.f32 %v3093_v52  ;;  %v3116_v2 = vand.u32 65535, %v1734_v49  ;;  %vm1608_vm2 = vmor %vm1192_vm8, %vm10326_vm11  ;;  %vm1193_vm13 = vcmp.lt.f32.partialorder %v10174_v60, %v15209_v14  ;;  %v15213_v52 = vld [vmem:[#allocation134_spill] sm:$0xff] }
 0x347   : > { %vm3364_vm6 = vcmp.eq.s32.totalorder %v2659_v55, %v9729_v54  ;;  %v2670_v13 = vshll.u32 %v2669_v44, 16  ;;  %3086 = vadd.xlane.f32.xlu0 %v3083_v56  ;;  %v2680_v55 = vcvt.f32.s32 %v2677_v15  ;;  %vm10351_vm12 = vmand %vm1321_vm5, %vm15210_vm10  ;;  %vm1322_vm11 = vcmp.eq.f32.partialorder %v10174_v60, %v15213_v52 }
 0x348   : > { %3096 = vadd.xlane.f32.xlu1 %v3094_v35  ;;  %v3493_v57 = vsel %vm3364_vm6, %v14946_v7, 0.0  ;;  %v2679_v50 = vpop.xlane.xlu0 %2678  ;;  %v3107_v7 = vcvt.s32.f32 %v3105_v1  ;;  %v1736_v44 = vsel %vm1608_vm2, 1, %v14663_v8  ;;  %v3118_v1 = vcvt.s32.f32 %v3116_v2  ;;  %vm1609_vm2 = vmor %vm1193_vm13, %vm10351_vm12 }
 0x349   : > { %v2689_v51 = vpop.xlane.xlu1 %2688  ;;  %v3640_v24 = vadd.f32 %v3639_v3, %v3493_v57  ;;  %v2671_v43 = vadd.s32 %v2670_v13, %v2668_v61  ;;  %v2681_v5 = vcvt.f32.s32 %v2679_v50  ;;  %v3117_v3 = vshrl.u32 %v1734_v49, 16  ;;  %v15214_v61 = vld [vmem:[#allocation135_spill] sm:$0xff]  ;;  %v7265_v13 = vld [vmem:[%s14124_s4] ss:$0 sm:$0xff]  ;;  %vm10376_vm8 = vmand %vm1322_vm11, %vm15120_vm14 }
 0x34a   : > { %v3129_v49 = vshrl.u32 %v1735_v12, 16  ;;  %v2692_v57 = vcvt.f32.s32 %v2689_v51  ;;  %vm1195_vm12 = vcmp.lt.f32.partialorder %v10174_v60, %v15214_v61 }
 0x34b   : > { %vm3365_vm6 = vcmp.eq.s32.totalorder %v2671_v43, %v9729_v54  ;;  %v2682_v62 = vshll.u32 %v2681_v5, 16  ;;  %3098 = vadd.xlane.f32.xlu0 %v3095_v30  ;;  %v3128_v5 = vand.u32 65535, %v1735_v12  ;;  %v3140_v12 = vand.u32 65535, %v1736_v44 }
 0x34c   : > { %3108 = vadd.xlane.f32.xlu1 %v3106_v9  ;;  %v3494_v42 = vsel %vm3365_vm6, %v14954_v58, 0.0  ;;  %v2691_v54 = vpop.xlane.xlu0 %2690  ;;  %vm1194_vm6 = vcmp.lt.f32.partialorder %v10174_v60, %v15213_v52  ;;  %v3119_v9 = vcvt.s32.f32 %v3117_v3  ;;  %v15221_v3 = vld [vmem:[#allocation92_spill] sm:$0xff] }
 0x34d   : > { %v2701_v15 = vpop.xlane.xlu1 %2700  ;;  %v3641_v35 = vadd.f32 %v3640_v24, %v3494_v42  ;;  %v2683_v53 = vadd.s32 %v2682_v62, %v2680_v55  ;;  %v2693_v32 = vcvt.f32.s32 %v2691_v54  ;;  %v3130_v55 = vcvt.s32.f32 %v3128_v5  ;;  %vm1610_vm11 = vmor %vm1194_vm6, %vm10376_vm8 }
 0x34e   : > { %v1737_v62 = vsel %vm1609_vm2, 1, %v14663_v8  ;;  %v2704_v56 = vcvt.f32.s32 %v2701_v15 }
 0x34f   : > { %vm3366_vm5 = vcmp.eq.s32.totalorder %v2683_v53, %v7265_v13  ;;  %v2694_v58 = vshll.u32 %v2693_v32, 16  ;;  %3110 = vadd.xlane.f32.xlu0 %v3107_v7  ;;  %v3142_v53 = vcvt.s32.f32 %v3140_v12  ;;  %v3141_v32 = vshrl.u32 %v1736_v44, 16  ;;  %v15226_v44 = vld [vmem:[#allocation137_spill] sm:$0xff] }
 0x350   : > { %3120 = vadd.xlane.f32.xlu1 %v3118_v1  ;;  %v3495_v50 = vsel %vm3366_vm5, %v14960_v0, 0.0  ;;  %v2703_v51 = vpop.xlane.xlu0 %2702  ;;  %vm15218_vm5 = vcmp.eq.f32.partialorder %v10174_v60, %v15214_v61  ;;  %v15224_v1 = vld [vmem:[#allocation136_spill] sm:$0xff]  ;;  %v3152_v2 = vand.u32 65535, %v1737_v62  ;;  %vm1325_vm10 = vcmp.eq.f32.partialorder %v10174_v60, %v15226_v44 }
 0x351   : > { %v10381_v30 = vpop.xlane.xlu1 %2712  ;;  %v3642_v24 = vadd.f32 %v3641_v35, %v3495_v50  ;;  %v2695_v43 = vadd.s32 %v2694_v58, %v2692_v57  ;;  %v2705_v7 = vcvt.f32.s32 %v2703_v51  ;;  %vm10396_vm2 = vmand %vm15218_vm5, %vm15127_vm9  ;;  %v3131_v35 = vcvt.s32.f32 %v3129_v49  ;;  %v15227_v49 = vld [vmem:[#allocation93_spill] sm:$0xff] }
 0x352   : > { %15217 = vst [vmem:[#allocation29_spill] sm:$0xff] %v10381_v30  ;;  %vm1324_vm8 = vcmp.eq.f32.partialorder %v10174_v60, %v15224_v1  ;;  %v1738_v50 = vsel %vm1610_vm11, 1, %v14663_v8  ;;  %vm1196_vm5 = vcmp.lt.f32.partialorder %v10174_v60, %v15224_v1  ;;  %vm15225_vm9 = vnez %v14678_v33 }
 0x353   : > { %vm3367_vm13 = vcmp.eq.s32.totalorder %v2695_v43, %v7265_v13  ;;  %v2706_v42 = vshll.u32 %v2705_v7, 16  ;;  %3122 = vadd.xlane.f32.xlu0 %v3119_v9  ;;  %vm1484_vm14 = vmand %vm1324_vm8, %vm15225_vm9  ;;  %v3153_v12 = vshrl.u32 %v1737_v62, 16  ;;  %v3143_v43 = vcvt.s32.f32 %v3141_v32 }
 0x354   : > { %3132 = vadd.xlane.f32.xlu1 %v3130_v55  ;;  %v3496_v54 = vsel %vm3367_vm13, %v15221_v3, 0.0  ;;  %v10401_v15 = vpop.xlane.xlu0 %2714  ;;  %vm1611_vm13 = vmor %vm1195_vm12, %vm10396_vm2  ;;  %v3154_v7 = vcvt.s32.f32 %v3152_v2  ;;  %v3164_v55 = vand.u32 65535, %v1738_v50  ;;  %vm1197_vm11 = vcmp.lt.f32.partialorder %v10174_v60, %v15226_v44 }
 0x355   : > { %15222 = vst [vmem:[#allocation32_spill] sm:$0xff] %v10401_v15  ;;  %v10403_v5 = vpop.xlane.xlu1 %2724  ;;  %v3643_v57 = vadd.f32 %v3642_v24, %v3496_v54  ;;  %v2707_v58 = vadd.s32 %v2706_v42, %v2704_v56  ;;  %v1739_v56 = vsel %vm1611_vm13, 1, %v14663_v8  ;;  %vm1612_vm12 = vmor %vm1196_vm5, %vm1484_vm14  ;;  %vm15230_vm2 = vnez %v14681_v27 }
 0x356   : > { %15223 = vst [vmem:[#allocation59_spill] sm:$0xff] %v10403_v5  ;;  %vm1485_vm8 = vmand %vm1325_vm10, %vm15230_vm2  ;;  %v3155_v3 = vcvt.s32.f32 %v3153_v12  ;;  %v3165_v54 = vshrl.u32 %v1738_v50, 16  ;;  %v3166_v32 = vcvt.s32.f32 %v3164_v55  ;;  %vm15234_vm13 = vnez %v14686_v26 }
 0x357   : > { %vm3368_vm6 = vcmp.eq.s32.totalorder %v2707_v58, %v7265_v13  ;;  %3134 = vadd.xlane.f32.xlu0 %v3131_v35  ;;  %v15233_v35 = vld [vmem:[#allocation138_spill] sm:$0xff]  ;;  %v1740_v58 = vsel %vm1612_vm12, 1, %v14663_v8  ;;  %vm1613_vm14 = vmor %vm1197_vm11, %vm1485_vm8  ;;  %v3177_v12 = vshrl.u32 %v1739_v56, 16  ;;  %vm15238_vm8 = vnez %v14689_v22 }
 0x358   : > { %3144 = vadd.xlane.f32.xlu1 %v3142_v53  ;;  %v3497_v51 = vsel %vm3368_vm6, %v15227_v49, 0.0  ;;  %v10420_v13 = vpop.xlane.xlu0 %2726  ;;  %vm1326_vm6 = vcmp.eq.f32.partialorder %v10174_v60, %v15233_v35  ;;  %vm1198_vm10 = vcmp.lt.f32.partialorder %v10174_v60, %v15233_v35  ;;  %v15235_v49 = vld [vmem:[#allocation139_spill] sm:$0xff]  ;;  %v3188_v55 = vand.u32 65535, %v1740_v58 }
 0x359   : > { %15228 = vst [vmem:[#allocation30_spill] sm:$0xff] %v10420_v13  ;;  %v10422_v9 = vpop.xlane.xlu1 %2736  ;;  %v3644_v24 = vadd.f32 %v3643_v57, %v3497_v51  ;;  %v3176_v57 = vand.u32 65535, %v1739_v56  ;;  %vm1486_vm5 = vmand %vm1326_vm6, %vm15234_vm13  ;;  %vm1327_vm2 = vcmp.eq.f32.partialorder %v10174_v60, %v15235_v49  ;;  %vm1199_vm11 = vcmp.lt.f32.partialorder %v10174_v60, %v15235_v49 }
 0x35a   : > { %15229 = vst [vmem:[#allocation31_spill] sm:$0xff] %v10422_v9  ;;  %vm1614_vm12 = vmor %vm1198_vm10, %vm1486_vm5  ;;  %v3179_v56 = vcvt.s32.f32 %v3177_v12  ;;  %vm14360_vm13 = vcmask 1044484  }
 0x35b   : > { %v3645_v42 = vrot.slane %v3644_v24, 4  ;;  %3146 = vadd.xlane.f32.xlu0 %v3143_v43  ;;  %v3167_v43 = vcvt.s32.f32 %v3165_v54  ;;  %vm1487_vm6 = vmand %vm1327_vm2, %vm15238_vm8  ;;  %v3189_v54 = vshrl.u32 %v1740_v58, 16 }
 0x35c   : > { %3156 = vadd.xlane.f32.xlu1 %v3154_v7  ;;  %v10435_v62 = vpop.xlane.xlu0 %2738  ;;  %v3178_v7 = vcvt.s32.f32 %v3176_v57  ;;  %vm1615_vm10 = vmor %vm1199_vm11, %vm1487_vm6 }
 0x35d   : > { %15231 = vst [vmem:[#allocation34_spill] sm:$0xff] %v10435_v62  ;;  %v10437_v0 = vpop.xlane.xlu1 %2748  ;;  %v3646_v53 = vadd.f32 %v3645_v42, %v3644_v24  ;;  %v1741_v42 = vsel %vm1613_vm14, 1, %v14663_v8 }
 0x35e   : > { %15232 = vst [vmem:[#allocation33_spill] sm:$0xff] %v10437_v0 }
 0x35f   : > { %v3647_v2 = vrot.slane %v3646_v53, 2  ;;  %3158 = vadd.xlane.f32.xlu0 %v3155_v3 }
 0x360   : > { %3168 = vadd.xlane.f32.xlu1 %v3166_v32  ;;  %v10448_v50 = vpop.xlane.xlu0 %2750 }
 0x361   : > { %15236 = vst [vmem:[#allocation36_spill] sm:$0xff] %v10448_v50  ;;  %v10450_v51 = vpop.xlane.xlu1 %2760  ;;  %v3648_v24 = vadd.f32 %v3647_v2, %v3646_v53  ;;  %v15241_v53 = vld [vmem:[#allocation140_spill] sm:$0xff]  ;;  %v3190_v2 = vcvt.s32.f32 %v3188_v55  ;;  %v15245_v55 = vld [vmem:[#allocation141_spill] sm:$0xff] }
 0x362   : > { %15237 = vst [vmem:[#allocation35_spill] sm:$0xff] %v10450_v51  ;;  %vm1328_vm14 = vcmp.eq.f32.partialorder %v10174_v60, %v15241_v53  ;;  %vm1200_vm2 = vcmp.lt.f32.partialorder %v10174_v60, %v15241_v53  ;;  %vm1201_vm6 = vcmp.lt.f32.partialorder %v10174_v60, %v15245_v55  ;;  %v15248_v53 = vld [vmem:[#allocation142_spill] sm:$0xff] }
 0x363   : > { %v3649_v3 = vrot.slane %v3648_v24, 1  ;;  %3170 = vadd.xlane.f32.xlu0 %v3167_v43  ;;  %v3200_v43 = vand.u32 65535, %v1741_v42  ;;  %vm1488_vm5 = vmand %vm1328_vm14, %vm14775_vm3 }
 0x364   : > { %3180 = vadd.xlane.f32.xlu1 %v3178_v7  ;;  %v10457_v32 = vpop.xlane.xlu0 %2762  ;;  %v1742_v7 = vsel %vm1614_vm12, 1, %v14663_v8  ;;  %vm1329_vm12 = vcmp.eq.f32.partialorder %v10174_v60, %v15245_v55  ;;  %vm1616_vm11 = vmor %vm1200_vm2, %vm1488_vm5  ;;  %vm1202_vm2 = vcmp.lt.f32.partialorder %v10174_v60, %v15248_v53 }
 0x365   : > { %15239 = vst [vmem:[#allocation65_spill] sm:$0xff] %v10457_v32  ;;  %v10459_v35 = vpop.xlane.xlu1 %2772  ;;  %v3650_v57 = vadd.f32 %v3649_v3, %v3648_v24  ;;  %v3201_v24 = vshrl.u32 %v1741_v42, 16  ;;  %v3191_v3 = vcvt.s32.f32 %v3189_v54  ;;  %vm1489_vm14 = vmand %vm1329_vm12, %vm15070_vm0 }
 0x366   : > { %15240 = vst [vmem:[#allocation38_spill] sm:$0xff] %v10459_v35 }
 0x367   : > { %3182 = vadd.xlane.f32.xlu0 %v3179_v56  ;;  %v10466_v49 = vsel %vm14360_vm13, %v3650_v57, %v10123_v11  ;;  %v3202_v56 = vcvt.s32.f32 %v3200_v43  ;;  %v1743_v11 = vsel %vm1615_vm10, 1, %v14663_v8  ;;  %vm1330_vm13 = vcmp.eq.f32.partialorder %v10174_v60, %v15248_v53  ;;  %vm1617_vm10 = vmor %vm1201_vm6, %vm1489_vm14 }
 0x368   : > { %3192 = vadd.xlane.f32.xlu1 %v3190_v2  ;;  %15242 = vst [vmem:[#allocation64_spill] sm:$0xff] %v10466_v49  ;;  %v10472_v58 = vpop.xlane.xlu0 %2774  ;;  %v3212_v2 = vand.u32 65535, %v1742_v7  ;;  %v3203_v49 = vcvt.s32.f32 %v3201_v24  ;;  %v3213_v43 = vshrl.u32 %v1742_v7, 16  ;;  %v3224_v44 = vand.u32 65535, %v1743_v11  ;;  %vm1490_vm5 = vmand %vm1330_vm13, %vm14978_vm15 }
 0x369   : > { %15243 = vst [vmem:[#allocation37_spill] sm:$0xff] %v10472_v58  ;;  %v10474_v12 = vpop.xlane.xlu1 %2784  ;;  %v3225_v1 = vshrl.u32 %v1743_v11, 16 }
 0x36a   : > { %15244 = vst [vmem:[#allocation67_spill] sm:$0xff] %v10474_v12  ;;  %v3214_v54 = vcvt.s32.f32 %v3212_v2  ;;  %v3215_v7 = vcvt.s32.f32 %v3213_v43  ;;  %v3226_v2 = vcvt.s32.f32 %v3224_v44 }
 0x36b   : > { %3194 = vadd.xlane.f32.xlu0 %v3191_v3  ;;  %v1744_v3 = vsel %vm1616_vm11, 1, %v14663_v8  ;;  %vm1618_vm11 = vmor %vm1202_vm2, %vm1490_vm5  ;;  %v3227_v52 = vcvt.s32.f32 %v3225_v1 }
 0x36c   : > { %3204 = vadd.xlane.f32.xlu1 %v3202_v56  ;;  %v10483_v57 = vpop.xlane.xlu0 %2786  ;;  %v15249_v56 = vld [vmem:[#allocation143_spill] sm:$0xff]  ;;  %v3236_v61 = vand.u32 65535, %v1744_v3  ;;  %v3237_v44 = vshrl.u32 %v1744_v3, 16  ;;  %v1746_v14 = vsel %vm1618_vm11, 1, %v14663_v8 }
 0x36d   : > { %15246 = vst [vmem:[#allocation39_spill] sm:$0xff] %v10483_v57  ;;  %v10485_v42 = vpop.xlane.xlu1 %2796  ;;  %vm1331_vm12 = vcmp.eq.f32.partialorder %v10174_v60, %v15249_v56  ;;  %vm1203_vm6 = vcmp.lt.f32.partialorder %v10174_v60, %v15249_v56  ;;  %v3260_v17 = vand.u32 65535, %v1746_v14 }
 0x36e   : > { %15247 = vst [vmem:[#allocation66_spill] sm:$0xff] %v10485_v42  ;;  %vm1491_vm13 = vmand %vm1331_vm12, %vm15174_vm1  ;;  %v3238_v43 = vcvt.s32.f32 %v3236_v61  ;;  %v3239_v60 = vcvt.s32.f32 %v3237_v44 }
 0x36f   : > { %3206 = vadd.xlane.f32.xlu0 %v3203_v49  ;;  %v1745_v49 = vsel %vm1617_vm10, 1, %v14663_v8  ;;  %vm1619_vm14 = vmor %vm1203_vm6, %vm1491_vm13 }
 0x370   : > { %3216 = vadd.xlane.f32.xlu1 %v3214_v54  ;;  %v10496_v24 = vpop.xlane.xlu0 %2798  ;;  %v3248_v11 = vand.u32 65535, %v1745_v49  ;;  %v3249_v41 = vshrl.u32 %v1745_v49, 16  ;;  %v1747_v59 = vsel %vm1619_vm14, 1, %v14663_v8 }
 0x371   : > { %15250 = vst [vmem:[#allocation40_spill] sm:$0xff] %v10496_v24  ;;  %v10498_v55 = vpop.xlane.xlu1 %2808  ;;  %v3272_v63 = vand.u32 65535, %v1747_v59  ;;  %v3273_v48 = vshrl.u32 %v1747_v59, 16 }
 0x372   : > { %15251 = vst [vmem:[#allocation71_spill] sm:$0xff] %v10498_v55  ;;  %v3250_v56 = vcvt.s32.f32 %v3248_v11  ;;  %v3251_v3 = vcvt.s32.f32 %v3249_v41 }
 0x373   : > { %3218 = vadd.xlane.f32.xlu0 %v3215_v7  ;;  %v3274_v11 = vcvt.s32.f32 %v3272_v63  ;;  %v3275_v41 = vcvt.s32.f32 %v3273_v48 }
 0x374   : > { %3228 = vadd.xlane.f32.xlu1 %v3226_v2  ;;  %v10505_v54 = vpop.xlane.xlu0 %2810 }
 0x375   : > { %15252 = vst [vmem:[#allocation70_spill] sm:$0xff] %v10505_v54  ;;  %v10507_v53 = vpop.xlane.xlu1 %2820 }
 0x376   : > { %15253 = vst [vmem:[#allocation73_spill] sm:$0xff] %v10507_v53 }
 0x377   : > { %3230 = vadd.xlane.f32.xlu0 %v3227_v52  ;;  %v3262_v52 = vcvt.s32.f32 %v3260_v17 }
 0x378   : > { %3240 = vadd.xlane.f32.xlu1 %v3238_v43  ;;  %v10510_v7 = vpop.xlane.xlu0 %2822  ;;  %v3261_v43 = vshrl.u32 %v1746_v14, 16 }
 0x379   : > { %15254 = vst [vmem:[#allocation77_spill] sm:$0xff] %v10510_v7  ;;  %v10512_v2 = vpop.xlane.xlu1 %2832 }
 0x37a   : > { %15255 = vst [vmem:[#allocation25_spill] sm:$0xff] %v10512_v2  ;;  %v3263_v49 = vcvt.s32.f32 %v3261_v43  ;;  %v10537_v43 = vld [vmem:[%s349_s19] sm:$0xff] }
 0x37b   : > { %3242 = vadd.xlane.f32.xlu0 %v3239_v60 }
 0x37c   : > { %3252 = vadd.xlane.f32.xlu1 %v3250_v56  ;;  %v10515_v61 = vpop.xlane.xlu0 %2834 }
 0x37d   : > { %15256 = vst [vmem:[#allocation76_spill] sm:$0xff] %v10515_v61  ;;  %v10517_v1 = vpop.xlane.xlu1 %2844 }
 0x37e   : > { %15257 = vst [vmem:[#allocation41_spill] sm:$0xff] %v10517_v1 }
 0x37f   : > { %3254 = vadd.xlane.f32.xlu0 %v3251_v3 }
 0x380   : > { %3264 = vadd.xlane.f32.xlu1 %v3262_v52  ;;  %v10519_v16 = vpop.xlane.xlu0 %2846 }
 0x381   : > { %15258 = vst [vmem:[#allocation43_spill] sm:$0xff] %v10519_v16  ;;  %v10521_v44 = vpop.xlane.xlu1 %2856 }
 0x382   : > { %15259 = vst [vmem:[#allocation42_spill] sm:$0xff] %v10521_v44 }
 0x383   : > { %3266 = vadd.xlane.f32.xlu0 %v3263_v49  ;;  %v3743_v49 = vrot.slane %v10537_v43, %v7695_v4 }
 0x384   : > { %3276 = vadd.xlane.f32.xlu1 %v3274_v11  ;;  %v10523_v56 = vpop.xlane.xlu0 %2858 }
 0x385   : > { %15260 = vst [vmem:[#allocation45_spill] sm:$0xff] %v10523_v56  ;;  %v10525_v60 = vpop.xlane.xlu1 %2868 }
 0x386   : > { %15261 = vst [vmem:[#allocation44_spill] sm:$0xff] %v10525_v60 }
 0x387   : > { %3278 = vadd.xlane.f32.xlu0 %v3275_v41 }
 0x388   : > { %v10527_v17 = vpop.xlane.xlu0 %2870 }
 0x389   : > { %15262 = vst [vmem:[#allocation89_spill] sm:$0xff] %v10527_v17  ;;  %v10529_v14 = vpop.xlane.xlu1 %2880 }
 0x38a   : > { %15263 = vst [vmem:[#allocation47_spill] sm:$0xff] %v10529_v14 }
 0x38c   : > { %v10531_v3 = vpop.xlane.xlu0 %2882 }
 0x38d   : > { %15264 = vst [vmem:[#allocation46_spill] sm:$0xff] %v10531_v3  ;;  %v10533_v52 = vpop.xlane.xlu1 %2892 }
 0x38e   : > { %15265 = vst [vmem:[#allocation90_spill] sm:$0xff] %v10533_v52 }
 0x390   : > { %v10539_v63 = vpop.xlane.xlu0 %2894 }
 0x391   : > { %15266 = vst [vmem:[#allocation49_spill] sm:$0xff] %v10539_v63  ;;  %v10541_v59 = vpop.xlane.xlu1 %2904 }
 0x392   : > { %15267 = vst [vmem:[#allocation91_spill] sm:$0xff] %v10541_v59 }
 0x394   : > { %v10545_v48 = vpop.xlane.xlu0 %2906 }
 0x395   : > { %15268 = vst [vmem:[#allocation48_spill] sm:$0xff] %v10545_v48  ;;  %v10547_v11 = vpop.xlane.xlu1 %2916  ;;  %3745 = vbcast.lane.b32.xlu1 %v3743_v49, 256 }
 0x396   : > { %15269 = vst [vmem:[#allocation51_spill] sm:$0xff] %v10547_v11 }
 0x398   : > { %v10549_v41 = vpop.xlane.xlu0 %2918 }
 0x399   : > { %15270 = vst [vmem:[#allocation27_spill] sm:$0xff] %v10549_v41  ;;  %v10551_v34 = vpop.xlane.xlu1 %2928  ;;  %3753 = vbcast.lane.b32.xlu1 %v3743_v49, 272 }
 0x39a   : > { %15271 = vst [vmem:[#allocation50_spill] sm:$0xff] %v10551_v34 }
 0x39c   : > { %v10553_v10 = vpop.xlane.xlu0 %2930 }
 0x39d   : > { %15272 = vst [vmem:[#allocation53_spill] sm:$0xff] %v10553_v10  ;;  %v10555_v47 = vpop.xlane.xlu1 %2940  ;;  %3757 = vbcast.lane.b32.xlu1 %v3743_v49, 280  ;;  %3749 = vbcast.lane.b32.xlu0 %v3743_v49, 264 }
 0x39e   : > { %15273 = vst [vmem:[#allocation52_spill] sm:$0xff] %v10555_v47 }
 0x3a0   : > { %v10557_v63 = vpop.xlane.xlu0 %2942 }
 0x3a1   : > { %15274 = vst [vmem:[#allocation55_spill] sm:$0xff] %v10557_v63  ;;  %v10559_v52 = vpop.xlane.xlu1 %2952  ;;  %3765 = vbcast.lane.b32.xlu1 %v3743_v49, 296  ;;  %3761 = vbcast.lane.b32.xlu0 %v3743_v49, 288 }
 0x3a2   : > { %15275 = vst [vmem:[#allocation54_spill] sm:$0xff] %v10559_v52 }
 0x3a4   : > { %v10561_v3 = vpop.xlane.xlu0 %2954 }
 0x3a5   : > { %15276 = vst [vmem:[#allocation57_spill] sm:$0xff] %v10561_v3  ;;  %v10563_v11 = vpop.xlane.xlu1 %2964  ;;  %3773 = vbcast.lane.b32.xlu1 %v3743_v49, 312  ;;  %3769 = vbcast.lane.b32.xlu0 %v3743_v49, 304 }
 0x3a6   : > { %15277 = vst [vmem:[#allocation56_spill] sm:$0xff] %v10563_v11 }
 0x3a8   : > { %v10565_v34 = vpop.xlane.xlu0 %2966 }
 0x3a9   : > { %15278 = vst [vmem:[#allocation58_spill] sm:$0xff] %v10565_v34  ;;  %v10567_v59 = vpop.xlane.xlu1 %2976  ;;  %3781 = vbcast.lane.b32.xlu1 %v3743_v49, 328  ;;  %3777 = vbcast.lane.b32.xlu0 %v3743_v49, 320 }
 0x3aa   : > { %15279 = vst [vmem:[#allocation61_spill] sm:$0xff] %v10567_v59  ;;  %v15286_v59 = vld [vmem:[#allocation23_spill] sm:$0xff] }
 0x3ab   : > { %v15287_v34 = vsub.s32 1, %v15286_v59  ;;  %v15341_v46 = vsub.s32 5, %v15286_v59  ;;  %v15353_v0 = vsub.s32 6, %v15286_v59 }
 0x3ac   : > { %v10569_v47 = vpop.xlane.xlu0 %2978 }
 0x3ad   : > { %15280 = vst [vmem:[#allocation60_spill] sm:$0xff] %v10569_v47  ;;  %v10571_v39 = vpop.xlane.xlu1 %2988  ;;  %3789 = vbcast.lane.b32.xlu1 %v3743_v49, 344  ;;  %3785 = vbcast.lane.b32.xlu0 %v3743_v49, 336  ;;  %v3810_v14 = vrot.slane %v10537_v43, %v15287_v34  ;;  %v4078_v53 = vrot.slane %v10537_v43, %v15341_v46 }
 0x3ae   : > { %15281 = vst [vmem:[#allocation63_spill] sm:$0xff] %v10571_v39  ;;  %v4145_v45 = vrot.slane %v10537_v43, %v15353_v0 }
 0x3b0   : > { %v10573_v52 = vpop.xlane.xlu0 %2990 }
 0x3b1   : > { %15282 = vst [vmem:[#allocation62_spill] sm:$0xff] %v10573_v52  ;;  %v10575_v63 = vpop.xlane.xlu1 %3000  ;;  %3797 = vbcast.lane.b32.xlu1 %v3743_v49, 360  ;;  %3793 = vbcast.lane.b32.xlu0 %v3743_v49, 352 }
 0x3b2   : > { %15283 = vst [vmem:[#allocation69_spill] sm:$0xff] %v10575_v63 }
 0x3b4   : > { %v10577_v11 = vpop.xlane.xlu0 %3002 }
 0x3b5   : > { %15284 = vst [vmem:[#allocation68_spill] sm:$0xff] %v10577_v11  ;;  %v10579_v3 = vpop.xlane.xlu1 %3012  ;;  %3805 = vbcast.lane.b32.xlu1 %v3743_v49, 376  ;;  %3801 = vbcast.lane.b32.xlu0 %v3743_v49, 368 }
 0x3b6   : > { %15285 = vst [vmem:[#allocation72_spill] sm:$0xff] %v10579_v3 }
 0x3b8   : > { %v10584_v47 = vpop.xlane.xlu0 %3014 }
 0x3b9   : > { %15288 = vst [vmem:[#allocation75_spill] sm:$0xff] %v10584_v47  ;;  %v10586_v39 = vpop.xlane.xlu1 %3024  ;;  %3816 = vbcast.lane.b32.xlu1 %v3810_v14, 264  ;;  %3812 = vbcast.lane.b32.xlu0 %v3810_v14, 256 }
 0x3ba   : > { %15289 = vst [vmem:[#allocation74_spill] sm:$0xff] %v10586_v39 }
 0x3bc   : > { %v10588_v52 = vpop.xlane.xlu0 %3026 }
 0x3bd   : > { %15290 = vst [vmem:[#allocation79_spill] sm:$0xff] %v10588_v52  ;;  %v10590_v63 = vpop.xlane.xlu1 %3036  ;;  %3824 = vbcast.lane.b32.xlu1 %v3810_v14, 280  ;;  %3820 = vbcast.lane.b32.xlu0 %v3810_v14, 272 }
 0x3be   : > { %15291 = vst [vmem:[#allocation78_spill] sm:$0xff] %v10590_v63 }
 0x3c0   : > { %v10592_v11 = vpop.xlane.xlu0 %3038 }
 0x3c1   : > { %15292 = vst [vmem:[#allocation81_spill] sm:$0xff] %v10592_v11  ;;  %v10594_v3 = vpop.xlane.xlu1 %3048  ;;  %3832 = vbcast.lane.b32.xlu1 %v3810_v14, 296  ;;  %3828 = vbcast.lane.b32.xlu0 %v3810_v14, 288 }
 0x3c2   : > { %15293 = vst [vmem:[#allocation80_spill] sm:$0xff] %v10594_v3 }
 0x3c4   : > { %v10596_v34 = vpop.xlane.xlu0 %3050 }
 0x3c5   : > { %15294 = vst [vmem:[#allocation83_spill] sm:$0xff] %v10596_v34  ;;  %v10598_v49 = vpop.xlane.xlu1 %3060  ;;  %3840 = vbcast.lane.b32.xlu1 %v3810_v14, 312  ;;  %3836 = vbcast.lane.b32.xlu0 %v3810_v14, 304 }
 0x3c6   : > { %15295 = vst [vmem:[#allocation82_spill] sm:$0xff] %v10598_v49 }
 0x3c8   : > { %v10600_v39 = vpop.xlane.xlu0 %3062 }
 0x3c9   : > { %15296 = vst [vmem:[#allocation85_spill] sm:$0xff] %v10600_v39  ;;  %v10602_v47 = vpop.xlane.xlu1 %3072  ;;  %3848 = vbcast.lane.b32.xlu1 %v3810_v14, 328  ;;  %3844 = vbcast.lane.b32.xlu0 %v3810_v14, 320 }
 0x3ca   : > { %15297 = vst [vmem:[#allocation84_spill] sm:$0xff] %v10602_v47  ;;  %v15304_v47 = vsub.s32 2, %v15286_v59 }
 0x3cc   : > { %v10604_v63 = vpop.xlane.xlu0 %3074  ;;  %v3877_v39 = vrot.slane %v10537_v43, %v15304_v47 }
 0x3cd   : > { %15298 = vst [vmem:[#allocation86_spill] sm:$0xff] %v10604_v63  ;;  %v10606_v52 = vpop.xlane.xlu1 %3084  ;;  %3856 = vbcast.lane.b32.xlu1 %v3810_v14, 344  ;;  %3852 = vbcast.lane.b32.xlu0 %v3810_v14, 336 }
 0x3ce   : > { %15299 = vst [vmem:[#allocation87_spill] sm:$0xff] %v10606_v52 }
 0x3d0   : > { %v10608_v3 = vpop.xlane.xlu0 %3086 }
 0x3d1   : > { %15300 = vst [vmem:[#allocation88_spill] sm:$0xff] %v10608_v3  ;;  %v10610_v11 = vpop.xlane.xlu1 %3096  ;;  %3864 = vbcast.lane.b32.xlu1 %v3810_v14, 360  ;;  %3860 = vbcast.lane.b32.xlu0 %v3810_v14, 352 }
 0x3d2   : > { %15301 = vst [vmem:[#allocation92_spill] sm:$0xff] %v10610_v11 }
 0x3d4   : > { %v10612_v49 = vpop.xlane.xlu0 %3098 }
 0x3d5   : > { %15302 = vst [vmem:[#allocation93_spill] sm:$0xff] %v10612_v49  ;;  %v10614_v34 = vpop.xlane.xlu1 %3108  ;;  %3872 = vbcast.lane.b32.xlu1 %v3810_v14, 376  ;;  %3868 = vbcast.lane.b32.xlu0 %v3810_v14, 368 }
 0x3d6   : > { %15303 = vst [vmem:[#allocation23_spill] sm:$0xff] %v10614_v34 }
 0x3d8   : > { %v10619_v63 = vpop.xlane.xlu0 %3110 }
 0x3d9   : > { %15305 = vst [vmem:[#allocation144_spill] sm:$0xff] %v10619_v63  ;;  %v10621_v52 = vpop.xlane.xlu1 %3120  ;;  %3883 = vbcast.lane.b32.xlu1 %v3877_v39, 264  ;;  %3879 = vbcast.lane.b32.xlu0 %v3877_v39, 256 }
 0x3da   : > { %15306 = vst [vmem:[#allocation145_spill] sm:$0xff] %v10621_v52 }
 0x3dc   : > { %v10623_v3 = vpop.xlane.xlu0 %3122 }
 0x3dd   : > { %15307 = vst [vmem:[#allocation146_spill] sm:$0xff] %v10623_v3  ;;  %v10625_v11 = vpop.xlane.xlu1 %3132  ;;  %3891 = vbcast.lane.b32.xlu1 %v3877_v39, 280  ;;  %3887 = vbcast.lane.b32.xlu0 %v3877_v39, 272 }
 0x3de   : > { %15308 = vst [vmem:[#allocation147_spill] sm:$0xff] %v10625_v11 }
 0x3e0   : > { %v10627_v49 = vpop.xlane.xlu0 %3134 }
 0x3e1   : > { %15309 = vst [vmem:[#allocation148_spill] sm:$0xff] %v10627_v49  ;;  %v10629_v34 = vpop.xlane.xlu1 %3144  ;;  %3899 = vbcast.lane.b32.xlu1 %v3877_v39, 296  ;;  %3895 = vbcast.lane.b32.xlu0 %v3877_v39, 288 }
 0x3e2   : > { %15310 = vst [vmem:[#allocation149_spill] sm:$0xff] %v10629_v34 }
 0x3e4   : > { %v10631_v47 = vpop.xlane.xlu0 %3146 }
 0x3e5   : > { %15311 = vst [vmem:[#allocation150_spill] sm:$0xff] %v10631_v47  ;;  %v10633_v14 = vpop.xlane.xlu1 %3156  ;;  %3907 = vbcast.lane.b32.xlu1 %v3877_v39, 312  ;;  %3903 = vbcast.lane.b32.xlu0 %v3877_v39, 304 }
 0x3e6   : > { %15312 = vst [vmem:[#allocation151_spill] sm:$0xff] %v10633_v14 }
 0x3e8   : > { %v10635_v52 = vpop.xlane.xlu0 %3158 }
 0x3e9   : > { %15313 = vst [vmem:[#allocation152_spill] sm:$0xff] %v10635_v52  ;;  %v10637_v63 = vpop.xlane.xlu1 %3168  ;;  %3915 = vbcast.lane.b32.xlu1 %v3877_v39, 328  ;;  %3911 = vbcast.lane.b32.xlu0 %v3877_v39, 320 }
 0x3ea   : > { %15314 = vst [vmem:[#allocation153_spill] sm:$0xff] %v10637_v63  ;;  %v15321_v63 = vsub.s32 3, %v15286_v59 }
 0x3ec   : > { %v10639_v11 = vpop.xlane.xlu0 %3170  ;;  %v3944_v52 = vrot.slane %v10537_v43, %v15321_v63 }
 0x3ed   : > { %15315 = vst [vmem:[#allocation154_spill] sm:$0xff] %v10639_v11  ;;  %v10641_v3 = vpop.xlane.xlu1 %3180  ;;  %3923 = vbcast.lane.b32.xlu1 %v3877_v39, 344  ;;  %3919 = vbcast.lane.b32.xlu0 %v3877_v39, 336 }
 0x3ee   : > { %15316 = vst [vmem:[#allocation155_spill] sm:$0xff] %v10641_v3 }
 0x3f0   : > { %v10643_v34 = vpop.xlane.xlu0 %3182 }
 0x3f1   : > { %15317 = vst [vmem:[#allocation156_spill] sm:$0xff] %v10643_v34  ;;  %v10645_v49 = vpop.xlane.xlu1 %3192  ;;  %3931 = vbcast.lane.b32.xlu1 %v3877_v39, 360  ;;  %3927 = vbcast.lane.b32.xlu0 %v3877_v39, 352 }
 0x3f2   : > { %15318 = vst [vmem:[#allocation157_spill] sm:$0xff] %v10645_v49 }
 0x3f4   : > { %v10647_v14 = vpop.xlane.xlu0 %3194 }
 0x3f5   : > { %15319 = vst [vmem:[#allocation158_spill] sm:$0xff] %v10647_v14  ;;  %v10649_v47 = vpop.xlane.xlu1 %3204  ;;  %3939 = vbcast.lane.b32.xlu1 %v3877_v39, 376  ;;  %3935 = vbcast.lane.b32.xlu0 %v3877_v39, 368 }
 0x3f6   : > { %15320 = vst [vmem:[#allocation159_spill] sm:$0xff] %v10649_v47 }
 0x3f8   : > { %v10654_v11 = vpop.xlane.xlu0 %3206 }
 0x3f9   : > { %15322 = vst [vmem:[#allocation160_spill] sm:$0xff] %v10654_v11  ;;  %v10656_v3 = vpop.xlane.xlu1 %3216  ;;  %3950 = vbcast.lane.b32.xlu1 %v3944_v52, 264  ;;  %3946 = vbcast.lane.b32.xlu0 %v3944_v52, 256 }
 0x3fa   : > { %15323 = vst [vmem:[#allocation161_spill] sm:$0xff] %v10656_v3 }
 0x3fc   : > { %v10658_v34 = vpop.xlane.xlu0 %3218 }
 0x3fd   : > { %15324 = vst [vmem:[#allocation162_spill] sm:$0xff] %v10658_v34  ;;  %v10660_v49 = vpop.xlane.xlu1 %3228  ;;  %3958 = vbcast.lane.b32.xlu1 %v3944_v52, 280  ;;  %3954 = vbcast.lane.b32.xlu0 %v3944_v52, 272 }
 0x3fe   : > { %15325 = vst [vmem:[#allocation163_spill] sm:$0xff] %v10660_v49 }
 0x400   : > { %v10662_v14 = vpop.xlane.xlu0 %3230 }
 0x401   : > { %15326 = vst [vmem:[#allocation164_spill] sm:$0xff] %v10662_v14  ;;  %v10664_v47 = vpop.xlane.xlu1 %3240  ;;  %3966 = vbcast.lane.b32.xlu1 %v3944_v52, 296  ;;  %3962 = vbcast.lane.b32.xlu0 %v3944_v52, 288 }
 0x402   : > { %15327 = vst [vmem:[#allocation165_spill] sm:$0xff] %v10664_v47 }
 0x404   : > { %v10666_v63 = vpop.xlane.xlu0 %3242 }
 0x405   : > { %15328 = vst [vmem:[#allocation166_spill] sm:$0xff] %v10666_v63  ;;  %v10668_v39 = vpop.xlane.xlu1 %3252  ;;  %3974 = vbcast.lane.b32.xlu1 %v3944_v52, 312  ;;  %3970 = vbcast.lane.b32.xlu0 %v3944_v52, 304 }
 0x406   : > { %15329 = vst [vmem:[#allocation167_spill] sm:$0xff] %v10668_v39 }
 0x408   : > { %v10670_v3 = vpop.xlane.xlu0 %3254 }
 0x409   : > { %15330 = vst [vmem:[#allocation168_spill] sm:$0xff] %v10670_v3  ;;  %3982 = vbcast.lane.b32.xlu1 %v3944_v52, 328  ;;  %v10672_v34 = vpop.xlane.xlu1 %3264  ;;  %3978 = vbcast.lane.b32.xlu0 %v3944_v52, 320 }
 0x40a   : > { %15331 = vst [vmem:[#allocation169_spill] sm:$0xff] %v10672_v34  ;;  %v15338_v34 = vsub.s32 4, %v15286_v59 }
 0x40c   : > { %v10674_v49 = vpop.xlane.xlu0 %3266  ;;  %v4011_v11 = vrot.slane %v10537_v43, %v15338_v34 }
 0x40d   : > { %15332 = vst [vmem:[#allocation170_spill] sm:$0xff] %v10674_v49  ;;  %3990 = vbcast.lane.b32.xlu1 %v3944_v52, 344  ;;  %v10676_v14 = vpop.xlane.xlu1 %3276  ;;  %3986 = vbcast.lane.b32.xlu0 %v3944_v52, 336 }
 0x40e   : > { %15333 = vst [vmem:[#allocation171_spill] sm:$0xff] %v10676_v14 }
 0x410   : > { %v10678_v47 = vpop.xlane.xlu0 %3278 }
 0x411   : > { %15334 = vst [vmem:[#allocation172_spill] sm:$0xff] %v10678_v47  ;;  %3998 = vbcast.lane.b32.xlu1 %v3944_v52, 360  ;;  %v10680_v63 = vpop.permute.xlu1 %3745  ;;  %3994 = vbcast.lane.b32.xlu0 %v3944_v52, 352 }
 0x412   : > { %15335 = vst [vmem:[#allocation173_spill] sm:$0xff] %v10680_v63 }
 0x414   : > { %v10682_v39 = vpop.permute.xlu0 %3749 }
 0x415   : > { %15336 = vst [vmem:[#allocation174_spill] sm:$0xff] %v10682_v39  ;;  %4006 = vbcast.lane.b32.xlu1 %v3944_v52, 376  ;;  %v10684_v3 = vpop.permute.xlu1 %3753  ;;  %4002 = vbcast.lane.b32.xlu0 %v3944_v52, 368 }
 0x416   : > { %15337 = vst [vmem:[#allocation175_spill] sm:$0xff] %v10684_v3 }
 0x418   : > { %v10689_v49 = vpop.permute.xlu0 %3761 }
 0x419   : > { %15339 = vst [vmem:[#allocation176_spill] sm:$0xff] %v10689_v49  ;;  %4017 = vbcast.lane.b32.xlu1 %v4011_v11, 264  ;;  %v10691_v14 = vpop.permute.xlu1 %3757  ;;  %4013 = vbcast.lane.b32.xlu0 %v4011_v11, 256 }
 0x41a   : > { %15340 = vst [vmem:[#allocation177_spill] sm:$0xff] %v10691_v14 }
 0x41c   : > { %v10693_v47 = vpop.permute.xlu0 %3769 }
 0x41d   : > { %4025 = vbcast.lane.b32.xlu1 %v4011_v11, 280  ;;  %v10695_v10 = vpop.permute.xlu1 %3765  ;;  %4021 = vbcast.lane.b32.xlu0 %v4011_v11, 272 }
 0x420   : > { %v10697_v60 = vpop.permute.xlu0 %3777 }
 0x421   : > { %4033 = vbcast.lane.b32.xlu1 %v4011_v11, 296  ;;  %v10699_v41 = vpop.permute.xlu1 %3773  ;;  %4029 = vbcast.lane.b32.xlu0 %v4011_v11, 288 }
 0x424   : > { %v10701_v34 = vpop.permute.xlu0 %3785 }
 0x425   : > { %4041 = vbcast.lane.b32.xlu1 %v4011_v11, 312  ;;  %v10703_v52 = vpop.permute.xlu1 %3781  ;;  %4037 = vbcast.lane.b32.xlu0 %v4011_v11, 304 }
 0x428   : > { %v10705_v48 = vpop.permute.xlu0 %3793 }
 0x429   : > { %4049 = vbcast.lane.b32.xlu1 %v4011_v11, 328  ;;  %v10707_v17 = vpop.permute.xlu1 %3789  ;;  %4045 = vbcast.lane.b32.xlu0 %v4011_v11, 320 }
 0x42c   : > { %v10709_v44 = vpop.permute.xlu0 %3801 }
 0x42d   : > { %4057 = vbcast.lane.b32.xlu1 %v4011_v11, 344  ;;  %v10711_v37 = vpop.permute.xlu1 %3797  ;;  %4053 = vbcast.lane.b32.xlu0 %v4011_v11, 336 }
 0x430   : > { %v10713_v56 = vpop.permute.xlu0 %3812 }
 0x431   : > { %4065 = vbcast.lane.b32.xlu1 %v4011_v11, 360  ;;  %v10715_v6 = vpop.permute.xlu1 %3805  ;;  %4061 = vbcast.lane.b32.xlu0 %v4011_v11, 352 }
 0x434   : > { %v10717_v1 = vpop.permute.xlu0 %3820 }
 0x435   : > { %4073 = vbcast.lane.b32.xlu1 %v4011_v11, 376  ;;  %v10719_v2 = vpop.permute.xlu1 %3816  ;;  %4069 = vbcast.lane.b32.xlu0 %v4011_v11, 368 }
 0x438   : > { %v10724_v16 = vpop.permute.xlu0 %3828 }
 0x439   : > { %4084 = vbcast.lane.b32.xlu1 %v4078_v53, 264  ;;  %v10726_v61 = vpop.permute.xlu1 %3824  ;;  %4080 = vbcast.lane.b32.xlu0 %v4078_v53, 256 }
 0x43c   : > { %v10728_v55 = vpop.permute.xlu0 %3836 }
 0x43d   : > { %4092 = vbcast.lane.b32.xlu1 %v4078_v53, 280  ;;  %v10730_v42 = vpop.permute.xlu1 %3832  ;;  %4088 = vbcast.lane.b32.xlu0 %v4078_v53, 272 }
 0x440   : > { %v10732_v7 = vpop.permute.xlu0 %3844 }
 0x441   : > { %15342 = vst [vmem:[#allocation178_spill] sm:$0xff] %v10732_v7  ;;  %4100 = vbcast.lane.b32.xlu1 %v4078_v53, 296  ;;  %v10734_v54 = vpop.permute.xlu1 %3840  ;;  %4096 = vbcast.lane.b32.xlu0 %v4078_v53, 288 }
 0x444   : > { %v10736_v46 = vpop.permute.xlu0 %3852 }
 0x445   : > { %15343 = vst [vmem:[#allocation179_spill] sm:$0xff] %v10736_v46  ;;  %4108 = vbcast.lane.b32.xlu1 %v4078_v53, 312  ;;  %v10738_v11 = vpop.permute.xlu1 %3848  ;;  %4104 = vbcast.lane.b32.xlu0 %v4078_v53, 304 }
 0x446   : > { %15344 = vst [vmem:[#allocation180_spill] sm:$0xff] %v10738_v11 }
 0x448   : > { %v10740_v24 = vpop.permute.xlu0 %3860 }
 0x449   : > { %15345 = vst [vmem:[#allocation181_spill] sm:$0xff] %v10740_v24  ;;  %4116 = vbcast.lane.b32.xlu1 %v4078_v53, 328  ;;  %v10742_v12 = vpop.permute.xlu1 %3856  ;;  %4112 = vbcast.lane.b32.xlu0 %v4078_v53, 320 }
 0x44a   : > { %15346 = vst [vmem:[#allocation182_spill] sm:$0xff] %v10742_v12 }
 0x44c   : > { %v10744_v57 = vpop.permute.xlu0 %3868 }
 0x44d   : > { %15347 = vst [vmem:[#allocation183_spill] sm:$0xff] %v10744_v57  ;;  %4124 = vbcast.lane.b32.xlu1 %v4078_v53, 344  ;;  %v10746_v35 = vpop.permute.xlu1 %3864  ;;  %4120 = vbcast.lane.b32.xlu0 %v4078_v53, 336 }
 0x44e   : > { %15348 = vst [vmem:[#allocation184_spill] sm:$0xff] %v10746_v35 }
 0x450   : > { %v10748_v58 = vpop.permute.xlu0 %3879 }
 0x451   : > { %15349 = vst [vmem:[#allocation185_spill] sm:$0xff] %v10748_v58  ;;  %4132 = vbcast.lane.b32.xlu1 %v4078_v53, 360  ;;  %v10750_v32 = vpop.permute.xlu1 %3872  ;;  %4128 = vbcast.lane.b32.xlu0 %v4078_v53, 352 }
 0x452   : > { %15350 = vst [vmem:[#allocation186_spill] sm:$0xff] %v10750_v32 }
 0x454   : > { %v10752_v51 = vpop.permute.xlu0 %3887 }
 0x455   : > { %15351 = vst [vmem:[#allocation187_spill] sm:$0xff] %v10752_v51  ;;  %4140 = vbcast.lane.b32.xlu1 %v4078_v53, 376  ;;  %v10754_v50 = vpop.permute.xlu1 %3883  ;;  %4136 = vbcast.lane.b32.xlu0 %v4078_v53, 368 }
 0x456   : > { %15352 = vst [vmem:[#allocation188_spill] sm:$0xff] %v10754_v50 }
 0x458   : > { %v10759_v62 = vpop.permute.xlu0 %3895 }
 0x459   : > { %15354 = vst [vmem:[#allocation189_spill] sm:$0xff] %v10759_v62  ;;  %4151 = vbcast.lane.b32.xlu1 %v4145_v45, 264  ;;  %v10761_v9 = vpop.permute.xlu1 %3891  ;;  %4147 = vbcast.lane.b32.xlu0 %v4145_v45, 256 }
 0x45a   : > { %15355 = vst [vmem:[#allocation190_spill] sm:$0xff] %v10761_v9 }
 0x45c   : > { %v10763_v5 = vpop.permute.xlu0 %3903 }
 0x45d   : > { %15356 = vst [vmem:[#allocation191_spill] sm:$0xff] %v10763_v5  ;;  %4159 = vbcast.lane.b32.xlu1 %v4145_v45, 280  ;;  %v10765_v30 = vpop.permute.xlu1 %3899  ;;  %4155 = vbcast.lane.b32.xlu0 %v4145_v45, 272 }
 0x45e   : > { %15357 = vst [vmem:[#allocation192_spill] sm:$0xff] %v10765_v30 }
 0x460   : > { %v10767_v13 = vpop.permute.xlu0 %3911 }
 0x461   : > { %15358 = vst [vmem:[#allocation193_spill] sm:$0xff] %v10767_v13  ;;  %4167 = vbcast.lane.b32.xlu1 %v4145_v45, 296  ;;  %v10769_v15 = vpop.permute.xlu1 %3907  ;;  %4163 = vbcast.lane.b32.xlu0 %v4145_v45, 288 }
 0x462   : > { %15359 = vst [vmem:[#allocation194_spill] sm:$0xff] %v10769_v15 }
 0x464   : > { %v10771_v0 = vpop.permute.xlu0 %3919 }
 0x465   : > { %15360 = vst [vmem:[#allocation195_spill] sm:$0xff] %v10771_v0  ;;  %4175 = vbcast.lane.b32.xlu1 %v4145_v45, 312  ;;  %v10773_v53 = vpop.permute.xlu1 %3915  ;;  %4171 = vbcast.lane.b32.xlu0 %v4145_v45, 304 }
 0x466   : > { %15361 = vst [vmem:[#allocation196_spill] sm:$0xff] %v10773_v53 }
 0x468   : > { %v10775_v62 = vpop.permute.xlu0 %3927 }
 0x469   : > { %15362 = vst [vmem:[#allocation197_spill] sm:$0xff] %v10775_v62  ;;  %4183 = vbcast.lane.b32.xlu1 %v4145_v45, 328  ;;  %v10777_v5 = vpop.permute.xlu1 %3923  ;;  %4179 = vbcast.lane.b32.xlu0 %v4145_v45, 320 }
 0x46a   : > { %15363 = vst [vmem:[#allocation198_spill] sm:$0xff] %v10777_v5  ;;  %v15370_v5 = vsub.s32 7, %v15286_v59 }
 0x46c   : > { %v10779_v30 = vpop.permute.xlu0 %3935  ;;  %v4212_v9 = vrot.slane %v10537_v43, %v15370_v5 }
 0x46d   : > { %15364 = vst [vmem:[#allocation199_spill] sm:$0xff] %v10779_v30  ;;  %4191 = vbcast.lane.b32.xlu1 %v4145_v45, 344  ;;  %v10781_v13 = vpop.permute.xlu1 %3931  ;;  %4187 = vbcast.lane.b32.xlu0 %v4145_v45, 336 }
 0x46e   : > { %15365 = vst [vmem:[#allocation200_spill] sm:$0xff] %v10781_v13 }
 0x470   : > { %v10783_v15 = vpop.permute.xlu0 %3946 }
 0x471   : > { %15366 = vst [vmem:[#allocation201_spill] sm:$0xff] %v10783_v15  ;;  %4199 = vbcast.lane.b32.xlu1 %v4145_v45, 360  ;;  %v10785_v0 = vpop.permute.xlu1 %3939  ;;  %4195 = vbcast.lane.b32.xlu0 %v4145_v45, 352 }
 0x472   : > { %15367 = vst [vmem:[#allocation202_spill] sm:$0xff] %v10785_v0 }
 0x474   : > { %v10787_v53 = vpop.permute.xlu0 %3954 }
 0x475   : > { %15368 = vst [vmem:[#allocation203_spill] sm:$0xff] %v10787_v53  ;;  %4207 = vbcast.lane.b32.xlu1 %v4145_v45, 376  ;;  %v10789_v62 = vpop.permute.xlu1 %3950  ;;  %4203 = vbcast.lane.b32.xlu0 %v4145_v45, 368 }
 0x476   : > { %15369 = vst [vmem:[#allocation204_spill] sm:$0xff] %v10789_v62 }
 0x478   : > { %v10794_v30 = vpop.permute.xlu0 %3962 }
 0x479   : > { %15371 = vst [vmem:[#allocation205_spill] sm:$0xff] %v10794_v30  ;;  %4218 = vbcast.lane.b32.xlu1 %v4212_v9, 264  ;;  %v10796_v13 = vpop.permute.xlu1 %3958  ;;  %4214 = vbcast.lane.b32.xlu0 %v4212_v9, 256 }
 0x47a   : > { %15372 = vst [vmem:[#allocation206_spill] sm:$0xff] %v10796_v13 }
 0x47c   : > { %v10798_v15 = vpop.permute.xlu0 %3970 }
 0x47d   : > { %15373 = vst [vmem:[#allocation207_spill] sm:$0xff] %v10798_v15  ;;  %4226 = vbcast.lane.b32.xlu1 %v4212_v9, 280  ;;  %v10800_v0 = vpop.permute.xlu1 %3966  ;;  %4222 = vbcast.lane.b32.xlu0 %v4212_v9, 272 }
 0x47e   : > { %15374 = vst [vmem:[#allocation208_spill] sm:$0xff] %v10800_v0 }
 0x480   : > { %v10802_v53 = vpop.permute.xlu0 %3978 }
 0x481   : > { %15375 = vst [vmem:[#allocation209_spill] sm:$0xff] %v10802_v53  ;;  %4234 = vbcast.lane.b32.xlu1 %v4212_v9, 296  ;;  %v10804_v62 = vpop.permute.xlu1 %3974  ;;  %4230 = vbcast.lane.b32.xlu0 %v4212_v9, 288 }
 0x482   : > { %15376 = vst [vmem:[#allocation210_spill] sm:$0xff] %v10804_v62 }
 0x484   : > { %v10806_v5 = vpop.permute.xlu0 %3986 }
 0x485   : > { %15377 = vst [vmem:[#allocation211_spill] sm:$0xff] %v10806_v5  ;;  %4242 = vbcast.lane.b32.xlu1 %v4212_v9, 312  ;;  %v10808_v45 = vpop.permute.xlu1 %3982  ;;  %4238 = vbcast.lane.b32.xlu0 %v4212_v9, 304 }
 0x486   : > { %15378 = vst [vmem:[#allocation212_spill] sm:$0xff] %v10808_v45 }
 0x488   : > { %v10810_v43 = vpop.permute.xlu0 %3994 }
 0x489   : > { %15379 = vst [vmem:[#allocation213_spill] sm:$0xff] %v10810_v43  ;;  %4250 = vbcast.lane.b32.xlu1 %v4212_v9, 328  ;;  %v10812_v59 = vpop.permute.xlu1 %3990  ;;  %4246 = vbcast.lane.b32.xlu0 %v4212_v9, 320 }
 0x48a   : > { %15380 = vst [vmem:[#allocation214_spill] sm:$0xff] %v10812_v59  ;;  %v10828_v59 = vld.sshfl [vmem:[%s340_s25] sm:$0xff pattern:$0x75316420] }
 0x48c   : > { %v10814_v15 = vpop.permute.xlu0 %4002 }
 0x48d   : > { %15381 = vst [vmem:[#allocation215_spill] sm:$0xff] %v10814_v15  ;;  %4258 = vbcast.lane.b32.xlu1 %v4212_v9, 344  ;;  %v10816_v53 = vpop.permute.xlu1 %3998  ;;  %4254 = vbcast.lane.b32.xlu0 %v4212_v9, 336 }
 0x48e   : > { %15382 = vst [vmem:[#allocation216_spill] sm:$0xff] %v10816_v53  ;;  %v15389_v53 = vld [vmem:[#allocation24_spill] sm:$0xff] }
 0x490   : > { %v10818_v62 = vpop.permute.xlu0 %4013 }
 0x491   : > { %15383 = vst [vmem:[#allocation217_spill] sm:$0xff] %v10818_v62  ;;  %4266 = vbcast.lane.b32.xlu1 %v4212_v9, 360  ;;  %v10820_v5 = vpop.permute.xlu1 %4006  ;;  %4262 = vbcast.lane.b32.xlu0 %v4212_v9, 352  ;;  %v10836_v62 = vrot.slane %v10828_v59, %v15389_v53 }
 0x492   : > { %15384 = vst [vmem:[#allocation218_spill] sm:$0xff] %v10820_v5 }
 0x494   : > { %v10822_v45 = vpop.permute.xlu0 %4021 }
 0x495   : > { %15385 = vst [vmem:[#allocation219_spill] sm:$0xff] %v10822_v45  ;;  %4274 = vbcast.lane.b32.xlu1 %v4212_v9, 376  ;;  %v10824_v43 = vpop.permute.xlu1 %4017  ;;  %4270 = vbcast.lane.b32.xlu0 %v4212_v9, 368  ;;  %v10844_v45 = vrot.slane %v10836_v62, %v7695_v4 }
 0x496   : > { %15386 = vst [vmem:[#allocation220_spill] sm:$0xff] %v10824_v43 }
 0x497   : > { %vm4495_vm10 = vcmp.eq.f32.partialorder %v10844_v45, %v10680_v63  ;;  %vm4367_vm2 = vcmp.lt.f32.partialorder %v10844_v45, %v10680_v63  ;;  %vm4496_vm12 = vcmp.eq.f32.partialorder %v10844_v45, %v10682_v39  ;;  %vm4368_vm6 = vcmp.lt.f32.partialorder %v10844_v45, %v10682_v39 }
 0x498   : > { %v10830_v15 = vpop.permute.xlu0 %4029  ;;  %vm4623_vm5 = vmand %vm4495_vm10, %vm15087_vm7  ;;  %vm4497_vm14 = vcmp.eq.f32.partialorder %v10844_v45, %v10684_v3  ;;  %vm4369_vm7 = vcmp.lt.f32.partialorder %v10844_v45, %v10684_v3  ;;  %vm4498_vm1 = vcmp.eq.f32.partialorder %v10844_v45, %v10691_v14 }
 0x499   : > { %15387 = vst [vmem:[#allocation221_spill] sm:$0xff] %v10830_v15  ;;  %v10832_v0 = vpop.permute.xlu1 %4025  ;;  %vm4751_vm11 = vmor %vm4367_vm2, %vm4623_vm5  ;;  %vm15400_vm2 = vnez %v14658_v20 }
 0x49a   : > { %15388 = vst [vmem:[#allocation222_spill] sm:$0xff] %v10832_v0  ;;  %vm4624_vm13 = vmand %vm4496_vm12, %vm14994_vm4 }
 0x49b   : > { %vm4752_vm10 = vmor %vm4368_vm6, %vm4624_vm13  ;;  %vm15403_vm6 = vnez %v14661_v18 }
 0x49c   : > { %v10838_v30 = vpop.permute.xlu0 %4037  ;;  %vm4625_vm5 = vmand %vm4497_vm14, %vm15400_vm2  ;;  %vm4499_vm14 = vcmp.eq.f32.partialorder %v10844_v45, %v10689_v49 }
 0x49d   : > { %15390 = vst [vmem:[#allocation24_spill] sm:$0xff] %v10838_v30  ;;  %v10840_v5 = vpop.permute.xlu1 %4033  ;;  %vm4753_vm12 = vmor %vm4369_vm7, %vm4625_vm5  ;;  %vm4371_vm7 = vcmp.lt.f32.partialorder %v10844_v45, %v10689_v49  ;;  %vm15405_vm5 = vnez %v14665_v28 }
 0x49e   : > { %15391 = vst [vmem:[#allocation223_spill] sm:$0xff] %v10840_v5  ;;  %vm4626_vm13 = vmand %vm4498_vm1, %vm15403_vm6  ;;  %v4881_v39 = vsel %vm4753_vm12, 1, %v14663_v8  ;;  %vm4500_vm1 = vcmp.eq.f32.partialorder %v10844_v45, %v10695_v10 }
 0x49f   : > { %vm4627_vm2 = vmand %vm4499_vm14, %vm15405_vm5  ;;  %vm4501_vm5 = vcmp.eq.f32.partialorder %v10844_v45, %v10693_v47 }
 0x4a0   : > { %v10846_v9 = vpop.permute.xlu0 %4045  ;;  %vm4755_vm12 = vmor %vm4371_vm7, %vm4627_vm2  ;;  %vm15410_vm7 = vnez %v14671_v19 }
 0x4a1   : > { %15392 = vst [vmem:[#allocation224_spill] sm:$0xff] %v10846_v9  ;;  %v10848_v43 = vpop.permute.xlu1 %4041 }
 0x4a2   : > { %15393 = vst [vmem:[#allocation225_spill] sm:$0xff] %v10848_v43 }
 0x4a4   : > { %v10852_v15 = vpop.permute.xlu0 %4053 }
 0x4a5   : > { %15394 = vst [vmem:[#allocation226_spill] sm:$0xff] %v10852_v15  ;;  %v10854_v0 = vpop.permute.xlu1 %4049  ;;  %v4879_v15 = vsel %vm4751_vm11, 1, %v14663_v8  ;;  %vm4370_vm11 = vcmp.lt.f32.partialorder %v10844_v45, %v10691_v14  ;;  %v5031_v14 = vand.u32 65535, %v4881_v39 }
 0x4a6   : > { %15395 = vst [vmem:[#allocation227_spill] sm:$0xff] %v10854_v0 }
 0x4a8   : > { %v10862_v30 = vpop.permute.xlu0 %4061 }
 0x4a9   : > { %15396 = vst [vmem:[#allocation228_spill] sm:$0xff] %v10862_v30  ;;  %v10864_v9 = vpop.permute.xlu1 %4057  ;;  %v5007_v30 = vand.u32 65535, %v4879_v15 }
 0x4aa   : > { %15397 = vst [vmem:[#allocation229_spill] sm:$0xff] %v10864_v9  ;;  %v4880_v9 = vsel %vm4752_vm10, 1, %v14663_v8  ;;  %vm4754_vm10 = vmor %vm4370_vm11, %vm4626_vm13  ;;  %vm4372_vm11 = vcmp.lt.f32.partialorder %v10844_v45, %v10695_v10  ;;  %vm15407_vm13 = vnez %v14668_v31 }
 0x4ab   : > { %v5019_v3 = vand.u32 65535, %v4880_v9  ;;  %vm4628_vm14 = vmand %vm4500_vm1, %vm15407_vm13  ;;  %vm4502_vm13 = vcmp.eq.f32.partialorder %v10844_v45, %v10699_v41 }
 0x4ac   : > { %v10873_v0 = vpop.permute.xlu0 %4069  ;;  %vm4756_vm2 = vmor %vm4372_vm11, %vm4628_vm14  ;;  %vm4374_vm11 = vcmp.lt.f32.partialorder %v10844_v45, %v10699_v41  ;;  %vm15412_vm14 = vnez %v14675_v29 }
 0x4ad   : > { %15398 = vst [vmem:[#allocation230_spill] sm:$0xff] %v10873_v0  ;;  %v10875_v43 = vpop.permute.xlu1 %4065  ;;  %v5008_v0 = vshrl.u32 %v4879_v15, 16  ;;  %vm4629_vm1 = vmand %vm4501_vm5, %vm15410_vm7  ;;  %vm4503_vm7 = vcmp.eq.f32.partialorder %v10844_v45, %v10697_v60 }
 0x4ae   : > { %15399 = vst [vmem:[#allocation231_spill] sm:$0xff] %v10875_v43  ;;  %v5009_v43 = vcvt.s32.f32 %v5007_v30  ;;  %v5021_v30 = vcvt.s32.f32 %v5019_v3  ;;  %vm4630_vm5 = vmand %vm4502_vm13, %vm15412_vm14 }
 0x4af   : > { %v5010_v15 = vcvt.s32.f32 %v5008_v0  ;;  %v5032_v0 = vshrl.u32 %v4881_v39, 16  ;;  %vm4631_vm13 = vmand %vm4503_vm7, %vm15225_vm9  ;;  %vm15416_vm7 = vnez %v14681_v27  ;;  %vm4505_vm9 = vcmp.eq.f32.partialorder %v10844_v45, %v10701_v34 }
 0x4b0   : > { %v10884_v5 = vpop.permute.xlu0 %4080 }
 0x4b1   : > { %15401 = vst [vmem:[#allocation232_spill] sm:$0xff] %v10884_v5  ;;  %v10886_v13 = vpop.permute.xlu1 %4073  ;;  %v5020_v5 = vshrl.u32 %v4880_v9, 16  ;;  %v5033_v9 = vcvt.s32.f32 %v5031_v14  ;;  %v5034_v39 = vcvt.s32.f32 %v5032_v0 }
 0x4b2   : > { %15402 = vst [vmem:[#allocation233_spill] sm:$0xff] %v10886_v13 }
 0x4b3   : > { %v5022_v3 = vcvt.s32.f32 %v5020_v5 }
 0x4b4   : > { %5011 = vadd.xlane.f32.xlu0 %v5009_v43  ;;  %v10901_v13 = vpop.permute.xlu0 %4088  ;;  %v4882_v43 = vsel %vm4754_vm10, 1, %v14663_v8  ;;  %vm4373_vm10 = vcmp.lt.f32.partialorder %v10844_v45, %v10693_v47 }
 0x4b5   : > { %v10895_v63 = vpop.permute.xlu1 %4084  ;;  %15406 = vst [vmem:[#allocation235_spill] sm:$0xff] %v10901_v13  ;;  %v5043_v13 = vand.u32 65535, %v4882_v43  ;;  %v5044_v14 = vshrl.u32 %v4882_v43, 16 }
 0x4b6   : > { %15404 = vst [vmem:[#allocation234_spill] sm:$0xff] %v10895_v63 }
 0x4b7   : > { %v5045_v5 = vcvt.s32.f32 %v5043_v13  ;;  %v5046_v13 = vcvt.s32.f32 %v5044_v14 }
 0x4b8   : > { %5023 = vadd.xlane.f32.xlu0 %v5021_v30  ;;  %v10914_v49 = vpop.permute.xlu0 %4096 }
 0x4b9   : > { %5013 = vadd.xlane.f32.xlu1 %v5010_v15  ;;  %v10910_v63 = vpop.permute.xlu1 %4092  ;;  %15409 = vst [vmem:[#allocation237_spill] sm:$0xff] %v10914_v49  ;;  %v4883_v15 = vsel %vm4755_vm12, 1, %v14663_v8  ;;  %v4884_v49 = vsel %vm4756_vm2, 1, %v14663_v8  ;;  %vm4757_vm12 = vmor %vm4373_vm10, %vm4629_vm1  ;;  %vm4375_vm10 = vcmp.lt.f32.partialorder %v10844_v45, %v10697_v60  ;;  %vm4504_vm1 = vcmp.eq.f32.partialorder %v10844_v45, %v10703_v52 }
 0x4ba   : > { %15408 = vst [vmem:[#allocation236_spill] sm:$0xff] %v10910_v63  ;;  %v5055_v30 = vand.u32 65535, %v4883_v15  ;;  %vm4758_vm2 = vmor %vm4374_vm11, %vm4630_vm5  ;;  %v5068_v14 = vshrl.u32 %v4884_v49, 16  ;;  %vm4376_vm11 = vcmp.lt.f32.partialorder %v10844_v45, %v10703_v52 }
 0x4bb   : > { %vm4632_vm5 = vmand %vm4504_vm1, %vm15416_vm7  ;;  %vm4506_vm7 = vcmp.eq.f32.partialorder %v10844_v45, %v10707_v17 }
 0x4bc   : > { %5025 = vadd.xlane.f32.xlu0 %v5022_v3  ;;  %v10930_v0 = vpop.permute.xlu0 %4104  ;;  %v5056_v3 = vshrl.u32 %v4883_v15, 16  ;;  %v5057_v43 = vcvt.s32.f32 %v5055_v30 }
 0x4bd   : > { %5035 = vadd.xlane.f32.xlu1 %v5033_v9  ;;  %v10923_v63 = vpop.permute.xlu1 %4100  ;;  %15413 = vst [vmem:[#allocation239_spill] sm:$0xff] %v10930_v0  ;;  %v5067_v9 = vand.u32 65535, %v4884_v49 }
 0x4be   : > { %15411 = vst [vmem:[#allocation238_spill] sm:$0xff] %v10923_v63  ;;  %v4885_v63 = vsel %vm4757_vm12, 1, %v14663_v8  ;;  %v5058_v15 = vcvt.s32.f32 %v5056_v3  ;;  %vm4759_vm12 = vmor %vm4375_vm10, %vm4631_vm13  ;;  %vm4377_vm10 = vcmp.lt.f32.partialorder %v10844_v45, %v10701_v34  ;;  %vm15418_vm13 = vnez %v14686_v26 }
 0x4bf   : > { %v5079_v30 = vand.u32 65535, %v4885_v63  ;;  %v5080_v3 = vshrl.u32 %v4885_v63, 16  ;;  %vm4633_vm1 = vmand %vm4505_vm9, %vm15418_vm13 }
 0x4c0   : > { %5037 = vadd.xlane.f32.xlu0 %v5034_v39  ;;  %v10943_v0 = vpop.permute.xlu0 %4112  ;;  %vm4634_vm9 = vmand %vm4506_vm7, %vm15238_vm8  ;;  %vm4379_vm7 = vcmp.lt.f32.partialorder %v10844_v45, %v10705_v48 }
 0x4c1   : > { %5047 = vadd.xlane.f32.xlu1 %v5045_v5  ;;  %v10939_v39 = vpop.permute.xlu1 %4108  ;;  %v5069_v5 = vcvt.s32.f32 %v5067_v9  ;;  %15415 = vst [vmem:[#allocation241_spill] sm:$0xff] %v10943_v0  ;;  %v5081_v49 = vcvt.s32.f32 %v5079_v30  ;;  %v4887_v0 = vsel %vm4759_vm12, 1, %v14663_v8  ;;  %vm4761_vm12 = vmor %vm4377_vm10, %vm4633_vm1  ;;  %vm4508_vm1 = vcmp.eq.f32.partialorder %v10844_v45, %v10711_v37 }
 0x4c2   : > { %15414 = vst [vmem:[#allocation240_spill] sm:$0xff] %v10939_v39  ;;  %v5103_v30 = vand.u32 65535, %v4887_v0 }
 0x4c4   : > { %5049 = vadd.xlane.f32.xlu0 %v5046_v13  ;;  %v4886_v13 = vsel %vm4758_vm2, 1, %v14663_v8  ;;  %vm4760_vm2 = vmor %vm4376_vm11, %vm4632_vm5  ;;  %v10959_v63 = vpop.permute.xlu0 %4120  ;;  %vm4378_vm11 = vcmp.lt.f32.partialorder %v10844_v45, %v10707_v17  ;;  %vm4507_vm5 = vcmp.eq.f32.partialorder %v10844_v45, %v10705_v48 }
 0x4c5   : > { %5059 = vadd.xlane.f32.xlu1 %v5057_v43  ;;  %v5070_v43 = vcvt.s32.f32 %v5068_v14  ;;  %v5091_v9 = vand.u32 65535, %v4886_v13  ;;  %v10952_v39 = vpop.permute.xlu1 %4116  ;;  %15419 = vst [vmem:[#allocation243_spill] sm:$0xff] %v10959_v63  ;;  %v5092_v14 = vshrl.u32 %v4886_v13, 16  ;;  %v5105_v13 = vcvt.s32.f32 %v5103_v30  ;;  %vm4635_vm10 = vmand %vm4507_vm5, %vm14775_vm3 }
 0x4c6   : > { %15417 = vst [vmem:[#allocation242_spill] sm:$0xff] %v10952_v39  ;;  %v4888_v39 = vsel %vm4760_vm2, 1, %v14663_v8  ;;  %vm4762_vm2 = vmor %vm4378_vm11, %vm4634_vm9  ;;  %vm4380_vm11 = vcmp.lt.f32.partialorder %v10844_v45, %v10711_v37  ;;  %vm4509_vm5 = vcmp.eq.f32.partialorder %v10844_v45, %v10709_v44 }
 0x4c7   : > { %v5116_v30 = vshrl.u32 %v4888_v39, 16  ;;  %vm4636_vm9 = vmand %vm4508_vm1, %vm15070_vm0  ;;  %vm4510_vm1 = vcmp.eq.f32.partialorder %v10844_v45, %v10715_v6 }
 0x4c8   : > { %5061 = vadd.xlane.f32.xlu0 %v5058_v15  ;;  %v5082_v15 = vcvt.s32.f32 %v5080_v3  ;;  %v5104_v3 = vshrl.u32 %v4887_v0, 16  ;;  %v10972_v63 = vpop.permute.xlu0 %4128 }
 0x4c9   : > { %5071 = vadd.xlane.f32.xlu1 %v5069_v5  ;;  %v5093_v5 = vcvt.s32.f32 %v5091_v9  ;;  %v5115_v9 = vand.u32 65535, %v4888_v39  ;;  %15421 = vst [vmem:[#allocation245_spill] sm:$0xff] %v10972_v63 }
 0x4ca   : > { %v5106_v0 = vcvt.s32.f32 %v5104_v3 }
 0x4cc   : > { %5073 = vadd.xlane.f32.xlu0 %v5070_v43  ;;  %v10968_v43 = vpop.permute.xlu1 %4124  ;;  %v10993_v3 = vpop.permute.xlu0 %4136 }
 0x4cd   : > { %5083 = vadd.xlane.f32.xlu1 %v5081_v49  ;;  %15420 = vst [vmem:[#allocation244_spill] sm:$0xff] %v10968_v43  ;;  %v5094_v49 = vcvt.s32.f32 %v5092_v14  ;;  %v5117_v14 = vcvt.s32.f32 %v5115_v9  ;;  %15423 = vst [vmem:[#allocation247_spill] sm:$0xff] %v10993_v3 }
 0x4d0   : > { %5085 = vadd.xlane.f32.xlu0 %v5082_v15  ;;  %v4889_v15 = vsel %vm4761_vm12, 1, %v14663_v8  ;;  %v10983_v43 = vpop.permute.xlu1 %4132  ;;  %vm4763_vm12 = vmor %vm4379_vm7, %vm4635_vm10  ;;  %vm4381_vm7 = vcmp.lt.f32.partialorder %v10844_v45, %v10709_v44 }
 0x4d1   : > { %5095 = vadd.xlane.f32.xlu1 %v5093_v5  ;;  %v4293_v5 = vcombine.high %v10828_v59, %v10828_v59  ;;  %v5127_v63 = vand.u32 65535, %v4889_v15  ;;  %15422 = vst [vmem:[#allocation246_spill] sm:$0xff] %v10983_v43  ;;  %v5128_v39 = vshrl.u32 %v4889_v15, 16  ;;  %vm4637_vm10 = vmand %vm4509_vm5, %vm14978_vm15 }
 0x4d3   : > { %v10987_v59 = vrot.slane %v4293_v5, %v15389_v53  ;;  %v5129_v9 = vcvt.s32.f32 %v5127_v63  ;;  %v5130_v5 = vcvt.s32.f32 %v5128_v39 }
 0x4d4   : > { %5097 = vadd.xlane.f32.xlu0 %v5094_v49  ;;  %v4890_v49 = vsel %vm4762_vm2, 1, %v14663_v8  ;;  %vm4764_vm2 = vmor %vm4380_vm11, %vm4636_vm9  ;;  %v11006_v15 = vpop.permute.xlu1 %4140  ;;  %vm4382_vm11 = vcmp.lt.f32.partialorder %v10844_v45, %v10715_v6  ;;  %vm15426_vm9 = vnez %v14702_v21 }
 0x4d5   : > { %5107 = vadd.xlane.f32.xlu1 %v5105_v13  ;;  %v5118_v13 = vcvt.s32.f32 %v5116_v30  ;;  %v11000_v53 = vrot.slane %v10987_v59, %v7695_v4  ;;  %15424 = vst [vmem:[#allocation248_spill] sm:$0xff] %v11006_v15  ;;  %v5140_v30 = vshrl.u32 %v4890_v49, 16  ;;  %v4892_v3 = vsel %vm4764_vm2, 1, %v14663_v8  ;;  %vm4638_vm5 = vmand %vm4510_vm1, %vm15426_vm9 }
 0x4d6   : > { %v5163_v15 = vand.u32 65535, %v4892_v3  ;;  %vm4766_vm2 = vmor %vm4382_vm11, %vm4638_vm5 }
 0x4d7   : > { %vm4511_vm15 = vcmp.eq.f32.partialorder %v11000_v53, %v10713_v56  ;;  %vm4512_vm9 = vcmp.eq.f32.partialorder %v11000_v53, %v10719_v2  ;;  %vm4384_vm11 = vcmp.lt.f32.partialorder %v11000_v53, %v10719_v2  ;;  %vm4513_vm5 = vcmp.eq.f32.partialorder %v11000_v53, %v10717_v1 }
 0x4d8   : > { %5109 = vadd.xlane.f32.xlu0 %v5106_v0  ;;  %v5139_v0 = vand.u32 65535, %v4890_v49  ;;  %v11019_v43 = vpop.permute.xlu1 %4151 }
 0x4d9   : > { %5119 = vadd.xlane.f32.xlu1 %v5117_v14  ;;  %v4891_v14 = vsel %vm4763_vm12, 1, %v14663_v8  ;;  %vm4765_vm12 = vmor %vm4381_vm7, %vm4637_vm10  ;;  %15427 = vst [vmem:[#allocation250_spill] sm:$0xff] %v11019_v43  ;;  %vm4383_vm7 = vcmp.lt.f32.partialorder %v11000_v53, %v10713_v56  ;;  %vm15428_vm10 = vnez %v14651_v23 }
 0x4da   : > { %v5141_v63 = vcvt.s32.f32 %v5139_v0  ;;  %v5152_v39 = vshrl.u32 %v4891_v14, 16  ;;  %v5142_v0 = vcvt.s32.f32 %v5140_v30  ;;  %vm4639_vm1 = vmand %vm4511_vm15, %vm15428_vm10 }
 0x4db   : > { %vm4640_vm15 = vmand %vm4512_vm9, %vm14994_vm4  ;;  %vm15432_vm9 = vnez %v14658_v20  ;;  %vm4514_vm4 = vcmp.eq.f32.partialorder %v11000_v53, %v10726_v61 }
 0x4dc   : > { %5121 = vadd.xlane.f32.xlu0 %v5118_v13  ;;  %v5151_v13 = vand.u32 65535, %v4891_v14  ;;  %v5154_v14 = vcvt.s32.f32 %v5152_v39 }
 0x4dd   : > { %5131 = vadd.xlane.f32.xlu1 %v5129_v9  ;;  %v11010_v9 = vpop.permute.xlu0 %4147 }
 0x4de   : > { %15425 = vst [vmem:[#allocation249_spill] sm:$0xff] %v11010_v9  ;;  %v5153_v49 = vcvt.s32.f32 %v5151_v13  ;;  %v4893_v9 = vsel %vm4765_vm12, 1, %v14663_v8  ;;  %v4894_v13 = vsel %vm4766_vm2, 1, %v14663_v8  ;;  %vm4767_vm12 = vmor %vm4383_vm7, %vm4639_vm1  ;;  %vm4385_vm7 = vcmp.lt.f32.partialorder %v11000_v53, %v10717_v1 }
 0x4df   : > { %v5175_v30 = vand.u32 65535, %v4893_v9  ;;  %v5176_v39 = vshrl.u32 %v4893_v9, 16  ;;  %vm4768_vm2 = vmor %vm4384_vm11, %vm4640_vm15  ;;  %vm4386_vm11 = vcmp.lt.f32.partialorder %v11000_v53, %v10726_v61 }
 0x4e0   : > { %5133 = vadd.xlane.f32.xlu0 %v5130_v5  ;;  %v5165_v5 = vcvt.s32.f32 %v5163_v15  ;;  %vm4641_vm1 = vmand %vm4513_vm5, %vm15432_vm9  ;;  %vm4515_vm5 = vcmp.eq.f32.partialorder %v11000_v53, %v10724_v16 }
 0x4e1   : > { %5143 = vadd.xlane.f32.xlu1 %v5141_v63  ;;  %v11026_v45 = vpop.permute.xlu0 %4155  ;;  %v5164_v63 = vshrl.u32 %v4892_v3, 16  ;;  %v5177_v3 = vcvt.s32.f32 %v5175_v30  ;;  %v5178_v9 = vcvt.s32.f32 %v5176_v39  ;;  %vm4642_vm15 = vmand %vm4514_vm4, %vm15403_vm6  ;;  %vm4516_vm6 = vcmp.eq.f32.partialorder %v11000_v53, %v10730_v42 }
 0x4e2   : > { %15429 = vst [vmem:[#allocation251_spill] sm:$0xff] %v11026_v45 }
 0x4e3   : > { %v5166_v15 = vcvt.s32.f32 %v5164_v63  ;;  %v5188_v63 = vshrl.u32 %v4894_v13, 16 }
 0x4e4   : > { %5145 = vadd.xlane.f32.xlu0 %v5142_v0  ;;  %v11035_v0 = vpop.permute.xlu1 %4159 }
 0x4e5   : > { %5155 = vadd.xlane.f32.xlu1 %v5153_v49  ;;  %15430 = vst [vmem:[#allocation252_spill] sm:$0xff] %v11035_v0  ;;  %v5187_v49 = vand.u32 65535, %v4894_v13  ;;  %v11039_v45 = vpop.permute.xlu0 %4163  ;;  %v5190_v13 = vcvt.s32.f32 %v5188_v63 }
 0x4e6   : > { %15431 = vst [vmem:[#allocation253_spill] sm:$0xff] %v11039_v45  ;;  %v4896_v45 = vsel %vm4768_vm2, 1, %v14663_v8  ;;  %vm4770_vm2 = vmor %vm4386_vm11, %vm4642_vm15  ;;  %vm4388_vm11 = vcmp.lt.f32.partialorder %v11000_v53, %v10730_v42  ;;  %vm15438_vm15 = vnez %v14668_v31 }
 0x4e7   : > { %v5212_v63 = vshrl.u32 %v4896_v45, 16 }
 0x4e8   : > { %5157 = vadd.xlane.f32.xlu0 %v5154_v14  ;;  %v4895_v14 = vsel %vm4767_vm12, 1, %v14663_v8  ;;  %v11048_v0 = vpop.permute.xlu1 %4167  ;;  %vm4769_vm12 = vmor %vm4385_vm7, %vm4641_vm1  ;;  %vm4387_vm7 = vcmp.lt.f32.partialorder %v11000_v53, %v10724_v16  ;;  %vm15435_vm1 = vnez %v14665_v28 }
 0x4e9   : > { %5167 = vadd.xlane.f32.xlu1 %v5165_v5  ;;  %v5189_v5 = vcvt.s32.f32 %v5187_v49  ;;  %v5199_v30 = vand.u32 65535, %v4895_v14  ;;  %15433 = vst [vmem:[#allocation254_spill] sm:$0xff] %v11048_v0  ;;  %v11055_v39 = vpop.permute.xlu0 %4171  ;;  %v5211_v49 = vand.u32 65535, %v4896_v45  ;;  %v4897_v0 = vsel %vm4769_vm12, 1, %v14663_v8  ;;  %vm4643_vm4 = vmand %vm4515_vm5, %vm15435_vm1 }
 0x4ea   : > { %15434 = vst [vmem:[#allocation255_spill] sm:$0xff] %v11055_v39  ;;  %vm4771_vm12 = vmor %vm4387_vm7, %vm4643_vm4  ;;  %vm4517_vm1 = vcmp.eq.f32.partialorder %v11000_v53, %v10728_v55  ;;  %vm4389_vm7 = vcmp.lt.f32.partialorder %v11000_v53, %v10728_v55  ;;  %vm15440_vm4 = vnez %v14671_v19 }
 0x4eb   : > { %vm4644_vm5 = vmand %vm4516_vm6, %vm15438_vm15  ;;  %vm4518_vm15 = vcmp.eq.f32.partialorder %v11000_v53, %v10734_v54 }
 0x4ec   : > { %5169 = vadd.xlane.f32.xlu0 %v5166_v15  ;;  %v5200_v15 = vshrl.u32 %v4895_v14, 16  ;;  %vm4645_vm6 = vmand %vm4517_vm1, %vm15440_vm4 }
 0x4ed   : > { %5179 = vadd.xlane.f32.xlu1 %v5177_v3  ;;  %v5201_v3 = vcvt.s32.f32 %v5199_v30  ;;  %v5223_v30 = vand.u32 65535, %v4897_v0  ;;  %v11068_v39 = vpop.permute.xlu0 %4179  ;;  %vm4646_vm1 = vmand %vm4518_vm15, %vm15412_vm14  ;;  %vm15444_vm15 = vnez %v14678_v33  ;;  %vm4520_vm14 = vcmp.eq.f32.partialorder %v11000_v53, %v10738_v11 }
 0x4ee   : > { %v5202_v14 = vcvt.s32.f32 %v5200_v15  ;;  %15437 = vst [vmem:[#allocation257_spill] sm:$0xff] %v11068_v39  ;;  %v5224_v15 = vshrl.u32 %v4897_v0, 16  ;;  %v4899_v39 = vsel %vm4771_vm12, 1, %v14663_v8  ;;  %vm4773_vm12 = vmor %vm4389_vm7, %vm4645_vm6  ;;  %vm4391_vm7 = vcmp.lt.f32.partialorder %v11000_v53, %v10732_v7 }
 0x4ef   : > { %v5225_v45 = vcvt.s32.f32 %v5223_v30  ;;  %v5247_v30 = vand.u32 65535, %v4899_v39 }
 0x4f0   : > { %5181 = vadd.xlane.f32.xlu0 %v5178_v9  ;;  %v11064_v9 = vpop.permute.xlu1 %4175 }
 0x4f1   : > { %5191 = vadd.xlane.f32.xlu1 %v5189_v5  ;;  %15436 = vst [vmem:[#allocation256_spill] sm:$0xff] %v11064_v9  ;;  %v5213_v5 = vcvt.s32.f32 %v5211_v49  ;;  %v11084_v0 = vpop.permute.xlu0 %4187 }
 0x4f2   : > { %15441 = vst [vmem:[#allocation259_spill] sm:$0xff] %v11084_v0 }
 0x4f4   : > { %5193 = vadd.xlane.f32.xlu0 %v5190_v13  ;;  %v4898_v13 = vsel %vm4770_vm2, 1, %v14663_v8  ;;  %v11077_v9 = vpop.permute.xlu1 %4183  ;;  %vm4772_vm2 = vmor %vm4388_vm11, %vm4644_vm5  ;;  %vm4390_vm11 = vcmp.lt.f32.partialorder %v11000_v53, %v10734_v54  ;;  %vm4519_vm5 = vcmp.eq.f32.partialorder %v11000_v53, %v10732_v7 }
 0x4f5   : > { %5203 = vadd.xlane.f32.xlu1 %v5201_v3  ;;  %v5214_v3 = vcvt.s32.f32 %v5212_v63  ;;  %v5235_v49 = vand.u32 65535, %v4898_v13  ;;  %15439 = vst [vmem:[#allocation258_spill] sm:$0xff] %v11077_v9  ;;  %v5236_v63 = vshrl.u32 %v4898_v13, 16  ;;  %v4900_v9 = vsel %vm4772_vm2, 1, %v14663_v8  ;;  %v11097_v0 = vpop.permute.xlu0 %4195  ;;  %vm4774_vm2 = vmor %vm4390_vm11, %vm4646_vm1 }
 0x4f6   : > { %v5249_v13 = vcvt.s32.f32 %v5247_v30  ;;  %15443 = vst [vmem:[#allocation261_spill] sm:$0xff] %v11097_v0  ;;  %vm4647_vm6 = vmand %vm4519_vm5, %vm15444_vm15  ;;  %v4902_v0 = vsel %vm4774_vm2, 1, %v14663_v8  ;;  %vm4392_vm11 = vcmp.lt.f32.partialorder %v11000_v53, %v10738_v11  ;;  %vm15446_vm1 = vnez %v14681_v27 }
 0x4f7   : > { %vm4648_vm5 = vmand %vm4520_vm14, %vm15446_vm1  ;;  %vm4521_vm15 = vcmp.eq.f32.partialorder %v11000_v53, %v10736_v46 }
 0x4f8   : > { %5205 = vadd.xlane.f32.xlu0 %v5202_v14  ;;  %v5226_v14 = vcvt.s32.f32 %v5224_v15  ;;  %v5248_v15 = vshrl.u32 %v4899_v39, 16  ;;  %vm4776_vm2 = vmor %vm4392_vm11, %vm4648_vm5  ;;  %vm4394_vm11 = vcmp.lt.f32.partialorder %v11000_v53, %v10742_v12  ;;  %vm4523_vm5 = vcmp.eq.f32.partialorder %v11000_v53, %v10740_v24 }
 0x4f9   : > { %5215 = vadd.xlane.f32.xlu1 %v5213_v5  ;;  %v5237_v5 = vcvt.s32.f32 %v5235_v49  ;;  %v5259_v49 = vand.u32 65535, %v4900_v9  ;;  %vm4649_vm14 = vmand %vm4521_vm15, %vm15418_vm13 }
 0x4fa   : > { %v5250_v39 = vcvt.s32.f32 %v5248_v15  ;;  %v11113_v15 = vpop.permute.xlu0 %4203 }
 0x4fb   : > { %15447 = vst [vmem:[#allocation263_spill] sm:$0xff] %v11113_v15 }
 0x4fc   : > { %5217 = vadd.xlane.f32.xlu0 %v5214_v3  ;;  %v11093_v3 = vpop.permute.xlu1 %4191 }
 0x4fd   : > { %5227 = vadd.xlane.f32.xlu1 %v5225_v45  ;;  %15442 = vst [vmem:[#allocation260_spill] sm:$0xff] %v11093_v3  ;;  %v5238_v45 = vcvt.s32.f32 %v5236_v63  ;;  %v5260_v63 = vshrl.u32 %v4900_v9, 16 }
 0x4fe   : > { %v11126_v15 = vpop.permute.xlu0 %4214 }
 0x4ff   : > { %v5262_v9 = vcvt.s32.f32 %v5260_v63  ;;  %v5284_v63 = vshrl.u32 %v4902_v0, 16  ;;  %15449 = vst [vmem:[#allocation265_spill] sm:$0xff] %v11126_v15 }
 0x500   : > { %5229 = vadd.xlane.f32.xlu0 %v5226_v14  ;;  %v4901_v14 = vsel %vm4773_vm12, 1, %v14663_v8  ;;  %v11106_v3 = vpop.permute.xlu1 %4199  ;;  %vm4775_vm12 = vmor %vm4391_vm7, %vm4647_vm6  ;;  %vm4393_vm7 = vcmp.lt.f32.partialorder %v11000_v53, %v10736_v46  ;;  %vm4522_vm6 = vcmp.eq.f32.partialorder %v11000_v53, %v10742_v12 }
 0x501   : > { %5239 = vadd.xlane.f32.xlu1 %v5237_v5  ;;  %v5261_v5 = vcvt.s32.f32 %v5259_v49  ;;  %v5271_v30 = vand.u32 65535, %v4901_v14  ;;  %15445 = vst [vmem:[#allocation262_spill] sm:$0xff] %v11106_v3  ;;  %v5283_v49 = vand.u32 65535, %v4902_v0  ;;  %v4903_v3 = vsel %vm4775_vm12, 1, %v14663_v8  ;;  %vm4777_vm12 = vmor %vm4393_vm7, %vm4649_vm14 }
 0x502   : > { %vm4650_vm15 = vmand %vm4522_vm6, %vm15238_vm8  ;;  %v4905_v15 = vsel %vm4777_vm12, 1, %v14663_v8  ;;  %vm4395_vm7 = vcmp.lt.f32.partialorder %v11000_v53, %v10740_v24  ;;  %vm4524_vm6 = vcmp.eq.f32.partialorder %v11000_v53, %v10746_v35  ;;  %v15483_v24 = vld [vmem:[#allocation196_spill] sm:$0xff] }
 0x503   : > { %vm4651_vm14 = vmand %vm4523_vm5, %vm14775_vm3  ;;  %vm4525_vm5 = vcmp.eq.f32.partialorder %v11000_v53, %v10744_v57 }
 0x504   : > { %5241 = vadd.xlane.f32.xlu0 %v5238_v45  ;;  %v5272_v45 = vshrl.u32 %v4901_v14, 16  ;;  %vm4779_vm12 = vmor %vm4395_vm7, %vm4651_vm14  ;;  %vm4397_vm7 = vcmp.lt.f32.partialorder %v11000_v53, %v10744_v57  ;;  %vm15454_vm14 = vnez %v14699_v40 }
 0x505   : > { %5251 = vadd.xlane.f32.xlu1 %v5249_v13  ;;  %v5273_v13 = vcvt.s32.f32 %v5271_v30  ;;  %v5295_v30 = vand.u32 65535, %v4903_v3 }
 0x506   : > { %v5274_v14 = vcvt.s32.f32 %v5272_v45  ;;  %v5296_v45 = vshrl.u32 %v4903_v3, 16  ;;  %v11142_v3 = vpop.permute.xlu0 %4222 }
 0x507   : > { %v5297_v0 = vcvt.s32.f32 %v5295_v30  ;;  %15451 = vst [vmem:[#allocation267_spill] sm:$0xff] %v11142_v3  ;;  %v5319_v30 = vand.u32 65535, %v4905_v15  ;;  %v4907_v3 = vsel %vm4779_vm12, 1, %v14663_v8 }
 0x508   : > { %5253 = vadd.xlane.f32.xlu0 %v5250_v39  ;;  %v11122_v39 = vpop.permute.xlu1 %4207 }
 0x509   : > { %5263 = vadd.xlane.f32.xlu1 %v5261_v5  ;;  %15448 = vst [vmem:[#allocation264_spill] sm:$0xff] %v11122_v39  ;;  %v5285_v5 = vcvt.s32.f32 %v5283_v49 }
 0x50c   : > { %5265 = vadd.xlane.f32.xlu0 %v5262_v9  ;;  %v4904_v9 = vsel %vm4776_vm2, 1, %v14663_v8  ;;  %v11135_v39 = vpop.permute.xlu1 %4218  ;;  %vm4778_vm2 = vmor %vm4394_vm11, %vm4650_vm15  ;;  %vm4396_vm11 = vcmp.lt.f32.partialorder %v11000_v53, %v10746_v35 }
 0x50d   : > { %5275 = vadd.xlane.f32.xlu1 %v5273_v13  ;;  %v5286_v13 = vcvt.s32.f32 %v5284_v63  ;;  %v5307_v49 = vand.u32 65535, %v4904_v9  ;;  %15450 = vst [vmem:[#allocation266_spill] sm:$0xff] %v11135_v39  ;;  %v5308_v63 = vshrl.u32 %v4904_v9, 16  ;;  %v4906_v39 = vsel %vm4778_vm2, 1, %v14663_v8  ;;  %vm4652_vm15 = vmand %vm4524_vm6, %vm15070_vm0 }
 0x50e   : > { %vm4780_vm2 = vmor %vm4396_vm11, %vm4652_vm15  ;;  %vm4526_vm0 = vcmp.eq.f32.partialorder %v11000_v53, %v10750_v32  ;;  %vm4398_vm11 = vcmp.lt.f32.partialorder %v11000_v53, %v10750_v32  ;;  %vm15456_vm15 = vnez %v14702_v21 }
 0x50f   : > { %v5310_v9 = vcvt.s32.f32 %v5308_v63  ;;  %vm4653_vm6 = vmand %vm4525_vm5, %vm15454_vm14 }
 0x510   : > { %5277 = vadd.xlane.f32.xlu0 %v5274_v14  ;;  %v5298_v14 = vcvt.s32.f32 %v5296_v45  ;;  %v11153_v45 = vpop.permute.xlu1 %4226  ;;  %vm4781_vm12 = vmor %vm4397_vm7, %vm4653_vm6 }
 0x511   : > { %5287 = vadd.xlane.f32.xlu1 %v5285_v5  ;;  %v5309_v5 = vcvt.s32.f32 %v5307_v49  ;;  %15452 = vst [vmem:[#allocation268_spill] sm:$0xff] %v11153_v45  ;;  %v5321_v49 = vcvt.s32.f32 %v5319_v30  ;;  %v5332_v30 = vshrl.u32 %v4906_v39, 16  ;;  %vm4654_vm5 = vmand %vm4526_vm0, %vm15456_vm15 }
 0x514   : > { %5289 = vadd.xlane.f32.xlu0 %v5286_v13  ;;  %v4323_v13 = vcombine.high %v10836_v62, %v10836_v62  ;;  %v11169_v45 = vpop.permute.xlu1 %4234 }
 0x515   : > { %5299 = vadd.xlane.f32.xlu1 %v5297_v0  ;;  %v5320_v0 = vshrl.u32 %v4905_v15, 16  ;;  %15455 = vst [vmem:[#allocation270_spill] sm:$0xff] %v11169_v45  ;;  %v4909_v45 = vsel %vm4781_vm12, 1, %v14663_v8 }
 0x516   : > { %v11161_v62 = vrot.slane %v4323_v13, %v7695_v4 }
 0x517   : > { %v5322_v15 = vcvt.s32.f32 %v5320_v0  ;;  %v5344_v0 = vshrl.u32 %v4907_v3, 16 }
 0x518   : > { %5301 = vadd.xlane.f32.xlu0 %v5298_v14  ;;  %v5331_v14 = vand.u32 65535, %v4906_v39  ;;  %vm4527_vm14 = vcmp.eq.f32.partialorder %v11161_v62, %v10748_v58  ;;  %v5334_v39 = vcvt.s32.f32 %v5332_v30  ;;  %vm4399_vm7 = vcmp.lt.f32.partialorder %v11161_v62, %v10748_v58  ;;  %v11185_v53 = vpop.permute.xlu1 %4242 }
 0x519   : > { %5311 = vadd.xlane.f32.xlu1 %v5309_v5  ;;  %v11157_v5 = vpop.permute.xlu0 %4230  ;;  %vm4655_vm0 = vmand %vm4527_vm14, %vm15428_vm10  ;;  %15458 = vst [vmem:[#allocation272_spill] sm:$0xff] %v11185_v53  ;;  %vm4528_vm6 = vcmp.eq.f32.partialorder %v11161_v62, %v10754_v50  ;;  %vm15460_vm14 = vnez %v14654_v25  ;;  %vm4529_vm10 = vcmp.eq.f32.partialorder %v11161_v62, %v10752_v51 }
 0x51a   : > { %15453 = vst [vmem:[#allocation269_spill] sm:$0xff] %v11157_v5  ;;  %v5333_v63 = vcvt.s32.f32 %v5331_v14  ;;  %v5343_v5 = vand.u32 65535, %v4907_v3  ;;  %v5346_v3 = vcvt.s32.f32 %v5344_v0  ;;  %vm4783_vm12 = vmor %vm4399_vm7, %vm4655_vm0  ;;  %v5368_v0 = vshrl.u32 %v4909_v45, 16 }
 0x51b   : > { %vm4401_vm7 = vcmp.lt.f32.partialorder %v11161_v62, %v10752_v51  ;;  %vm4657_vm0 = vmand %vm4529_vm10, %vm15432_vm9 }
 0x51c   : > { %5313 = vadd.xlane.f32.xlu0 %v5310_v9  ;;  %v4908_v9 = vsel %vm4780_vm2, 1, %v14663_v8  ;;  %vm4782_vm2 = vmor %vm4398_vm11, %vm4654_vm5  ;;  %vm4400_vm11 = vcmp.lt.f32.partialorder %v11161_v62, %v10754_v50  ;;  %v11198_v53 = vpop.permute.xlu1 %4250  ;;  %v15476_v50 = vld [vmem:[#allocation193_spill] sm:$0xff] }
 0x51d   : > { %5323 = vadd.xlane.f32.xlu1 %v5321_v49  ;;  %v11176_v13 = vpop.permute.xlu0 %4238  ;;  %v5345_v49 = vcvt.s32.f32 %v5343_v5  ;;  %v5355_v14 = vand.u32 65535, %v4908_v9  ;;  %v5356_v5 = vshrl.u32 %v4908_v9, 16  ;;  %vm4656_vm5 = vmand %vm4528_vm6, %vm15460_vm14  ;;  %15461 = vst [vmem:[#allocation274_spill] sm:$0xff] %v11198_v53 }
 0x51e   : > { %15457 = vst [vmem:[#allocation271_spill] sm:$0xff] %v11176_v13 }
 0x520   : > { %5325 = vadd.xlane.f32.xlu0 %v5322_v15  ;;  %v5357_v15 = vcvt.s32.f32 %v5355_v14 }
 0x521   : > { %5335 = vadd.xlane.f32.xlu1 %v5333_v63  ;;  %v5367_v63 = vand.u32 65535, %v4909_v45  ;;  %v11189_v30 = vpop.permute.xlu0 %4246 }
 0x522   : > { %15459 = vst [vmem:[#allocation273_spill] sm:$0xff] %v11189_v30  ;;  %v4911_v30 = vsel %vm4783_vm12, 1, %v14663_v8  ;;  %vm4785_vm12 = vmor %vm4401_vm7, %vm4657_vm0  ;;  %vm15468_vm0 = vnez %v14665_v28 }
 0x523   : > { %v5369_v9 = vcvt.s32.f32 %v5367_v63  ;;  %v5391_v53 = vand.u32 65535, %v4911_v30 }
 0x524   : > { %5337 = vadd.xlane.f32.xlu0 %v5334_v39  ;;  %v4910_v39 = vsel %vm4782_vm2, 1, %v14663_v8  ;;  %vm4784_vm2 = vmor %vm4400_vm11, %vm4656_vm5  ;;  %vm15464_vm5 = vnez %v14661_v18 }
 0x525   : > { %5347 = vadd.xlane.f32.xlu1 %v5345_v49  ;;  %v5358_v49 = vcvt.s32.f32 %v5356_v5  ;;  %v5379_v14 = vand.u32 65535, %v4910_v39  ;;  %v11205_v45 = vpop.permute.xlu0 %4254  ;;  %v5380_v63 = vshrl.u32 %v4910_v39, 16  ;;  %v4912_v13 = vsel %vm4784_vm2, 1, %v14663_v8 }
 0x526   : > { %15462 = vst [vmem:[#allocation275_spill] sm:$0xff] %v11205_v45  ;;  %v5393_v39 = vcvt.s32.f32 %v5391_v53  ;;  %v5403_v45 = vand.u32 65535, %v4912_v13  ;;  %v5404_v53 = vshrl.u32 %v4912_v13, 16 }
 0x527   : > { %v5381_v5 = vcvt.s32.f32 %v5379_v14  ;;  %v5382_v14 = vcvt.s32.f32 %v5380_v63 }
 0x528   : > { %5349 = vadd.xlane.f32.xlu0 %v5346_v3  ;;  %v5370_v3 = vcvt.s32.f32 %v5368_v0  ;;  %v5392_v0 = vshrl.u32 %v4911_v30, 16  ;;  %v5405_v63 = vcvt.s32.f32 %v5403_v45  ;;  %v5406_v13 = vcvt.s32.f32 %v5404_v53 }
 0x529   : > { %5359 = vadd.xlane.f32.xlu1 %v5357_v15  ;;  %v15463_v15 = vld [vmem:[#allocation190_spill] sm:$0xff]  ;;  %v11218_v43 = vpop.permute.xlu0 %4262 }
 0x52a   : > { %vm4530_vm6 = vcmp.eq.f32.partialorder %v11161_v62, %v15463_v15  ;;  %vm4402_vm11 = vcmp.lt.f32.partialorder %v11161_v62, %v15463_v15  ;;  %15467 = vst [vmem:[#allocation277_spill] sm:$0xff] %v11218_v43  ;;  %v5394_v30 = vcvt.s32.f32 %v5392_v0 }
 0x52b   : > { %vm4658_vm10 = vmand %vm4530_vm6, %vm15464_vm5 }
 0x52c   : > { %5361 = vadd.xlane.f32.xlu0 %v5358_v49  ;;  %v11214_v49 = vpop.permute.xlu1 %4258  ;;  %vm4786_vm2 = vmor %vm4402_vm11, %vm4658_vm10  ;;  %vm15472_vm10 = vnez %v14668_v31 }
 0x52d   : > { %5371 = vadd.xlane.f32.xlu1 %v5369_v9  ;;  %15465 = vst [vmem:[#allocation276_spill] sm:$0xff] %v11214_v49  ;;  %v15466_v9 = vld [vmem:[#allocation189_spill] sm:$0xff]  ;;  %v4914_v43 = vsel %vm4786_vm2, 1, %v14663_v8  ;;  %v11236_v0 = vpop.permute.xlu0 %4270 }
 0x52e   : > { %vm4531_vm9 = vcmp.eq.f32.partialorder %v11161_v62, %v15466_v9  ;;  %vm4403_vm7 = vcmp.lt.f32.partialorder %v11161_v62, %v15466_v9  ;;  %15473 = vst [vmem:[#allocation279_spill] sm:$0xff] %v11236_v0  ;;  %v15475_v0 = vld [vmem:[#allocation194_spill] sm:$0xff] }
 0x52f   : > { %vm4659_vm6 = vmand %vm4531_vm9, %vm15468_vm0 }
 0x530   : > { %5373 = vadd.xlane.f32.xlu0 %v5370_v3  ;;  %v4913_v3 = vsel %vm4785_vm12, 1, %v14663_v8  ;;  %v11227_v15 = vpop.permute.xlu1 %4266  ;;  %vm4787_vm11 = vmor %vm4403_vm7, %vm4659_vm6 }
 0x531   : > { %5383 = vadd.xlane.f32.xlu1 %v5381_v5  ;;  %v15469_v5 = vld [vmem:[#allocation192_spill] sm:$0xff]  ;;  %v5415_v49 = vand.u32 65535, %v4913_v3  ;;  %15470 = vst [vmem:[#allocation278_spill] sm:$0xff] %v11227_v15  ;;  %v5427_v15 = vand.u32 65535, %v4914_v43  ;;  %v4915_v9 = vsel %vm4787_vm11, 1, %v14663_v8  ;;  %vm4535_vm11 = vcmp.eq.f32.partialorder %v11161_v62, %v15476_v50 }
 0x532   : > { %vm4532_vm5 = vcmp.eq.f32.partialorder %v11161_v62, %v15469_v5  ;;  %vm4404_vm9 = vcmp.lt.f32.partialorder %v11161_v62, %v15469_v5  ;;  %v5428_v5 = vshrl.u32 %v4914_v43, 16  ;;  %v5439_v53 = vand.u32 65535, %v4915_v9  ;;  %v15484_v43 = vld [vmem:[#allocation195_spill] sm:$0xff] }
 0x533   : > { %vm4660_vm0 = vmand %vm4532_vm5, %vm15472_vm10  ;;  %v5417_v45 = vcvt.s32.f32 %v5415_v49  ;;  %vm4534_vm5 = vcmp.eq.f32.partialorder %v11161_v62, %v15475_v0 }
 0x534   : > { %5385 = vadd.xlane.f32.xlu0 %v5382_v14  ;;  %v15471_v14 = vld [vmem:[#allocation191_spill] sm:$0xff]  ;;  %vm4788_vm6 = vmor %vm4404_vm9, %vm4660_vm0  ;;  %vm4406_vm0 = vcmp.lt.f32.partialorder %v11161_v62, %v15475_v0  ;;  %vm15477_vm9 = vnez %v14675_v29  ;;  %v15491_v0 = vld [vmem:[#allocation174_spill] sm:$0xff] }
 0x535   : > { %5395 = vadd.xlane.f32.xlu1 %v5393_v39  ;;  %vm4533_vm12 = vcmp.eq.f32.partialorder %v11161_v62, %v15471_v14  ;;  %v5416_v39 = vshrl.u32 %v4913_v3, 16  ;;  %vm4405_vm7 = vcmp.lt.f32.partialorder %v11161_v62, %v15471_v14  ;;  %v5429_v3 = vcvt.s32.f32 %v5427_v15 }
 0x536   : > { %vm4661_vm2 = vmand %vm4533_vm12, %vm15440_vm4  ;;  %v4916_v51 = vsel %vm4788_vm6, 1, %v14663_v8  ;;  %v5441_v14 = vcvt.s32.f32 %v5439_v53 }
 0x537   : > { %v5418_v49 = vcvt.s32.f32 %v5416_v39  ;;  %vm4789_vm12 = vmor %vm4405_vm7, %vm4661_vm2  ;;  %v5440_v39 = vshrl.u32 %v4915_v9, 16  ;;  %v5451_v58 = vand.u32 65535, %v4916_v51  ;;  %vm4407_vm2 = vcmp.lt.f32.partialorder %v11161_v62, %v15476_v50 }
 0x538   : > { %5397 = vadd.xlane.f32.xlu0 %v5394_v30  ;;  %v11243_v30 = vpop.permute.xlu1 %4274  ;;  %vm11254_vm4 = vmand %vm4534_vm5, %vm15477_vm9  ;;  %v4917_v32 = vsel %vm4789_vm12, 1, %v14663_v8  ;;  %vm15480_vm7 = vnez %v14678_v33  ;;  %vm4536_vm12 = vcmp.eq.f32.partialorder %v11161_v62, %v15483_v24 }
 0x539   : > { %5407 = vadd.xlane.f32.xlu1 %v5405_v63  ;;  %15474 = vst [vmem:[#allocation280_spill] sm:$0xff] %v11243_v30  ;;  %vm11263_vm6 = vmand %vm4535_vm11, %vm15480_vm7  ;;  %v5442_v53 = vcvt.s32.f32 %v5440_v39  ;;  %v5463_v35 = vand.u32 65535, %v4917_v32 }
 0x53a   : > { %vm4790_vm5 = vmor %vm4406_vm0, %vm11254_vm4  ;;  %vm4537_vm4 = vcmp.eq.f32.partialorder %v11161_v62, %v15484_v43  ;;  %vm4408_vm0 = vcmp.lt.f32.partialorder %v11161_v62, %v15483_v24  ;;  %v15495_v24 = vld [vmem:[#allocation197_spill] sm:$0xff] }
 0x53b   : > { %vm4791_vm11 = vmor %vm4407_vm2, %vm11263_vm6 }
 0x53c   : > { %5409 = vadd.xlane.f32.xlu0 %v5406_v13  ;;  %vm11291_vm2 = vmand %vm4536_vm12, %vm15446_vm1 }
 0x53d   : > { %5419 = vadd.xlane.f32.xlu1 %v5417_v45  ;;  %v5012_v63 = vpop.xlane.xlu0 %5011  ;;  %v5430_v45 = vcvt.s32.f32 %v5428_v5  ;;  %vm11304_vm12 = vmand %vm4537_vm4, %vm15418_vm13  ;;  %vm15492_vm13 = vcmp.lt.f32.partialorder %v11161_v62, %v15484_v43 }
 0x540   : > { %5421 = vadd.xlane.f32.xlu0 %v5418_v49 }
 0x541   : > { %5431 = vadd.xlane.f32.xlu1 %v5429_v3  ;;  %v5024_v13 = vpop.xlane.xlu0 %5023  ;;  %v5015_v3 = vcvt.f32.s32 %v5012_v63  ;;  %v5453_v63 = vcvt.s32.f32 %v5451_v58  ;;  %v15501_v58 = vld [vmem:[#allocation200_spill] sm:$0xff] }
 0x542   : > { %v5014_v15 = vpop.xlane.xlu1 %5013 }
 0x543   : > { %v5016_v30 = vcvt.f32.s32 %v5014_v15  ;;  %v5452_v15 = vshrl.u32 %v4916_v51, 16  ;;  %v4918_v51 = vsel %vm4790_vm5, 1, %v14663_v8  ;;  %vm4792_vm5 = vmor %vm4408_vm0, %vm11291_vm2  ;;  %vm4539_vm2 = vcmp.eq.f32.partialorder %v11161_v62, %v15495_v24 }
 0x544   : > { %5433 = vadd.xlane.f32.xlu0 %v5430_v45  ;;  %vm11323_vm0 = vmor %vm15492_vm13, %vm11304_vm12 }
 0x545   : > { %v5017_v57 = vshll.u32 %v5016_v30, 16  ;;  %5443 = vadd.xlane.f32.xlu1 %v5441_v14  ;;  %v5026_v9 = vpop.xlane.xlu0 %5025  ;;  %v11282_v14 = vld [vmem:[%s14125_s5] ss:$0 sm:$0xff]  ;;  %v5464_v30 = vshrl.u32 %v4917_v32, 16  ;;  %v5454_v49 = vcvt.s32.f32 %v5452_v15  ;;  %vm11353_vm12 = vmand %vm4539_vm2, %vm14775_vm3 }
 0x546   : > { %v5036_v5 = vpop.xlane.xlu1 %5035  ;;  %v5028_v46 = vcvt.f32.s32 %v5026_v9  ;;  %v4919_v9 = vsel %vm4791_vm11, 1, %v14663_v8 }
 0x547   : > { %v5018_v12 = vadd.s32 %v5017_v57, %v5015_v3  ;;  %v5027_v57 = vcvt.f32.s32 %v5024_v13  ;;  %v5465_v3 = vcvt.s32.f32 %v5463_v35  ;;  %v5466_v35 = vcvt.s32.f32 %v5464_v30 }
 0x548   : > { %v5029_v45 = vshll.u32 %v5028_v46, 16  ;;  %5445 = vadd.xlane.f32.xlu0 %v5442_v53  ;;  %v5475_v53 = vand.u32 65535, %v4918_v51  ;;  %v5039_v15 = vcvt.f32.s32 %v5036_v5  ;;  %v5487_v5 = vand.u32 65535, %v4919_v9 }
 0x549   : > { %5455 = vadd.xlane.f32.xlu1 %v5453_v63  ;;  %v5038_v39 = vpop.xlane.xlu0 %5037  ;;  %vm6548_vm6 = vcmp.eq.s32.totalorder %v5018_v12, %v11282_v14 }
 0x54a   : > { %v5048_v32 = vpop.xlane.xlu1 %5047  ;;  %v5030_v46 = vadd.s32 %v5029_v45, %v5027_v57  ;;  %v5040_v13 = vcvt.f32.s32 %v5038_v39  ;;  %v5476_v57 = vshrl.u32 %v4918_v51, 16  ;;  %v15489_v45 = vld [vmem:[#allocation198_spill] sm:$0xff]  ;;  %v15490_v39 = vld [vmem:[#allocation173_spill] sm:$0xff]  ;;  %v5477_v51 = vcvt.s32.f32 %v5475_v53 }
 0x54b   : > { %vm4538_vm4 = vcmp.eq.f32.partialorder %v11161_v62, %v15489_v45  ;;  %v6677_v50 = vsel %vm6548_vm6, %v15490_v39, 0.0  ;;  %v4920_v39 = vsel %vm4792_vm5, 1, %v14663_v8  ;;  %vm4410_vm6 = vcmp.lt.f32.partialorder %v11161_v62, %v15489_v45 }
 0x54c   : > { %vm6549_vm11 = vcmp.eq.s32.totalorder %v5030_v46, %v11282_v14  ;;  %v5041_v12 = vshll.u32 %v5040_v13, 16  ;;  %5457 = vadd.xlane.f32.xlu0 %v5454_v49  ;;  %vm11338_vm13 = vmand %vm4538_vm4, %vm15238_vm8  ;;  %v5489_v43 = vcvt.s32.f32 %v5487_v5  ;;  %vm4411_vm5 = vcmp.lt.f32.partialorder %v11161_v62, %v15495_v24 }
 0x54d   : > { %5467 = vadd.xlane.f32.xlu1 %v5465_v3  ;;  %v6678_v30 = vsel %vm6549_vm11, %v15491_v0, 0.0  ;;  %v5050_v11 = vpop.xlane.xlu0 %5049  ;;  %v5488_v0 = vshrl.u32 %v4919_v9, 16  ;;  %v15498_v9 = vld [vmem:[#allocation175_spill] sm:$0xff]  ;;  %v5500_v7 = vshrl.u32 %v4920_v39, 16  ;;  %vm11371_vm2 = vmor %vm4411_vm5, %vm11353_vm12  ;;  %v4325_v53 = vcombine.high %v10987_v59, %v10987_v59  ;;  %v15517_v59 = vld [vmem:[#allocation201_spill] sm:$0xff] }
 0x54e   : > { %v5060_v46 = vpop.xlane.xlu1 %5059  ;;  %v6805_v13 = vadd.f32 %v6678_v30, %v6677_v50  ;;  %v5042_v49 = vadd.s32 %v5041_v12, %v5039_v15  ;;  %v5052_v3 = vcvt.f32.s32 %v5050_v11  ;;  %v5051_v50 = vcvt.f32.s32 %v5048_v32 }
 0x54f   : > { %v5478_v30 = vcvt.s32.f32 %v5476_v57  ;;  %v4921_v32 = vsel %vm11323_vm0, 1, %v14663_v8  ;;  %v5063_v57 = vcvt.f32.s32 %v5060_v46  ;;  %vm4794_vm0 = vmor %vm4410_vm6, %vm11338_vm13  ;;  %vm4412_vm13 = vcmp.lt.f32.partialorder %v11161_v62, %v15501_v58 }
 0x550   : > { %vm6550_vm11 = vcmp.eq.s32.totalorder %v5042_v49, %v11282_v14  ;;  %v5053_v11 = vshll.u32 %v5052_v3, 16  ;;  %5469 = vadd.xlane.f32.xlu0 %v5466_v35  ;;  %vm15506_vm5 = vnez %v14696_v38  ;;  %v11397_v45 = vrot.slane %v4325_v53, %v7695_v4  ;;  %v15513_v53 = vld [vmem:[#allocation202_spill] sm:$0xff] }
 0x551   : > { %5479 = vadd.xlane.f32.xlu1 %v5477_v51  ;;  %v6679_v63 = vsel %vm6550_vm11, %v15498_v9, 0.0  ;;  %v5062_v15 = vpop.xlane.xlu0 %5061  ;;  %v5499_v51 = vand.u32 65535, %v4920_v39  ;;  %vm4540_vm11 = vcmp.eq.f32.partialorder %v11161_v62, %v15501_v58  ;;  %v5512_v39 = vshrl.u32 %v4921_v32, 16 }
 0x552   : > { %v5072_v12 = vpop.xlane.xlu1 %5071  ;;  %v6806_v35 = vadd.f32 %v6805_v13, %v6679_v63  ;;  %v5054_v49 = vadd.s32 %v5053_v11, %v5051_v50  ;;  %v5064_v3 = vcvt.f32.s32 %v5062_v15  ;;  %v5490_v13 = vcvt.s32.f32 %v5488_v0  ;;  %v15502_v50 = vld [vmem:[#allocation177_spill] sm:$0xff]  ;;  %vm11388_vm12 = vmand %vm4540_vm11, %vm15506_vm5 }
 0x553   : > { %vm15510_vm11 = vnez %v14699_v40  ;;  %v5514_v0 = vcvt.s32.f32 %v5512_v39  ;;  %vm4542_vm5 = vcmp.eq.f32.partialorder %v11161_v62, %v15513_v53 }
 0x554   : > { %vm6551_vm4 = vcmp.eq.s32.totalorder %v5054_v49, %v11282_v14  ;;  %v5065_v5 = vshll.u32 %v5064_v3, 16  ;;  %5481 = vadd.xlane.f32.xlu0 %v5478_v30  ;;  %v5511_v49 = vand.u32 65535, %v4921_v32  ;;  %v15509_v32 = vld [vmem:[#allocation176_spill] sm:$0xff] }
 0x555   : > { %5491 = vadd.xlane.f32.xlu1 %v5489_v43  ;;  %v6680_v11 = vsel %vm6551_vm4, %v15502_v50, 0.0  ;;  %v5074_v63 = vpop.xlane.xlu0 %5073  ;;  %v5501_v43 = vcvt.s32.f32 %v5499_v51  ;;  %v15505_v50 = vld [vmem:[#allocation199_spill] sm:$0xff]  ;;  %v5075_v51 = vcvt.f32.s32 %v5072_v12  ;;  %v4923_v12 = vsel %vm11371_vm2, 1, %v14663_v8 }
 0x556   : > { %v5084_v15 = vpop.xlane.xlu1 %5083  ;;  %v6807_v46 = vadd.f32 %v6806_v35, %v6680_v11  ;;  %v5066_v3 = vadd.s32 %v5065_v5, %v5063_v57  ;;  %v5076_v30 = vcvt.f32.s32 %v5074_v63  ;;  %vm4541_vm6 = vcmp.eq.f32.partialorder %v11161_v62, %v15505_v50 }
 0x557   : > { %v4922_v35 = vsel %vm4794_vm0, 1, %v14663_v8  ;;  %v5502_v63 = vcvt.s32.f32 %v5500_v7  ;;  %v5513_v24 = vcvt.s32.f32 %v5511_v49  ;;  %v5087_v49 = vcvt.f32.s32 %v5084_v15  ;;  %vm4796_vm0 = vmor %vm4412_vm13, %vm11388_vm12 }
 0x558   : > { %vm6552_vm4 = vcmp.eq.s32.totalorder %v5066_v3, %v11282_v14  ;;  %v5077_v9 = vshll.u32 %v5076_v30, 16  ;;  %5493 = vadd.xlane.f32.xlu0 %v5490_v13  ;;  %vm4543_vm13 = vcmp.eq.f32.partialorder %v11397_v45, %v15517_v59  ;;  %vm4414_vm12 = vcmp.lt.f32.partialorder %v11161_v62, %v15513_v53 }
 0x559   : > { %5503 = vadd.xlane.f32.xlu1 %v5501_v43  ;;  %v6681_v57 = vsel %vm6552_vm4, %v15509_v32, 0.0  ;;  %v5086_v5 = vpop.xlane.xlu0 %5085  ;;  %v5523_v43 = vand.u32 65535, %v4922_v35  ;;  %vm11406_vm4 = vmand %vm4541_vm6, %vm15510_vm11  ;;  %vm15514_vm6 = vcmp.lt.f32.partialorder %v11161_v62, %v15505_v50 }
 0x55a   : > { %v5096_v11 = vpop.xlane.xlu1 %5095  ;;  %v6808_v13 = vadd.f32 %v6807_v46, %v6681_v57  ;;  %v5078_v3 = vadd.s32 %v5077_v9, %v5075_v51  ;;  %v5088_v30 = vcvt.f32.s32 %v5086_v5  ;;  %v5524_v57 = vshrl.u32 %v4922_v35, 16  ;;  %vm11424_vm11 = vmor %vm15514_vm6, %vm11406_vm4 }
 0x55b   : > { %v5535_v5 = vand.u32 65535, %v4923_v12  ;;  %v4924_v35 = vsel %vm4796_vm0, 1, %v14663_v8  ;;  %vm11439_vm4 = vmand %vm4542_vm5, %vm15456_vm15  ;;  %vm15520_vm0 = vnez %v14651_v23 }
 0x55c   : > { %vm6553_vm2 = vcmp.eq.s32.totalorder %v5078_v3, %v11282_v14  ;;  %v5089_v46 = vshll.u32 %v5088_v30, 16  ;;  %5505 = vadd.xlane.f32.xlu0 %v5502_v63  ;;  %vm11454_vm6 = vmand %vm4543_vm13, %vm15520_vm0  ;;  %vm15524_vm13 = vcmp.lt.f32.partialorder %v11397_v45, %v15517_v59 }
 0x55d   : > { %5515 = vadd.xlane.f32.xlu1 %v5513_v24  ;;  %v6682_v51 = vsel %vm6553_vm2, %v10695_v10, 0.0  ;;  %v5098_v9 = vpop.xlane.xlu0 %5097  ;;  %v5525_v24 = vcvt.s32.f32 %v5523_v43  ;;  %v5536_v10 = vshrl.u32 %v4923_v12, 16  ;;  %vm11472_vm0 = vmor %vm15524_vm13, %vm11454_vm6 }
 0x55e   : > { %v5108_v32 = vpop.xlane.xlu1 %5107  ;;  %v6809_v15 = vadd.f32 %v6808_v13, %v6682_v51  ;;  %v5090_v3 = vadd.s32 %v5089_v46, %v5087_v49  ;;  %v5100_v63 = vcvt.f32.s32 %v5098_v9  ;;  %v5099_v13 = vcvt.f32.s32 %v5096_v11 }
 0x55f   : > { %v5526_v46 = vcvt.s32.f32 %v5524_v57  ;;  %v5537_v51 = vcvt.s32.f32 %v5535_v5  ;;  %v4925_v11 = vsel %vm11424_vm11, 1, %v14663_v8  ;;  %v5111_v57 = vcvt.f32.s32 %v5108_v32  ;;  %vm4798_vm11 = vmor %vm4414_vm12, %vm11439_vm4 }
 0x560   : > { %vm6554_vm2 = vcmp.eq.s32.totalorder %v5090_v3, %v11282_v14  ;;  %v5101_v30 = vshll.u32 %v5100_v63, 16  ;;  %5517 = vadd.xlane.f32.xlu0 %v5514_v0  ;;  %v5547_v63 = vand.u32 65535, %v4924_v35 }
 0x561   : > { %5527 = vadd.xlane.f32.xlu1 %v5525_v24  ;;  %v6683_v12 = vsel %vm6554_vm2, %v10693_v47, 0.0  ;;  %v5110_v7 = vpop.xlane.xlu0 %5109  ;;  %v15523_v24 = vld [vmem:[#allocation204_spill] sm:$0xff] }
 0x562   : > { %v5120_v49 = vpop.xlane.xlu1 %5119  ;;  %v6810_v0 = vadd.f32 %v6809_v15, %v6683_v12  ;;  %v5102_v9 = vadd.s32 %v5101_v30, %v5099_v13  ;;  %v5112_v3 = vcvt.f32.s32 %v5110_v7  ;;  %v5538_v15 = vcvt.s32.f32 %v5536_v10  ;;  %v15527_v10 = vld [vmem:[#allocation203_spill] sm:$0xff] }
 0x563   : > { %vm4544_vm5 = vcmp.eq.f32.partialorder %v11397_v45, %v15523_v24  ;;  %v5548_v12 = vshrl.u32 %v4924_v35, 16  ;;  %v5559_v7 = vand.u32 65535, %v4925_v11  ;;  %vm4545_vm12 = vcmp.eq.f32.partialorder %v11397_v45, %v15527_v10 }
 0x564   : > { %vm6555_vm2 = vcmp.eq.s32.totalorder %v5102_v9, %v11282_v14  ;;  %v5113_v5 = vshll.u32 %v5112_v3, 16  ;;  %5529 = vadd.xlane.f32.xlu0 %v5526_v46  ;;  %v4926_v35 = vsel %vm4798_vm11, 1, %v14663_v8  ;;  %vm4416_vm4 = vcmp.lt.f32.partialorder %v11397_v45, %v15523_v24  ;;  %vm11487_vm6 = vmand %vm4544_vm5, %vm15460_vm14  ;;  %v15537_v3 = vld [vmem:[#allocation205_spill] sm:$0xff] }
 0x565   : > { %5539 = vadd.xlane.f32.xlu1 %v5537_v51  ;;  %v6684_v39 = vsel %vm6555_vm2, %v10699_v41, 0.0  ;;  %v5122_v13 = vpop.xlane.xlu0 %5121  ;;  %v5549_v51 = vcvt.s32.f32 %v5547_v63  ;;  %v5560_v41 = vshrl.u32 %v4925_v11, 16  ;;  %v5123_v43 = vcvt.f32.s32 %v5120_v49 }
 0x566   : > { %v5132_v30 = vpop.xlane.xlu1 %5131  ;;  %v6811_v32 = vadd.f32 %v6810_v0, %v6684_v39  ;;  %v5114_v9 = vadd.s32 %v5113_v5, %v5111_v57  ;;  %v5124_v46 = vcvt.f32.s32 %v5122_v13  ;;  %v5550_v57 = vcvt.s32.f32 %v5548_v12 }
 0x567   : > { %v5561_v5 = vcvt.s32.f32 %v5559_v7  ;;  %v4927_v49 = vsel %vm11472_vm0, 1, %v14663_v8  ;;  %vm15530_vm11 = vnez %v14658_v20  ;;  %v5135_v12 = vcvt.f32.s32 %v5132_v30  ;;  %vm4800_vm0 = vmor %vm4416_vm4, %vm11487_vm6 }
 0x568   : > { %vm6556_vm2 = vcmp.eq.s32.totalorder %v5114_v9, %v11282_v14  ;;  %v5125_v0 = vshll.u32 %v5124_v46, 16  ;;  %5541 = vadd.xlane.f32.xlu0 %v5538_v15  ;;  %v5571_v9 = vand.u32 65535, %v4926_v35  ;;  %vm11502_vm13 = vmand %vm4545_vm12, %vm15530_vm11  ;;  %v15533_v46 = vld [vmem:[#allocation206_spill] sm:$0xff]  ;;  %vm15534_vm12 = vcmp.lt.f32.partialorder %v11397_v45, %v15527_v10 }
 0x569   : > { %5551 = vadd.xlane.f32.xlu1 %v5549_v51  ;;  %v6685_v11 = vsel %vm6556_vm2, %v10697_v60, 0.0  ;;  %v5134_v63 = vpop.xlane.xlu0 %5133  ;;  %vm4546_vm5 = vcmp.eq.f32.partialorder %v11397_v45, %v15533_v46  ;;  %vm11520_vm11 = vmor %vm15534_vm12, %vm11502_vm13  ;;  %vm4547_vm4 = vcmp.eq.f32.partialorder %v11397_v45, %v15537_v3  ;;  %vm15538_vm13 = vnez %v14661_v18 }
 0x56a   : > { %v5144_v47 = vpop.xlane.xlu1 %5143  ;;  %v6812_v15 = vadd.f32 %v6811_v32, %v6685_v11  ;;  %v5126_v39 = vadd.s32 %v5125_v0, %v5123_v43  ;;  %v5136_v13 = vcvt.f32.s32 %v5134_v63  ;;  %v5562_v32 = vcvt.s32.f32 %v5560_v41  ;;  %vm11535_vm12 = vmand %vm4546_vm5, %vm15538_vm13 }
 0x56b   : > { %v5572_v0 = vshrl.u32 %v4926_v35, 16  ;;  %v5583_v11 = vand.u32 65535, %v4927_v49  ;;  %v4928_v35 = vsel %vm4800_vm0, 1, %v14663_v8  ;;  %vm15541_vm0 = vnez %v14665_v28 }
 0x56c   : > { %vm6557_vm2 = vcmp.eq.s32.totalorder %v5126_v39, %v11282_v14  ;;  %v5137_v7 = vshll.u32 %v5136_v13, 16  ;;  %5553 = vadd.xlane.f32.xlu0 %v5550_v57  ;;  %v15549_v13 = vld [vmem:[#allocation207_spill] sm:$0xff] }
 0x56d   : > { %5563 = vadd.xlane.f32.xlu1 %v5561_v5  ;;  %v6686_v51 = vsel %vm6557_vm2, %v10703_v52, 0.0  ;;  %v5146_v62 = vpop.xlane.xlu0 %5145  ;;  %v5573_v5 = vcvt.s32.f32 %v5571_v9  ;;  %v5584_v52 = vshrl.u32 %v4927_v49, 16 }
 0x56e   : > { %v5156_v43 = vpop.xlane.xlu1 %5155  ;;  %v6813_v30 = vadd.f32 %v6812_v15, %v6686_v51  ;;  %v5138_v63 = vadd.s32 %v5137_v7, %v5135_v12  ;;  %v5148_v57 = vcvt.f32.s32 %v5146_v62  ;;  %v5147_v15 = vcvt.f32.s32 %v5144_v47 }
 0x56f   : > { %v5574_v12 = vcvt.s32.f32 %v5572_v0  ;;  %v5585_v7 = vcvt.s32.f32 %v5583_v11  ;;  %v4929_v47 = vsel %vm11520_vm11, 1, %v14663_v8  ;;  %v5159_v0 = vcvt.f32.s32 %v5156_v43 }
 0x570   : > { %vm6558_vm2 = vcmp.eq.s32.totalorder %v5138_v63, %v11282_v14  ;;  %v5149_v39 = vshll.u32 %v5148_v57, 16  ;;  %5565 = vadd.xlane.f32.xlu0 %v5562_v32  ;;  %v5595_v63 = vand.u32 65535, %v4928_v35  ;;  %vm15544_vm11 = vcmp.lt.f32.partialorder %v11397_v45, %v15533_v46  ;;  %v15545_v57 = vld [vmem:[#allocation208_spill] sm:$0xff] }
 0x571   : > { %5575 = vadd.xlane.f32.xlu1 %v5573_v5  ;;  %v6687_v49 = vsel %vm6558_vm2, %v10701_v34, 0.0  ;;  %v5158_v9 = vpop.xlane.xlu0 %5157  ;;  %vm11550_vm2 = vmand %vm4547_vm4, %vm15541_vm0  ;;  %vm4548_vm13 = vcmp.eq.f32.partialorder %v11397_v45, %v15545_v57  ;;  %vm15546_vm4 = vcmp.lt.f32.partialorder %v11397_v45, %v15537_v3 }
 0x572   : > { %v5168_v60 = vpop.xlane.xlu1 %5167  ;;  %v6814_v32 = vadd.f32 %v6813_v30, %v6687_v49  ;;  %v5150_v51 = vadd.s32 %v5149_v39, %v5147_v15  ;;  %v5160_v62 = vcvt.f32.s32 %v5158_v9  ;;  %v5586_v30 = vcvt.s32.f32 %v5584_v52  ;;  %vm4802_vm5 = vmor %vm15544_vm11, %vm11535_vm12 }
 0x573   : > { %v5596_v39 = vshrl.u32 %v4928_v35, 16  ;;  %v5607_v49 = vand.u32 65535, %v4929_v47  ;;  %vm11568_vm0 = vmor %vm15546_vm4, %vm11550_vm2  ;;  %v4930_v35 = vsel %vm4802_vm5, 1, %v14663_v8  ;;  %vm4420_vm12 = vcmp.lt.f32.partialorder %v11397_v45, %v15545_v57 }
 0x574   : > { %vm6559_vm6 = vcmp.eq.s32.totalorder %v5150_v51, %v11282_v14  ;;  %v5161_v11 = vshll.u32 %v5160_v62, 16  ;;  %5577 = vadd.xlane.f32.xlu0 %v5574_v12  ;;  %vm11583_vm2 = vmand %vm4548_vm13, %vm15472_vm10  ;;  %vm15552_vm5 = vnez %v14671_v19  ;;  %v15559_v62 = vld [vmem:[#allocation209_spill] sm:$0xff] }
 0x575   : > { %5587 = vadd.xlane.f32.xlu1 %v5585_v7  ;;  %v6688_v5 = vsel %vm6559_vm6, %v10707_v17, 0.0  ;;  %v5170_v41 = vpop.xlane.xlu0 %5169  ;;  %v5597_v7 = vcvt.s32.f32 %v5595_v63  ;;  %vm4549_vm6 = vcmp.eq.f32.partialorder %v11397_v45, %v15549_v13  ;;  %v5608_v17 = vshrl.u32 %v4929_v47, 16 }
 0x576   : > { %v5180_v15 = vpop.xlane.xlu1 %5179  ;;  %v6815_v43 = vadd.f32 %v6814_v32, %v6688_v5  ;;  %v5162_v9 = vadd.s32 %v5161_v11, %v5159_v0  ;;  %v5172_v12 = vcvt.f32.s32 %v5170_v41  ;;  %v5171_v32 = vcvt.f32.s32 %v5168_v60  ;;  %vm11598_vm4 = vmand %vm4549_vm6, %vm15552_vm5 }
 0x577   : > { %v5598_v0 = vcvt.s32.f32 %v5596_v39  ;;  %v5609_v11 = vcvt.s32.f32 %v5607_v49  ;;  %v4931_v60 = vsel %vm11568_vm0, 1, %v14663_v8  ;;  %v5183_v39 = vcvt.f32.s32 %v5180_v15  ;;  %vm4804_vm0 = vmor %vm4420_vm12, %vm11583_vm2 }
 0x578   : > { %vm6560_vm11 = vcmp.eq.s32.totalorder %v5162_v9, %v11282_v14  ;;  %v5173_v51 = vshll.u32 %v5172_v12, 16  ;;  %5589 = vadd.xlane.f32.xlu0 %v5586_v30  ;;  %v5619_v9 = vand.u32 65535, %v4930_v35  ;;  %v15555_v12 = vld [vmem:[#allocation210_spill] sm:$0xff]  ;;  %vm15556_vm6 = vcmp.lt.f32.partialorder %v11397_v45, %v15549_v13 }
 0x579   : > { %5599 = vadd.xlane.f32.xlu1 %v5597_v7  ;;  %v6689_v47 = vsel %vm6560_vm11, %v10705_v48, 0.0  ;;  %v5182_v63 = vpop.xlane.xlu0 %5181  ;;  %vm4550_vm13 = vcmp.eq.f32.partialorder %v11397_v45, %v15555_v12  ;;  %vm11616_vm5 = vmor %vm15556_vm6, %vm11598_vm4  ;;  %vm4551_vm12 = vcmp.eq.f32.partialorder %v11397_v45, %v15559_v62  ;;  %vm4422_vm2 = vcmp.lt.f32.partialorder %v11397_v45, %v15555_v12 }
 0x57a   : > { %v5192_v34 = vpop.xlane.xlu1 %5191  ;;  %v6816_v30 = vadd.f32 %v6815_v43, %v6689_v47  ;;  %v5174_v5 = vadd.s32 %v5173_v51, %v5171_v32  ;;  %v5184_v41 = vcvt.f32.s32 %v5182_v63  ;;  %v5610_v43 = vcvt.s32.f32 %v5608_v17  ;;  %vm11631_vm4 = vmand %vm4550_vm13, %vm15477_vm9 }
 0x57b   : > { %v5620_v51 = vshrl.u32 %v4930_v35, 16  ;;  %v5631_v47 = vand.u32 65535, %v4931_v60  ;;  %v4932_v35 = vsel %vm4804_vm0, 1, %v14663_v8  ;;  %vm4423_vm13 = vcmp.lt.f32.partialorder %v11397_v45, %v15559_v62  ;;  %vm11646_vm0 = vmand %vm4551_vm12, %vm15480_vm7 }
 0x57c   : > { %vm6561_vm11 = vcmp.eq.s32.totalorder %v5174_v5, %v11282_v14  ;;  %v5185_v49 = vshll.u32 %v5184_v41, 16  ;;  %5601 = vadd.xlane.f32.xlu0 %v5598_v0  ;;  %vm4807_vm12 = vmor %vm4423_vm13, %vm11646_vm0 }
 0x57d   : > { %5611 = vadd.xlane.f32.xlu1 %v5609_v11  ;;  %v6690_v7 = vsel %vm6561_vm11, %v10711_v37, 0.0  ;;  %v5194_v52 = vpop.xlane.xlu0 %5193  ;;  %v5621_v11 = vcvt.s32.f32 %v5619_v9  ;;  %v5632_v37 = vshrl.u32 %v4931_v60, 16 }
 0x57e   : > { %v5204_v32 = vpop.xlane.xlu1 %5203  ;;  %v6817_v15 = vadd.f32 %v6816_v30, %v6690_v7  ;;  %v5186_v63 = vadd.s32 %v5185_v49, %v5183_v39  ;;  %v5196_v0 = vcvt.f32.s32 %v5194_v52  ;;  %v5195_v30 = vcvt.f32.s32 %v5192_v34 }
 0x57f   : > { %v5622_v39 = vcvt.s32.f32 %v5620_v51  ;;  %v5633_v49 = vcvt.s32.f32 %v5631_v47  ;;  %v4933_v34 = vsel %vm11616_vm5, 1, %v14663_v8  ;;  %v5207_v51 = vcvt.f32.s32 %v5204_v32  ;;  %vm4806_vm5 = vmor %vm4422_vm2, %vm11631_vm4 }
 0x580   : > { %vm6562_vm11 = vcmp.eq.s32.totalorder %v5186_v63, %v11282_v14  ;;  %v5197_v5 = vshll.u32 %v5196_v0, 16  ;;  %5613 = vadd.xlane.f32.xlu0 %v5610_v43  ;;  %v5643_v63 = vand.u32 65535, %v4932_v35  ;;  %v15564_v0 = vld [vmem:[#allocation212_spill] sm:$0xff]  ;;  %v5656_v41 = vshrl.u32 %v4933_v34, 16 }
 0x581   : > { %5623 = vadd.xlane.f32.xlu1 %v5621_v11  ;;  %v6691_v60 = vsel %vm6562_vm11, %v10709_v44, 0.0  ;;  %v5206_v9 = vpop.xlane.xlu0 %5205  ;;  %vm4552_vm11 = vcmp.eq.f32.partialorder %v11397_v45, %v15564_v0  ;;  %vm4424_vm4 = vcmp.lt.f32.partialorder %v11397_v45, %v15564_v0 }
 0x582   : > { %v5216_v48 = vpop.xlane.xlu1 %5215  ;;  %v6818_v43 = vadd.f32 %v6817_v15, %v6691_v60  ;;  %v5198_v7 = vadd.s32 %v5197_v5, %v5195_v30  ;;  %v5208_v52 = vcvt.f32.s32 %v5206_v9  ;;  %v5634_v15 = vcvt.s32.f32 %v5632_v37 }
 0x583   : > { %v5644_v5 = vshrl.u32 %v4932_v35, 16  ;;  %v5655_v60 = vand.u32 65535, %v4933_v34  ;;  %v5645_v37 = vcvt.s32.f32 %v5643_v63 }
 0x584   : > { %vm6563_vm6 = vcmp.eq.s32.totalorder %v5198_v7, %v11282_v14  ;;  %v5209_v47 = vshll.u32 %v5208_v52, 16  ;;  %5625 = vadd.xlane.f32.xlu0 %v5622_v39  ;;  %v15565_v7 = vld [vmem:[#allocation211_spill] sm:$0xff] }
 0x585   : > { %5635 = vadd.xlane.f32.xlu1 %v5633_v49  ;;  %v6692_v11 = vsel %vm6563_vm6, %v10715_v6, 0.0  ;;  %v5218_v17 = vpop.xlane.xlu0 %5217  ;;  %v4934_v49 = vsel %vm4806_vm5, 1, %v14663_v8  ;;  %vm4553_vm2 = vcmp.eq.f32.partialorder %v11397_v45, %v15565_v7  ;;  %v5219_v6 = vcvt.f32.s32 %v5216_v48  ;;  %vm11676_vm6 = vmand %vm4552_vm11, %vm15446_vm1 }
 0x586   : > { %v5228_v30 = vpop.xlane.xlu1 %5227  ;;  %v11659_v32 = vadd.f32 %v6818_v43, %v6692_v11  ;;  %v5210_v9 = vadd.s32 %v5209_v47, %v5207_v51  ;;  %v5220_v39 = vcvt.f32.s32 %v5218_v17  ;;  %v5646_v63 = vcvt.s32.f32 %v5644_v5  ;;  %vm4808_vm0 = vmor %vm4424_vm4, %vm11676_vm6  ;;  %v15583_v11 = vld [vmem:[#allocation215_spill] sm:$0xff] }
 0x587   : > { %v5657_v44 = vcvt.s32.f32 %v5655_v60  ;;  %v4935_v48 = vsel %vm4807_vm12, 1, %v14663_v8  ;;  %vm15568_vm5 = vnez %v14686_v26  ;;  %v5658_v17 = vcvt.s32.f32 %v5656_v41 }
 0x588   : > { %v5221_v35 = vshll.u32 %v5220_v39, 16  ;;  %5637 = vadd.xlane.f32.xlu0 %v5634_v15  ;;  %vm6564_vm13 = vcmp.eq.s32.totalorder %v5210_v9, %v11282_v14  ;;  %v5667_v15 = vand.u32 65535, %v4934_v49  ;;  %vm11689_vm11 = vmand %vm4553_vm2, %vm15568_vm5  ;;  %v5231_v5 = vcvt.f32.s32 %v5228_v30  ;;  %v15571_v39 = vld [vmem:[#allocation214_spill] sm:$0xff] }
 0x589   : > { %5647 = vadd.xlane.f32.xlu1 %v5645_v37  ;;  %v5230_v34 = vpop.xlane.xlu0 %5229  ;;  %v5668_v9 = vshrl.u32 %v4934_v49, 16  ;;  %vm4554_vm2 = vcmp.eq.f32.partialorder %v11397_v45, %v15571_v39  ;;  %v6693_v37 = vsel %vm6564_vm13, %v10713_v56, 0.0  ;;  %v5679_v30 = vand.u32 65535, %v4935_v48 }
 0x58a   : > { %v5240_v52 = vpop.xlane.xlu1 %5239  ;;  %v5222_v51 = vadd.s32 %v5221_v35, %v5219_v6  ;;  %v5232_v47 = vcvt.f32.s32 %v5230_v34  ;;  %v5669_v49 = vcvt.s32.f32 %v5667_v15  ;;  %vm15572_vm5 = vcmp.lt.f32.partialorder %v11397_v45, %v15565_v7 }
 0x58b   : > { %vm11708_vm4 = vmor %vm15572_vm5, %vm11689_vm11  ;;  %v4936_v56 = vsel %vm4808_vm0, 1, %v14663_v8  ;;  %vm4426_vm13 = vcmp.lt.f32.partialorder %v11397_v45, %v15571_v39 }
 0x58c   : > { %vm6565_vm12 = vcmp.eq.s32.totalorder %v5222_v51, %v11282_v14  ;;  %v5233_v60 = vshll.u32 %v5232_v47, 16  ;;  %5649 = vadd.xlane.f32.xlu0 %v5646_v63  ;;  %v15575_v51 = vld [vmem:[#allocation213_spill] sm:$0xff]  ;;  %v5243_v47 = vcvt.f32.s32 %v5240_v52  ;;  %vm11723_vm5 = vmand %vm4554_vm2, %vm15238_vm8  ;;  %v4937_v52 = vsel %vm11708_vm4, 1, %v14663_v8 }
 0x58d   : > { %5659 = vadd.xlane.f32.xlu1 %v5657_v44  ;;  %v6694_v41 = vsel %vm6565_vm12, %v10719_v2, 0.0  ;;  %v5242_v6 = vpop.xlane.xlu0 %5241  ;;  %vm4555_vm6 = vcmp.eq.f32.partialorder %v11397_v45, %v15575_v51  ;;  %v5680_v2 = vshrl.u32 %v4935_v48, 16  ;;  %vm4427_vm0 = vcmp.lt.f32.partialorder %v11397_v45, %v15575_v51  ;;  %vm4810_vm4 = vmor %vm4426_vm13, %vm11723_vm5 }
 0x58e   : > { %v5252_v35 = vpop.xlane.xlu1 %5251  ;;  %v6826_v34 = vadd.f32 %v6694_v41, %v6693_v37  ;;  %v5234_v63 = vadd.s32 %v5233_v60, %v5231_v5  ;;  %v5244_v44 = vcvt.f32.s32 %v5242_v6  ;;  %v5670_v37 = vcvt.s32.f32 %v5668_v9  ;;  %vm11738_vm11 = vmand %vm4555_vm6, %vm14775_vm3 }
 0x58f   : > { %v5681_v41 = vcvt.s32.f32 %v5679_v30  ;;  %v5255_v9 = vcvt.f32.s32 %v5252_v35  ;;  %vm11756_vm6 = vmor %vm4427_vm0, %vm11738_vm11  ;;  %vm4557_vm13 = vcmp.eq.f32.partialorder %v11397_v45, %v15583_v11  ;;  %vm15584_vm0 = vnez %v14696_v38 }
 0x590   : > { %vm6566_vm12 = vcmp.eq.s32.totalorder %v5234_v63, %v11282_v14  ;;  %v5245_v15 = vshll.u32 %v5244_v44, 16  ;;  %5661 = vadd.xlane.f32.xlu0 %v5658_v17  ;;  %v5691_v44 = vand.u32 65535, %v4936_v56 }
 0x591   : > { %5671 = vadd.xlane.f32.xlu1 %v5669_v49  ;;  %v6695_v48 = vsel %vm6566_vm12, %v10717_v1, 0.0  ;;  %v5254_v5 = vpop.xlane.xlu0 %5253  ;;  %v15580_v49 = vld [vmem:[#allocation216_spill] sm:$0xff] }
 0x592   : > { %v5264_v60 = vpop.xlane.xlu1 %5263  ;;  %v6827_v17 = vadd.f32 %v6826_v34, %v6695_v48  ;;  %v5246_v6 = vadd.s32 %v5245_v15, %v5243_v47  ;;  %v5256_v63 = vcvt.f32.s32 %v5254_v5  ;;  %v5682_v34 = vcvt.s32.f32 %v5680_v2  ;;  %v15592_v2 = vld [vmem:[#allocation218_spill] sm:$0xff] }
 0x593   : > { %vm4556_vm12 = vcmp.eq.f32.partialorder %v11397_v45, %v15580_v49  ;;  %v5692_v48 = vshrl.u32 %v4936_v56, 16  ;;  %v5703_v5 = vand.u32 65535, %v4937_v52  ;;  %v4938_v56 = vsel %vm4810_vm4, 1, %v14663_v8 }
 0x594   : > { %vm6567_vm2 = vcmp.eq.s32.totalorder %v5246_v6, %v11282_v14  ;;  %v5257_v30 = vshll.u32 %v5256_v63, 16  ;;  %5673 = vadd.xlane.f32.xlu0 %v5670_v37  ;;  %vm4428_vm5 = vcmp.lt.f32.partialorder %v11397_v45, %v15580_v49  ;;  %vm11771_vm11 = vmand %vm4556_vm12, %vm15584_vm0  ;;  %vm15589_vm12 = vnez %v14699_v40 }
 0x595   : > { %5683 = vadd.xlane.f32.xlu1 %v5681_v41  ;;  %v6696_v43 = vsel %vm6567_vm2, %v10726_v61, 0.0  ;;  %v5266_v47 = vpop.xlane.xlu0 %5265  ;;  %v5693_v41 = vcvt.s32.f32 %v5691_v44  ;;  %v5704_v61 = vshrl.u32 %v4937_v52, 16  ;;  %vm4812_vm4 = vmor %vm4428_vm5, %vm11771_vm11  ;;  %vm4558_vm0 = vcmp.eq.f32.partialorder %v11397_v45, %v15592_v2  ;;  %v15596_v44 = vld [vmem:[#allocation217_spill] sm:$0xff] }
 0x596   : > { %v5276_v15 = vpop.xlane.xlu1 %5275  ;;  %v6828_v35 = vadd.f32 %v6827_v17, %v6696_v43  ;;  %v5258_v6 = vadd.s32 %v5257_v30, %v5255_v9  ;;  %v5268_v37 = vcvt.f32.s32 %v5266_v47  ;;  %v5267_v17 = vcvt.f32.s32 %v5264_v60 }
 0x597   : > { %v5694_v30 = vcvt.s32.f32 %v5692_v48  ;;  %v5705_v43 = vcvt.s32.f32 %v5703_v5  ;;  %v4939_v60 = vsel %vm11756_vm6, 1, %v14663_v8  ;;  %v5279_v48 = vcvt.f32.s32 %v5276_v15 }
 0x598   : > { %vm6568_vm2 = vcmp.eq.s32.totalorder %v5258_v6, %v11282_v14  ;;  %v5269_v63 = vshll.u32 %v5268_v37, 16  ;;  %5685 = vadd.xlane.f32.xlu0 %v5682_v34  ;;  %v5715_v37 = vand.u32 65535, %v4938_v56  ;;  %vm4430_vm11 = vcmp.lt.f32.partialorder %v11397_v45, %v15592_v2 }
 0x599   : > { %5695 = vadd.xlane.f32.xlu1 %v5693_v41  ;;  %v6697_v52 = vsel %vm6568_vm2, %v10724_v16, 0.0  ;;  %v5278_v1 = vpop.xlane.xlu0 %5277  ;;  %v15587_v41 = vld [vmem:[#allocation26_spill] sm:$0xff]  ;;  %vm11790_vm2 = vmand %vm4557_vm13, %vm15589_vm12  ;;  %vm15593_vm13 = vcmp.lt.f32.partialorder %v11397_v45, %v15583_v11 }
 0x59a   : > { %v5288_v9 = vpop.xlane.xlu1 %5287  ;;  %v6829_v34 = vadd.f32 %v6828_v35, %v6697_v52  ;;  %v5270_v47 = vadd.s32 %v5269_v63, %v5267_v17  ;;  %v5280_v6 = vcvt.f32.s32 %v5278_v1  ;;  %v11781_v51 = vrot.slane %v15587_v41, %v7695_v4  ;;  %vm11808_vm12 = vmor %vm15593_vm13, %vm11790_vm2  ;;  %v15613_v45 = vld [vmem:[#allocation222_spill] sm:$0xff] }
 0x59b   : > { %v5706_v35 = vcvt.s32.f32 %v5704_v61  ;;  %v5716_v1 = vshrl.u32 %v4938_v56, 16  ;;  %v4940_v56 = vsel %vm4812_vm4, 1, %v14663_v8  ;;  %vm11823_vm2 = vmand %vm4558_vm0, %vm15456_vm15  ;;  %vm15599_vm4 = vnez %v14651_v23  ;;  %v15602_v61 = vld [vmem:[#allocation220_spill] sm:$0xff]  ;;  %v15734_v23 = vld [vmem:[#allocation195_spill] sm:$0xff] }
 0x59c   : > { %15588 = vst [vmem:[#allocation173_spill] sm:$0xff] %v11781_v51  ;;  %vm6569_vm6 = vcmp.eq.s32.totalorder %v5270_v47, %v11282_v14  ;;  %v5281_v5 = vshll.u32 %v5280_v6, 16  ;;  %5697 = vadd.xlane.f32.xlu0 %v5694_v30  ;;  %v5727_v47 = vand.u32 65535, %v4939_v60  ;;  %vm4559_vm5 = vcmp.eq.f32.partialorder %v11781_v51, %v15596_v44 }
 0x59d   : > { %5707 = vadd.xlane.f32.xlu1 %v5705_v43  ;;  %v6698_v17 = vsel %vm6569_vm6, %v10730_v42, 0.0  ;;  %v5290_v63 = vpop.xlane.xlu0 %5289  ;;  %v5717_v43 = vcvt.s32.f32 %v5715_v37  ;;  %v5728_v42 = vshrl.u32 %v4939_v60, 16  ;;  %vm11838_vm13 = vmand %vm4559_vm5, %vm15599_vm4  ;;  %vm4560_vm0 = vcmp.eq.f32.partialorder %v11781_v51, %v15602_v61 }
 0x59e   : > { %v5300_v52 = vpop.xlane.xlu1 %5299  ;;  %v6830_v15 = vadd.f32 %v6829_v34, %v6698_v17  ;;  %v5282_v6 = vadd.s32 %v5281_v5, %v5279_v48  ;;  %v5292_v30 = vcvt.f32.s32 %v5290_v63  ;;  %v5291_v34 = vcvt.f32.s32 %v5288_v9 }
 0x59f   : > { %v5718_v17 = vcvt.s32.f32 %v5716_v1  ;;  %v5729_v63 = vcvt.s32.f32 %v5727_v47  ;;  %v4941_v9 = vsel %vm11808_vm12, 1, %v14663_v8  ;;  %v5303_v1 = vcvt.f32.s32 %v5300_v52  ;;  %vm4814_vm12 = vmor %vm4430_vm11, %vm11823_vm2 }
 0x5a0   : > { %vm6570_vm6 = vcmp.eq.s32.totalorder %v5282_v6, %v11282_v14  ;;  %v5293_v37 = vshll.u32 %v5292_v30, 16  ;;  %5709 = vadd.xlane.f32.xlu0 %v5706_v35  ;;  %vm15603_vm5 = vcmp.lt.f32.partialorder %v11781_v51, %v15596_v44  ;;  %vm4432_vm2 = vcmp.lt.f32.partialorder %v11781_v51, %v15602_v61 }
 0x5a1   : > { %5719 = vadd.xlane.f32.xlu1 %v5717_v43  ;;  %v6699_v60 = vsel %vm6570_vm6, %v10728_v55, 0.0  ;;  %v5302_v48 = vpop.xlane.xlu0 %5301  ;;  %v5739_v43 = vand.u32 65535, %v4940_v56  ;;  %vm11856_vm15 = vmor %vm15603_vm5, %vm11838_vm13 }
 0x5a2   : > { %v5312_v5 = vpop.xlane.xlu1 %5311  ;;  %v6831_v35 = vadd.f32 %v6830_v15, %v6699_v60  ;;  %v5294_v6 = vadd.s32 %v5293_v37, %v5291_v34  ;;  %v5304_v30 = vcvt.f32.s32 %v5302_v48  ;;  %v5730_v15 = vcvt.s32.f32 %v5728_v42  ;;  %v15606_v42 = vld [vmem:[#allocation219_spill] sm:$0xff]  ;;  %vm11871_vm13 = vmand %vm4560_vm0, %vm15460_vm14 }
 0x5a3   : > { %v5740_v48 = vshrl.u32 %v4940_v56, 16  ;;  %vm4561_vm11 = vcmp.eq.f32.partialorder %v11781_v51, %v15606_v42  ;;  %v4942_v56 = vsel %vm4814_vm12, 1, %v14663_v8  ;;  %v5315_v16 = vcvt.f32.s32 %v5312_v5 }
 0x5a4   : > { %vm6571_vm6 = vcmp.eq.s32.totalorder %v5294_v6, %v11282_v14  ;;  %v5305_v47 = vshll.u32 %v5304_v30, 16  ;;  %5721 = vadd.xlane.f32.xlu0 %v5718_v17  ;;  %v5751_v6 = vand.u32 65535, %v4941_v9  ;;  %v4943_v5 = vsel %vm11856_vm15, 1, %v14663_v8  ;;  %vm4816_vm15 = vmor %vm4432_vm2, %vm11871_vm13 }
 0x5a5   : > { %5731 = vadd.xlane.f32.xlu1 %v5729_v63  ;;  %v6700_v34 = vsel %vm6571_vm6, %v10734_v54, 0.0  ;;  %v5314_v37 = vpop.xlane.xlu0 %5313  ;;  %v5741_v63 = vcvt.s32.f32 %v5739_v43  ;;  %v5752_v54 = vshrl.u32 %v4941_v9, 16  ;;  %v15609_v9 = vld [vmem:[#allocation178_spill] sm:$0xff]  ;;  %vm15610_vm12 = vnez %v14658_v20  ;;  %v15618_v43 = vld [vmem:[#allocation221_spill] sm:$0xff] }
 0x5a6   : > { %v5324_v60 = vpop.xlane.xlu1 %5323  ;;  %v6832_v52 = vadd.f32 %v6831_v35, %v6700_v34  ;;  %v5306_v30 = vadd.s32 %v5305_v47, %v5303_v1  ;;  %v5316_v17 = vcvt.f32.s32 %v5314_v37  ;;  %v5742_v34 = vcvt.s32.f32 %v5740_v48  ;;  %vm11886_vm5 = vmand %vm4561_vm11, %vm15610_vm12 }
 0x5a7   : > { %v5753_v37 = vcvt.s32.f32 %v5751_v6  ;;  %v5327_v48 = vcvt.f32.s32 %v5324_v60  ;;  %vm4562_vm0 = vcmp.eq.f32.partialorder %v11781_v51, %v15613_v45  ;;  %v5764_v21 = vshrl.u32 %v4942_v56, 16 }
 0x5a8   : > { %vm6572_vm6 = vcmp.eq.s32.totalorder %v5306_v30, %v11282_v14  ;;  %v5317_v35 = vshll.u32 %v5316_v17, 16  ;;  %5733 = vadd.xlane.f32.xlu0 %v5730_v15  ;;  %vm15615_vm11 = vcmp.lt.f32.partialorder %v11781_v51, %v15606_v42  ;;  %vm4563_vm2 = vcmp.eq.f32.partialorder %v11781_v51, %v15618_v43 }
 0x5a9   : > { %5743 = vadd.xlane.f32.xlu1 %v5741_v63  ;;  %v6701_v55 = vsel %vm6572_vm6, %v15609_v9, 0.0  ;;  %v5326_v1 = vpop.xlane.xlu0 %5325  ;;  %v5763_v63 = vand.u32 65535, %v4942_v56  ;;  %vm11904_vm12 = vmor %vm15615_vm11, %vm11886_vm5  ;;  %v4944_v56 = vsel %vm4816_vm15, 1, %v14663_v8  ;;  %vm15619_vm5 = vnez %v14661_v18 }
 0x5aa   : > { %v5336_v47 = vpop.xlane.xlu1 %5335  ;;  %v6833_v15 = vadd.f32 %v6832_v52, %v6701_v55  ;;  %v5318_v30 = vadd.s32 %v5317_v35, %v5315_v16  ;;  %v5328_v17 = vcvt.f32.s32 %v5326_v1  ;;  %v5754_v52 = vcvt.s32.f32 %v5752_v54  ;;  %v15614_v16 = vld [vmem:[#allocation180_spill] sm:$0xff]  ;;  %vm11924_vm15 = vmand %vm4562_vm0, %vm15619_vm5  ;;  %v15627_v54 = vld [vmem:[#allocation223_spill] sm:$0xff] }
 0x5ab   : > { %vm15623_vm11 = vnez %v14665_v28  ;;  %v5788_v61 = vshrl.u32 %v4944_v56, 16 }
 0x5ac   : > { %vm6573_vm6 = vcmp.eq.s32.totalorder %v5318_v30, %v11282_v14  ;;  %v5329_v6 = vshll.u32 %v5328_v17, 16  ;;  %5745 = vadd.xlane.f32.xlu0 %v5742_v34  ;;  %v5775_v14 = vand.u32 65535, %v4943_v5  ;;  %v5776_v17 = vshrl.u32 %v4943_v5, 16  ;;  %v15632_v5 = vld [vmem:[#allocation24_spill] sm:$0xff] }
 0x5ad   : > { %5755 = vadd.xlane.f32.xlu1 %v5753_v37  ;;  %v6702_v35 = vsel %vm6573_vm6, %v15614_v16, 0.0  ;;  %v5338_v55 = vpop.xlane.xlu0 %5337  ;;  %v5765_v37 = vcvt.s32.f32 %v5763_v63  ;;  %v5339_v63 = vcvt.f32.s32 %v5336_v47  ;;  %v4945_v47 = vsel %vm11904_vm12, 1, %v14663_v8 }
 0x5ae   : > { %v5348_v1 = vpop.xlane.xlu1 %5347  ;;  %v6834_v60 = vadd.f32 %v6833_v15, %v6702_v35  ;;  %v5330_v30 = vadd.s32 %v5329_v6, %v5327_v48  ;;  %v5340_v34 = vcvt.f32.s32 %v5338_v55  ;;  %v11916_v15 = vld [vmem:[%s14125_s5] ss:$0 sm:$0xff]  ;;  %v15622_v48 = vld [vmem:[#allocation179_spill] sm:$0xff]  ;;  %v5766_v55 = vcvt.s32.f32 %v5764_v21 }
 0x5af   : > { %v5777_v42 = vcvt.s32.f32 %v5775_v14  ;;  %v5351_v21 = vcvt.f32.s32 %v5348_v1  ;;  %vm15626_vm12 = vcmp.lt.f32.partialorder %v11781_v51, %v15613_v45  ;;  %v15640_v45 = vld [vmem:[#allocation225_spill] sm:$0xff] }
 0x5b0   : > { %vm6574_vm6 = vcmp.eq.s32.totalorder %v5330_v30, %v11916_v15  ;;  %v5341_v9 = vshll.u32 %v5340_v34, 16  ;;  %5757 = vadd.xlane.f32.xlu0 %v5754_v52  ;;  %vm4818_vm0 = vmor %vm15626_vm12, %vm11924_vm15  ;;  %vm4565_vm15 = vcmp.eq.f32.partialorder %v11781_v51, %v15632_v5  ;;  %vm4436_vm12 = vcmp.lt.f32.partialorder %v11781_v51, %v15627_v54 }
 0x5b1   : > { %5767 = vadd.xlane.f32.xlu1 %v5765_v37  ;;  %v6703_v6 = vsel %vm6574_vm6, %v15622_v48, 0.0  ;;  %v5350_v16 = vpop.xlane.xlu0 %5349  ;;  %v5787_v37 = vand.u32 65535, %v4944_v56  ;;  %vm11939_vm6 = vmand %vm4563_vm2, %vm15623_vm11  ;;  %vm15629_vm2 = vcmp.lt.f32.partialorder %v11781_v51, %v15618_v43  ;;  %v5800_v56 = vshrl.u32 %v4945_v47, 16 }
 0x5b2   : > { %v5360_v35 = vpop.xlane.xlu1 %5359  ;;  %v6835_v52 = vadd.f32 %v6834_v60, %v6703_v6  ;;  %v5342_v30 = vadd.s32 %v5341_v9, %v5339_v63  ;;  %v5352_v34 = vcvt.f32.s32 %v5350_v16  ;;  %v5778_v60 = vcvt.s32.f32 %v5776_v17  ;;  %v15628_v63 = vld [vmem:[#allocation182_spill] sm:$0xff]  ;;  %vm11957_vm11 = vmor %vm15629_vm2, %vm11939_vm6 }
 0x5b3   : > { %vm15633_vm6 = vcmp.eq.f32.partialorder %v11781_v51, %v15627_v54 }
 0x5b4   : > { %vm6575_vm13 = vcmp.eq.s32.totalorder %v5342_v30, %v11916_v15  ;;  %v5353_v14 = vshll.u32 %v5352_v34, 16  ;;  %5769 = vadd.xlane.f32.xlu0 %v5766_v55  ;;  %v5799_v30 = vand.u32 65535, %v4945_v47  ;;  %vm11974_vm2 = vmand %vm15633_vm6, %vm15472_vm10  ;;  %v15636_v47 = vld [vmem:[#allocation181_spill] sm:$0xff] }
 0x5b5   : > { %5779 = vadd.xlane.f32.xlu1 %v5777_v42  ;;  %v6704_v9 = vsel %vm6575_vm13, %v15628_v63, 0.0  ;;  %v5362_v6 = vpop.xlane.xlu0 %5361  ;;  %v5789_v42 = vcvt.s32.f32 %v5787_v37  ;;  %v5363_v37 = vcvt.f32.s32 %v5360_v35  ;;  %v4947_v35 = vsel %vm11957_vm11, 1, %v14663_v8  ;;  %vm11999_vm11 = vmor %vm4436_vm12, %vm11974_vm2 }
 0x5b6   : > { %v5372_v16 = vpop.xlane.xlu1 %5371  ;;  %v6836_v1 = vadd.f32 %v6835_v52, %v6704_v9  ;;  %v5354_v34 = vadd.s32 %v5353_v14, %v5351_v21  ;;  %v5364_v55 = vcvt.f32.s32 %v5362_v6  ;;  %v4946_v52 = vsel %vm4818_vm0, 1, %v14663_v8 }
 0x5b7   : > { %v5790_v6 = vcvt.s32.f32 %v5788_v61  ;;  %v5801_v43 = vcvt.s32.f32 %v5799_v30  ;;  %vm15637_vm0 = vnez %v14671_v19  ;;  %v5802_v61 = vcvt.s32.f32 %v5800_v56 }
 0x5b8   : > { %vm6576_vm5 = vcmp.eq.s32.totalorder %v5354_v34, %v11916_v15  ;;  %v5365_v48 = vshll.u32 %v5364_v55, 16  ;;  %5781 = vadd.xlane.f32.xlu0 %v5778_v60  ;;  %vm11987_vm13 = vmand %vm4565_vm15, %vm15637_vm0  ;;  %v5375_v30 = vcvt.f32.s32 %v5372_v16  ;;  %v5812_v44 = vshrl.u32 %v4946_v52, 16 }
 0x5b9   : > { %5791 = vadd.xlane.f32.xlu1 %v5789_v42  ;;  %v6705_v14 = vsel %vm6576_vm5, %v15636_v47, 0.0  ;;  %v5374_v63 = vpop.xlane.xlu0 %5373  ;;  %v5811_v47 = vand.u32 65535, %v4946_v52  ;;  %v6820_v56 = vrot.slane %v11659_v32, 4  ;;  %vm15644_vm5 = vcmp.lt.f32.partialorder %v11781_v51, %v15632_v5 }
 0x5ba   : > { %v5384_v9 = vpop.xlane.xlu1 %5383  ;;  %v6837_v34 = vadd.f32 %v6836_v1, %v6705_v14  ;;  %v5366_v55 = vadd.s32 %v5365_v48, %v5363_v37  ;;  %v5376_v42 = vcvt.f32.s32 %v5374_v63  ;;  %v15643_v37 = vld [vmem:[#allocation184_spill] sm:$0xff]  ;;  %vm4821_vm0 = vmor %vm15644_vm5, %vm11987_vm13  ;;  %vm15645_vm12 = vcmp.eq.f32.partialorder %v11781_v51, %v15640_v45 }
 0x5bb   : > { %vm12017_vm2 = vmand %vm15645_vm12, %vm15477_vm9  ;;  %v5824_v60 = vshrl.u32 %v4947_v35, 16  ;;  %v5387_v5 = vcvt.f32.s32 %v5384_v9  ;;  %v5814_v2 = vcvt.s32.f32 %v5812_v44  ;;  %vm15650_vm5 = vcmp.lt.f32.partialorder %v11781_v51, %v15640_v45  ;;  %v15654_v45 = vld [vmem:[#allocation226_spill] sm:$0xff] }
 0x5bc   : > { %vm6577_vm6 = vcmp.eq.s32.totalorder %v5366_v55, %v11916_v15  ;;  %v5377_v17 = vshll.u32 %v5376_v42, 16  ;;  %5793 = vadd.xlane.f32.xlu0 %v5790_v6  ;;  %v5813_v55 = vcvt.s32.f32 %v5811_v47  ;;  %v15648_v42 = vld [vmem:[#allocation224_spill] sm:$0xff]  ;;  %v6821_v47 = vadd.f32 %v6820_v56, %v11659_v32  ;;  %v15653_v56 = vld [vmem:[#allocation227_spill] sm:$0xff] }
 0x5bd   : > { %5803 = vadd.xlane.f32.xlu1 %v5801_v43  ;;  %v6706_v16 = vsel %vm6577_vm6, %v15643_v37, 0.0  ;;  %v5386_v48 = vpop.xlane.xlu0 %5385  ;;  %v5823_v43 = vand.u32 65535, %v4947_v35  ;;  %vm4439_vm6 = vcmp.lt.f32.partialorder %v11781_v51, %v15648_v42  ;;  %vm4567_vm15 = vcmp.eq.f32.partialorder %v11781_v51, %v15648_v42 }
 0x5be   : > { %v5396_v14 = vpop.xlane.xlu1 %5395  ;;  %v6838_v21 = vadd.f32 %v6837_v34, %v6706_v16  ;;  %v5378_v63 = vadd.s32 %v5377_v17, %v5375_v30  ;;  %v5388_v6 = vcvt.f32.s32 %v5386_v48  ;;  %v4948_v37 = vsel %vm11999_vm11, 1, %v14663_v8  ;;  %v15649_v30 = vld [vmem:[#allocation183_spill] sm:$0xff]  ;;  %vm4822_vm11 = vmor %vm15650_vm5, %vm12017_vm2 }
 0x5bf   : > { %v4949_v34 = vsel %vm4821_vm0, 1, %v14663_v8  ;;  %v5825_v35 = vcvt.s32.f32 %v5823_v43  ;;  %vm12042_vm0 = vmand %vm4567_vm15, %vm15480_vm7  ;;  %v5835_v44 = vand.u32 65535, %v4948_v37  ;;  %vm4568_vm12 = vcmp.eq.f32.partialorder %v11781_v51, %v15653_v56 }
 0x5c0   : > { %vm6578_vm13 = vcmp.eq.s32.totalorder %v5378_v63, %v11916_v15  ;;  %v5389_v54 = vshll.u32 %v5388_v6, 16  ;;  %5805 = vadd.xlane.f32.xlu0 %v5802_v61  ;;  %v5826_v43 = vcvt.s32.f32 %v5824_v60  ;;  %v5836_v52 = vshrl.u32 %v4948_v37, 16 }
 0x5c1   : > { %5815 = vadd.xlane.f32.xlu1 %v5813_v55  ;;  %v6707_v17 = vsel %vm6578_vm13, %v15649_v30, 0.0  ;;  %v5398_v16 = vpop.xlane.xlu0 %5397  ;;  %v5847_v63 = vand.u32 65535, %v4949_v34  ;;  %v5399_v6 = vcvt.f32.s32 %v5396_v14  ;;  %v4950_v30 = vsel %vm4822_vm11, 1, %v14663_v8  ;;  %vm4823_vm13 = vmor %vm4439_vm6, %vm12042_vm0 }
 0x5c2   : > { %v5408_v48 = vpop.xlane.xlu1 %5407  ;;  %v6839_v32 = vadd.f32 %v6838_v21, %v6707_v17  ;;  %v5390_v61 = vadd.s32 %v5389_v54, %v5387_v5  ;;  %v5400_v1 = vcvt.f32.s32 %v5398_v16  ;;  %v6822_v54 = vrot.slane %v6821_v47, 2  ;;  %v15655_v5 = vld [vmem:[#allocation186_spill] sm:$0xff] }
 0x5c3   : > { %v5848_v11 = vshrl.u32 %v4949_v34, 16  ;;  %v5837_v37 = vcvt.s32.f32 %v5835_v44  ;;  %vm4569_vm5 = vcmp.eq.f32.partialorder %v11781_v51, %v15654_v45  ;;  %vm4440_vm11 = vcmp.lt.f32.partialorder %v11781_v51, %v15653_v56 }
 0x5c4   : > { %vm6579_vm2 = vcmp.eq.s32.totalorder %v5390_v61, %v11916_v15  ;;  %v5401_v55 = vshll.u32 %v5400_v1, 16  ;;  %5817 = vadd.xlane.f32.xlu0 %v5814_v2  ;;  %v5859_v9 = vand.u32 65535, %v4950_v30  ;;  %v5411_v61 = vcvt.f32.s32 %v5408_v48 }
 0x5c5   : > { %5827 = vadd.xlane.f32.xlu1 %v5825_v35  ;;  %v6708_v21 = vsel %vm6579_vm2, %v15655_v5, 0.0  ;;  %v5410_v17 = vpop.xlane.xlu0 %5409  ;;  %vm12067_vm2 = vmand %vm4568_vm12, %vm15446_vm1  ;;  %v5838_v35 = vcvt.s32.f32 %v5836_v52  ;;  %v4951_v44 = vsel %vm4823_vm13, 1, %v14663_v8  ;;  %v5860_v42 = vshrl.u32 %v4950_v30, 16 }
 0x5c6   : > { %v5420_v16 = vpop.xlane.xlu1 %5419  ;;  %v6840_v14 = vadd.f32 %v6839_v32, %v6708_v21  ;;  %v5402_v2 = vadd.s32 %v5401_v55, %v5399_v6  ;;  %v5412_v60 = vcvt.f32.s32 %v5410_v17  ;;  %v6823_v6 = vadd.f32 %v6822_v54, %v6821_v47  ;;  %vm12078_vm0 = vmor %vm4440_vm11, %vm12067_vm2  ;;  %v15663_v47 = vld [vmem:[#allocation229_spill] sm:$0xff] }
 0x5c7   : > { %v5849_v21 = vcvt.s32.f32 %v5847_v63  ;;  %v5850_v17 = vcvt.s32.f32 %v5848_v11  ;;  %vm15660_vm12 = vnez %v14686_v26  ;;  %vm4570_vm15 = vcmp.eq.f32.partialorder %v11781_v51, %v15663_v47 }
 0x5c8   : > { %v6841_v32 = vrot.slane %v6840_v14, 4  ;;  %v5413_v1 = vshll.u32 %v5412_v60, 16  ;;  %5829 = vadd.xlane.f32.xlu0 %v5826_v43  ;;  %vm6580_vm6 = vcmp.eq.s32.totalorder %v5402_v2, %v11916_v15  ;;  %vm12087_vm13 = vmand %vm4569_vm5, %vm15660_vm12  ;;  %v5861_v43 = vcvt.s32.f32 %v5859_v9  ;;  %v15669_v2 = vld [vmem:[#allocation228_spill] sm:$0xff] }
 0x5c9   : > { %5839 = vadd.xlane.f32.xlu1 %v5837_v37  ;;  %v5422_v55 = vpop.xlane.xlu0 %5421  ;;  %v5871_v52 = vand.u32 65535, %v4951_v44  ;;  %v5872_v63 = vshrl.u32 %v4951_v44, 16  ;;  %v5423_v54 = vcvt.f32.s32 %v5420_v16  ;;  %v6824_v60 = vrot.slane %v6823_v6, 1  ;;  %v15664_v37 = vld [vmem:[#allocation185_spill] sm:$0xff] }
 0x5ca   : > { %v5432_v5 = vpop.xlane.xlu1 %5431  ;;  %v6842_v27 = vadd.f32 %v6841_v32, %v6840_v14  ;;  %v5414_v49 = vadd.s32 %v5413_v1, %v5411_v61  ;;  %v5424_v39 = vcvt.f32.s32 %v5422_v55  ;;  %v6709_v34 = vsel %vm6580_vm6, %v15664_v37, 0.0  ;;  %v15665_v32 = vld [vmem:[#allocation188_spill] sm:$0xff] }
 0x5cb   : > { %v4952_v9 = vsel %vm12078_vm0, 1, %v14663_v8  ;;  %vm15666_vm5 = vcmp.lt.f32.partialorder %v11781_v51, %v15654_v45  ;;  %vm4571_vm6 = vcmp.eq.f32.partialorder %v11781_v51, %v15669_v2  ;;  %vm12119_vm0 = vmand %vm4570_vm15, %vm15238_vm8  ;;  %v5435_v11 = vcvt.f32.s32 %v5432_v5 }
 0x5cc   : > { %v6843_v30 = vrot.slane %v6842_v27, 2  ;;  %vm6581_vm11 = vcmp.eq.s32.totalorder %v5414_v49, %v11916_v15  ;;  %v5425_v14 = vshll.u32 %v5424_v39, 16  ;;  %5841 = vadd.xlane.f32.xlu0 %v5838_v35  ;;  %vm12106_vm2 = vmor %vm15666_vm5, %vm12087_vm13  ;;  %v5862_v35 = vcvt.s32.f32 %v5860_v42 }
 0x5cd   : > { %5851 = vadd.xlane.f32.xlu1 %v5849_v21  ;;  %v6710_v61 = vsel %vm6581_vm11, %v15665_v32, 0.0  ;;  %v5434_v1 = vpop.xlane.xlu0 %5433  ;;  %vm4442_vm11 = vcmp.lt.f32.partialorder %v11781_v51, %v15663_v47  ;;  %v4953_v32 = vsel %vm12106_vm2, 1, %v14663_v8  ;;  %vm12133_vm15 = vmand %vm4571_vm6, %vm14775_vm3  ;;  %vm15678_vm6 = vcmask 1041409  }
 0x5ce   : > { %v5444_v55 = vpop.xlane.xlu1 %5443  ;;  %v6844_v44 = vadd.f32 %v6843_v30, %v6842_v27  ;;  %v6847_v56 = vadd.f32 %v6710_v61, %v6709_v34  ;;  %v5426_v49 = vadd.s32 %v5425_v14, %v5423_v54  ;;  %v5436_v16 = vcvt.f32.s32 %v5434_v1  ;;  %v15672_v14 = vld [vmem:[#allocation187_spill] sm:$0xff]  ;;  %v15675_v61 = vld [vmem:[#allocation28_spill] sm:$0xff]  ;;  %vm12148_vm2 = vmor %vm4442_vm11, %vm12119_vm0 }
 0x5cf   : > { %v5873_v27 = vcvt.s32.f32 %v5871_v52  ;;  %v6825_v54 = vadd.f32 %v6824_v60, %v6823_v6  ;;  %v5883_v34 = vand.u32 65535, %v4952_v9  ;;  %v12139_v1 = vrot.slane %v15675_v61, %v7695_v4 }
 0x5d0   : > { %v6845_v48 = vrot.slane %v6844_v44, 1  ;;  %vm6582_vm13 = vcmp.eq.s32.totalorder %v5426_v49, %v11916_v15  ;;  %v5437_v30 = vshll.u32 %v5436_v16, 16  ;;  %5853 = vadd.xlane.f32.xlu0 %v5850_v17  ;;  %v5874_v49 = vcvt.s32.f32 %v5872_v63  ;;  %v15679_v63 = vld [vmem:[#allocation231_spill] sm:$0xff] }
 0x5d1   : > { %5863 = vadd.xlane.f32.xlu1 %v5861_v43  ;;  %v6711_v42 = vsel %vm6582_vm13, %v15672_v14, 0.0  ;;  %v5446_v52 = vpop.xlane.xlu0 %5445  ;;  %v5884_v16 = vshrl.u32 %v4952_v9, 16  ;;  %vm4572_vm5 = vcmp.eq.f32.partialorder %v11781_v51, %v15679_v63  ;;  %v15680_v9 = vld [vmem:[#allocation190_spill] sm:$0xff]  ;;  %v5885_v14 = vcvt.s32.f32 %v5883_v34 }
 0x5d2   : > { %v5456_v37 = vpop.xlane.xlu1 %5455  ;;  %v6846_v17 = vadd.f32 %v6845_v48, %v6844_v44  ;;  %v6848_v6 = vadd.f32 %v6847_v56, %v6711_v42  ;;  %v5438_v43 = vadd.s32 %v5437_v30, %v5435_v11  ;;  %v5448_v60 = vcvt.f32.s32 %v5446_v52 }
 0x5d3   : > { %v5447_v44 = vcvt.f32.s32 %v5444_v55  ;;  %v5895_v42 = vand.u32 65535, %v4953_v32  ;;  %vm15681_vm11 = vcmp.lt.f32.partialorder %v11781_v51, %v15669_v2  ;;  %v5896_v34 = vshrl.u32 %v4953_v32, 16 }
 0x5d4   : > { %v12153_v56 = vsel %vm15678_vm6, %v6846_v17, %v6825_v54  ;;  %vm6583_vm13 = vcmp.eq.s32.totalorder %v5438_v43, %v11916_v15  ;;  %v5449_v48 = vshll.u32 %v5448_v60, 16  ;;  %5865 = vadd.xlane.f32.xlu0 %v5862_v35  ;;  %v4954_v54 = vsel %vm12148_vm2, 1, %v14663_v8  ;;  %vm12167_vm0 = vmor %vm15681_vm11, %vm12133_vm15  ;;  %v15688_v43 = vld [vmem:[#allocation189_spill] sm:$0xff] }
 0x5d5   : > { %5875 = vadd.xlane.f32.xlu1 %v5873_v27  ;;  %v6712_v21 = vsel %vm6583_vm13, %v15680_v9, 0.0  ;;  %v5458_v11 = vpop.xlane.xlu0 %5457  ;;  %v4324_v35 = vcombine.high %v15587_v41, %v15587_v41  ;;  %v15684_v27 = vld [vmem:[#allocation230_spill] sm:$0xff]  ;;  %vm4444_vm13 = vcmp.lt.f32.partialorder %v11781_v51, %v15679_v63  ;;  %vm15685_vm2 = vnez %v14696_v38 }
 0x5d6   : > { %v5468_v30 = vpop.xlane.xlu1 %5467  ;;  %v6849_v52 = vadd.f32 %v6848_v6, %v6712_v21  ;;  %v5450_v47 = vadd.s32 %v5449_v48, %v5447_v44  ;;  %v5460_v45 = vcvt.f32.s32 %v5458_v11  ;;  %vm4573_vm6 = vcmp.eq.f32.partialorder %v11781_v51, %v15684_v27  ;;  %vm12182_vm3 = vmand %vm4572_vm5, %vm15685_vm2 }
 0x5d7   : > { %v5459_v17 = vcvt.f32.s32 %v5456_v37  ;;  %v5886_v6 = vcvt.s32.f32 %v5884_v16  ;;  %v5897_v44 = vcvt.s32.f32 %v5895_v42  ;;  %v5907_v48 = vand.u32 65535, %v4954_v54 }
 0x5d8   : > { %vm6584_vm15 = vcmp.eq.s32.totalorder %v5450_v47, %v11916_v15  ;;  %v5461_v41 = vshll.u32 %v5460_v45, 16  ;;  %5877 = vadd.xlane.f32.xlu0 %v5874_v49  ;;  %v4955_v9 = vsel %vm12167_vm0, 1, %v14663_v8  ;;  %vm15689_vm5 = vnez %v14699_v40  ;;  %v15692_v47 = vld [vmem:[#allocation232_spill] sm:$0xff] }
 0x5d9   : > { %5887 = vadd.xlane.f32.xlu1 %v5885_v14  ;;  %v6713_v60 = vsel %vm6584_vm15, %v15688_v43, 0.0  ;;  %v5470_v39 = vpop.xlane.xlu0 %5469  ;;  %vm12196_vm11 = vmand %vm4573_vm6, %vm15689_vm5  ;;  %v12203_v21 = vrot.slane %v4324_v35, %v7695_v4  ;;  %v5908_v11 = vshrl.u32 %v4954_v54, 16  ;;  %v5471_v42 = vcvt.f32.s32 %v5468_v30  ;;  %v15698_v35 = vld [vmem:[#allocation192_spill] sm:$0xff] }
 0x5da   : > { %v5480_v32 = vpop.xlane.xlu1 %5479  ;;  %v6850_v37 = vadd.f32 %v6849_v52, %v6713_v60  ;;  %v5462_v49 = vadd.s32 %v5461_v41, %v5459_v17  ;;  %v5472_v16 = vcvt.f32.s32 %v5470_v39  ;;  %vm12212_vm6 = vmor %vm4444_vm13, %vm12182_vm3  ;;  %v5898_v55 = vcvt.s32.f32 %v5896_v34 }
 0x5db   : > { %vm15695_vm5 = vcmp.eq.f32.partialorder %v12139_v1, %v15692_v47  ;;  %v5909_v41 = vcvt.s32.f32 %v5907_v48  ;;  %v4956_v39 = vsel %vm12212_vm6, 1, %v14663_v8  ;;  %vm15699_vm3 = vcmp.lt.f32.partialorder %v11781_v51, %v15684_v27 }
 0x5dc   : > { %vm6585_vm15 = vcmp.eq.s32.totalorder %v5462_v49, %v11916_v15  ;;  %v5473_v52 = vshll.u32 %v5472_v16, 16  ;;  %5889 = vadd.xlane.f32.xlu0 %v5886_v6  ;;  %vm12224_vm2 = vmand %vm15695_vm5, %vm15599_vm4  ;;  %v5919_v6 = vand.u32 65535, %v4955_v9  ;;  %v15702_v49 = vld [vmem:[#allocation234_spill] sm:$0xff]  ;;  %v5910_v48 = vcvt.s32.f32 %v5908_v11  ;;  %v15703_v16 = vld [vmem:[#allocation249_spill] sm:$0xff] }
 0x5dd   : > { %5899 = vadd.xlane.f32.xlu1 %v5897_v44  ;;  %v6714_v5 = vsel %vm6585_vm15, %v15698_v35, 0.0  ;;  %v5482_v17 = vpop.xlane.xlu0 %5481  ;;  %vm12237_vm13 = vmor %vm15699_vm3, %vm12196_vm11  ;;  %vm4576_vm5 = vcmp.eq.f32.partialorder %v12139_v1, %v15702_v49  ;;  %vm4591_vm15 = vcmp.eq.f32.partialorder %v12203_v21, %v15703_v16  ;;  %v5483_v14 = vcvt.f32.s32 %v5480_v32  ;;  %v15707_v11 = vld [vmem:[#allocation191_spill] sm:$0xff] }
 0x5de   : > { %v5492_v30 = vpop.xlane.xlu1 %5491  ;;  %v6851_v43 = vadd.f32 %v6850_v37, %v6714_v5  ;;  %v5474_v34 = vadd.s32 %v5473_v52, %v5471_v42  ;;  %v5484_v60 = vcvt.f32.s32 %v5482_v17  ;;  %v5920_v37 = vshrl.u32 %v4955_v9, 16 }
 0x5df   : > { %vm15704_vm11 = vcmp.lt.f32.partialorder %v12139_v1, %v15692_v47  ;;  %v5921_v5 = vcvt.s32.f32 %v5919_v6  ;;  %v5931_v17 = vand.u32 65535, %v4956_v39  ;;  %v4957_v32 = vsel %vm12237_vm13, 1, %v14663_v8  ;;  %vm12279_vm13 = vmand %vm4591_vm15, %vm15599_vm4 }
 0x5e0   : > { %vm6586_vm0 = vcmp.eq.s32.totalorder %v5474_v34, %v11916_v15  ;;  %v5485_v42 = vshll.u32 %v5484_v60, 16  ;;  %5901 = vadd.xlane.f32.xlu0 %v5898_v55  ;;  %vm12251_vm6 = vmor %vm15704_vm11, %vm12224_vm2  ;;  %vm4448_vm3 = vcmp.lt.f32.partialorder %v12139_v1, %v15702_v49  ;;  %v4326_v34 = vcombine.high %v15675_v61, %v15675_v61 }
 0x5e1   : > { %5911 = vadd.xlane.f32.xlu1 %v5909_v41  ;;  %v6715_v9 = vsel %vm6586_vm0, %v15707_v11, 0.0  ;;  %v5494_v52 = vpop.xlane.xlu0 %5493  ;;  %vm12266_vm2 = vmand %vm4576_vm5, %vm15460_vm14  ;;  %vm4463_vm0 = vcmp.lt.f32.partialorder %v12203_v21, %v15703_v16  ;;  %v5922_v44 = vcvt.s32.f32 %v5920_v37  ;;  %v5495_v61 = vcvt.f32.s32 %v5492_v30  ;;  %v15713_v11 = vld [vmem:[#allocation235_spill] sm:$0xff] }
 0x5e2   : > { %v5504_v35 = vpop.xlane.xlu1 %5503  ;;  %v6852_v54 = vadd.f32 %v6851_v43, %v6715_v9  ;;  %v5486_v41 = vadd.s32 %v5485_v42, %v5483_v14  ;;  %v5496_v6 = vcvt.f32.s32 %v5494_v52  ;;  %v12286_v43 = vsel %vm12251_vm6, 1, %v14663_v8  ;;  %v15712_v14 = vld [vmem:[#allocation250_spill] sm:$0xff]  ;;  %vm12299_vm6 = vmor %vm4448_vm3, %vm12266_vm2 }
 0x5e3   : > { %vm4592_vm5 = vcmp.eq.f32.partialorder %v12203_v21, %v15712_v14  ;;  %vm4577_vm15 = vcmp.eq.f32.partialorder %v12139_v1, %v15713_v11  ;;  %v15714_v9 = vld [vmem:[#allocation194_spill] sm:$0xff]  ;;  %v5932_v51 = vshrl.u32 %v4956_v39, 16  ;;  %v5943_v45 = vand.u32 65535, %v4957_v32  ;;  %v15727_v39 = vld [vmem:[#allocation265_spill] sm:$0xff] }
 0x5e4   : > { %vm6587_vm11 = vcmp.eq.s32.totalorder %v5486_v41, %v11916_v15  ;;  %v5497_v42 = vshll.u32 %v5496_v6, 16  ;;  %5913 = vadd.xlane.f32.xlu0 %v5910_v48  ;;  %v5933_v6 = vcvt.s32.f32 %v5931_v17  ;;  %v12313_v55 = vrot.slane %v4326_v34, %v7695_v4  ;;  %vm12322_vm2 = vmand %vm4592_vm5, %vm15460_vm14  ;;  %v15728_v17 = vld [vmem:[#allocation196_spill] sm:$0xff] }
 0x5e5   : > { %5923 = vadd.xlane.f32.xlu1 %v5921_v5  ;;  %v6716_v52 = vsel %vm6587_vm11, %v15714_v9, 0.0  ;;  %v5506_v37 = vpop.xlane.xlu0 %5505  ;;  %vm12308_vm11 = vmor %vm4463_vm0, %vm12279_vm13  ;;  %v5968_v60 = vshrl.u32 %v12286_v43, 16  ;;  %v5507_v4 = vcvt.f32.s32 %v5504_v35  ;;  %vm15721_vm3 = vnez %v14658_v20 }
 0x5e6   : > { %v5516_v47 = vpop.xlane.xlu1 %5515  ;;  %v6853_v30 = vadd.f32 %v6852_v54, %v6716_v52  ;;  %v5498_v48 = vadd.s32 %v5497_v42, %v5495_v61  ;;  %v5508_v5 = vcvt.f32.s32 %v5506_v37  ;;  %v5944_v54 = vshrl.u32 %v4957_v32, 16  ;;  %vm12335_vm5 = vmand %vm4577_vm15, %vm15721_vm3  ;;  %v15724_v32 = vld [vmem:[#allocation193_spill] sm:$0xff] }
 0x5e7   : > { %v5934_v37 = vcvt.s32.f32 %v5932_v51  ;;  %v5945_v16 = vcvt.s32.f32 %v5943_v45  ;;  %v12343_v35 = vsel %vm12299_vm6, 1, %v14663_v8  ;;  %vm15725_vm15 = vcmp.lt.f32.partialorder %v12203_v21, %v15712_v14  ;;  %v15736_v14 = vld [vmem:[#allocation251_spill] sm:$0xff] }
 0x5e8   : > { %vm6588_vm13 = vcmp.eq.s32.totalorder %v5498_v48, %v11916_v15  ;;  %v5509_v34 = vshll.u32 %v5508_v5, 16  ;;  %5925 = vadd.xlane.f32.xlu0 %v5922_v44  ;;  %v5946_v51 = vcvt.s32.f32 %v5944_v54  ;;  %v5970_v45 = vcvt.s32.f32 %v5968_v60 }
 0x5e9   : > { %5935 = vadd.xlane.f32.xlu1 %v5933_v6  ;;  %v6717_v42 = vsel %vm6588_vm13, %v15724_v32, 0.0  ;;  %v5518_v9 = vpop.xlane.xlu0 %5517  ;;  %v12348_v6 = vsel %vm12308_vm11, 1, %v14663_v8  ;;  %vm4848_vm13 = vmor %vm15725_vm15, %vm12322_vm2  ;;  %v5519_v41 = vcvt.f32.s32 %v5516_v47  ;;  %vm15726_vm6 = vcmp.lt.f32.partialorder %v12139_v1, %v15713_v11  ;;  %v15735_v11 = vld [vmem:[#allocation236_spill] sm:$0xff] }
 0x5ea   : > { %v5528_v52 = vpop.xlane.xlu1 %5527  ;;  %v6854_v44 = vadd.f32 %v6853_v30, %v6717_v42  ;;  %v5510_v48 = vadd.s32 %v5509_v34, %v5507_v4  ;;  %v5520_v5 = vcvt.f32.s32 %v5518_v9  ;;  %v5980_v30 = vshrl.u32 %v12343_v35, 16  ;;  %vm4833_vm11 = vmor %vm15726_vm6, %vm12335_vm5 }
 0x5eb   : > { %vm4607_vm8 = vcmp.eq.f32.partialorder %v12313_v55, %v15727_v39  ;;  %v6160_v47 = vshrl.u32 %v12348_v6, 16  ;;  %v12367_v34 = vsel %vm4848_vm13, 1, %v14663_v8 }
 0x5ec   : > { %vm6589_vm0 = vcmp.eq.s32.totalorder %v5510_v48, %v11916_v15  ;;  %v5521_v32 = vshll.u32 %v5520_v5, 16  ;;  %5937 = vadd.xlane.f32.xlu0 %v5934_v37  ;;  %v5967_v37 = vand.u32 65535, %v12286_v43  ;;  %v12373_v48 = vsel %vm4833_vm11, 1, %v14663_v8  ;;  %vm12379_vm5 = vmand %vm4607_vm8, %vm15599_vm4 }
 0x5ed   : > { %5947 = vadd.xlane.f32.xlu1 %v5945_v16  ;;  %v6718_v54 = vsel %vm6589_vm0, %v15728_v17, 0.0  ;;  %v5530_v60 = vpop.xlane.xlu0 %5529  ;;  %v15729_v16 = vld [vmem:[#allocation266_spill] sm:$0xff]  ;;  %vm4479_vm0 = vcmp.lt.f32.partialorder %v12313_v55, %v15727_v39  ;;  %v5531_v17 = vcvt.f32.s32 %v5528_v52  ;;  %vm4578_vm8 = vcmp.eq.f32.partialorder %v12139_v1, %v15735_v11 }
 0x5ee   : > { %v5540_v4 = vpop.xlane.xlu1 %5539  ;;  %vm4608_vm2 = vcmp.eq.f32.partialorder %v12313_v55, %v15729_v16  ;;  %v6855_v61 = vadd.f32 %v6854_v44, %v6718_v54  ;;  %v5522_v42 = vadd.s32 %v5521_v32, %v5519_v41  ;;  %v5532_v9 = vcvt.f32.s32 %v5530_v60  ;;  %vm12403_vm4 = vmor %vm4479_vm0, %vm12379_vm5 }
 0x5ef   : > { %vm4480_vm13 = vcmp.lt.f32.partialorder %v12313_v55, %v15729_v16  ;;  %vm12388_vm6 = vmand %vm4608_vm2, %vm15460_vm14  ;;  %v5982_v60 = vcvt.s32.f32 %v5980_v30  ;;  %vm4593_vm14 = vcmp.eq.f32.partialorder %v12203_v21, %v15736_v14  ;;  %v5969_v25 = vcvt.s32.f32 %v5967_v37  ;;  %v15739_v37 = vld [vmem:[#allocation198_spill] sm:$0xff]  ;;  %v15745_v30 = vld [vmem:[#allocation197_spill] sm:$0xff] }
 0x5f0   : > { %vm6590_vm15 = vcmp.eq.s32.totalorder %v5522_v42, %v11916_v15  ;;  %v5533_v44 = vshll.u32 %v5532_v9, 16  ;;  %5949 = vadd.xlane.f32.xlu0 %v5946_v51  ;;  %v6172_v42 = vshrl.u32 %v12367_v34, 16  ;;  %vm4864_vm2 = vmor %vm4480_vm13, %vm12388_vm6  ;;  %vm4465_vm0 = vcmp.lt.f32.partialorder %v12203_v21, %v15736_v14 }
 0x5f1   : > { %5973 = vadd.xlane.f32.xlu1 %v5970_v45  ;;  %v6719_v41 = vsel %vm6590_vm15, %v15734_v23, 0.0  ;;  %v5542_v32 = vpop.xlane.xlu0 %5541  ;;  %v6162_v45 = vcvt.s32.f32 %v6160_v47  ;;  %vm12423_vm5 = vmand %vm4593_vm14, %vm15721_vm3  ;;  %vm4450_vm15 = vcmp.lt.f32.partialorder %v12139_v1, %v15735_v11  ;;  %vm15742_vm13 = vnez %v14661_v18 }
 0x5f2   : > { %v5552_v54 = vpop.xlane.xlu1 %5551  ;;  %v6856_v52 = vadd.f32 %v6855_v61, %v6719_v41  ;;  %v5534_v9 = vadd.s32 %v5533_v44, %v5531_v17  ;;  %v5544_v51 = vcvt.f32.s32 %v5542_v32  ;;  %v5543_v61 = vcvt.f32.s32 %v5540_v4  ;;  %vm12442_vm6 = vmand %vm4578_vm8, %vm15742_vm13 }
 0x5f3   : > { %v5979_v17 = vand.u32 65535, %v12343_v35  ;;  %v6174_v41 = vcvt.s32.f32 %v6172_v42  ;;  %v5992_v4 = vshrl.u32 %v12373_v48, 16  ;;  %v12433_v42 = vsel %vm4864_vm2, 1, %v14663_v8  ;;  %vm4849_vm8 = vmor %vm4465_vm0, %vm12423_vm5 }
 0x5f4   : > { %vm6591_vm11 = vcmp.eq.s32.totalorder %v5534_v9, %v11916_v15  ;;  %v5545_v47 = vshll.u32 %v5544_v51, 16  ;;  %5985 = vadd.xlane.f32.xlu0 %v5982_v60  ;;  %v12430_v9 = vsel %vm12403_vm4, 1, %v14663_v8  ;;  %v5555_v51 = vcvt.f32.s32 %v5552_v54  ;;  %vm4834_vm2 = vmor %vm4450_vm15, %vm12442_vm6 }
 0x5f5   : > { %6165 = vadd.xlane.f32.xlu1 %v6162_v45  ;;  %v6720_v5 = vsel %vm6591_vm11, %v15739_v37, 0.0  ;;  %v5554_v44 = vpop.xlane.xlu0 %5553  ;;  %v6352_v16 = vshrl.u32 %v12430_v9, 16  ;;  %v12460_v35 = vsel %vm4849_vm8, 1, %v14663_v8 }
 0x5f6   : > { %v5564_v23 = vpop.xlane.xlu1 %5563  ;;  %v6857_v43 = vadd.f32 %v6856_v52, %v6720_v5  ;;  %v5546_v32 = vadd.s32 %v5545_v47, %v5543_v61  ;;  %v5556_v60 = vcvt.f32.s32 %v5554_v44  ;;  %v5981_v5 = vcvt.s32.f32 %v5979_v17  ;;  %v15748_v52 = vld [vmem:[#allocation252_spill] sm:$0xff] }
 0x5f7   : > { %v5994_v44 = vcvt.s32.f32 %v5992_v4  ;;  %v5567_v17 = vcvt.f32.s32 %v5564_v23  ;;  %v6354_v23 = vcvt.s32.f32 %v6352_v16  ;;  %vm4594_vm15 = vcmp.eq.f32.partialorder %v12203_v21, %v15748_v52 }
 0x5f8   : > { %vm6592_vm14 = vcmp.eq.s32.totalorder %v5546_v32, %v11916_v15  ;;  %v5557_v45 = vshll.u32 %v5556_v60, 16  ;;  %6177 = vadd.xlane.f32.xlu0 %v6174_v41  ;;  %v6364_v41 = vshrl.u32 %v12433_v42, 16  ;;  %v6159_v60 = vand.u32 65535, %v12348_v6 }
 0x5f9   : > { %5971 = vadd.xlane.f32.xlu1 %v5969_v25  ;;  %v6721_v61 = vsel %vm6592_vm14, %v15745_v30, 0.0  ;;  %v5566_v47 = vpop.xlane.xlu0 %5565  ;;  %v15746_v25 = vld [vmem:[#allocation237_spill] sm:$0xff]  ;;  %v6171_v30 = vand.u32 65535, %v12367_v34 }
 0x5fa   : > { %v5576_v37 = vpop.xlane.xlu1 %5575  ;;  %v6858_v39 = vadd.f32 %v6857_v43, %v6721_v61  ;;  %v5558_v32 = vadd.s32 %v5557_v45, %v5555_v51  ;;  %v5568_v54 = vcvt.f32.s32 %v5566_v47  ;;  %vm4579_vm4 = vcmp.eq.f32.partialorder %v12139_v1, %v15746_v25  ;;  %v15747_v43 = vld [vmem:[#allocation267_spill] sm:$0xff] }
 0x5fb   : > { %vm4609_vm0 = vcmp.eq.f32.partialorder %v12313_v55, %v15747_v43  ;;  %vm4451_vm5 = vcmp.lt.f32.partialorder %v12139_v1, %v15746_v25  ;;  %vm4481_vm6 = vcmp.lt.f32.partialorder %v12313_v55, %v15747_v43 }
 0x5fc   : > { %vm6593_vm11 = vcmp.eq.s32.totalorder %v5558_v32, %v11916_v15  ;;  %v5569_v4 = vshll.u32 %v5568_v54, 16  ;;  %5983 = vadd.xlane.f32.xlu0 %v5981_v5  ;;  %v5991_v32 = vand.u32 65535, %v12373_v48  ;;  %v12477_v54 = vsel %vm4834_vm2, 1, %v14663_v8  ;;  %vm12486_vm14 = vmand %vm4609_vm0, %vm15721_vm3 }
 0x5fd   : > { %5997 = vadd.xlane.f32.xlu1 %v5994_v44  ;;  %v6722_v6 = vsel %vm6593_vm11, %v15501_v58, 0.0  ;;  %v5578_v51 = vpop.xlane.xlu0 %5577  ;;  %v6366_v44 = vcvt.s32.f32 %v6364_v41  ;;  %vm15751_vm11 = vnez %v14665_v28  ;;  %vm4466_vm3 = vcmp.lt.f32.partialorder %v12203_v21, %v15748_v52  ;;  %vm12509_vm0 = vmand %vm4594_vm15, %vm15742_vm13 }
 0x5fe   : > { %v5588_v45 = vpop.xlane.xlu1 %5587  ;;  %v6859_v61 = vadd.f32 %v6858_v39, %v6722_v6  ;;  %v5570_v47 = vadd.s32 %v5569_v4, %v5567_v17  ;;  %v5580_v5 = vcvt.f32.s32 %v5578_v51  ;;  %v5579_v39 = vcvt.f32.s32 %v5576_v37  ;;  %vm12496_vm2 = vmand %vm4579_vm4, %vm15751_vm11 }
 0x5ff   : > { %v6161_v37 = vcvt.s32.f32 %v6159_v60  ;;  %v6184_v17 = vshrl.u32 %v12460_v35, 16  ;;  %vm12519_vm4 = vmor %vm4481_vm6, %vm12486_vm14 }
 0x600   : > { %vm6594_vm8 = vcmp.eq.s32.totalorder %v5570_v47, %v11916_v15  ;;  %v5581_v34 = vshll.u32 %v5580_v5, 16  ;;  %6357 = vadd.xlane.f32.xlu0 %v6354_v23  ;;  %v6173_v47 = vcvt.s32.f32 %v6171_v30  ;;  %v5591_v5 = vcvt.f32.s32 %v5588_v45  ;;  %vm4850_vm6 = vmor %vm4466_vm3, %vm12509_vm0 }
 0x601   : > { %6369 = vadd.xlane.f32.xlu1 %v6366_v44  ;;  %v6723_v16 = vsel %vm6594_vm8, %v15505_v50, 0.0  ;;  %v5590_v48 = vpop.xlane.xlu0 %5589  ;;  %v6004_v50 = vshrl.u32 %v12477_v54, 16  ;;  %vm4835_vm8 = vmor %vm4451_vm5, %vm12496_vm2 }
 0x602   : > { %v5600_v41 = vpop.xlane.xlu1 %5599  ;;  %v6860_v6 = vadd.f32 %v6859_v61, %v6723_v16  ;;  %v5582_v51 = vadd.s32 %v5581_v34, %v5579_v39  ;;  %v5592_v23 = vcvt.f32.s32 %v5590_v48  ;;  %v6186_v39 = vcvt.s32.f32 %v6184_v17 }
 0x603   : > { %v5993_v34 = vcvt.s32.f32 %v5991_v32  ;;  %v6351_v16 = vand.u32 65535, %v12430_v9  ;;  %v6006_v32 = vcvt.s32.f32 %v6004_v50  ;;  %v12544_v9 = vsel %vm4835_vm8, 1, %v14663_v8 }
 0x604   : > { %vm6595_vm15 = vcmp.eq.s32.totalorder %v5582_v51, %v11916_v15  ;;  %v5593_v44 = vshll.u32 %v5592_v23, 16  ;;  %6163 = vadd.xlane.f32.xlu0 %v6161_v37  ;;  %v12539_v37 = vsel %vm12519_vm4, 1, %v14663_v8  ;;  %v5603_v4 = vcvt.f32.s32 %v5600_v41  ;;  %v15759_v23 = vld [vmem:[#allocation268_spill] sm:$0xff] }
 0x605   : > { %6175 = vadd.xlane.f32.xlu1 %v6173_v47  ;;  %v6724_v30 = vsel %vm6595_vm15, %v15513_v53, 0.0  ;;  %v5602_v61 = vpop.xlane.xlu0 %5601  ;;  %v15758_v53 = vld [vmem:[#allocation238_spill] sm:$0xff]  ;;  %vm4610_vm14 = vcmp.eq.f32.partialorder %v12313_v55, %v15759_v23  ;;  %v6376_v50 = vshrl.u32 %v12539_v37, 16  ;;  %vm4482_vm0 = vcmp.lt.f32.partialorder %v12313_v55, %v15759_v23 }
 0x606   : > { %v5612_v58 = vpop.xlane.xlu1 %5611  ;;  %v6861_v45 = vadd.f32 %v6860_v6, %v6724_v30  ;;  %v5594_v20 = vadd.s32 %v5593_v44, %v5591_v5  ;;  %v5604_v48 = vcvt.f32.s32 %v5602_v61  ;;  %vm4580_vm5 = vcmp.eq.f32.partialorder %v12139_v1, %v15758_v53  ;;  %vm12566_vm15 = vmand %vm4610_vm14, %vm15742_vm13 }
 0x607   : > { %v12547_v6 = vsel %vm4850_vm6, 1, %v14663_v8  ;;  %v6353_v5 = vcvt.s32.f32 %v6351_v16  ;;  %v6363_v44 = vand.u32 65535, %v12433_v42  ;;  %v5615_v42 = vcvt.f32.s32 %v5612_v58  ;;  %vm4866_vm14 = vmor %vm4482_vm0, %vm12566_vm15 }
 0x608   : > { %v6862_v17 = vrot.slane %v6861_v45, 4  ;;  %v5605_v51 = vshll.u32 %v5604_v48, 16  ;;  %6189 = vadd.xlane.f32.xlu0 %v6186_v39  ;;  %vm6596_vm2 = vcmp.eq.s32.totalorder %v5594_v20, %v11916_v15  ;;  %v15760_v39 = vld [vmem:[#allocation253_spill] sm:$0xff]  ;;  %v6196_v48 = vshrl.u32 %v12547_v6, 16 }
 0x609   : > { %5995 = vadd.xlane.f32.xlu1 %v5993_v34  ;;  %v5614_v47 = vpop.xlane.xlu0 %5613  ;;  %vm4595_vm3 = vcmp.eq.f32.partialorder %v12203_v21, %v15760_v39  ;;  %v6183_v34 = vand.u32 65535, %v12460_v35  ;;  %v6725_v35 = vsel %vm6596_vm2, %v15517_v59, 0.0  ;;  %v6378_v58 = vcvt.s32.f32 %v6376_v50 }
 0x60a   : > { %v5624_v60 = vpop.xlane.xlu1 %5623  ;;  %v6863_v30 = vadd.f32 %v6862_v17, %v6861_v45  ;;  %v5606_v41 = vadd.s32 %v5605_v51, %v5603_v4  ;;  %v5616_v61 = vcvt.f32.s32 %v5614_v47  ;;  %v6365_v51 = vcvt.s32.f32 %v6363_v44  ;;  %vm12579_vm13 = vmand %vm4595_vm3, %vm15751_vm11 }
 0x60b   : > { %vm4467_vm8 = vcmp.lt.f32.partialorder %v12203_v21, %v15760_v39  ;;  %v6003_v59 = vand.u32 65535, %v12477_v54  ;;  %vm4452_vm2 = vcmp.lt.f32.partialorder %v12139_v1, %v15758_v53  ;;  %vm12598_vm3 = vmand %vm4580_vm5, %vm15472_vm10  ;;  %vm15769_vm15 = vcmask 1042434  }
 0x60c   : > { %v6864_v16 = vrot.slane %v6863_v30, 2  ;;  %vm6597_vm4 = vcmp.eq.s32.totalorder %v5606_v41, %v11916_v15  ;;  %v5617_v25 = vshll.u32 %v5616_v61, 16  ;;  %6009 = vadd.xlane.f32.xlu0 %v6006_v32  ;;  %v6185_v61 = vcvt.s32.f32 %v6183_v34  ;;  %vm12608_vm0 = vmor %vm4467_vm8, %vm12579_vm13  ;;  %v12618_v34 = vld [vmem:[%s14125_s5] ss:$0 sm:$0xff] }
 0x60d   : > { %6355 = vadd.xlane.f32.xlu1 %v6353_v5  ;;  %v6726_v20 = vsel %vm6597_vm4, %v15523_v24, 0.0  ;;  %v5626_v17 = vpop.xlane.xlu0 %5625  ;;  %v6016_v24 = vshrl.u32 %v12544_v9, 16  ;;  %vm4836_vm4 = vmor %vm4452_vm2, %vm12598_vm3 }
 0x60e   : > { %v5636_v4 = vpop.xlane.xlu1 %5635  ;;  %v6865_v47 = vadd.f32 %v6864_v16, %v6863_v30  ;;  %v6868_v32 = vadd.f32 %v6726_v20, %v6725_v35  ;;  %v5618_v5 = vadd.s32 %v5617_v25, %v5615_v42  ;;  %v5628_v41 = vcvt.f32.s32 %v5626_v17 }
 0x60f   : > { %v5627_v25 = vcvt.f32.s32 %v5624_v60  ;;  %v6198_v16 = vcvt.s32.f32 %v6196_v48  ;;  %v5639_v48 = vcvt.f32.s32 %v5636_v4 }
 0x610   : > { %v6866_v44 = vrot.slane %v6865_v47, 1  ;;  %vm6598_vm6 = vcmp.eq.s32.totalorder %v5618_v5, %v11916_v15  ;;  %v5629_v50 = vshll.u32 %v5628_v41, 16  ;;  %6367 = vadd.xlane.f32.xlu0 %v6365_v51  ;;  %v6005_v51 = vcvt.s32.f32 %v6003_v59  ;;  %v15770_v5 = vld [vmem:[#allocation269_spill] sm:$0xff]  ;;  %v15771_v15 = vld [vmem:[#allocation239_spill] sm:$0xff] }
 0x611   : > { %6381 = vadd.xlane.f32.xlu1 %v6378_v58  ;;  %v6727_v54 = vsel %vm6598_vm6, %v15527_v10, 0.0  ;;  %v5638_v60 = vpop.xlane.xlu0 %5637  ;;  %v6018_v58 = vcvt.s32.f32 %v6016_v24  ;;  %v12613_v10 = vsel %vm4866_vm14, 1, %v14663_v8  ;;  %vm4611_vm8 = vcmp.eq.f32.partialorder %v12313_v55, %v15770_v5 }
 0x612   : > { %v5648_v30 = vpop.xlane.xlu1 %5647  ;;  %v6867_v42 = vadd.f32 %v6866_v44, %v6865_v47  ;;  %v6869_v45 = vadd.f32 %v6868_v32, %v6727_v54  ;;  %v5630_v35 = vadd.s32 %v5629_v50, %v5627_v25  ;;  %v5640_v20 = vcvt.f32.s32 %v5638_v60  ;;  %v15772_v54 = vld [vmem:[#allocation254_spill] sm:$0xff]  ;;  %vm12656_vm3 = vmand %vm4611_vm8, %vm15751_vm11 }
 0x613   : > { %v6375_v59 = vand.u32 65535, %v12539_v37  ;;  %v12637_v24 = vsel %vm12608_vm0, 1, %v14663_v8  ;;  %vm4581_vm13 = vcmp.eq.f32.partialorder %v12139_v1, %v15771_v15  ;;  %vm4596_vm6 = vcmp.eq.f32.partialorder %v12203_v21, %v15772_v54 }
 0x614   : > { %vm6599_vm5 = vcmp.eq.s32.totalorder %v5630_v35, %v12618_v34  ;;  %v5641_v47 = vshll.u32 %v5640_v20, 16  ;;  %6187 = vadd.xlane.f32.xlu0 %v6185_v61  ;;  %v12628_v32 = vsel %vm15769_vm15, %v6867_v42, %v12153_v56  ;;  %v6388_v56 = vshrl.u32 %v12613_v10, 16  ;;  %vm12669_vm11 = vmand %vm4596_vm6, %vm15472_vm10 }
 0x615   : > { %6201 = vadd.xlane.f32.xlu1 %v6198_v16  ;;  %v6728_v41 = vsel %vm6599_vm5, %v15533_v46, 0.0  ;;  %v5650_v18 = vpop.xlane.xlu0 %5649  ;;  %v12645_v46 = vsel %vm4836_vm4, 1, %v14663_v8  ;;  %v5651_v37 = vcvt.f32.s32 %v5648_v30  ;;  %v6195_v61 = vand.u32 65535, %v12547_v6 }
 0x616   : > { %v5660_v4 = vpop.xlane.xlu1 %5659  ;;  %v6870_v44 = vadd.f32 %v6869_v45, %v6728_v41  ;;  %v5642_v25 = vadd.s32 %v5641_v47, %v5639_v48  ;;  %v5652_v50 = vcvt.f32.s32 %v5650_v18  ;;  %vm4483_vm2 = vcmp.lt.f32.partialorder %v12313_v55, %v15770_v5 }
 0x617   : > { %v6377_v35 = vcvt.s32.f32 %v6375_v59  ;;  %v6208_v20 = vshrl.u32 %v12637_v24, 16  ;;  %vm4468_vm0 = vcmp.lt.f32.partialorder %v12203_v21, %v15772_v54  ;;  %v5663_v48 = vcvt.f32.s32 %v5660_v4  ;;  %vm4867_vm4 = vmor %vm4483_vm2, %vm12656_vm3 }
 0x618   : > { %vm6600_vm14 = vcmp.eq.s32.totalorder %v5642_v25, %v12618_v34  ;;  %v5653_v60 = vshll.u32 %v5652_v50, 16  ;;  %6007 = vadd.xlane.f32.xlu0 %v6005_v51  ;;  %v6028_v41 = vshrl.u32 %v12645_v46, 16  ;;  %vm4453_vm15 = vcmp.lt.f32.partialorder %v12139_v1, %v15771_v15 }
 0x619   : > { %6021 = vadd.xlane.f32.xlu1 %v6018_v58  ;;  %v6729_v42 = vsel %vm6600_vm14, %v15537_v3, 0.0  ;;  %v5662_v30 = vpop.xlane.xlu0 %5661  ;;  %v6390_v58 = vcvt.s32.f32 %v6388_v56  ;;  %v6015_v3 = vand.u32 65535, %v12544_v9  ;;  %vm15777_vm8 = vnez %v14671_v19  ;;  %vm4852_vm14 = vmor %vm4468_vm0, %vm12669_vm11 }
 0x61a   : > { %v5672_v45 = vpop.xlane.xlu1 %5671  ;;  %v6871_v6 = vadd.f32 %v6870_v44, %v6729_v42  ;;  %v5654_v17 = vadd.s32 %v5653_v60, %v5651_v37  ;;  %v5664_v51 = vcvt.f32.s32 %v5662_v30  ;;  %vm12688_vm6 = vmand %vm4581_vm13, %vm15777_vm8  ;;  %v6197_v44 = vcvt.s32.f32 %v6195_v61  ;;  %v15780_v30 = vld [vmem:[#allocation270_spill] sm:$0xff] }
 0x61b   : > { %v6210_v37 = vcvt.s32.f32 %v6208_v20  ;;  %v6017_v60 = vcvt.s32.f32 %v6015_v3  ;;  %v12699_v16 = vsel %vm4867_vm4, 1, %v14663_v8  ;;  %v6030_v61 = vcvt.s32.f32 %v6028_v41  ;;  %vm4837_vm2 = vmor %vm4453_vm15, %vm12688_vm6 }
 0x61c   : > { %vm6601_vm5 = vcmp.eq.s32.totalorder %v5654_v17, %v12618_v34  ;;  %v5665_v47 = vshll.u32 %v5664_v51, 16  ;;  %6379 = vadd.xlane.f32.xlu0 %v6377_v35  ;;  %vm4612_vm3 = vcmp.eq.f32.partialorder %v12313_v55, %v15780_v30  ;;  %v6387_v17 = vand.u32 65535, %v12613_v10 }
 0x61d   : > { %6393 = vadd.xlane.f32.xlu1 %v6390_v58  ;;  %v6730_v18 = vsel %vm6601_vm5, %v15545_v57, 0.0  ;;  %v5674_v4 = vpop.xlane.xlu0 %5673  ;;  %v5675_v57 = vcvt.f32.s32 %v5672_v45  ;;  %v12712_v45 = vsel %vm4852_vm14, 1, %v14663_v8  ;;  %v6400_v3 = vshrl.u32 %v12699_v16, 16  ;;  %vm12731_vm15 = vmand %vm4612_vm3, %vm15472_vm10 }
 0x61e   : > { %v5684_v59 = vpop.xlane.xlu1 %5683  ;;  %v6872_v25 = vadd.f32 %v6871_v6, %v6730_v18  ;;  %v5666_v50 = vadd.s32 %v5665_v47, %v5663_v48  ;;  %v5676_v56 = vcvt.f32.s32 %v5674_v4  ;;  %v15781_v48 = vld [vmem:[#allocation240_spill] sm:$0xff]  ;;  %v15782_v47 = vld [vmem:[#allocation255_spill] sm:$0xff]  ;;  %v6207_v9 = vand.u32 65535, %v12637_v24 }
 0x61f   : > { %vm4582_vm0 = vcmp.eq.f32.partialorder %v12139_v1, %v15781_v48  ;;  %vm4597_vm11 = vcmp.eq.f32.partialorder %v12203_v21, %v15782_v47  ;;  %v5687_v10 = vcvt.f32.s32 %v5684_v59  ;;  %vm4484_vm4 = vcmp.lt.f32.partialorder %v12313_v55, %v15780_v30 }
 0x620   : > { %vm6602_vm13 = vcmp.eq.s32.totalorder %v5666_v50, %v12618_v34  ;;  %v5677_v42 = vshll.u32 %v5676_v56, 16  ;;  %6199 = vadd.xlane.f32.xlu0 %v6197_v44  ;;  %v6220_v50 = vshrl.u32 %v12712_v45, 16  ;;  %vm4469_vm6 = vcmp.lt.f32.partialorder %v12203_v21, %v15782_v47  ;;  %vm12744_vm10 = vmand %vm4597_vm11, %vm15777_vm8 }
 0x621   : > { %6213 = vadd.xlane.f32.xlu1 %v6210_v37  ;;  %v6731_v35 = vsel %vm6602_vm13, %v15549_v13, 0.0  ;;  %v5686_v20 = vpop.xlane.xlu0 %5685  ;;  %v12720_v13 = vsel %vm4837_vm2, 1, %v14663_v8  ;;  %vm4868_vm13 = vmor %vm4484_vm4, %vm12731_vm15  ;;  %vm4454_vm2 = vcmp.lt.f32.partialorder %v12139_v1, %v15781_v48 }
 0x622   : > { %v5696_v6 = vpop.xlane.xlu1 %5695  ;;  %v6873_v51 = vadd.f32 %v6872_v25, %v6731_v35  ;;  %v5678_v58 = vadd.s32 %v5677_v42, %v5675_v57  ;;  %v5688_v28 = vcvt.f32.s32 %v5686_v20  ;;  %v6389_v25 = vcvt.s32.f32 %v6387_v17  ;;  %vm12763_vm3 = vmand %vm4582_vm0, %vm15477_vm9 }
 0x623   : > { %v5699_v57 = vcvt.f32.s32 %v5696_v6  ;;  %v6209_v17 = vcvt.s32.f32 %v6207_v9  ;;  %vm4853_vm11 = vmor %vm4469_vm6, %vm12744_vm10 }
 0x624   : > { %vm6603_vm5 = vcmp.eq.s32.totalorder %v5678_v58, %v12618_v34  ;;  %v5689_v41 = vshll.u32 %v5688_v28, 16  ;;  %6019 = vadd.xlane.f32.xlu0 %v6017_v60  ;;  %v6402_v60 = vcvt.s32.f32 %v6400_v3  ;;  %v6222_v3 = vcvt.s32.f32 %v6220_v50 }
 0x625   : > { %6033 = vadd.xlane.f32.xlu1 %v6030_v61  ;;  %v6732_v4 = vsel %vm6603_vm5, %v15555_v12, 0.0  ;;  %v5698_v59 = vpop.xlane.xlu0 %5697  ;;  %v6027_v12 = vand.u32 65535, %v12645_v46  ;;  %v6040_v61 = vshrl.u32 %v12720_v13, 16  ;;  %vm4838_vm5 = vmor %vm4454_vm2, %vm12763_vm3 }
 0x626   : > { %v5708_v44 = vpop.xlane.xlu1 %5707  ;;  %v6874_v24 = vadd.f32 %v6873_v51, %v6732_v4  ;;  %v5690_v56 = vadd.s32 %v5689_v41, %v5687_v10  ;;  %v5700_v37 = vcvt.f32.s32 %v5698_v59  ;;  %v12774_v41 = vsel %vm4868_vm13, 1, %v14663_v8  ;;  %v15789_v4 = vld [vmem:[#allocation271_spill] sm:$0xff] }
 0x627   : > { %v6029_v10 = vcvt.s32.f32 %v6027_v12  ;;  %v6042_v9 = vcvt.s32.f32 %v6040_v61  ;;  %vm4613_vm4 = vcmp.eq.f32.partialorder %v12313_v55, %v15789_v4  ;;  %v6412_v31 = vshrl.u32 %v12774_v41, 16  ;;  %v15790_v12 = vld [vmem:[#allocation241_spill] sm:$0xff] }
 0x628   : > { %vm6604_vm14 = vcmp.eq.s32.totalorder %v5690_v56, %v12618_v34  ;;  %v5701_v42 = vshll.u32 %v5700_v37, 16  ;;  %6391 = vadd.xlane.f32.xlu0 %v6389_v25  ;;  %vm4583_vm15 = vcmp.eq.f32.partialorder %v12139_v1, %v15790_v12  ;;  %v6219_v61 = vand.u32 65535, %v12712_v45  ;;  %vm12806_vm13 = vmand %vm4613_vm4, %vm15777_vm8 }
 0x629   : > { %6405 = vadd.xlane.f32.xlu1 %v6402_v60  ;;  %v6733_v35 = vsel %vm6604_vm14, %v15559_v62, 0.0  ;;  %v5710_v20 = vpop.xlane.xlu0 %5709  ;;  %v5711_v62 = vcvt.f32.s32 %v5708_v44  ;;  %v12787_v44 = vsel %vm4853_vm11, 1, %v14663_v8  ;;  %vm4485_vm14 = vcmp.lt.f32.partialorder %v12313_v55, %v15789_v4 }
 0x62a   : > { %v5720_v6 = vpop.xlane.xlu1 %5719  ;;  %v6875_v51 = vadd.f32 %v6874_v24, %v6733_v35  ;;  %v5702_v58 = vadd.s32 %v5701_v42, %v5699_v57  ;;  %v5712_v28 = vcvt.f32.s32 %v5710_v20  ;;  %v6399_v24 = vand.u32 65535, %v12699_v16  ;;  %v15791_v57 = vld [vmem:[#allocation256_spill] sm:$0xff]  ;;  %vm4869_vm11 = vmor %vm4485_vm14, %vm12806_vm13 }
 0x62b   : > { %vm4598_vm6 = vcmp.eq.f32.partialorder %v12203_v21, %v15791_v57  ;;  %v5723_v16 = vcvt.f32.s32 %v5720_v6  ;;  %vm4470_vm2 = vcmp.lt.f32.partialorder %v12203_v21, %v15791_v57 }
 0x62c   : > { %vm6605_vm0 = vcmp.eq.s32.totalorder %v5702_v58, %v12618_v34  ;;  %v5713_v18 = vshll.u32 %v5712_v28, 16  ;;  %6211 = vadd.xlane.f32.xlu0 %v6209_v17  ;;  %v6401_v17 = vcvt.s32.f32 %v6399_v24  ;;  %vm12819_vm8 = vmand %vm4598_vm6, %vm15477_vm9  ;;  %v6221_v24 = vcvt.s32.f32 %v6219_v61 }
 0x62d   : > { %6225 = vadd.xlane.f32.xlu1 %v6222_v3  ;;  %v6734_v59 = vsel %vm6605_vm0, %v15564_v0, 0.0  ;;  %v5722_v25 = vpop.xlane.xlu0 %5721  ;;  %v12795_v0 = vsel %vm4838_vm5, 1, %v14663_v8  ;;  %v6414_v3 = vcvt.s32.f32 %v6412_v31  ;;  %vm4455_vm0 = vcmp.lt.f32.partialorder %v12139_v1, %v15790_v12  ;;  %vm12838_vm5 = vmand %vm4583_vm15, %vm15480_vm7 }
 0x62e   : > { %v5732_v50 = vpop.xlane.xlu1 %5731  ;;  %v6876_v56 = vadd.f32 %v6875_v51, %v6734_v59  ;;  %v5714_v37 = vadd.s32 %v5713_v18, %v5711_v62  ;;  %v5724_v60 = vcvt.f32.s32 %v5722_v25  ;;  %v6232_v51 = vshrl.u32 %v12787_v44, 16  ;;  %vm4854_vm4 = vmor %vm4470_vm2, %vm12819_vm8 }
 0x62f   : > { %v6052_v18 = vshrl.u32 %v12795_v0, 16  ;;  %vm4839_vm6 = vmor %vm4455_vm0, %vm12838_vm5 }
 0x630   : > { %vm6606_vm10 = vcmp.eq.s32.totalorder %v5714_v37, %v12618_v34  ;;  %v5725_v42 = vshll.u32 %v5724_v60, 16  ;;  %6031 = vadd.xlane.f32.xlu0 %v6029_v10  ;;  %v5735_v10 = vcvt.f32.s32 %v5732_v50  ;;  %v6234_v31 = vcvt.s32.f32 %v6232_v51 }
 0x631   : > { %6045 = vadd.xlane.f32.xlu1 %v6042_v9  ;;  %v6735_v35 = vsel %vm6606_vm10, %v15565_v7, 0.0  ;;  %v5734_v20 = vpop.xlane.xlu0 %5733  ;;  %v6039_v7 = vand.u32 65535, %v12720_v13  ;;  %v15798_v9 = vld [vmem:[#allocation214_spill] sm:$0xff]  ;;  %v6054_v61 = vcvt.s32.f32 %v6052_v18  ;;  %v12868_v18 = vsel %vm4839_vm6, 1, %v14663_v8 }
 0x632   : > { %v5744_v6 = vpop.xlane.xlu1 %5743  ;;  %v6877_v45 = vadd.f32 %v6876_v56, %v6735_v35  ;;  %v5726_v58 = vadd.s32 %v5725_v42, %v5723_v16  ;;  %v5736_v28 = vcvt.f32.s32 %v5734_v20  ;;  %v12849_v42 = vsel %vm4869_vm11, 1, %v14663_v8  ;;  %v15799_v20 = vld [vmem:[#allocation272_spill] sm:$0xff] }
 0x633   : > { %v6041_v16 = vcvt.s32.f32 %v6039_v7  ;;  %v5747_v46 = vcvt.f32.s32 %v5744_v6  ;;  %vm4614_vm10 = vcmp.eq.f32.partialorder %v12313_v55, %v15799_v20  ;;  %v12862_v6 = vsel %vm4854_vm4, 1, %v14663_v8 }
 0x634   : > { %vm6607_vm3 = vcmp.eq.s32.totalorder %v5726_v58, %v12618_v34  ;;  %v5737_v62 = vshll.u32 %v5736_v28, 16  ;;  %6403 = vadd.xlane.f32.xlu0 %v6401_v17  ;;  %v15800_v17 = vld [vmem:[#allocation213_spill] sm:$0xff]  ;;  %v6411_v28 = vand.u32 65535, %v12774_v41  ;;  %vm4486_vm13 = vcmp.lt.f32.partialorder %v12313_v55, %v15799_v20  ;;  %vm12874_vm2 = vmand %vm4614_vm10, %vm15477_vm9 }
 0x635   : > { %6417 = vadd.xlane.f32.xlu1 %v6414_v3  ;;  %v6736_v59 = vsel %vm6607_vm3, %v15798_v9, 0.0  ;;  %v5746_v25 = vpop.xlane.xlu0 %5745  ;;  %vm12891_vm3 = vmor %vm4486_vm13, %vm12874_vm2 }
 0x636   : > { %v5756_v50 = vpop.xlane.xlu1 %5755  ;;  %v6878_v56 = vadd.f32 %v6877_v45, %v6736_v59  ;;  %v5738_v37 = vadd.s32 %v5737_v62, %v5735_v10  ;;  %v5748_v60 = vcvt.f32.s32 %v5746_v25  ;;  %v6424_v10 = vshrl.u32 %v12849_v42, 16  ;;  %v15801_v62 = vld [vmem:[#allocation257_spill] sm:$0xff]  ;;  %v15804_v59 = vld [vmem:[#allocation216_spill] sm:$0xff] }
 0x637   : > { %vm4599_vm14 = vcmp.eq.f32.partialorder %v12203_v21, %v15801_v62  ;;  %v5759_v13 = vcvt.f32.s32 %v5756_v50  ;;  %v6051_v50 = vand.u32 65535, %v12795_v0  ;;  %vm4471_vm11 = vcmp.lt.f32.partialorder %v12203_v21, %v15801_v62 }
 0x638   : > { %vm6608_vm15 = vcmp.eq.s32.totalorder %v5738_v37, %v12618_v34  ;;  %v5749_v35 = vshll.u32 %v5748_v60, 16  ;;  %6223 = vadd.xlane.f32.xlu0 %v6221_v24  ;;  %v6413_v37 = vcvt.s32.f32 %v6411_v28  ;;  %v6231_v60 = vand.u32 65535, %v12787_v44  ;;  %vm12902_vm0 = vmand %vm4599_vm14, %vm15480_vm7  ;;  %v15810_v28 = vld [vmem:[#allocation215_spill] sm:$0xff] }
 0x639   : > { %6237 = vadd.xlane.f32.xlu1 %v6234_v31  ;;  %v6737_v51 = vsel %vm6608_vm15, %v15800_v17, 0.0  ;;  %v5758_v45 = vpop.xlane.xlu0 %5757  ;;  %v6244_v31 = vshrl.u32 %v12862_v6, 16  ;;  %v6426_v17 = vcvt.s32.f32 %v6424_v10  ;;  %vm12929_vm6 = vmor %vm4471_vm11, %vm12902_vm0 }
 0x63a   : > { %v5768_v58 = vpop.xlane.xlu1 %5767  ;;  %v6879_v3 = vadd.f32 %v6878_v56, %v6737_v51  ;;  %v5750_v19 = vadd.s32 %v5749_v35, %v5747_v46  ;;  %v5760_v7 = vcvt.f32.s32 %v5758_v45  ;;  %v15805_v51 = vld [vmem:[#allocation242_spill] sm:$0xff]  ;;  %v6233_v10 = vcvt.s32.f32 %v6231_v60 }
 0x63b   : > { %vm4584_vm9 = vcmp.eq.f32.partialorder %v12139_v1, %v15805_v51  ;;  %vm4456_vm4 = vcmp.lt.f32.partialorder %v12139_v1, %v15805_v51  ;;  %v6246_v41 = vcvt.s32.f32 %v6244_v31 }
 0x63c   : > { %vm6609_vm8 = vcmp.eq.s32.totalorder %v5750_v19, %v12618_v34  ;;  %v5761_v9 = vshll.u32 %v5760_v7, 16  ;;  %6043 = vadd.xlane.f32.xlu0 %v6041_v16  ;;  %v6064_v16 = vshrl.u32 %v12868_v18, 16  ;;  %vm12915_vm15 = vmand %vm4584_vm9, %vm15446_vm1 }
 0x63d   : > { %6057 = vadd.xlane.f32.xlu1 %v6054_v61  ;;  %v6738_v25 = vsel %vm6609_vm8, %v15804_v59, 0.0  ;;  %v5770_v24 = vpop.xlane.xlu0 %5769  ;;  %v5771_v61 = vcvt.f32.s32 %v5768_v58  ;;  %vm4840_vm2 = vmor %vm4456_vm4, %vm12915_vm15 }
 0x63e   : > { %v5780_v56 = vpop.xlane.xlu1 %5779  ;;  %v6880_v29 = vadd.f32 %v6879_v3, %v6738_v25  ;;  %v5762_v46 = vadd.s32 %v5761_v9, %v5759_v13  ;;  %v5772_v35 = vcvt.f32.s32 %v5770_v24  ;;  %v12922_v24 = vsel %vm12891_vm3, 1, %v14663_v8 }
 0x63f   : > { %v6066_v60 = vcvt.s32.f32 %v6064_v16 }
 0x640   : > { %vm6610_vm5 = vcmp.eq.s32.totalorder %v5762_v46, %v12618_v34  ;;  %v5773_v45 = vshll.u32 %v5772_v35, 16  ;;  %6415 = vadd.xlane.f32.xlu0 %v6413_v37  ;;  %v6053_v37 = vcvt.s32.f32 %v6051_v50  ;;  %v15816_v46 = vld [vmem:[#allocation273_spill] sm:$0xff]  ;;  %v15818_v50 = vld [vmem:[#allocation218_spill] sm:$0xff] }
 0x641   : > { %6429 = vadd.xlane.f32.xlu1 %v6426_v17  ;;  %v6739_v3 = vsel %vm6610_vm5, %v15810_v28, 0.0  ;;  %v5782_v19 = vpop.xlane.xlu0 %5781  ;;  %vm4615_vm10 = vcmp.eq.f32.partialorder %v12313_v55, %v15816_v46  ;;  %v15817_v17 = vld [vmem:[#allocation258_spill] sm:$0xff]  ;;  %vm4487_vm9 = vcmp.lt.f32.partialorder %v12313_v55, %v15816_v46 }
 0x642   : > { %v5792_v7 = vpop.xlane.xlu1 %5791  ;;  %v6881_v58 = vadd.f32 %v6880_v29, %v6739_v3  ;;  %v5774_v59 = vadd.s32 %v5773_v45, %v5771_v61  ;;  %v5784_v25 = vcvt.f32.s32 %v5782_v19  ;;  %v5783_v29 = vcvt.f32.s32 %v5780_v56  ;;  %vm12960_vm3 = vmand %vm4615_vm10, %vm15480_vm7 }
 0x643   : > { %vm4600_vm13 = vcmp.eq.f32.partialorder %v12203_v21, %v15817_v17  ;;  %v6423_v61 = vand.u32 65535, %v12849_v42  ;;  %v6436_v45 = vshrl.u32 %v12922_v24, 16  ;;  %v12949_v19 = vsel %vm12929_vm6, 1, %v14663_v8  ;;  %vm12986_vm5 = vmor %vm4487_vm9, %vm12960_vm3 }
 0x644   : > { %vm6611_vm14 = vcmp.eq.s32.totalorder %v5774_v59, %v12618_v34  ;;  %v5785_v35 = vshll.u32 %v5784_v25, 16  ;;  %6235 = vadd.xlane.f32.xlu0 %v6233_v10  ;;  %v15819_v10 = vld [vmem:[#allocation243_spill] sm:$0xff]  ;;  %v12966_v25 = vsel %vm4840_vm2, 1, %v14663_v8  ;;  %vm4472_vm11 = vcmp.lt.f32.partialorder %v12203_v21, %v15817_v17  ;;  %vm12975_vm7 = vmand %vm4600_vm13, %vm15446_vm1 }
 0x645   : > { %6249 = vadd.xlane.f32.xlu1 %v6246_v41  ;;  %v6740_v16 = vsel %vm6611_vm14, %v15818_v50, 0.0  ;;  %v5794_v44 = vpop.xlane.xlu0 %5793  ;;  %vm4585_vm8 = vcmp.eq.f32.partialorder %v12139_v1, %v15819_v10  ;;  %v6243_v41 = vand.u32 65535, %v12862_v6  ;;  %v6425_v31 = vcvt.s32.f32 %v6423_v61  ;;  %vm4856_vm6 = vmor %vm4472_vm11, %vm12975_vm7 }
 0x646   : > { %v5804_v0 = vpop.xlane.xlu1 %5803  ;;  %v6882_v56 = vadd.f32 %v6881_v58, %v6740_v16  ;;  %v5786_v28 = vadd.s32 %v5785_v35, %v5783_v29  ;;  %v5796_v3 = vcvt.f32.s32 %v5794_v44  ;;  %v5795_v58 = vcvt.f32.s32 %v5792_v7  ;;  %vm13005_vm10 = vmand %vm4585_vm8, %vm15660_vm12 }
 0x647   : > { %vm4457_vm4 = vcmp.lt.f32.partialorder %v12139_v1, %v15819_v10  ;;  %v6245_v44 = vcvt.s32.f32 %v6243_v41  ;;  %v6063_v61 = vand.u32 65535, %v12868_v18  ;;  %v15828_v41 = vld [vmem:[#allocation217_spill] sm:$0xff]  ;;  %v13019_v62 = vsel %vm4856_vm6, 1, %v14663_v8  ;;  %v15832_v18 = vld [vmem:[#allocation244_spill] sm:$0xff] }
 0x648   : > { %v6883_v9 = vrot.slane %v6882_v56, 4  ;;  %v5797_v59 = vshll.u32 %v5796_v3, 16  ;;  %6055 = vadd.xlane.f32.xlu0 %v6053_v37  ;;  %v6438_v37 = vcvt.s32.f32 %v6436_v45  ;;  %vm6612_vm0 = vcmp.eq.s32.totalorder %v5786_v28, %v12618_v34  ;;  %vm4841_vm13 = vmor %vm4457_vm4, %vm13005_vm10 }
 0x649   : > { %6069 = vadd.xlane.f32.xlu1 %v6066_v60  ;;  %v5806_v6 = vpop.xlane.xlu0 %5805  ;;  %v6256_v60 = vshrl.u32 %v12949_v19, 16  ;;  %v6076_v45 = vshrl.u32 %v12966_v25, 16  ;;  %v5807_v3 = vcvt.f32.s32 %v5804_v0  ;;  %v6741_v0 = vsel %vm6612_vm0, %v15828_v41, 0.0 }
 0x64a   : > { %v5816_v7 = vpop.xlane.xlu1 %5815  ;;  %v6884_v29 = vadd.f32 %v6883_v9, %v6882_v56  ;;  %v5798_v35 = vadd.s32 %v5797_v59, %v5795_v58  ;;  %v5808_v50 = vcvt.f32.s32 %v5806_v6  ;;  %v15829_v9 = vld [vmem:[#allocation220_spill] sm:$0xff]  ;;  %v6065_v46 = vcvt.s32.f32 %v6063_v61 }
 0x64b   : > { %v6258_v6 = vcvt.s32.f32 %v6256_v60  ;;  %v6078_v51 = vcvt.s32.f32 %v6076_v45  ;;  %v5819_v41 = vcvt.f32.s32 %v5816_v7  ;;  %v15830_v60 = vld [vmem:[#allocation274_spill] sm:$0xff]  ;;  %vm4586_vm8 = vcmp.eq.f32.partialorder %v12139_v1, %v15832_v18 }
 0x64c   : > { %v6885_v56 = vrot.slane %v6884_v29, 2  ;;  %vm6613_vm15 = vcmp.eq.s32.totalorder %v5798_v35, %v12618_v34  ;;  %v5809_v42 = vshll.u32 %v5808_v50, 16  ;;  %6427 = vadd.xlane.f32.xlu0 %v6425_v31  ;;  %v13016_v31 = vsel %vm12986_vm5, 1, %v14663_v8 }
 0x64d   : > { %6441 = vadd.xlane.f32.xlu1 %v6438_v37  ;;  %v6742_v58 = vsel %vm6613_vm15, %v15829_v9, 0.0  ;;  %v5818_v59 = vpop.xlane.xlu0 %5817  ;;  %vm4616_vm2 = vcmp.eq.f32.partialorder %v12313_v55, %v15830_v60  ;;  %v6448_v7 = vshrl.u32 %v13016_v31, 16  ;;  %vm15834_vm11 = vcmask 1043459  }
 0x64e   : > { %v5828_v33 = vpop.xlane.xlu1 %5827  ;;  %v6886_v37 = vadd.f32 %v6885_v56, %v6884_v29  ;;  %v6889_v35 = vadd.f32 %v6742_v58, %v6741_v0  ;;  %v5810_v50 = vadd.s32 %v5809_v42, %v5807_v3  ;;  %v5820_v17 = vcvt.f32.s32 %v5818_v59  ;;  %v15831_v29 = vld [vmem:[#allocation219_spill] sm:$0xff]  ;;  %vm13052_vm0 = vmand %vm4616_vm2, %vm15446_vm1 }
 0x64f   : > { %v6435_v56 = vand.u32 65535, %v12922_v24  ;;  %v15833_v0 = vld [vmem:[#allocation259_spill] sm:$0xff]  ;;  %v6255_v58 = vand.u32 65535, %v12949_v19  ;;  %v13038_v59 = vsel %vm4841_vm13, 1, %v14663_v8  ;;  %v5831_v24 = vcvt.f32.s32 %v5828_v33  ;;  %v15838_v33 = vld [vmem:[#allocation222_spill] sm:$0xff] }
 0x650   : > { %v6887_v28 = vrot.slane %v6886_v37, 1  ;;  %vm6614_vm14 = vcmp.eq.s32.totalorder %v5810_v50, %v12618_v34  ;;  %v5821_v9 = vshll.u32 %v5820_v17, 16  ;;  %6247 = vadd.xlane.f32.xlu0 %v6245_v44  ;;  %vm4601_vm9 = vcmp.eq.f32.partialorder %v12203_v21, %v15833_v0 }
 0x651   : > { %6261 = vadd.xlane.f32.xlu1 %v6258_v6  ;;  %v6743_v16 = vsel %vm6614_vm14, %v15831_v29, 0.0  ;;  %v5830_v61 = vpop.xlane.xlu0 %5829  ;;  %vm4488_vm7 = vcmp.lt.f32.partialorder %v12313_v55, %v15830_v60  ;;  %v6437_v50 = vcvt.s32.f32 %v6435_v56  ;;  %v6450_v29 = vcvt.s32.f32 %v6448_v7  ;;  %vm13065_vm1 = vmand %vm4601_vm9, %vm15660_vm12 }
 0x652   : > { %v5840_v45 = vpop.xlane.xlu1 %5839  ;;  %v6888_v17 = vadd.f32 %v6887_v28, %v6886_v37  ;;  %v6890_v44 = vadd.f32 %v6889_v35, %v6743_v16  ;;  %v5822_v3 = vadd.s32 %v5821_v9, %v5819_v41  ;;  %v5832_v42 = vcvt.f32.s32 %v5830_v61  ;;  %vm4872_vm15 = vmor %vm4488_vm7, %vm13052_vm0 }
 0x653   : > { %vm4473_vm5 = vcmp.lt.f32.partialorder %v12203_v21, %v15833_v0  ;;  %v6075_v16 = vand.u32 65535, %v12966_v25  ;;  %v5843_v61 = vcvt.f32.s32 %v5840_v45  ;;  %v6088_v7 = vshrl.u32 %v13038_v59, 16  ;;  %v15844_v45 = vld [vmem:[#allocation221_spill] sm:$0xff] }
 0x654   : > { %vm6615_vm3 = vcmp.eq.s32.totalorder %v5822_v3, %v12618_v34  ;;  %v5833_v6 = vshll.u32 %v5832_v42, 16  ;;  %6067 = vadd.xlane.f32.xlu0 %v6065_v46  ;;  %v13043_v37 = vsel %vm15834_vm11, %v6888_v17, %v12628_v32  ;;  %v6268_v32 = vshrl.u32 %v13019_v62, 16  ;;  %vm4857_vm13 = vmor %vm4473_vm5, %vm13065_vm1 }
 0x655   : > { %6081 = vadd.xlane.f32.xlu1 %v6078_v51  ;;  %15835 = vst [vmem:[#allocation174_spill] sm:$0xff] %v13043_v37  ;;  %v6744_v35 = vsel %vm6615_vm3, %v15838_v33, 0.0  ;;  %v5842_v46 = vpop.xlane.xlu0 %5841  ;;  %vm4458_vm6 = vcmp.lt.f32.partialorder %v12139_v1, %v15832_v18  ;;  %vm15841_vm10 = vnez %v14689_v22  ;;  %v6257_v42 = vcvt.s32.f32 %v6255_v58 }
 0x656   : > { %v5852_v51 = vpop.xlane.xlu1 %5851  ;;  %v6891_v28 = vadd.f32 %v6890_v44, %v6744_v35  ;;  %v5834_v41 = vadd.s32 %v5833_v6, %v5831_v24  ;;  %v5844_v9 = vcvt.f32.s32 %v5842_v46  ;;  %vm13084_vm14 = vmand %vm4586_vm8, %vm15841_vm10  ;;  %v6270_v33 = vcvt.s32.f32 %v6268_v32  ;;  %v15845_v32 = vld [vmem:[#allocation275_spill] sm:$0xff] }
 0x657   : > { %v6077_v35 = vcvt.s32.f32 %v6075_v16  ;;  %v13095_v46 = vsel %vm4872_vm15, 1, %v14663_v8  ;;  %v6090_v58 = vcvt.s32.f32 %v6088_v7  ;;  %vm4842_vm8 = vmor %vm4458_vm6, %vm13084_vm14  ;;  %vm4617_vm9 = vcmp.eq.f32.partialorder %v12313_v55, %v15845_v32 }
 0x658   : > { %vm6616_vm4 = vcmp.eq.s32.totalorder %v5834_v41, %v12618_v34  ;;  %v5845_v56 = vshll.u32 %v5844_v9, 16  ;;  %6439 = vadd.xlane.f32.xlu0 %v6437_v50  ;;  %v5855_v50 = vcvt.f32.s32 %v5852_v51  ;;  %v6447_v16 = vand.u32 65535, %v13016_v31  ;;  %vm13127_vm5 = vmand %vm4617_vm9, %vm15660_vm12 }
 0x659   : > { %6453 = vadd.xlane.f32.xlu1 %v6450_v29  ;;  %v6745_v17 = vsel %vm6616_vm4, %v15844_v45, 0.0  ;;  %v5854_v44 = vpop.xlane.xlu0 %5853  ;;  %v13108_v51 = vsel %vm4857_vm13, 1, %v14663_v8  ;;  %v6460_v25 = vshrl.u32 %v13095_v46, 16  ;;  %v15847_v45 = vld [vmem:[#allocation245_spill] sm:$0xff]  ;;  %vm4489_vm0 = vcmp.lt.f32.partialorder %v12313_v55, %v15845_v32 }
 0x65a   : > { %v5864_v3 = vpop.xlane.xlu1 %5863  ;;  %v6892_v24 = vadd.f32 %v6891_v28, %v6745_v17  ;;  %v5846_v6 = vadd.s32 %v5845_v56, %v5843_v61  ;;  %v5856_v19 = vcvt.f32.s32 %v5854_v44  ;;  %v15846_v28 = vld [vmem:[#allocation223_spill] sm:$0xff]  ;;  %vm4587_vm3 = vcmp.eq.f32.partialorder %v12139_v1, %v15847_v45  ;;  %v15848_v17 = vld [vmem:[#allocation260_spill] sm:$0xff]  ;;  %vm4873_vm15 = vmor %vm4489_vm0, %vm13127_vm5 }
 0x65b   : > { %vm4602_vm11 = vcmp.eq.f32.partialorder %v12203_v21, %v15848_v17  ;;  %v13116_v44 = vsel %vm4842_vm8, 1, %v14663_v8  ;;  %v5867_v31 = vcvt.f32.s32 %v5864_v3  ;;  %vm4474_vm1 = vcmp.lt.f32.partialorder %v12203_v21, %v15848_v17 }
 0x65c   : > { %vm6617_vm2 = vcmp.eq.s32.totalorder %v5846_v6, %v12618_v34  ;;  %v5857_v41 = vshll.u32 %v5856_v19, 16  ;;  %6259 = vadd.xlane.f32.xlu0 %v6257_v42  ;;  %v15851_v19 = vld [vmem:[#allocation24_spill] sm:$0xff]  ;;  %vm13140_vm12 = vmand %vm4602_vm11, %vm15841_vm10  ;;  %vm4459_vm6 = vcmp.lt.f32.partialorder %v12139_v1, %v15847_v45  ;;  %vm15854_vm14 = vnez %v14692_v36 }
 0x65d   : > { %6273 = vadd.xlane.f32.xlu1 %v6270_v33  ;;  %v6746_v9 = vsel %vm6617_vm2, %v15846_v28, 0.0  ;;  %v5866_v29 = vpop.xlane.xlu0 %5865  ;;  %vm13159_vm13 = vmand %vm4587_vm3, %vm15854_vm14 }
 0x65e   : > { %v5876_v13 = vpop.xlane.xlu1 %5875  ;;  %v6893_v61 = vadd.f32 %v6892_v24, %v6746_v9  ;;  %v5858_v56 = vadd.s32 %v5857_v41, %v5855_v50  ;;  %v5868_v7 = vcvt.f32.s32 %v5866_v29  ;;  %v6267_v24 = vand.u32 65535, %v13019_v62  ;;  %vm4858_vm2 = vmor %vm4474_vm1, %vm13140_vm12 }
 0x65f   : > { %v6280_v41 = vshrl.u32 %v13108_v51, 16  ;;  %v6462_v9 = vcvt.s32.f32 %v6460_v25  ;;  %v6087_v29 = vand.u32 65535, %v13038_v59  ;;  %vm4843_vm9 = vmor %vm4459_vm6, %vm13159_vm13  ;;  %vm15867_vm13 = vnez %v14696_v38 }
 0x660   : > { %vm6618_vm7 = vcmp.eq.s32.totalorder %v5858_v56, %v12618_v34  ;;  %v5869_v42 = vshll.u32 %v5868_v7, 16  ;;  %6079 = vadd.xlane.f32.xlu0 %v6077_v35  ;;  %v6449_v35 = vcvt.s32.f32 %v6447_v16  ;;  %v5879_v16 = vcvt.f32.s32 %v5876_v13  ;;  %v15857_v13 = vld [vmem:[#allocation225_spill] sm:$0xff] }
 0x661   : > { %6093 = vadd.xlane.f32.xlu1 %v6090_v58  ;;  %v6747_v33 = vsel %vm6618_vm7, %v15851_v19, 0.0  ;;  %v5878_v3 = vpop.xlane.xlu0 %5877  ;;  %v6100_v56 = vshrl.u32 %v13116_v44, 16 }
 0x662   : > { %v5888_v50 = vpop.xlane.xlu1 %5887  ;;  %v6894_v62 = vadd.f32 %v6893_v61, %v6747_v33  ;;  %v5870_v58 = vadd.s32 %v5869_v42, %v5867_v31  ;;  %v5880_v28 = vcvt.f32.s32 %v5878_v3  ;;  %v6269_v42 = vcvt.s32.f32 %v6267_v24 }
 0x663   : > { %v6282_v3 = vcvt.s32.f32 %v6280_v41  ;;  %v6102_v24 = vcvt.s32.f32 %v6100_v56  ;;  %v15858_v41 = vld [vmem:[#allocation276_spill] sm:$0xff] }
 0x664   : > { %vm6619_vm4 = vcmp.eq.s32.totalorder %v5870_v58, %v12618_v34  ;;  %v5881_v61 = vshll.u32 %v5880_v28, 16  ;;  %6451 = vadd.xlane.f32.xlu0 %v6449_v35  ;;  %v6089_v35 = vcvt.s32.f32 %v6087_v29  ;;  %v13170_v58 = vsel %vm4873_vm15, 1, %v14663_v8 }
 0x665   : > { %6465 = vadd.xlane.f32.xlu1 %v6462_v9  ;;  %v6748_v7 = vsel %vm6619_vm4, %v15857_v13, 0.0  ;;  %v5890_v25 = vpop.xlane.xlu0 %5889  ;;  %v5891_v28 = vcvt.f32.s32 %v5888_v50  ;;  %vm4618_vm3 = vcmp.eq.f32.partialorder %v12313_v55, %v15858_v41  ;;  %v13183_v50 = vsel %vm4858_vm2, 1, %v14663_v8 }
 0x666   : > { %v5900_v31 = vpop.xlane.xlu1 %5899  ;;  %v6895_v6 = vadd.f32 %v6894_v62, %v6748_v7  ;;  %v5882_v19 = vadd.s32 %v5881_v61, %v5879_v16  ;;  %v5892_v33 = vcvt.f32.s32 %v5890_v25  ;;  %v15859_v62 = vld [vmem:[#allocation224_spill] sm:$0xff]  ;;  %v6459_v61 = vand.u32 65535, %v13095_v46  ;;  %v15860_v25 = vld [vmem:[#allocation246_spill] sm:$0xff]  ;;  %vm13202_vm1 = vmand %vm4618_vm3, %vm15841_vm10 }
 0x667   : > { %v6472_v59 = vshrl.u32 %v13170_v58, 16  ;;  %vm4588_vm11 = vcmp.eq.f32.partialorder %v12139_v1, %v15860_v25  ;;  %v5903_v46 = vcvt.f32.s32 %v5900_v31  ;;  %vm4490_vm5 = vcmp.lt.f32.partialorder %v12313_v55, %v15858_v41  ;;  %v15908_v41 = vld [vmem:[#allocation248_spill] sm:$0xff] }
 0x668   : > { %vm6620_vm8 = vcmp.eq.s32.totalorder %v5882_v19, %v12618_v34  ;;  %v5893_v9 = vshll.u32 %v5892_v33, 16  ;;  %6271 = vadd.xlane.f32.xlu0 %v6269_v42  ;;  %v15861_v42 = vld [vmem:[#allocation261_spill] sm:$0xff]  ;;  %v13191_v19 = vsel %vm4843_vm9, 1, %v14663_v8  ;;  %vm4874_vm15 = vmor %vm4490_vm5, %vm13202_vm1  ;;  %vm4460_vm6 = vcmp.lt.f32.partialorder %v12139_v1, %v15860_v25 }
 0x669   : > { %6285 = vadd.xlane.f32.xlu1 %v6282_v3  ;;  %v6749_v26 = vsel %vm6620_vm8, %v15859_v62, 0.0  ;;  %v5902_v29 = vpop.xlane.xlu0 %5901  ;;  %vm4603_vm7 = vcmp.eq.f32.partialorder %v12203_v21, %v15861_v42  ;;  %vm4475_vm12 = vcmp.lt.f32.partialorder %v12203_v21, %v15861_v42  ;;  %vm13234_vm2 = vmand %vm4588_vm11, %vm15867_vm13  ;;  %v15898_v42 = vld [vmem:[#allocation263_spill] sm:$0xff] }
 0x66a   : > { %v5912_v16 = vpop.xlane.xlu1 %5911  ;;  %v6896_v13 = vadd.f32 %v6895_v6, %v6749_v26  ;;  %v5894_v56 = vadd.s32 %v5893_v9, %v5891_v28  ;;  %v5904_v7 = vcvt.f32.s32 %v5902_v29  ;;  %v6279_v6 = vand.u32 65535, %v13108_v51  ;;  %v15864_v28 = vld [vmem:[#allocation227_spill] sm:$0xff]  ;;  %vm13215_vm10 = vmand %vm4603_vm7, %vm15854_vm14 }
 0x66b   : > { %vm4859_vm8 = vmor %vm4475_vm12, %vm13215_vm10 }
 0x66c   : > { %vm6621_vm0 = vcmp.eq.s32.totalorder %v5894_v56, %v12618_v34  ;;  %v5905_v33 = vshll.u32 %v5904_v7, 16  ;;  %6091 = vadd.xlane.f32.xlu0 %v6089_v35  ;;  %v6461_v35 = vcvt.s32.f32 %v6459_v61  ;;  %v6474_v56 = vcvt.s32.f32 %v6472_v59  ;;  %vm4844_vm3 = vmor %vm4460_vm6, %vm13234_vm2 }
 0x66d   : > { %6105 = vadd.xlane.f32.xlu1 %v6102_v24  ;;  %v6750_v9 = vsel %vm6621_vm0, %v15864_v28, 0.0  ;;  %v5914_v31 = vpop.xlane.xlu0 %5913  ;;  %v6292_v24 = vshrl.u32 %v13183_v50, 16  ;;  %v6099_v61 = vand.u32 65535, %v13116_v44  ;;  %v6112_v59 = vshrl.u32 %v13191_v19, 16 }
 0x66e   : > { %v5924_v62 = vpop.xlane.xlu1 %5923  ;;  %v6897_v51 = vadd.f32 %v6896_v13, %v6750_v9  ;;  %v5906_v26 = vadd.s32 %v5905_v33, %v5903_v46  ;;  %v5916_v29 = vcvt.f32.s32 %v5914_v31  ;;  %v5915_v13 = vcvt.f32.s32 %v5912_v16  ;;  %v15870_v16 = vld [vmem:[#allocation226_spill] sm:$0xff] }
 0x66f   : > { %v6281_v28 = vcvt.s32.f32 %v6279_v6  ;;  %v6114_v6 = vcvt.s32.f32 %v6112_v59 }
 0x670   : > { %vm6622_vm4 = vcmp.eq.s32.totalorder %v5906_v26, %v12618_v34  ;;  %v5917_v7 = vshll.u32 %v5916_v29, 16  ;;  %6463 = vadd.xlane.f32.xlu0 %v6461_v35  ;;  %v6294_v26 = vcvt.s32.f32 %v6292_v24  ;;  %v6101_v29 = vcvt.s32.f32 %v6099_v61  ;;  %v15871_v24 = vld [vmem:[#allocation277_spill] sm:$0xff] }
 0x671   : > { %6477 = vadd.xlane.f32.xlu1 %v6474_v56  ;;  %v6751_v46 = vsel %vm6622_vm4, %v15870_v16, 0.0  ;;  %v5926_v33 = vpop.xlane.xlu0 %5925  ;;  %v13245_v56 = vsel %vm4874_vm15, 1, %v14663_v8  ;;  %v5927_v16 = vcvt.f32.s32 %v5924_v62  ;;  %vm4619_vm11 = vcmp.eq.f32.partialorder %v12313_v55, %v15871_v24 }
 0x672   : > { %v5936_v3 = vpop.xlane.xlu1 %5935  ;;  %v6898_v9 = vadd.f32 %v6897_v51, %v6751_v46  ;;  %v5918_v31 = vadd.s32 %v5917_v7, %v5915_v13  ;;  %v5928_v35 = vcvt.f32.s32 %v5926_v33  ;;  %v15872_v51 = vld [vmem:[#allocation229_spill] sm:$0xff]  ;;  %v6471_v7 = vand.u32 65535, %v13170_v58  ;;  %vm13272_vm1 = vmand %vm4619_vm11, %vm15854_vm14 }
 0x673   : > { %v13258_v62 = vsel %vm4859_vm8, 1, %v14663_v8  ;;  %v6484_v44 = vshrl.u32 %v13245_v56, 16  ;;  %vm4491_vm5 = vcmp.lt.f32.partialorder %v12313_v55, %v15871_v24  ;;  %vm15882_vm8 = vnez %v14699_v40  ;;  %v15889_v24 = vld [vmem:[#allocation173_spill] sm:$0xff] }
 0x674   : > { %vm6623_vm9 = vcmp.eq.s32.totalorder %v5918_v31, %v12618_v34  ;;  %v5929_v37 = vshll.u32 %v5928_v35, 16  ;;  %6283 = vadd.xlane.f32.xlu0 %v6281_v28  ;;  %v15873_v28 = vld [vmem:[#allocation262_spill] sm:$0xff]  ;;  %v13266_v31 = vsel %vm4844_vm3, 1, %v14663_v8  ;;  %vm13297_vm4 = vmor %vm4491_vm5, %vm13272_vm1 }
 0x675   : > { %6297 = vadd.xlane.f32.xlu1 %v6294_v26  ;;  %v6752_v22 = vsel %vm6623_vm9, %v15872_v51, 0.0  ;;  %v5938_v61 = vpop.xlane.xlu0 %5937  ;;  %vm4476_vm7 = vcmp.lt.f32.partialorder %v12203_v21, %v15873_v28  ;;  %vm4604_vm0 = vcmp.eq.f32.partialorder %v12203_v21, %v15873_v28  ;;  %v6473_v51 = vcvt.s32.f32 %v6471_v7  ;;  %v15888_v28 = vld [vmem:[#allocation233_spill] sm:$0xff] }
 0x676   : > { %v5948_v13 = vpop.xlane.xlu1 %5947  ;;  %v6899_v46 = vadd.f32 %v6898_v9, %v6752_v22  ;;  %v5930_v59 = vadd.s32 %v5929_v37, %v5927_v16  ;;  %v5940_v33 = vcvt.f32.s32 %v5938_v61  ;;  %v5939_v37 = vcvt.f32.s32 %v5936_v3  ;;  %vm13285_vm14 = vmand %vm4604_vm0, %vm15867_vm13 }
 0x677   : > { %v6291_v22 = vand.u32 65535, %v13183_v50  ;;  %v6304_v61 = vshrl.u32 %v13258_v62, 16  ;;  %v6111_v50 = vand.u32 65535, %v13191_v19  ;;  %v6124_v19 = vshrl.u32 %v13266_v31, 16  ;;  %vm4860_vm6 = vmor %vm4476_vm7, %vm13285_vm14 }
 0x678   : > { %vm6624_vm12 = vcmp.eq.s32.totalorder %v5930_v59, %v12618_v34  ;;  %v5941_v9 = vshll.u32 %v5940_v33, 16  ;;  %6103 = vadd.xlane.f32.xlu0 %v6101_v29  ;;  %v5951_v59 = vcvt.f32.s32 %v5948_v13  ;;  %v13335_v36 = vsel %vm4860_vm6, 1, %v14663_v8 }
 0x679   : > { %6117 = vadd.xlane.f32.xlu1 %v6114_v6  ;;  %v6753_v35 = vsel %vm6624_vm12, %v15669_v2, 0.0  ;;  %v5950_v26 = vpop.xlane.xlu0 %5949  ;;  %v6486_v2 = vcvt.s32.f32 %v6484_v44  ;;  %v15878_v6 = vld [vmem:[#allocation247_spill] sm:$0xff]  ;;  %vm4574_vm0 = vcmp.eq.f32.partialorder %v15889_v24, %v15888_v28  ;;  %vm4446_vm12 = vcmp.lt.f32.partialorder %v15889_v24, %v15888_v28 }
 0x67a   : > { %v5974_v16 = vpop.xlane.xlu1 %5973  ;;  %v6900_v34 = vadd.f32 %v6899_v46, %v6753_v35  ;;  %v5942_v3 = vadd.s32 %v5941_v9, %v5939_v37  ;;  %v5952_v29 = vcvt.f32.s32 %v5950_v26  ;;  %vm4589_vm10 = vcmp.eq.f32.partialorder %v12139_v1, %v15878_v6  ;;  %v13304_v46 = vld [vmem:[%s14125_s5] ss:$0 sm:$0xff] }
 0x67b   : > { %v6293_v9 = vcvt.s32.f32 %v6291_v22  ;;  %v6306_v35 = vcvt.s32.f32 %v6304_v61  ;;  %vm4461_vm2 = vcmp.lt.f32.partialorder %v12139_v1, %v15878_v6  ;;  %vm13329_vm9 = vmand %vm4589_vm10, %vm15882_vm8  ;;  %v6126_v61 = vcvt.s32.f32 %v6124_v19  ;;  %v15897_v6 = vld [vmem:[#allocation59_spill] sm:$0xff] }
 0x67c   : > { %vm6625_vm15 = vcmp.eq.s32.totalorder %v5942_v3, %v13304_v46  ;;  %v5953_v33 = vshll.u32 %v5952_v29, 16  ;;  %6475 = vadd.xlane.f32.xlu0 %v6473_v51  ;;  %v5976_v3 = vcvt.f32.s32 %v5974_v16  ;;  %v13319_v51 = vsel %vm13297_vm4, 1, %v14663_v8  ;;  %vm4845_vm7 = vmor %vm4461_vm2, %vm13329_vm9 }
 0x67d   : > { %6489 = vadd.xlane.f32.xlu1 %v6486_v2  ;;  %v6754_v44 = vsel %vm6625_vm15, %v15679_v63, 0.0  ;;  %v5986_v58 = vpop.xlane.xlu0 %5985  ;;  %v15881_v63 = vld [vmem:[#allocation32_spill] sm:$0xff]  ;;  %v6113_v16 = vcvt.s32.f32 %v6111_v50  ;;  %v6303_v22 = vand.u32 65535, %v13258_v62  ;;  %v6316_v38 = vshrl.u32 %v13335_v36, 16 }
 0x67e   : > { %v13309_v37 = vpop.xlane.xlu1 %6165  ;;  %v6901_v26 = vadd.f32 %v6900_v34, %v6754_v44  ;;  %v5954_v13 = vadd.s32 %v5953_v33, %v5951_v59  ;;  %v2717_v29 = vcvt.f32.s32 %v15881_v63  ;;  %v15885_v34 = vld [vmem:[#allocation278_spill] sm:$0xff]  ;;  %v6483_v33 = vand.u32 65535, %v13245_v56  ;;  %v15890_v56 = vld [vmem:[#allocation29_spill] sm:$0xff] }
 0x67f   : > { %vm4620_vm11 = vcmp.eq.f32.partialorder %v12313_v55, %v15885_v34  ;;  %v6496_v44 = vshrl.u32 %v13319_v51, 16  ;;  %v5988_v50 = vcvt.f32.s32 %v5986_v58  ;;  %v2716_v25 = vcvt.f32.s32 %v15890_v56 }
 0x680   : > { %vm6626_vm3 = vcmp.eq.s32.totalorder %v5954_v13, %v13304_v46  ;;  %6295 = vadd.xlane.f32.xlu0 %v6293_v9  ;;  %v5977_v9 = vshll.u32 %v5976_v3, 16  ;;  %vm4492_vm5 = vcmp.lt.f32.partialorder %v12313_v55, %v15885_v34  ;;  %vm13362_vm1 = vmand %vm4620_vm11, %vm15867_vm13  ;;  %vm4605_vm10 = vcmp.eq.f32.partialorder %v12203_v21, %v15898_v42 }
 0x681   : > { %6309 = vadd.xlane.f32.xlu1 %v6306_v35  ;;  %v6755_v2 = vsel %vm6626_vm3, %v15684_v27, 0.0  ;;  %v13340_v7 = vpop.xlane.xlu0 %6177  ;;  %v2718_v35 = vshll.u32 %v2717_v29, 16  ;;  %v15887_v27 = vld [vmem:[#allocation30_spill] sm:$0xff]  ;;  %vm13391_vm4 = vmor %vm4492_vm5, %vm13362_vm1  ;;  %vm4477_vm6 = vcmp.lt.f32.partialorder %v12203_v21, %v15898_v42  ;;  %v6318_v58 = vcvt.s32.f32 %v6316_v38 }
 0x682   : > { %v5972_v59 = vpop.xlane.xlu1 %5971  ;;  %v13344_v13 = vadd.f32 %v6901_v26, %v6755_v2  ;;  %v2729_v63 = vcvt.f32.s32 %v15887_v27  ;;  %v13373_v2 = vsel %vm4845_vm7, 1, %v14663_v8  ;;  %vm13419_vm9 = vmand %vm4605_vm10, %vm15882_vm8  ;;  %v6180_v38 = vcvt.f32.s32 %v13340_v7 }
 0x683   : > { %v5975_v19 = vcvt.f32.s32 %v5972_v59  ;;  %v15893_v59 = vld [vmem:[#allocation110_spill] sm:$0xff]  ;;  %v13381_v56 = vadd.s32 %v2718_v35, %v2716_v25  ;;  %v13429_v24 = vsel %vm13391_vm4, 1, %v14663_v8  ;;  %vm4590_vm7 = vcmp.eq.f32.partialorder %v12139_v1, %v15908_v41 }
 0x684   : > { %15886 = vst [vmem:[#allocation175_spill] sm:$0xff] %v13344_v13  ;;  %6115 = vadd.xlane.f32.xlu0 %v6113_v16  ;;  %vm15894_vm13 = vnez %v15893_v59  ;;  %v5989_v16 = vshll.u32 %v5988_v50, 16  ;;  %v2728_v13 = vcvt.f32.s32 %v15897_v6  ;;  %v2730_v62 = vshll.u32 %v2729_v63, 16  ;;  %v15901_v50 = vld [vmem:[#allocation31_spill] sm:$0xff] }
 0x685   : > { %v5978_v26 = vadd.s32 %v5977_v9, %v5975_v19  ;;  %6129 = vadd.xlane.f32.xlu1 %v6126_v61  ;;  %v5984_v3 = vpop.xlane.xlu0 %5983  ;;  %vm13377_vm14 = vmand %vm4574_vm0, %vm15894_vm13  ;;  %v6485_v9 = vcvt.s32.f32 %v6483_v33  ;;  %v6498_v19 = vcvt.s32.f32 %v6496_v44  ;;  %v6123_v6 = vand.u32 65535, %v13266_v31 }
 0x686   : > { %v13368_v29 = vpop.xlane.xlu1 %5997  ;;  %v5987_v61 = vcvt.f32.s32 %v5984_v3  ;;  %v6305_v63 = vcvt.s32.f32 %v6303_v22  ;;  %v6136_v3 = vshrl.u32 %v13373_v2, 16  ;;  %vm13410_vm2 = vmor %vm4446_vm12, %vm13377_vm14  ;;  %v6168_v22 = vcvt.f32.s32 %v13309_v37  ;;  %v13439_v37 = vld [vmem:[%s14124_s4] ss:$0 sm:$0xff] }
 0x687   : > { %vm6628_vm15 = vcmp.eq.s32.totalorder %v5978_v26, %v13304_v46  ;;  %v2731_v27 = vadd.s32 %v2730_v62, %v2728_v13  ;;  %vm3369_vm11 = vcmp.eq.s32.totalorder %v13381_v56, %v13439_v37  ;;  %v6125_v13 = vcvt.s32.f32 %v6123_v6  ;;  %vm4861_vm0 = vmor %vm4477_vm6, %vm13419_vm9  ;;  %v15927_v56 = vld [vmem:[#allocation33_spill] sm:$0xff] }
 0x688   : > { %v5990_v25 = vadd.s32 %v5989_v16, %v5987_v61  ;;  %6487 = vadd.xlane.f32.xlu0 %v6485_v9  ;;  %v15906_v61 = vld [vmem:[#allocation34_spill] sm:$0xff]  ;;  %v6000_v26 = vcvt.f32.s32 %v13368_v29  ;;  %v6508_v28 = vshrl.u32 %v13429_v24, 16  ;;  %vm4462_vm1 = vcmp.lt.f32.partialorder %v12139_v1, %v15908_v41  ;;  %vm13468_vm12 = vmand %vm4590_vm7, %vm15894_vm13 }
 0x689   : > { %6501 = vadd.xlane.f32.xlu1 %v6498_v19  ;;  %v13400_v44 = vpop.xlane.xlu0 %6357  ;;  %v2741_v9 = vcvt.f32.s32 %v15906_v61  ;;  %v15907_v19 = vld [vmem:[#allocation232_spill] sm:$0xff]  ;;  %v6138_v61 = vcvt.s32.f32 %v6136_v3  ;;  %vm3370_vm5 = vcmp.eq.s32.totalorder %v2731_v27, %v13439_v37  ;;  %v6315_v31 = vand.u32 65535, %v13335_v36 }
 0x68a   : > { %v13402_v35 = vpop.xlane.xlu1 %6369  ;;  %vm6629_vm3 = vcmp.eq.s32.totalorder %v5990_v25, %v13304_v46  ;;  %v6757_v33 = vsel %vm6628_vm15, %v15907_v19, 0.0  ;;  %v6495_v19 = vand.u32 65535, %v13319_v51  ;;  %v6510_v45 = vcvt.s32.f32 %v6508_v28  ;;  %vm13489_vm15 = vmor %vm4462_vm1, %vm13468_vm12 }
 0x68b   : > { %v6758_v34 = vsel %vm6629_vm3, %v15702_v49, 0.0  ;;  %v13450_v49 = vsel %vm13410_vm2, 1, %v14663_v8  ;;  %v2742_v29 = vshll.u32 %v2741_v9, 16  ;;  %v6001_v9 = vshll.u32 %v6000_v26, 16  ;;  %v15914_v26 = vld [vmem:[#allocation95_spill] sm:$0xff] }
 0x68c   : > { %v13445_v7 = vadd.f32 %v6758_v34, %v6757_v33  ;;  %6307 = vadd.xlane.f32.xlu0 %v6305_v63  ;;  %v6169_v34 = vshll.u32 %v6168_v22, 16  ;;  %v6181_v33 = vshll.u32 %v6180_v38, 16  ;;  %v13475_v22 = vsel %vm4861_vm0, 1, %v14663_v8  ;;  %v15911_v38 = vld [vmem:[#allocation279_spill] sm:$0xff] }
 0x68d   : > { %6321 = vadd.xlane.f32.xlu1 %v6318_v58  ;;  %v6164_v62 = vpop.xlane.xlu0 %6163  ;;  %v5956_v58 = vshrl.u32 %v13450_v49, 16  ;;  %vm4621_vm14 = vcmp.eq.f32.partialorder %v12313_v55, %v15911_v38  ;;  %v6497_v42 = vcvt.s32.f32 %v6495_v19  ;;  %v6360_v17 = vcvt.f32.s32 %v13400_v44  ;;  %v15916_v44 = vld [vmem:[#allocation249_spill] sm:$0xff] }
 0x68e   : > { %v6176_v25 = vpop.xlane.xlu1 %6175  ;;  %v6167_v6 = vcvt.f32.s32 %v6164_v62  ;;  %v3499_v28 = vsel %vm3370_vm5, %v15914_v26, 0.0  ;;  %vm4493_vm2 = vcmp.lt.f32.partialorder %v12313_v55, %v15911_v38  ;;  %vm13507_vm9 = vmand %vm4621_vm14, %vm15882_vm8  ;;  %v6135_v40 = vand.u32 65535, %v13373_v2 }
 0x68f   : > { %v6179_v63 = vcvt.f32.s32 %v6176_v25  ;;  %v13520_v26 = vsel %vm13489_vm15, 1, %v14663_v8  ;;  %vm13547_vm0 = vmor %vm4493_vm2, %vm13507_vm9  ;;  %v6327_v41 = vand.u32 65535, %v13475_v22 }
 0x690   : > { %v6170_v3 = vadd.s32 %v6169_v34, %v6167_v6  ;;  %6127 = vadd.xlane.f32.xlu0 %v6125_v13  ;;  %v15917_v34 = vld [vmem:[#allocation250_spill] sm:$0xff] }
 0x691   : > { %v6182_v16 = vadd.s32 %v6181_v33, %v6179_v63  ;;  %6141 = vadd.xlane.f32.xlu1 %v6138_v61  ;;  %v13479_v62 = vpop.xlane.xlu0 %6189  ;;  %v15915_v61 = vld [vmem:[#allocation264_spill] sm:$0xff]  ;;  %v5958_v63 = vcvt.s32.f32 %v5956_v58  ;;  %v6372_v58 = vcvt.f32.s32 %v13402_v35 }
 0x692   : > { %v5996_v25 = vpop.xlane.xlu1 %5995  ;;  %vm6644_vm10 = vcmp.eq.s32.totalorder %v6170_v3, %v13304_v46  ;;  %vm4606_vm6 = vcmp.eq.f32.partialorder %v12203_v21, %v15915_v61  ;;  %vm4478_vm7 = vcmp.lt.f32.partialorder %v12203_v21, %v15915_v61  ;;  %v5955_v21 = vand.u32 65535, %v13450_v49 }
 0x693   : > { %vm6645_vm4 = vcmp.eq.s32.totalorder %v6182_v16, %v13304_v46  ;;  %v5999_v13 = vcvt.f32.s32 %v5996_v25  ;;  %v6773_v19 = vsel %vm6644_vm10, %v15916_v44, 0.0  ;;  %v6317_v16 = vcvt.s32.f32 %v6315_v31  ;;  %vm13527_vm8 = vmand %vm4606_vm6, %vm15894_vm13  ;;  %v15922_v31 = vld [vmem:[#allocation94_spill] sm:$0xff]  ;;  %v15924_v44 = vld [vmem:[#allocation235_spill] sm:$0xff] }
 0x694   : > { %v6774_v33 = vsel %vm6645_vm4, %v15917_v34, 0.0  ;;  %6499 = vadd.xlane.f32.xlu0 %v6497_v42  ;;  %v6328_v25 = vshrl.u32 %v13475_v22, 16  ;;  %v6361_v42 = vshll.u32 %v6360_v17, 16  ;;  %v2752_v34 = vcvt.f32.s32 %v15927_v56  ;;  %v15941_v22 = vld [vmem:[#allocation37_spill] sm:$0xff] }
 0x695   : > { %v13511_v27 = vadd.f32 %v6774_v33, %v6773_v19  ;;  %v6002_v6 = vadd.s32 %v6001_v9, %v5999_v13  ;;  %6513 = vadd.xlane.f32.xlu1 %v6510_v45  ;;  %v13513_v51 = vpop.xlane.xlu0 %6009  ;;  %v3498_v9 = vsel %vm3369_vm11, %v15922_v31, 0.0  ;;  %v15923_v13 = vcvt.f32.s32 %v15901_v50  ;;  %vm13570_vm11 = vmor %vm4478_vm7, %vm13527_vm8 }
 0x696   : > { %v6356_v3 = vpop.xlane.xlu1 %6355  ;;  %v3651_v35 = vadd.f32 %v3499_v28, %v3498_v9  ;;  %v6330_v1 = vcvt.s32.f32 %v6328_v25  ;;  %v6148_v31 = vshrl.u32 %v13520_v26, 16  ;;  %v6192_v28 = vcvt.f32.s32 %v13479_v62  ;;  %v15931_v62 = vld [vmem:[#allocation35_spill] sm:$0xff] }
 0x697   : > { %vm6630_vm3 = vcmp.eq.s32.totalorder %v6002_v6, %v13304_v46  ;;  %v6359_v2 = vcvt.f32.s32 %v6356_v3  ;;  %v2743_v36 = vadd.s32 %v2742_v29, %v15923_v13  ;;  %v6137_v3 = vcvt.s32.f32 %v6135_v40  ;;  %v15932_v40 = vld [vmem:[#allocation65_spill] sm:$0xff] }
 0x698   : > { %v6759_v19 = vsel %vm6630_vm3, %v15924_v44, 0.0  ;;  %5961 = vadd.xlane.f32.xlu0 %v5958_v63  ;;  %v6507_v13 = vand.u32 65535, %v13429_v24  ;;  %v6373_v44 = vshll.u32 %v6372_v58, 16  ;;  %v15930_v24 = vld [vmem:[#allocation36_spill] sm:$0xff]  ;;  %v2764_v25 = vcvt.f32.s32 %v15931_v62 }
 0x699   : > { %v13553_v50 = vadd.f32 %v13445_v7, %v6759_v19  ;;  %v6362_v29 = vadd.s32 %v6361_v42, %v6359_v2  ;;  %6319 = vadd.xlane.f32.xlu1 %v6317_v16  ;;  %v6368_v33 = vpop.xlane.xlu0 %6367  ;;  %v13563_v7 = vsel %vm13547_vm0, 1, %v14663_v8  ;;  %vm3371_vm5 = vcmp.eq.s32.totalorder %v2743_v36, %v13439_v37  ;;  %v15933_v58 = vld [vmem:[#allocation280_spill] sm:$0xff] }
 0x69a   : > { %v13555_v6 = vpop.xlane.xlu1 %6381  ;;  %v6371_v9 = vcvt.f32.s32 %v6368_v33  ;;  %v2753_v16 = vcvt.f32.s32 %v15930_v24  ;;  %v2765_v42 = vcvt.f32.s32 %v15932_v40  ;;  %vm4622_vm1 = vcmp.eq.f32.partialorder %v12313_v55, %v15933_v58 }
 0x69b   : > { %vm6660_vm12 = vcmp.eq.s32.totalorder %v6362_v29, %v13304_v46  ;;  %v6150_v17 = vcvt.s32.f32 %v6148_v31  ;;  %v6509_v56 = vcvt.s32.f32 %v6507_v13  ;;  %v6520_v33 = vshrl.u32 %v13563_v7, 16  ;;  %vm13599_vm4 = vmand %vm4622_vm1, %vm15894_vm13  ;;  %v15936_v31 = vld [vmem:[#allocation265_spill] sm:$0xff]  ;;  %v15937_v13 = vld [vmem:[#allocation266_spill] sm:$0xff] }
 0x69c   : > { %v6374_v45 = vadd.s32 %v6373_v44, %v6371_v9  ;;  %6333 = vadd.xlane.f32.xlu0 %v6330_v1  ;;  %v13588_v24 = vsel %vm13570_vm11, 1, %v14663_v8  ;;  %v6193_v62 = vshll.u32 %v6192_v28, 16  ;;  %v6012_v40 = vcvt.f32.s32 %v13513_v51  ;;  %v15938_v28 = vld [vmem:[#allocation96_spill] sm:$0xff] }
 0x69d   : > { %6139 = vadd.xlane.f32.xlu1 %v6137_v3  ;;  %v6188_v2 = vpop.xlane.xlu0 %6187  ;;  %v2754_v3 = vshll.u32 %v2753_v16, 16  ;;  %vm4494_vm10 = vcmp.lt.f32.partialorder %v12313_v55, %v15933_v58  ;;  %v6789_v51 = vsel %vm6660_vm12, %v15936_v31, 0.0  ;;  %v3500_v9 = vsel %vm3371_vm5, %v15938_v28, 0.0 }
 0x69e   : > { %v13582_v19 = vpop.xlane.xlu1 %6201  ;;  %vm6661_vm14 = vcmp.eq.s32.totalorder %v6374_v45, %v13304_v46  ;;  %v6191_v1 = vcvt.f32.s32 %v6188_v2  ;;  %v2766_v63 = vshll.u32 %v2765_v42, 16  ;;  %v6522_v61 = vcvt.s32.f32 %v6520_v33  ;;  %vm13621_vm15 = vmor %vm4494_vm10, %vm13599_vm4 }
 0x69f   : > { %v6790_v44 = vsel %vm6661_vm14, %v15937_v13, 0.0  ;;  %v5957_v38 = vcvt.s32.f32 %v5955_v21  ;;  %v6340_v29 = vshrl.u32 %v13588_v24, 16  ;;  %v6013_v31 = vshll.u32 %v6012_v40, 16 }
 0x6a0   : > { %v6952_v16 = vadd.f32 %v6790_v44, %v6789_v51  ;;  %v6194_v59 = vadd.s32 %v6193_v62, %v6191_v1  ;;  %6153 = vadd.xlane.f32.xlu0 %v6150_v17  ;;  %v6384_v13 = vcvt.f32.s32 %v13555_v6  ;;  %v3652_v21 = vadd.f32 %v3651_v35, %v3500_v9 }
 0x6a1   : > { %6511 = vadd.xlane.f32.xlu1 %v6509_v56  ;;  %v6008_v45 = vpop.xlane.xlu0 %6007  ;;  %v2755_v17 = vadd.s32 %v2754_v3, %v2752_v34  ;;  %v2777_v56 = vcvt.f32.s32 %v15941_v22  ;;  %v2767_v62 = vadd.s32 %v2766_v63, %v2764_v25  ;;  %v6147_v1 = vand.u32 65535, %v13520_v26  ;;  %v15945_v22 = vld [vmem:[#allocation67_spill] sm:$0xff] }
 0x6a2   : > { %v13610_v2 = vpop.xlane.xlu1 %6021  ;;  %vm6646_vm13 = vcmp.eq.s32.totalorder %v6194_v59, %v13304_v46  ;;  %v6011_v36 = vcvt.f32.s32 %v6008_v45  ;;  %v6329_v51 = vcvt.s32.f32 %v6327_v41  ;;  %v6342_v44 = vcvt.s32.f32 %v6340_v29 }
 0x6a3   : > { %v6775_v33 = vsel %vm6646_vm13, %v15736_v14, 0.0  ;;  %v6519_v35 = vand.u32 65535, %v13563_v7  ;;  %v5006_v34 = vsel %vm13621_vm15, 1, %v14663_v8  ;;  %v6385_v14 = vshll.u32 %v6384_v13, 16  ;;  %v15943_v7 = vld [vmem:[#allocation39_spill] sm:$0xff] }
 0x6a4   : > { %v6932_v6 = vadd.f32 %v13511_v27, %v6775_v33  ;;  %v6014_v40 = vadd.s32 %v6013_v31, %v6011_v36  ;;  %6525 = vadd.xlane.f32.xlu0 %v6522_v61  ;;  %v6204_v25 = vcvt.f32.s32 %v13582_v19  ;;  %vm3372_vm2 = vcmp.eq.s32.totalorder %v2755_v17, %v13439_v37  ;;  %v15944_v36 = vld [vmem:[#allocation97_spill] sm:$0xff] }
 0x6a5   : > { %5959 = vadd.xlane.f32.xlu1 %v5957_v38  ;;  %v6380_v49 = vpop.xlane.xlu0 %6379  ;;  %v15942_v38 = vld [vmem:[#allocation38_spill] sm:$0xff]  ;;  %v2778_v26 = vshll.u32 %v2777_v56, 16  ;;  %vm3373_vm9 = vcmp.eq.s32.totalorder %v2767_v62, %v13439_v37  ;;  %v2789_v3 = vcvt.f32.s32 %v15943_v7  ;;  %v6149_v63 = vcvt.s32.f32 %v6147_v1 }
 0x6a6   : > { %v13629_v55 = vpop.xlane.xlu1 %6393  ;;  %vm6631_vm6 = vcmp.eq.s32.totalorder %v6014_v40, %v13304_v46  ;;  %v6383_v61 = vcvt.f32.s32 %v6380_v49  ;;  %v2776_v27 = vcvt.f32.s32 %v15942_v38  ;;  %v6521_v59 = vcvt.s32.f32 %v6519_v35  ;;  %v15946_v40 = vld [vmem:[#allocation98_spill] sm:$0xff] }
 0x6a7   : > { %v6760_v41 = vsel %vm6631_vm6, %v15735_v11, 0.0  ;;  %v6532_v45 = vshrl.u32 %v5006_v34, 16  ;;  %v6339_v29 = vand.u32 65535, %v13588_v24  ;;  %v6205_v31 = vshll.u32 %v6204_v25, 16 }
 0x6a8   : > { %v6912_v28 = vadd.f32 %v13553_v50, %v6760_v41  ;;  %v6386_v8 = vadd.s32 %v6385_v14, %v6383_v61  ;;  %6331 = vadd.xlane.f32.xlu0 %v6329_v51  ;;  %v6024_v11 = vcvt.f32.s32 %v13610_v2  ;;  %v3501_v50 = vsel %vm3372_vm2, %v15944_v36, 0.0  ;;  %v15947_v2 = vld [vmem:[#allocation40_spill] sm:$0xff]  ;;  %v15948_v41 = vld [vmem:[#allocation70_spill] sm:$0xff] }
 0x6a9   : > { %6345 = vadd.xlane.f32.xlu1 %v6342_v44  ;;  %v6200_v19 = vpop.xlane.xlu0 %6199  ;;  %v2779_v42 = vadd.s32 %v2778_v26, %v2776_v27  ;;  %v2788_v56 = vcvt.f32.s32 %v15945_v22  ;;  %v3502_v1 = vsel %vm3373_vm9, %v15946_v40, 0.0  ;;  %v2790_v24 = vshll.u32 %v2789_v3, 16 }
 0x6aa   : > { %v13643_v9 = vpop.xlane.xlu1 %6213  ;;  %vm6662_vm8 = vcmp.eq.s32.totalorder %v6386_v8, %v13304_v46  ;;  %v6203_v13 = vcvt.f32.s32 %v6200_v19  ;;  %v2801_v44 = vcvt.f32.s32 %v15947_v2  ;;  %v6534_v17 = vcvt.s32.f32 %v6532_v45  ;;  %v15954_v2 = vld [vmem:[#allocation76_spill] sm:$0xff] }
 0x6ab   : > { %v6791_v33 = vsel %vm6662_vm8, %v15747_v43, 0.0  ;;  %v6341_v25 = vcvt.s32.f32 %v6339_v29  ;;  %v6531_v61 = vand.u32 65535, %v5006_v34  ;;  %v6025_v38 = vshll.u32 %v6024_v11, 16  ;;  %v15950_v11 = vld [vmem:[#allocation99_spill] sm:$0xff] }
 0x6ac   : > { %v6953_v49 = vadd.f32 %v6952_v16, %v6791_v33  ;;  %v6206_v51 = vadd.s32 %v6205_v31, %v6203_v13  ;;  %6151 = vadd.xlane.f32.xlu0 %v6149_v63  ;;  %v6396_v27 = vcvt.f32.s32 %v13629_v55  ;;  %v3653_v62 = vadd.f32 %v3652_v21, %v3501_v50  ;;  %v15949_v63 = vld [vmem:[#allocation77_spill] sm:$0xff]  ;;  %v15951_v13 = vld [vmem:[#allocation66_spill] sm:$0xff]  ;;  %v15952_v50 = vld [vmem:[#allocation71_spill] sm:$0xff] }
 0x6ad   : > { %6523 = vadd.xlane.f32.xlu1 %v6521_v59  ;;  %v6020_v35 = vpop.xlane.xlu0 %6019  ;;  %vm3374_vm7 = vcmp.eq.s32.totalorder %v2779_v42, %v13439_v37  ;;  %v2791_v26 = vadd.s32 %v2790_v24, %v2788_v56  ;;  %v2813_v7 = vcvt.f32.s32 %v15948_v41  ;;  %v2802_v34 = vshll.u32 %v2801_v44, 16  ;;  %v15953_v56 = vld [vmem:[#allocation237_spill] sm:$0xff]  ;;  %v15957_v41 = vld [vmem:[#allocation100_spill] sm:$0xff] }
 0x6ae   : > { %v6034_v14 = vpop.xlane.xlu1 %6033  ;;  %vm6647_vm3 = vcmp.eq.s32.totalorder %v6206_v51, %v13304_v46  ;;  %v6023_v43 = vcvt.f32.s32 %v6020_v35  ;;  %v3654_v19 = vadd.f32 %v3653_v62, %v3502_v1  ;;  %v2825_v59 = vcvt.f32.s32 %v15949_v63  ;;  %v15955_v35 = vld [vmem:[#allocation43_spill] sm:$0xff]  ;;  %v15956_v62 = vld [vmem:[#allocation73_spill] sm:$0xff] }
 0x6af   : > { %v6776_v16 = vsel %vm6647_vm3, %v15748_v52, 0.0  ;;  %v6533_v29 = vcvt.s32.f32 %v6531_v61  ;;  %v6397_v31 = vshll.u32 %v6396_v27, 16  ;;  %v6216_v21 = vcvt.f32.s32 %v13643_v9 }
 0x6b0   : > { %v6933_v3 = vadd.f32 %v6932_v6, %v6776_v16  ;;  %v6026_v8 = vadd.s32 %v6025_v38, %v6023_v43  ;;  %6537 = vadd.xlane.f32.xlu0 %v6534_v17  ;;  %v3503_v6 = vsel %vm3374_vm7, %v15950_v11, 0.0  ;;  %v2800_v36 = vcvt.f32.s32 %v15951_v13  ;;  %v15958_v11 = vld [vmem:[#allocation25_spill] sm:$0xff] }
 0x6b1   : > { %6343 = vadd.xlane.f32.xlu1 %v6341_v25  ;;  %v6392_v55 = vpop.xlane.xlu0 %6391  ;;  %v2812_v22 = vcvt.f32.s32 %v15952_v50  ;;  %vm3375_vm11 = vcmp.eq.s32.totalorder %v2791_v26, %v13439_v37  ;;  %v2814_v40 = vshll.u32 %v2813_v7, 16  ;;  %v2826_v51 = vshll.u32 %v2825_v59, 16  ;;  %v15959_v26 = vld [vmem:[#allocation41_spill] sm:$0xff] }
 0x6b2   : > { %v6406_v45 = vpop.xlane.xlu1 %6405  ;;  %vm6632_vm0 = vcmp.eq.s32.totalorder %v6026_v8, %v13304_v46  ;;  %v6395_v52 = vcvt.f32.s32 %v6392_v55  ;;  %v2803_v9 = vadd.s32 %v2802_v34, %v2800_v36  ;;  %v2837_v44 = vcvt.f32.s32 %v15954_v2  ;;  %v15960_v36 = vld [vmem:[#allocation102_spill] sm:$0xff] }
 0x6b3   : > { %v6761_v33 = vsel %vm6632_vm0, %v15953_v56, 0.0  ;;  %v2849_v17 = vcvt.f32.s32 %v15955_v35  ;;  %v6217_v61 = vshll.u32 %v6216_v21, 16  ;;  %v6036_v38 = vcvt.f32.s32 %v6034_v14 }
 0x6b4   : > { %v6913_v1 = vadd.f32 %v6912_v28, %v6761_v33  ;;  %v6398_v24 = vadd.s32 %v6397_v31, %v6395_v52  ;;  %6535 = vadd.xlane.f32.xlu0 %v6533_v29  ;;  %v3655_v43 = vadd.f32 %v3654_v19, %v3503_v6  ;;  %v2824_v16 = vcvt.f32.s32 %v15956_v62 }
 0x6b5   : > { %v6212_v42 = vpop.xlane.xlu0 %6211  ;;  %v3504_v7 = vsel %vm3375_vm11, %v15957_v41, 0.0  ;;  %v2815_v8 = vadd.s32 %v2814_v40, %v2812_v22  ;;  %vm3376_vm1 = vcmp.eq.s32.totalorder %v2803_v9, %v13439_v37  ;;  %v2838_v55 = vshll.u32 %v2837_v44, 16  ;;  %v15961_v40 = vld [vmem:[#allocation45_spill] sm:$0xff] }
 0x6b6   : > { %v6226_v25 = vpop.xlane.xlu1 %6225  ;;  %vm6663_vm5 = vcmp.eq.s32.totalorder %v6398_v24, %v13304_v46  ;;  %v6215_v27 = vcvt.f32.s32 %v6212_v42  ;;  %v2827_v59 = vadd.s32 %v2826_v51, %v2824_v16  ;;  %v2850_v14 = vshll.u32 %v2849_v17, 16  ;;  %v15962_v42 = vld [vmem:[#allocation103_spill] sm:$0xff] }
 0x6b7   : > { %v6792_v28 = vsel %vm6663_vm5, %v15759_v23, 0.0  ;;  %v6037_v21 = vshll.u32 %v6036_v38, 16  ;;  %v6408_v19 = vcvt.f32.s32 %v6406_v45  ;;  %v3656_v23 = vadd.f32 %v3655_v43, %v3504_v7 }
 0x6b8   : > { %v6954_v34 = vadd.f32 %v6953_v49, %v6792_v28  ;;  %v6218_v63 = vadd.s32 %v6217_v61, %v6215_v27  ;;  %v2836_v6 = vcvt.f32.s32 %v15958_v11  ;;  %v2848_v13 = vcvt.f32.s32 %v15959_v26  ;;  %v15963_v27 = vld [vmem:[#allocation104_spill] sm:$0xff] }
 0x6b9   : > { %v6032_v29 = vpop.xlane.xlu0 %6031  ;;  %v3505_v50 = vsel %vm3376_vm1, %v15960_v36, 0.0  ;;  %vm3377_vm14 = vcmp.eq.s32.totalorder %v2815_v8, %v13439_v37  ;;  %vm3378_vm10 = vcmp.eq.s32.totalorder %v2827_v59, %v13439_v37  ;;  %v2861_v24 = vcvt.f32.s32 %v15961_v40  ;;  %v15964_v8 = vld [vmem:[#allocation42_spill] sm:$0xff]  ;;  %v15965_v59 = vld [vmem:[#allocation105_spill] sm:$0xff] }
 0x6ba   : > { %v6046_v31 = vpop.xlane.xlu1 %6045  ;;  %vm6648_vm12 = vcmp.eq.s32.totalorder %v6218_v63, %v13304_v46  ;;  %v6035_v52 = vcvt.f32.s32 %v6032_v29  ;;  %v2839_v33 = vadd.s32 %v2838_v55, %v2836_v6  ;;  %v2851_v45 = vadd.s32 %v2850_v14, %v2848_v13  ;;  %v15967_v36 = vld [vmem:[#allocation89_spill] sm:$0xff] }
 0x6bb   : > { %v6777_v49 = vsel %vm6648_vm12, %v15760_v39, 0.0  ;;  %v6409_v2 = vshll.u32 %v6408_v19, 16  ;;  %v6228_v44 = vcvt.f32.s32 %v6226_v25  ;;  %v3657_v17 = vadd.f32 %v3656_v23, %v3505_v50  ;;  %v15966_v19 = vld [vmem:[#allocation106_spill] sm:$0xff] }
 0x6bc   : > { %v6934_v22 = vadd.f32 %v6933_v3, %v6777_v49  ;;  %v6038_v56 = vadd.s32 %v6037_v21, %v6035_v52  ;;  %v3506_v61 = vsel %vm3377_vm14, %v15962_v42, 0.0  ;;  %v3507_v43 = vsel %vm3378_vm10, %v15963_v27, 0.0 }
 0x6bd   : > { %v6404_v9 = vpop.xlane.xlu0 %6403  ;;  %vm3379_vm13 = vcmp.eq.s32.totalorder %v2839_v33, %v13439_v37  ;;  %vm3380_vm15 = vcmp.eq.s32.totalorder %v2851_v45, %v13439_v37  ;;  %v2862_v62 = vshll.u32 %v2861_v24, 16  ;;  %v6229_v25 = vshll.u32 %v6228_v44, 16 }
 0x6be   : > { %v6418_v51 = vpop.xlane.xlu1 %6417  ;;  %vm6633_vm4 = vcmp.eq.s32.totalorder %v6038_v56, %v13304_v46  ;;  %v6407_v35 = vcvt.f32.s32 %v6404_v9  ;;  %v6048_v41 = vcvt.f32.s32 %v6046_v31  ;;  %v2860_v63 = vcvt.f32.s32 %v15964_v8  ;;  %v15968_v56 = vld [vmem:[#allocation48_spill] sm:$0xff]  ;;  %v15974_v8 = vld [vmem:[#allocation91_spill] sm:$0xff] }
 0x6bf   : > { %v6762_v39 = vsel %vm6633_vm4, %v15758_v53, 0.0  ;;  %v3658_v53 = vadd.f32 %v3657_v17, %v3506_v61  ;;  %v3508_v55 = vsel %vm3379_vm13, %v15965_v59, 0.0  ;;  %v3509_v52 = vsel %vm3380_vm15, %v15966_v19, 0.0 }
 0x6c0   : > { %v6914_v3 = vadd.f32 %v6913_v1, %v6762_v39  ;;  %v6410_v38 = vadd.s32 %v6409_v2, %v6407_v35  ;;  %v2863_v23 = vadd.s32 %v2862_v62, %v2860_v63  ;;  %v6049_v26 = vshll.u32 %v6048_v41, 16  ;;  %v15970_v2 = vld [vmem:[#allocation44_spill] sm:$0xff] }
 0x6c1   : > { %v6224_v16 = vpop.xlane.xlu0 %6223  ;;  %v3659_v21 = vadd.f32 %v3658_v53, %v3507_v43  ;;  %v6420_v31 = vcvt.f32.s32 %v6418_v51  ;;  %v2873_v50 = vcvt.f32.s32 %v15967_v36  ;;  %v2872_v44 = vcvt.f32.s32 %v15970_v2  ;;  %v15971_v51 = vld [vmem:[#allocation53_spill] sm:$0xff] }
 0x6c2   : > { %v6238_v28 = vpop.xlane.xlu1 %6237  ;;  %vm6664_vm6 = vcmp.eq.s32.totalorder %v6410_v38, %v13304_v46  ;;  %v6227_v7 = vcvt.f32.s32 %v6224_v16  ;;  %vm3381_vm9 = vcmp.eq.s32.totalorder %v2863_v23, %v13439_v37  ;;  %v2933_v35 = vcvt.f32.s32 %v15971_v51  ;;  %v15973_v16 = vld [vmem:[#allocation107_spill] sm:$0xff] }
 0x6c3   : > { %v6793_v1 = vsel %vm6664_vm6, %v15770_v5, 0.0  ;;  %v3660_v49 = vadd.f32 %v3659_v21, %v3508_v55  ;;  %v2909_v5 = vcvt.f32.s32 %v15968_v56  ;;  %v6421_v42 = vshll.u32 %v6420_v31, 16  ;;  %v15977_v31 = vld [vmem:[#allocation50_spill] sm:$0xff] }
 0x6c4   : > { %v6955_v14 = vadd.f32 %v6954_v34, %v6793_v1  ;;  %v6230_v29 = vadd.s32 %v6229_v25, %v6227_v7  ;;  %v15969_v34 = vld [vmem:[#allocation27_spill] sm:$0xff]  ;;  %v6240_v61 = vcvt.f32.s32 %v6238_v28  ;;  %v2874_v27 = vshll.u32 %v2873_v50, 16 }
 0x6c5   : > { %v6044_v11 = vpop.xlane.xlu0 %6043  ;;  %v2921_v45 = vcvt.f32.s32 %v15969_v34  ;;  %v3661_v9 = vadd.f32 %v3660_v49, %v3509_v52  ;;  %v2910_v62 = vshll.u32 %v2909_v5, 16  ;;  %v3510_v25 = vsel %vm3381_vm9, %v15973_v16, 0.0  ;;  %v15975_v1 = vld [vmem:[#allocation51_spill] sm:$0xff]  ;;  %v15978_v5 = vld [vmem:[#allocation46_spill] sm:$0xff] }
 0x6c6   : > { %v6058_v6 = vpop.xlane.xlu1 %6057  ;;  %vm6649_vm2 = vcmp.eq.s32.totalorder %v6230_v29, %v13304_v46  ;;  %v6047_v13 = vcvt.f32.s32 %v6044_v11  ;;  %v2908_v63 = vcvt.f32.s32 %v15974_v8  ;;  %v2920_v59 = vcvt.f32.s32 %v15975_v1  ;;  %v15976_v28 = vld [vmem:[#allocation55_spill] sm:$0xff] }
 0x6c7   : > { %v6778_v33 = vsel %vm6649_vm2, %v15772_v54, 0.0  ;;  %v15972_v54 = vld [vmem:[#allocation47_spill] sm:$0xff]  ;;  %v2922_v41 = vshll.u32 %v2921_v45, 16  ;;  %v2934_v55 = vshll.u32 %v2933_v35, 16  ;;  %v2945_v29 = vcvt.f32.s32 %v15976_v28 }
 0x6c8   : > { %v6935_v40 = vadd.f32 %v6934_v22, %v6778_v33  ;;  %v6050_v24 = vadd.s32 %v6049_v26, %v6047_v13  ;;  %v2884_v43 = vcvt.f32.s32 %v15972_v54  ;;  %v6241_v52 = vshll.u32 %v6240_v61, 16 }
 0x6c9   : > { %v6416_v39 = vpop.xlane.xlu0 %6415  ;;  %v6060_v23 = vcvt.f32.s32 %v6058_v6  ;;  %v2911_v26 = vadd.s32 %v2910_v62, %v2908_v63  ;;  %v2875_v49 = vadd.s32 %v2874_v27, %v2872_v44  ;;  %v2923_v36 = vadd.s32 %v2922_v41, %v2920_v59  ;;  %v15984_v59 = vld [vmem:[#allocation113_spill] sm:$0xff] }
 0x6ca   : > { %v6430_v17 = vpop.xlane.xlu1 %6429  ;;  %vm6634_vm8 = vcmp.eq.s32.totalorder %v6050_v24, %v13304_v46  ;;  %v6419_v38 = vcvt.f32.s32 %v6416_v39  ;;  %v2885_v33 = vcvt.f32.s32 %v15978_v5  ;;  %v2946_v45 = vshll.u32 %v2945_v29, 16  ;;  %v15979_v24 = vld [vmem:[#allocation57_spill] sm:$0xff] }
 0x6cb   : > { %v6763_v22 = vsel %vm6634_vm8, %v15771_v15, 0.0  ;;  %v13716_v15 = vadd.f32 %v3661_v9, %v3510_v25  ;;  %v2957_v6 = vcvt.f32.s32 %v15979_v24  ;;  %v6061_v35 = vshll.u32 %v6060_v23, 16 }
 0x6cc   : > { %v6915_v7 = vadd.f32 %v6914_v3, %v6763_v22  ;;  %v6422_v53 = vadd.s32 %v6421_v42, %v6419_v38  ;;  %v2932_v3 = vcvt.f32.s32 %v15977_v31  ;;  %v6432_v9 = vcvt.f32.s32 %v6430_v17  ;;  %v15980_v42 = vld [vmem:[#allocation90_spill] sm:$0xff] }
 0x6cd   : > { %v6236_v21 = vpop.xlane.xlu0 %6235  ;;  %v2896_v61 = vcvt.f32.s32 %v15980_v42  ;;  %vm3385_vm0 = vcmp.eq.s32.totalorder %v2911_v26, %v13439_v37  ;;  %vm3386_vm11 = vcmp.eq.s32.totalorder %v2923_v36, %v13439_v37  ;;  %v15982_v38 = vld [vmem:[#allocation58_spill] sm:$0xff]  ;;  %vm3382_vm5 = vcmp.eq.s32.totalorder %v2875_v49, %v13439_v37  ;;  %v15988_v36 = vld [vmem:[#allocation60_spill] sm:$0xff] }
 0x6ce   : > { %v6250_v19 = vpop.xlane.xlu1 %6249  ;;  %vm6665_vm3 = vcmp.eq.s32.totalorder %v6422_v53, %v13304_v46  ;;  %v6239_v11 = vcvt.f32.s32 %v6236_v21  ;;  %v2935_v34 = vadd.s32 %v2934_v55, %v2932_v3  ;;  %v2969_v27 = vcvt.f32.s32 %v15982_v38  ;;  %v15985_v55 = vld [vmem:[#allocation54_spill] sm:$0xff]  ;;  %v15987_v3 = vld [vmem:[#allocation56_spill] sm:$0xff] }
 0x6cf   : > { %v6794_v13 = vsel %vm6665_vm3, %v15780_v30, 0.0  ;;  %v15981_v30 = vld [vmem:[#allocation52_spill] sm:$0xff]  ;;  %v2958_v16 = vshll.u32 %v2957_v6, 16  ;;  %v6433_v53 = vshll.u32 %v6432_v9, 16  ;;  %v6252_v8 = vcvt.f32.s32 %v6250_v19  ;;  %v15986_v21 = vld [vmem:[#allocation114_spill] sm:$0xff]  ;;  %v15990_v9 = vld [vmem:[#allocation115_spill] sm:$0xff] }
 0x6d0   : > { %v6956_v50 = vadd.f32 %v6955_v14, %v6794_v13  ;;  %v6242_v56 = vadd.s32 %v6241_v52, %v6239_v11  ;;  %v2944_v14 = vcvt.f32.s32 %v15981_v30  ;;  %vm3387_vm1 = vcmp.eq.s32.totalorder %v2935_v34, %v13439_v37 }
 0x6d1   : > { %v6056_v2 = vpop.xlane.xlu0 %6055  ;;  %v2956_v28 = vcvt.f32.s32 %v15985_v55  ;;  %v3516_v52 = vsel %vm3387_vm1, %v15986_v21, 0.0  ;;  %v2970_v23 = vshll.u32 %v2969_v27, 16  ;;  %v2968_v13 = vcvt.f32.s32 %v15987_v3  ;;  %v15991_v27 = vld [vmem:[#allocation62_spill] sm:$0xff]  ;;  %v15995_v21 = vld [vmem:[#allocation75_spill] sm:$0xff] }
 0x6d2   : > { %v6070_v51 = vpop.xlane.xlu1 %6069  ;;  %vm6650_vm7 = vcmp.eq.s32.totalorder %v6242_v56, %v13304_v46  ;;  %v6059_v39 = vcvt.f32.s32 %v6056_v2  ;;  %v2947_v17 = vadd.s32 %v2946_v45, %v2944_v14  ;;  %v2981_v56 = vcvt.f32.s32 %v15988_v36 }
 0x6d3   : > { %v6779_v44 = vsel %vm6650_vm7, %v15782_v47, 0.0  ;;  %v15983_v47 = vld [vmem:[#allocation112_spill] sm:$0xff]  ;;  %v2959_v19 = vadd.s32 %v2958_v16, %v2956_v28  ;;  %v6253_v34 = vshll.u32 %v6252_v8, 16  ;;  %v6072_v45 = vcvt.f32.s32 %v6070_v51  ;;  %v15992_v8 = vld [vmem:[#allocation61_spill] sm:$0xff] }
 0x6d4   : > { %v6936_v62 = vadd.f32 %v6935_v40, %v6779_v44  ;;  %v6062_v22 = vadd.s32 %v6061_v35, %v6059_v39  ;;  %v3514_v1 = vsel %vm3385_vm0, %v15983_v47, 0.0  ;;  %v3515_v40 = vsel %vm3386_vm11, %v15984_v59, 0.0  ;;  %v15993_v47 = vld [vmem:[#allocation116_spill] sm:$0xff] }
 0x6d5   : > { %v6428_v25 = vpop.xlane.xlu0 %6427  ;;  %vm3388_vm14 = vcmp.eq.s32.totalorder %v2947_v17, %v13439_v37  ;;  %v3672_v2 = vadd.f32 %v3515_v40, %v3514_v1  ;;  %v2971_v30 = vadd.s32 %v2970_v23, %v2968_v13  ;;  %vm3389_vm4 = vcmp.eq.s32.totalorder %v2959_v19, %v13439_v37  ;;  %v15997_v13 = vld [vmem:[#allocation63_spill] sm:$0xff] }
 0x6d6   : > { %v6442_v41 = vpop.xlane.xlu1 %6441  ;;  %vm6635_vm12 = vcmp.eq.s32.totalorder %v6062_v22, %v13304_v46  ;;  %v6431_v63 = vcvt.f32.s32 %v6428_v25  ;;  %v3517_v39 = vsel %vm3388_vm14, %v15990_v9, 0.0  ;;  %v2982_v51 = vshll.u32 %v2981_v56, 16 }
 0x6d7   : > { %v6764_v29 = vsel %vm6635_vm12, %v15781_v48, 0.0  ;;  %v15989_v48 = vld [vmem:[#allocation108_spill] sm:$0xff]  ;;  %v3673_v38 = vadd.f32 %v3672_v2, %v3516_v52  ;;  %v2993_v22 = vcvt.f32.s32 %v15991_v27  ;;  %v6073_v49 = vshll.u32 %v6072_v45, 16 }
 0x6d8   : > { %v6916_v11 = vadd.f32 %v6915_v7, %v6764_v29  ;;  %v6434_v31 = vadd.s32 %v6433_v53, %v6431_v63  ;;  %v13746_v6 = vsel %vm3382_vm5, %v15989_v48, 0.0  ;;  %v2886_v7 = vshll.u32 %v2885_v33, 16 }
 0x6d9   : > { %v6248_v26 = vpop.xlane.xlu0 %6247  ;;  %v6444_v25 = vcvt.f32.s32 %v6442_v41  ;;  %v3674_v53 = vadd.f32 %v3673_v38, %v3517_v39  ;;  %v3518_v1 = vsel %vm3389_vm4, %v15993_v47, 0.0  ;;  %vm3390_vm15 = vcmp.eq.s32.totalorder %v2971_v30, %v13439_v37  ;;  %v15994_v41 = vld [vmem:[#allocation68_spill] sm:$0xff] }
 0x6da   : > { %v6262_v5 = vpop.xlane.xlu1 %6261  ;;  %vm6666_vm10 = vcmp.eq.s32.totalorder %v6434_v31, %v13304_v46  ;;  %v6251_v24 = vcvt.f32.s32 %v6248_v26  ;;  %v2994_v28 = vshll.u32 %v2993_v22, 16  ;;  %v3005_v29 = vcvt.f32.s32 %v15994_v41  ;;  %v15998_v26 = vld [vmem:[#allocation117_spill] sm:$0xff]  ;;  %v16000_v38 = vld [vmem:[#allocation72_spill] sm:$0xff] }
 0x6db   : > { %v6795_v35 = vsel %vm6666_vm10, %v15789_v4, 0.0  ;;  %v2887_v4 = vadd.s32 %v2886_v7, %v2884_v43  ;;  %v3017_v52 = vcvt.f32.s32 %v15995_v21  ;;  %v6445_v43 = vshll.u32 %v6444_v25, 16 }
 0x6dc   : > { %v6957_v14 = vadd.f32 %v6956_v50, %v6795_v35  ;;  %v6254_v44 = vadd.s32 %v6253_v34, %v6251_v24  ;;  %v2980_v50 = vcvt.f32.s32 %v15992_v8  ;;  %v6264_v31 = vcvt.f32.s32 %v6262_v5  ;;  %v16002_v8 = vld [vmem:[#allocation79_spill] sm:$0xff] }
 0x6dd   : > { %v6068_v17 = vpop.xlane.xlu0 %6067  ;;  %vm3383_vm2 = vcmp.eq.s32.totalorder %v2887_v4, %v13439_v37  ;;  %v3675_v56 = vadd.f32 %v3674_v53, %v3518_v1  ;;  %v3519_v34 = vsel %vm3390_vm15, %v15998_v26, 0.0  ;;  %v3018_v48 = vshll.u32 %v3017_v52, 16 }
 0x6de   : > { %v6082_v16 = vpop.xlane.xlu1 %6081  ;;  %vm6651_vm13 = vcmp.eq.s32.totalorder %v6254_v44, %v13304_v46  ;;  %v6071_v33 = vcvt.f32.s32 %v6068_v17  ;;  %v2983_v55 = vadd.s32 %v2982_v51, %v2980_v50  ;;  %v6265_v35 = vshll.u32 %v6264_v31, 16  ;;  %v16001_v17 = vld [vmem:[#allocation118_spill] sm:$0xff] }
 0x6df   : > { %v6780_v63 = vsel %vm6651_vm13, %v15791_v57, 0.0  ;;  %v15996_v57 = vld [vmem:[#allocation49_spill] sm:$0xff]  ;;  %v6084_v9 = vcvt.f32.s32 %v6082_v16  ;;  %v3016_v51 = vcvt.f32.s32 %v16000_v38  ;;  %v3676_v22 = vadd.f32 %v3675_v56, %v3519_v34  ;;  %v16009_v34 = vld [vmem:[#allocation120_spill] sm:$0xff] }
 0x6e0   : > { %v6937_v59 = vadd.f32 %v6936_v62, %v6780_v63  ;;  %v6074_v40 = vadd.s32 %v6073_v49, %v6071_v33  ;;  %v2897_v3 = vcvt.f32.s32 %v15996_v57  ;;  %v2992_v62 = vcvt.f32.s32 %v15997_v13 }
 0x6e1   : > { %v6440_v23 = vpop.xlane.xlu0 %6439  ;;  %vm3391_vm9 = vcmp.eq.s32.totalorder %v2983_v55, %v13439_v37  ;;  %v3019_v53 = vadd.s32 %v3018_v48, %v3016_v51  ;;  %v3029_v50 = vcvt.f32.s32 %v16002_v8  ;;  %v6085_v1 = vshll.u32 %v6084_v9, 16  ;;  %v16003_v55 = vld [vmem:[#allocation109_spill] sm:$0xff]  ;;  %v16011_v9 = vld [vmem:[#allocation144_spill] sm:$0xff] }
 0x6e2   : > { %v6454_v54 = vpop.xlane.xlu1 %6453  ;;  %vm6636_vm6 = vcmp.eq.s32.totalorder %v6074_v40, %v13304_v46  ;;  %v6443_v19 = vcvt.f32.s32 %v6440_v23  ;;  %v2995_v5 = vadd.s32 %v2994_v28, %v2992_v62  ;;  %v3006_v46 = vshll.u32 %v3005_v29, 16  ;;  %v16004_v29 = vld [vmem:[#allocation257_spill] sm:$0xff]  ;;  %v16005_v23 = vld [vmem:[#allocation119_spill] sm:$0xff] }
 0x6e3   : > { %v6765_v36 = vsel %vm6636_vm6, %v15790_v12, 0.0  ;;  %v13773_v12 = vld [vmem:[%s14125_s5] ss:$0 sm:$0xff]  ;;  %v2898_v30 = vshll.u32 %v2897_v3, 16  ;;  %v3520_v16 = vsel %vm3391_vm9, %v16001_v17, 0.0  ;;  %v6456_v40 = vcvt.f32.s32 %v6454_v54 }
 0x6e4   : > { %v6917_v45 = vadd.f32 %v6916_v11, %v6765_v36  ;;  %v6446_v24 = vadd.s32 %v6445_v43, %v6443_v19  ;;  %v15999_v11 = vld [vmem:[#allocation69_spill] sm:$0xff]  ;;  %vm3392_vm3 = vcmp.eq.s32.totalorder %v2995_v5, %v13439_v37  ;;  %v3663_v28 = vadd.f32 %v13716_v15, %v13746_v6  ;;  %v16008_v36 = vld [vmem:[#allocation242_spill] sm:$0xff] }
 0x6e5   : > { %v6260_v7 = vpop.xlane.xlu0 %6259  ;;  %v3004_v44 = vcvt.f32.s32 %v15999_v11  ;;  %v2899_v41 = vadd.s32 %v2898_v30, %v2896_v61  ;;  %v3677_v52 = vadd.f32 %v3676_v22, %v3520_v16  ;;  %v3521_v43 = vsel %vm3392_vm3, %v16005_v23, 0.0  ;;  %v16006_v15 = vld [vmem:[#allocation81_spill] sm:$0xff]  ;;  %v16012_v22 = vld [vmem:[#allocation78_spill] sm:$0xff]  ;;  %v16018_v23 = vld [vmem:[#allocation83_spill] sm:$0xff] }
 0x6e6   : > { %v6274_v2 = vpop.xlane.xlu1 %6273  ;;  %vm6667_vm8 = vcmp.eq.s32.totalorder %v6446_v24, %v13773_v12  ;;  %v6263_v39 = vcvt.f32.s32 %v6260_v7  ;;  %vm3394_vm11 = vcmp.eq.s32.totalorder %v3019_v53, %v13439_v37  ;;  %v3030_v19 = vshll.u32 %v3029_v50, 16  ;;  %v16010_v48 = vld [vmem:[#allocation121_spill] sm:$0xff]  ;;  %v16015_v53 = vld [vmem:[#allocation111_spill] sm:$0xff]  ;;  %v16016_v50 = vld [vmem:[#allocation146_spill] sm:$0xff] }
 0x6e7   : > { %v6796_v27 = vsel %vm6667_vm8, %v15799_v20, 0.0  ;;  %v3007_v33 = vadd.s32 %v3006_v46, %v3004_v44  ;;  %v3041_v6 = vcvt.f32.s32 %v16006_v15  ;;  %v6457_v3 = vshll.u32 %v6456_v40, 16  ;;  %v16013_v17 = vld [vmem:[#allocation93_spill] sm:$0xff]  ;;  %v16020_v15 = vld [vmem:[#allocation258_spill] sm:$0xff] }
 0x6e8   : > { %v6958_v49 = vadd.f32 %v6957_v14, %v6796_v27  ;;  %v6266_v25 = vadd.s32 %v6265_v35, %v6263_v39  ;;  %v3512_v14 = vsel %vm3383_vm2, %v16003_v55, 0.0  ;;  %v6276_v42 = vcvt.f32.s32 %v6274_v2 }
 0x6e9   : > { %v6080_v63 = vpop.xlane.xlu0 %6079  ;;  %vm3393_vm0 = vcmp.eq.s32.totalorder %v3007_v33, %v13439_v37  ;;  %v13800_v13 = vadd.f32 %v3663_v28, %v3512_v14  ;;  %vm3384_vm1 = vcmp.eq.s32.totalorder %v2899_v41, %v13439_v37  ;;  %v3678_v26 = vadd.f32 %v3677_v52, %v3521_v43  ;;  %v16017_v28 = vld [vmem:[#allocation148_spill] sm:$0xff] }
 0x6ea   : > { %v6094_v47 = vpop.xlane.xlu1 %6093  ;;  %vm6652_vm7 = vcmp.eq.s32.totalorder %v6266_v25, %v13773_v12  ;;  %v6083_v20 = vcvt.f32.s32 %v6080_v63  ;;  %v3522_v24 = vsel %vm3393_vm0, %v16009_v34, 0.0  ;;  %v3523_v7 = vsel %vm3394_vm11, %v16010_v48, 0.0  ;;  %v16014_v25 = vld [vmem:[#allocation273_spill] sm:$0xff] }
 0x6eb   : > { %v6781_v21 = vsel %vm6652_vm7, %v16004_v29, 0.0  ;;  %v3042_v35 = vshll.u32 %v3041_v6, 16  ;;  %v3113_v39 = vcvt.f32.s32 %v16011_v9  ;;  %v6277_v44 = vshll.u32 %v6276_v42, 16  ;;  %v16025_v9 = vld [vmem:[#allocation145_spill] sm:$0xff] }
 0x6ec   : > { %v6938_v31 = vadd.f32 %v6937_v59, %v6781_v21  ;;  %v6086_v54 = vadd.s32 %v6085_v1, %v6083_v20  ;;  %v16007_v59 = vld [vmem:[#allocation74_spill] sm:$0xff]  ;;  %v6096_v38 = vcvt.f32.s32 %v6094_v47  ;;  %v3679_v27 = vadd.f32 %v3678_v26, %v3522_v24  ;;  %v16024_v24 = vld [vmem:[#allocation152_spill] sm:$0xff] }
 0x6ed   : > { %v6452_v57 = vpop.xlane.xlu0 %6451  ;;  %v3028_v62 = vcvt.f32.s32 %v16007_v59  ;;  %v3101_v16 = vcvt.f32.s32 %v16013_v17  ;;  %v13819_v8 = vsel %vm3384_vm1, %v16015_v53, 0.0  ;;  %v3125_v63 = vcvt.f32.s32 %v16016_v50  ;;  %v16029_v53 = vld [vmem:[#allocation149_spill] sm:$0xff] }
 0x6ee   : > { %v13797_v4 = vpop.xlane.xlu1 %6465  ;;  %vm6637_vm5 = vcmp.eq.s32.totalorder %v6086_v54, %v13773_v12  ;;  %v6455_v61 = vcvt.f32.s32 %v6452_v57  ;;  %v3680_v40 = vadd.f32 %v3679_v27, %v3523_v7  ;;  %v3137_v55 = vcvt.f32.s32 %v16017_v28  ;;  %v16021_v57 = vld [vmem:[#allocation23_spill] sm:$0xff] }
 0x6ef   : > { %v6766_v56 = vsel %vm6637_vm5, %v16008_v36, 0.0  ;;  %v3031_v2 = vadd.s32 %v3030_v19, %v3028_v62  ;;  %v3114_v21 = vshll.u32 %v3113_v39, 16  ;;  %v6097_v52 = vshll.u32 %v6096_v38, 16  ;;  %v16022_v62 = vld [vmem:[#allocation122_spill] sm:$0xff]  ;;  %v16026_v39 = vld [vmem:[#allocation147_spill] sm:$0xff] }
 0x6f0   : > { %v6918_v5 = vadd.f32 %v6917_v45, %v6766_v56  ;;  %v6458_v46 = vadd.s32 %v6457_v3, %v6455_v61  ;;  %v3040_v45 = vcvt.f32.s32 %v16012_v22  ;;  %v3053_v43 = vcvt.f32.s32 %v16018_v23  ;;  %v16023_v56 = vld [vmem:[#allocation92_spill] sm:$0xff]  ;;  %v16027_v22 = vld [vmem:[#allocation154_spill] sm:$0xff] }
 0x6f1   : > { %v6272_v30 = vpop.xlane.xlu0 %6271  ;;  %vm3395_vm14 = vcmp.eq.s32.totalorder %v3031_v2, %v13439_v37  ;;  %v3102_v54 = vshll.u32 %v3101_v16, 16  ;;  %v3112_v3 = vcvt.f32.s32 %v16021_v57  ;;  %v3126_v42 = vshll.u32 %v3125_v63, 16  ;;  %v16028_v16 = vld [vmem:[#allocation123_spill] sm:$0xff]  ;;  %v16033_v23 = vld [vmem:[#allocation156_spill] sm:$0xff]  ;;  %v16035_v57 = vld [vmem:[#allocation158_spill] sm:$0xff] }
 0x6f2   : > { %v13810_v11 = vpop.xlane.xlu1 %6285  ;;  %vm6668_vm12 = vcmp.eq.s32.totalorder %v6458_v46, %v13773_v12  ;;  %v6275_v51 = vcvt.f32.s32 %v6272_v30  ;;  %v3043_v20 = vadd.s32 %v3042_v35, %v3040_v45  ;;  %v3524_v36 = vsel %vm3395_vm14, %v16022_v62, 0.0  ;;  %v13847_v35 = vld [vmem:[%s14124_s4] ss:$0 sm:$0xff] }
 0x6f3   : > { %v6797_v33 = vsel %vm6668_vm12, %v16014_v25, 0.0  ;;  %v3100_v26 = vcvt.f32.s32 %v16023_v56  ;;  %v3138_v34 = vshll.u32 %v3137_v55, 16  ;;  %v3161_v46 = vcvt.f32.s32 %v16024_v24  ;;  %v16030_v55 = vld [vmem:[#allocation80_spill] sm:$0xff]  ;;  %v16036_v62 = vld [vmem:[#allocation85_spill] sm:$0xff] }
 0x6f4   : > { %v13822_v1 = vadd.f32 %v6958_v49, %v6797_v33  ;;  %v6278_v47 = vadd.s32 %v6277_v44, %v6275_v51  ;;  %v16019_v49 = vld [vmem:[#allocation150_spill] sm:$0xff]  ;;  %vm3396_vm4 = vcmp.eq.s32.totalorder %v3043_v20, %v13847_v35  ;;  %v3124_v37 = vcvt.f32.s32 %v16025_v9  ;;  %v16037_v56 = vld [vmem:[#allocation84_spill] sm:$0xff] }
 0x6f5   : > { %v6092_v14 = vpop.xlane.xlu0 %6091  ;;  %v3149_v19 = vcvt.f32.s32 %v16019_v49  ;;  %v3103_v2 = vadd.s32 %v3102_v54, %v3100_v26  ;;  %v3136_v30 = vcvt.f32.s32 %v16026_v39  ;;  %v3054_v51 = vshll.u32 %v3053_v43, 16  ;;  %v16040_v9 = vld [vmem:[#allocation130_spill] sm:$0xff] }
 0x6f6   : > { %v13826_v29 = vpop.xlane.xlu1 %6105  ;;  %vm6653_vm10 = vcmp.eq.s32.totalorder %v6278_v47, %v13773_v12  ;;  %v6095_v41 = vcvt.f32.s32 %v6092_v14  ;;  %v3127_v27 = vadd.s32 %v3126_v42, %v3124_v37  ;;  %v3173_v45 = vcvt.f32.s32 %v16027_v22 }
 0x6f7   : > { %v6782_v6 = vsel %vm6653_vm10, %v16020_v15, 0.0  ;;  %v3150_v44 = vshll.u32 %v3149_v19, 16  ;;  %v3525_v25 = vsel %vm3396_vm4, %v16028_v16, 0.0  ;;  %v3139_v33 = vadd.s32 %v3138_v34, %v3136_v30  ;;  %v16038_v34 = vld [vmem:[#allocation128_spill] sm:$0xff] }
 0x6f8   : > { %v13833_v61 = vadd.f32 %v6938_v31, %v6782_v6  ;;  %v6098_v59 = vadd.s32 %v6097_v52, %v6095_v41  ;;  %v3115_v31 = vadd.s32 %v3114_v21, %v3112_v3  ;;  %v3148_v50 = vcvt.f32.s32 %v16029_v53  ;;  %v16032_v52 = vld [vmem:[#allocation151_spill] sm:$0xff]  ;;  %v16041_v30 = vld [vmem:[#allocation160_spill] sm:$0xff] }
 0x6f9   : > { %v13840_v48 = vpop.xlane.xlu0 %6463  ;;  %v3162_v63 = vshll.u32 %v3161_v46, 16  ;;  %v3681_v28 = vadd.f32 %v3680_v40, %v3524_v36  ;;  %v3052_v14 = vcvt.f32.s32 %v16030_v55  ;;  %vm3401_vm6 = vcmp.eq.s32.totalorder %v3103_v2, %v13847_v35  ;;  %v16034_v40 = vld [vmem:[#allocation129_spill] sm:$0xff] }
 0x6fa   : > { %v13842_v7 = vpop.xlane.xlu1 %6477  ;;  %vm6638_vm13 = vcmp.eq.s32.totalorder %v6098_v59, %v13773_v12  ;;  %vm3402_vm15 = vcmp.eq.s32.totalorder %v3115_v31, %v13847_v35  ;;  %v3160_v41 = vcvt.f32.s32 %v16032_v52  ;;  %v3185_v43 = vcvt.f32.s32 %v16033_v23  ;;  %v16039_v46 = vld [vmem:[#allocation153_spill] sm:$0xff] }
 0x6fb   : > { %v6767_v38 = vsel %vm6638_vm13, %v15819_v10, 0.0  ;;  %v16031_v10 = vld [vmem:[#allocation82_spill] sm:$0xff]  ;;  %v13869_v54 = vadd.f32 %v3681_v28, %v3525_v25  ;;  %v3055_v49 = vadd.s32 %v3054_v51, %v3052_v14  ;;  %vm3403_vm2 = vcmp.eq.s32.totalorder %v3127_v27, %v13847_v35  ;;  %v16042_v51 = vld [vmem:[#allocation131_spill] sm:$0xff]  ;;  %v16047_v23 = vld [vmem:[#allocation157_spill] sm:$0xff] }
 0x6fc   : > { %v13855_v17 = vadd.f32 %v6918_v5, %v6767_v38  ;;  %v3064_v21 = vcvt.f32.s32 %v16031_v10  ;;  %v3151_v5 = vadd.s32 %v3150_v44, %v3148_v50  ;;  %v3174_v19 = vshll.u32 %v3173_v45, 16  ;;  %v16043_v45 = vld [vmem:[#allocation155_spill] sm:$0xff]  ;;  %v16044_v25 = vld [vmem:[#allocation162_spill] sm:$0xff]  ;;  %v16046_v10 = vld [vmem:[#allocation132_spill] sm:$0xff] }
 0x6fd   : > { %v13859_v47 = vpop.xlane.xlu0 %6283  ;;  %v3531_v15 = vsel %vm3402_vm15, %v16034_v40, 0.0  ;;  %vm3404_vm9 = vcmp.eq.s32.totalorder %v3139_v33, %v13847_v35  ;;  %v3163_v6 = vadd.s32 %v3162_v63, %v3160_v41  ;;  %v3197_v3 = vcvt.f32.s32 %v16035_v57  ;;  %v16045_v28 = vld [vmem:[#allocation86_spill] sm:$0xff]  ;;  %v16048_v40 = vld [vmem:[#allocation164_spill] sm:$0xff] }
 0x6fe   : > { %v13861_v20 = vpop.xlane.xlu1 %6297  ;;  %v3065_v36 = vcvt.f32.s32 %v16036_v62  ;;  %v3076_v26 = vcvt.f32.s32 %v16037_v56  ;;  %v3530_v24 = vsel %vm3401_vm6, %v16038_v34, 0.0  ;;  %v3172_v31 = vcvt.f32.s32 %v16039_v46  ;;  %v16049_v57 = vld [vmem:[#allocation88_spill] sm:$0xff]  ;;  %v16050_v56 = vld [vmem:[#allocation133_spill] sm:$0xff] }
 0x6ff   : > { %v3532_v37 = vsel %vm3403_vm2, %v16040_v9, 0.0  ;;  %vm3405_vm8 = vcmp.eq.s32.totalorder %v3151_v5, %v13847_v35  ;;  %v3186_v39 = vshll.u32 %v3185_v43, 16  ;;  %v3209_v44 = vcvt.f32.s32 %v16041_v30  ;;  %v16053_v30 = vld [vmem:[#allocation124_spill] sm:$0xff] }
 0x700   : > { %vm3397_vm3 = vcmp.eq.s32.totalorder %v3055_v49, %v13847_v35  ;;  %v3693_v38 = vadd.f32 %v3531_v15, %v3530_v24  ;;  %v3533_v27 = vsel %vm3404_vm9, %v16042_v51, 0.0  ;;  %v3175_v22 = vadd.s32 %v3174_v19, %v3172_v31  ;;  %v16051_v24 = vld [vmem:[#allocation159_spill] sm:$0xff]  ;;  %v16052_v31 = vld [vmem:[#allocation166_spill] sm:$0xff] }
 0x701   : > { %v13875_v42 = vpop.xlane.xlu0 %6103  ;;  %vm3406_vm7 = vcmp.eq.s32.totalorder %v3163_v6, %v13847_v35  ;;  %v3184_v2 = vcvt.f32.s32 %v16043_v45  ;;  %v3198_v16 = vshll.u32 %v3197_v3, 16  ;;  %v3221_v33 = vcvt.f32.s32 %v16044_v25  ;;  %v16054_v45 = vld [vmem:[#allocation161_spill] sm:$0xff] }
 0x702   : > { %v13877_v59 = vpop.xlane.xlu1 %6117  ;;  %v3066_v63 = vshll.u32 %v3065_v36, 16  ;;  %v3077_v55 = vcvt.f32.s32 %v16045_v28  ;;  %v3694_v14 = vadd.f32 %v3693_v38, %v3532_v37  ;;  %v3534_v52 = vsel %vm3405_vm8, %v16046_v10, 0.0  ;;  %v16055_v28 = vld [vmem:[#allocation134_spill] sm:$0xff]  ;;  %v16056_v10 = vld [vmem:[#allocation168_spill] sm:$0xff] }
 0x703   : > { %v3187_v41 = vadd.s32 %v3186_v39, %v3184_v2  ;;  %v3196_v43 = vcvt.f32.s32 %v16047_v23  ;;  %v3210_v19 = vshll.u32 %v3209_v44, 16  ;;  %v3233_v15 = vcvt.f32.s32 %v16048_v40  ;;  %v16058_v40 = vld [vmem:[#allocation87_spill] sm:$0xff] }
 0x704   : > { %v3089_v3 = vcvt.f32.s32 %v16049_v57  ;;  %v3695_v62 = vadd.f32 %v3694_v14, %v3533_v27  ;;  %v3535_v36 = vsel %vm3406_vm7, %v16050_v56, 0.0  ;;  %vm3407_vm0 = vcmp.eq.s32.totalorder %v3175_v22, %v13847_v35  ;;  %v16059_v57 = vld [vmem:[#allocation135_spill] sm:$0xff] }
 0x705   : > { %v13893_v53 = vpop.xlane.xlu0 %6475  ;;  %v3199_v34 = vadd.s32 %v3198_v16, %v3196_v43  ;;  %v3208_v46 = vcvt.f32.s32 %v16051_v24  ;;  %v3222_v5 = vshll.u32 %v3221_v33, 16  ;;  %v3245_v9 = vcvt.f32.s32 %v16052_v31  ;;  %v16061_v24 = vld [vmem:[#allocation165_spill] sm:$0xff]  ;;  %v16062_v31 = vld [vmem:[#allocation136_spill] sm:$0xff] }
 0x706   : > { %v13895_v50 = vpop.xlane.xlu1 %6489  ;;  %v3526_v44 = vsel %vm3397_vm3, %v16053_v30, 0.0  ;;  %v3067_v38 = vadd.s32 %v3066_v63, %v3064_v21  ;;  %v3078_v51 = vshll.u32 %v3077_v55, 16  ;;  %v3696_v6 = vadd.f32 %v3695_v62, %v3534_v52  ;;  %v16057_v21 = vld [vmem:[#allocation163_spill] sm:$0xff] }
 0x707   : > { %vm3408_vm11 = vcmp.eq.s32.totalorder %v3187_v41, %v13847_v35  ;;  %v3211_v27 = vadd.s32 %v3210_v19, %v3208_v46  ;;  %v3220_v2 = vcvt.f32.s32 %v16054_v45  ;;  %v3234_v16 = vshll.u32 %v3233_v15, 16 }
 0x708   : > { %v3090_v25 = vshll.u32 %v3089_v3, 16  ;;  %v3697_v33 = vadd.f32 %v3696_v6, %v3535_v36  ;;  %v3536_v14 = vsel %vm3407_vm0, %v16055_v28, 0.0  ;;  %v3257_v23 = vcvt.f32.s32 %v16056_v10  ;;  %v16060_v3 = vld [vmem:[#allocation170_spill] sm:$0xff] }
 0x709   : > { %v13910_v37 = vpop.xlane.xlu0 %6295  ;;  %vm3409_vm5 = vcmp.eq.s32.totalorder %v3199_v34, %v13847_v35  ;;  %v3223_v49 = vadd.s32 %v3222_v5, %v3220_v2  ;;  %v3232_v63 = vcvt.f32.s32 %v16057_v21  ;;  %v3246_v55 = vshll.u32 %v3245_v9, 16  ;;  %v16066_v34 = vld [vmem:[#allocation125_spill] sm:$0xff] }
 0x70a   : > { %v13912_v39 = vpop.xlane.xlu1 %6309  ;;  %v3079_v19 = vadd.s32 %v3078_v51, %v3076_v26  ;;  %v3088_v15 = vcvt.f32.s32 %v16058_v40  ;;  %v3537_v22 = vsel %vm3408_vm11, %v16059_v57, 0.0  ;;  %v3269_v62 = vcvt.f32.s32 %v16060_v3  ;;  %v16063_v51 = vld [vmem:[#allocation172_spill] sm:$0xff] }
 0x70b   : > { %v3698_v56 = vadd.f32 %v3697_v33, %v3536_v14  ;;  %vm3410_vm1 = vcmp.eq.s32.totalorder %v3211_v27, %v13847_v35  ;;  %v3235_v36 = vadd.s32 %v3234_v16, %v3232_v63  ;;  %v3244_v46 = vcvt.f32.s32 %v16061_v24  ;;  %v16064_v16 = vld [vmem:[#allocation137_spill] sm:$0xff]  ;;  %v16071_v24 = vld [vmem:[#allocation127_spill] sm:$0xff] }
 0x70c   : > { %vm3398_vm12 = vcmp.eq.s32.totalorder %v3067_v38, %v13847_v35  ;;  %v3091_v5 = vadd.s32 %v3090_v25, %v3088_v15  ;;  %v3538_v26 = vsel %vm3409_vm5, %v16062_v31, 0.0  ;;  %v3258_v9 = vshll.u32 %v3257_v23, 16  ;;  %v16065_v25 = vld [vmem:[#allocation167_spill] sm:$0xff]  ;;  %v16067_v23 = vld [vmem:[#allocation138_spill] sm:$0xff]  ;;  %v16068_v63 = vld [vmem:[#allocation169_spill] sm:$0xff] }
 0x70d   : > { %v13925_v52 = vpop.xlane.xlu0 %6115  ;;  %v3699_v30 = vadd.f32 %v3698_v56, %v3537_v22  ;;  %vm3411_vm14 = vcmp.eq.s32.totalorder %v3223_v49, %v13847_v35  ;;  %v3247_v41 = vadd.s32 %v3246_v55, %v3244_v46  ;;  %v3281_v6 = vcvt.f32.s32 %v16063_v51  ;;  %v16069_v22 = vld [vmem:[#allocation126_spill] sm:$0xff]  ;;  %v16072_v31 = vld [vmem:[#allocation171_spill] sm:$0xff] }
 0x70e   : > { %v13927_v43 = vpop.xlane.xlu1 %6129  ;;  %v3683_v2 = vadd.f32 %v13869_v54, %v3526_v44  ;;  %v3539_v38 = vsel %vm3410_vm1, %v16064_v16, 0.0  ;;  %v3256_v33 = vcvt.f32.s32 %v16065_v25  ;;  %v3270_v28 = vshll.u32 %v3269_v62, 16  ;;  %v16070_v62 = vld [vmem:[#allocation139_spill] sm:$0xff] }
 0x70f   : > { %v3527_v14 = vsel %vm3398_vm12, %v16066_v34, 0.0  ;;  %vm3399_vm10 = vcmp.eq.s32.totalorder %v3079_v19, %v13847_v35  ;;  %v3700_v10 = vadd.f32 %v3699_v30, %v3538_v26  ;;  %vm3412_vm4 = vcmp.eq.s32.totalorder %v3235_v36, %v13847_v35 }
 0x710   : > { %vm3400_vm13 = vcmp.eq.s32.totalorder %v3091_v5, %v13847_v35  ;;  %v3540_v49 = vsel %vm3411_vm14, %v16067_v23, 0.0  ;;  %v3259_v21 = vadd.s32 %v3258_v9, %v3256_v33  ;;  %v3268_v55 = vcvt.f32.s32 %v16068_v63  ;;  %v16075_v63 = vld [vmem:[#allocation142_spill] sm:$0xff] }
 0x711   : > { %v13942_v45 = vpop.xlane.xlu0 %6487  ;;  %v3665_v54 = vadd.f32 %v13800_v13, %v13819_v8  ;;  %v3701_v44 = vadd.f32 %v3700_v10, %v3539_v38  ;;  %vm3413_vm15 = vcmp.eq.s32.totalorder %v3247_v41, %v13847_v35  ;;  %v3282_v40 = vshll.u32 %v3281_v6, 16  ;;  %v16073_v8 = vld [vmem:[#allocation140_spill] sm:$0xff] }
 0x712   : > { %v13944_v27 = vpop.xlane.xlu1 %6501  ;;  %v3684_v57 = vadd.f32 %v3683_v2, %v3527_v14  ;;  %v3528_v3 = vsel %vm3399_vm10, %v16069_v22, 0.0  ;;  %v3541_v56 = vsel %vm3412_vm4, %v16070_v62, 0.0  ;;  %v3271_v36 = vadd.s32 %v3270_v28, %v3268_v55  ;;  %v16074_v14 = vld [vmem:[#allocation141_spill] sm:$0xff] }
 0x713   : > { %v3529_v46 = vsel %vm3400_vm13, %v16071_v24, 0.0  ;;  %v3702_v5 = vadd.f32 %v3701_v44, %v3540_v49  ;;  %v3280_v26 = vcvt.f32.s32 %v16072_v31  ;;  %v6468_v13 = vcvt.f32.s32 %v13797_v4 }
 0x714   : > { %v3542_v9 = vsel %vm3413_vm15, %v16073_v8, 0.0  ;;  %vm3414_vm6 = vcmp.eq.s32.totalorder %v3259_v21, %v13847_v35  ;;  %v6288_v30 = vcvt.f32.s32 %v13810_v11  ;;  %v6108_v41 = vcvt.f32.s32 %v13826_v29 }
 0x715   : > { %v13958_v15 = vpop.xlane.xlu0 %6307  ;;  %v3685_v51 = vadd.f32 %v3684_v57, %v3528_v3  ;;  %v3703_v6 = vadd.f32 %v3702_v5, %v3541_v56  ;;  %v3283_v2 = vadd.s32 %v3282_v40, %v3280_v26  ;;  %v6467_v16 = vcvt.f32.s32 %v13840_v48 }
 0x716   : > { %v13960_v19 = vpop.xlane.xlu1 %6321  ;;  %v3666_v33 = vrot.slane %v3665_v54, 4  ;;  %vm3415_vm2 = vcmp.eq.s32.totalorder %v3271_v36, %v13847_v35  ;;  %v6287_v4 = vcvt.f32.s32 %v13859_v47  ;;  %v6107_v28 = vcvt.f32.s32 %v13875_v42  ;;  %v16076_v36 = vld [vmem:[#allocation143_spill] sm:$0xff] }
 0x717   : > { %v3686_v34 = vadd.f32 %v3685_v51, %v3529_v46  ;;  %v3704_v11 = vadd.f32 %v3703_v6, %v3542_v9  ;;  %v3543_v29 = vsel %vm3414_vm6, %v16074_v14, 0.0  ;;  %v6469_v10 = vshll.u32 %v6468_v13, 16 }
 0x718   : > { %v6289_v23 = vshll.u32 %v6288_v30, 16  ;;  %v6109_v49 = vshll.u32 %v6108_v41, 16  ;;  %v6480_v48 = vcvt.f32.s32 %v13842_v7  ;;  %v6300_v21 = vcvt.f32.s32 %v13861_v20 }
 0x719   : > { %v13972_v38 = vpop.xlane.xlu0 %6127  ;;  %v3544_v55 = vsel %vm3415_vm2, %v16075_v63, 0.0  ;;  %vm3416_vm9 = vcmp.eq.s32.totalorder %v3283_v2, %v13847_v35  ;;  %v6470_v44 = vadd.s32 %v6469_v10, %v6467_v16  ;;  %v6120_v47 = vcvt.f32.s32 %v13877_v59 }
 0x71a   : > { %v13974_v25 = vpop.xlane.xlu1 %6141  ;;  %v6290_v57 = vadd.s32 %v6289_v23, %v6287_v4  ;;  %v6110_v22 = vadd.s32 %v6109_v49, %v6107_v28  ;;  %v6479_v3 = vcvt.f32.s32 %v13893_v53  ;;  %v6299_v62 = vcvt.f32.s32 %v13910_v37 }
 0x71b   : > { %v3705_v7 = vadd.f32 %v3704_v11, %v3543_v29  ;;  %v6119_v20 = vcvt.f32.s32 %v13925_v52  ;;  %v13992_v56 = vadd.f32 %v3666_v33, %v3665_v54  ;;  %v3545_v35 = vsel %vm3416_vm9, %v16076_v36, 0.0 }
 0x71c   : > { %v6481_v24 = vshll.u32 %v6480_v48, 16  ;;  %v6301_v46 = vshll.u32 %v6300_v21, 16  ;;  %v3687_v59 = vrot.slane %v3686_v34, 4  ;;  %vm6669_vm8 = vcmp.eq.s32.totalorder %v6470_v44, %v13773_v12  ;;  %v16078_v48 = vld [vmem:[#allocation245_spill] sm:$0xff] }
 0x71d   : > { %v13985_v40 = vpop.xlane.xlu0 %6499  ;;  %v3706_v5 = vadd.f32 %v3705_v7, %v3544_v55  ;;  %v6121_v31 = vshll.u32 %v6120_v47, 16  ;;  %vm6654_vm3 = vcmp.eq.s32.totalorder %v6290_v57, %v13773_v12  ;;  %vm6639_vm7 = vcmp.eq.s32.totalorder %v6110_v22, %v13773_v12 }
 0x71e   : > { %v13987_v42 = vpop.xlane.xlu1 %6513  ;;  %v6482_v53 = vadd.s32 %v6481_v24, %v6479_v3  ;;  %v6302_v37 = vadd.s32 %v6301_v46, %v6299_v62  ;;  %v3668_v8 = vrot.slane %v13992_v56, 2  ;;  %v6798_v9 = vsel %vm6669_vm8, %v15830_v60, 0.0 }
 0x71f   : > { %v14000_v52 = vadd.f32 %v3706_v5, %v3545_v35  ;;  %v6122_v54 = vadd.s32 %v6121_v31, %v6119_v20  ;;  %v6783_v30 = vsel %vm6654_vm3, %v15833_v0, 0.0  ;;  %v6768_v41 = vsel %vm6639_vm7, %v15832_v18, 0.0 }
 0x720   : > { %v6492_v51 = vcvt.f32.s32 %v13895_v50  ;;  %v14007_v16 = vadd.f32 %v3687_v59, %v3686_v34  ;;  %vm6670_vm0 = vcmp.eq.s32.totalorder %v6482_v53, %v13773_v12  ;;  %vm6655_vm11 = vcmp.eq.s32.totalorder %v6302_v37, %v13773_v12 }
 0x721   : > { %v5962_v26 = vpop.xlane.xlu0 %5961  ;;  %v6312_v33 = vcvt.f32.s32 %v13912_v39  ;;  %v3708_v4 = vrot.slane %v14000_v52, 4  ;;  %vm6640_vm5 = vcmp.eq.s32.totalorder %v6122_v54, %v13773_v12  ;;  %v6132_v60 = vcvt.f32.s32 %v13927_v43  ;;  %v16077_v39 = vld [vmem:[#allocation260_spill] sm:$0xff] }
 0x722   : > { %v13996_v13 = vpop.xlane.xlu1 %6319  ;;  %v6491_v18 = vcvt.f32.s32 %v13942_v45  ;;  %v6960_v0 = vadd.f32 %v13822_v1, %v6798_v9  ;;  %v6940_v50 = vadd.f32 %v13833_v61, %v6783_v30  ;;  %v6920_v28 = vadd.f32 %v13855_v17, %v6768_v41  ;;  %v16079_v9 = vld [vmem:[#allocation276_spill] sm:$0xff]  ;;  %v16080_v41 = vld [vmem:[#allocation261_spill] sm:$0xff] }
 0x723   : > { %v6311_v34 = vcvt.f32.s32 %v13958_v15  ;;  %v6799_v11 = vsel %vm6670_vm0, %v15845_v32, 0.0  ;;  %v6493_v14 = vshll.u32 %v6492_v51, 16  ;;  %v6784_v29 = vsel %vm6655_vm11, %v16077_v39, 0.0 }
 0x724   : > { %v6131_v10 = vcvt.f32.s32 %v13972_v38  ;;  %v6313_v43 = vshll.u32 %v6312_v33, 16  ;;  %v6769_v45 = vsel %vm6640_vm5, %v16078_v48, 0.0  ;;  %v6144_v1 = vcvt.f32.s32 %v13974_v25 }
 0x725   : > { %v6334_v6 = vpop.xlane.xlu0 %6333  ;;  %v5964_v21 = vcvt.f32.s32 %v5962_v26  ;;  %v6133_v61 = vshll.u32 %v6132_v60, 16  ;;  %v6494_v63 = vadd.s32 %v6493_v14, %v6491_v18  ;;  %v6504_v17 = vcvt.f32.s32 %v13944_v27  ;;  %v16082_v60 = vld [vmem:[#allocation246_spill] sm:$0xff] }
 0x726   : > { %v6140_v2 = vpop.xlane.xlu1 %6139  ;;  %v6324_v15 = vcvt.f32.s32 %v13960_v19  ;;  %v6961_v32 = vadd.f32 %v6960_v0, %v6799_v11  ;;  %v6941_v55 = vadd.f32 %v6940_v50, %v6784_v29  ;;  %v6314_v44 = vadd.s32 %v6313_v43, %v6311_v34  ;;  %v16083_v50 = vld [vmem:[#allocation175_spill] sm:$0xff] }
 0x727   : > { %v6143_v47 = vcvt.f32.s32 %v6140_v2  ;;  %v6921_v57 = vadd.f32 %v6920_v28, %v6769_v45  ;;  %v6134_v38 = vadd.s32 %v6133_v61, %v6131_v10  ;;  %v6503_v22 = vcvt.f32.s32 %v13985_v40  ;;  %v16081_v2 = vld [vmem:[#allocation233_spill] sm:$0xff]  ;;  %v16084_v45 = vld [vmem:[#allocation247_spill] sm:$0xff] }
 0x728   : > { %v6323_v3 = vcvt.f32.s32 %v13996_v13  ;;  %v6145_v25 = vshll.u32 %v6144_v1, 16  ;;  %v6516_v20 = vcvt.f32.s32 %v13987_v42  ;;  %v5965_v36 = vshll.u32 %v5964_v21, 16 }
 0x729   : > { %v6154_v23 = vpop.xlane.xlu0 %6153  ;;  %vm6671_vm1 = vcmp.eq.s32.totalorder %v6494_v63, %v13773_v12  ;;  %v6505_v27 = vshll.u32 %v6504_v17, 16  ;;  %v6325_v19 = vshll.u32 %v6324_v15, 16  ;;  %v6336_v24 = vcvt.f32.s32 %v6334_v6 }
 0x72a   : > { %v6512_v49 = vpop.xlane.xlu1 %6511  ;;  %vm6656_vm12 = vcmp.eq.s32.totalorder %v6314_v44, %v13773_v12  ;;  %v6146_v46 = vadd.s32 %v6145_v25, %v6143_v47  ;;  %vm6641_vm14 = vcmp.eq.s32.totalorder %v6134_v38, %v13773_v12  ;;  %v6156_v26 = vcvt.f32.s32 %v6154_v23  ;;  %v16085_v44 = vld [vmem:[#allocation277_spill] sm:$0xff]  ;;  %v16086_v38 = vld [vmem:[#allocation262_spill] sm:$0xff] }
 0x72b   : > { %v6515_v59 = vcvt.f32.s32 %v6512_v49  ;;  %v6506_v40 = vadd.s32 %v6505_v27, %v6503_v22  ;;  %v6326_v31 = vadd.s32 %v6325_v19, %v6323_v3  ;;  %v6517_v42 = vshll.u32 %v6516_v20, 16  ;;  %v16087_v25 = vld [vmem:[#allocation278_spill] sm:$0xff] }
 0x72c   : > { %v6800_v30 = vsel %vm6671_vm1, %v16079_v9, 0.0  ;;  %v6785_v51 = vsel %vm6656_vm12, %v16080_v41, 0.0  ;;  %v6337_v6 = vshll.u32 %v6336_v24, 16  ;;  %v6770_v18 = vsel %vm6641_vm14, %v16082_v60, 0.0  ;;  %v16089_v24 = vld [vmem:[#allocation263_spill] sm:$0xff] }
 0x72d   : > { %v6526_v62 = vpop.xlane.xlu0 %6525  ;;  %vm6642_vm4 = vcmp.eq.s32.totalorder %v6146_v46, %v13773_v12  ;;  %v6518_v0 = vadd.s32 %v6517_v42, %v6515_v59  ;;  %vm6672_vm13 = vcmp.eq.s32.totalorder %v6506_v40, %v13773_v12  ;;  %vm6657_vm15 = vcmp.eq.s32.totalorder %v6326_v31, %v13773_v12  ;;  %v16090_v41 = vld [vmem:[#allocation279_spill] sm:$0xff] }
 0x72e   : > { %v5960_v7 = vpop.xlane.xlu1 %5959  ;;  %v6528_v37 = vcvt.f32.s32 %v6526_v62  ;;  %v6157_v34 = vshll.u32 %v6156_v26, 16  ;;  %v6962_v43 = vadd.f32 %v6961_v32, %v6800_v30  ;;  %v6922_v48 = vadd.f32 %v6921_v57, %v6770_v18 }
 0x72f   : > { %v5963_v35 = vcvt.f32.s32 %v5960_v7  ;;  %v6771_v1 = vsel %vm6642_vm4, %v16084_v45, 0.0  ;;  %vm6673_vm6 = vcmp.eq.s32.totalorder %v6518_v0, %v13773_v12  ;;  %v6942_v15 = vadd.f32 %v6941_v55, %v6785_v51 }
 0x730   : > { %v6529_v29 = vshll.u32 %v6528_v37, 16  ;;  %v6801_v47 = vsel %vm6672_vm13, %v16085_v44, 0.0  ;;  %v6786_v22 = vsel %vm6657_vm15, %v16086_v38, 0.0  ;;  %v6923_v3 = vadd.f32 %v6922_v48, %v6771_v1 }
 0x731   : > { %v5966_v5 = vadd.s32 %v5965_v36, %v5963_v35  ;;  %v6332_v13 = vpop.xlane.xlu0 %6331  ;;  %v6802_v20 = vsel %vm6673_vm6, %v16087_v25, 0.0  ;;  %v16088_v36 = vld [vmem:[#allocation248_spill] sm:$0xff]  ;;  %v6963_v40 = vadd.f32 %v6962_v43, %v6801_v47  ;;  %v6943_v31 = vadd.f32 %v6942_v15, %v6786_v22 }
 0x732   : > { %v6346_v53 = vpop.xlane.xlu1 %6345  ;;  %v6335_v54 = vcvt.f32.s32 %v6332_v13  ;;  %vm16093_vm0 = vcmask 1044484   ;;  %vm3730_vm11 = vcmask 1045509   ;;  %vm3732_vm5 = vcmask 1046534  }
 0x733   : > { %vm6627_vm10 = vcmp.eq.s32.totalorder %v5966_v5, %v13773_v12  ;;  %v6348_v21 = vcvt.f32.s32 %v6346_v53  ;;  %v3709_v5 = vadd.f32 %v3708_v4, %v14000_v52  ;;  %v6964_v9 = vadd.f32 %v6963_v40, %v6802_v20 }
 0x734   : > { %v6756_v33 = vsel %vm6627_vm10, %v16081_v2, 0.0  ;;  %v6338_v11 = vadd.s32 %v6337_v6, %v6335_v54  ;;  %v3689_v52 = vrot.slane %v14007_v16, 2  ;;  %vm3734_vm1 = vcmask 1047559  }
 0x735   : > { %v6903_v28 = vadd.f32 %v16083_v50, %v6756_v33  ;;  %v6152_v14 = vpop.xlane.xlu0 %6151  ;;  %v6349_v55 = vshll.u32 %v6348_v21, 16  ;;  %v16091_v33 = vld [vmem:[#allocation264_spill] sm:$0xff]  ;;  %v3710_v4 = vrot.slane %v3709_v5, 2 }
 0x736   : > { %v6524_v39 = vpop.xlane.xlu1 %6523  ;;  %v6155_v23 = vcvt.f32.s32 %v6152_v14  ;;  %vm6658_vm2 = vcmp.eq.s32.totalorder %v6338_v11, %v13773_v12 }
 0x737   : > { %v6904_v10 = vrot.slane %v6903_v28, 4  ;;  %v6527_v49 = vcvt.f32.s32 %v6524_v39  ;;  %v6787_v46 = vsel %vm6658_vm2, %v16089_v24, 0.0  ;;  %v3711_v1 = vadd.f32 %v3710_v4, %v3709_v5 }
 0x738   : > { %v6158_v63 = vadd.s32 %v6157_v34, %v6155_v23  ;;  %v6944_v30 = vadd.f32 %v6943_v31, %v6787_v46  ;;  %v16092_v34 = vld [vmem:[#allocation174_spill] sm:$0xff] }
 0x739   : > { %v6905_v61 = vadd.f32 %v6904_v10, %v6903_v28  ;;  %v6530_v17 = vadd.s32 %v6529_v29, %v6527_v49  ;;  %v6538_v32 = vpop.xlane.xlu0 %6537  ;;  %v3669_v29 = vadd.f32 %v3668_v8, %v13992_v56  ;;  %v3690_v49 = vadd.f32 %v3689_v52, %v14007_v16 }
 0x73a   : > { %v6344_v57 = vpop.xlane.xlu1 %6343  ;;  %vm6643_vm9 = vcmp.eq.s32.totalorder %v6158_v63, %v13773_v12  ;;  %v6540_v7 = vcvt.f32.s32 %v6538_v32  ;;  %v3712_v44 = vrot.slane %v3711_v1, 1 }
 0x73b   : > { %v6906_v62 = vrot.slane %v6905_v61, 2  ;;  %v6772_v35 = vsel %vm6643_vm9, %v16088_v36, 0.0  ;;  %v6347_v27 = vcvt.f32.s32 %v6344_v57  ;;  %vm6674_vm8 = vcmp.eq.s32.totalorder %v6530_v17, %v13773_v12 }
 0x73c   : > { %v6924_v59 = vadd.f32 %v6923_v3, %v6772_v35  ;;  %v6541_v37 = vshll.u32 %v6540_v7, 16  ;;  %v6803_v51 = vsel %vm6674_vm8, %v16090_v41, 0.0  ;;  %v3691_v15 = vrot.slane %v3690_v49, 1 }
 0x73d   : > { %v6907_v19 = vadd.f32 %v6906_v62, %v6905_v61  ;;  %v6350_v26 = vadd.s32 %v6349_v55, %v6347_v27  ;;  %v6536_v13 = vpop.xlane.xlu0 %6535  ;;  %v6965_v28 = vadd.f32 %v6964_v9, %v6803_v51  ;;  %v3713_v57 = vadd.f32 %v3712_v44, %v3711_v1  ;;  %v16094_v62 = vld [vmem:[#allocation64_spill] sm:$0xff] }
 0x73e   : > { %v6925_v42 = vrot.slane %v6924_v59, 4  ;;  %v6539_v54 = vcvt.f32.s32 %v6536_v13  ;;  %v3692_v22 = vadd.f32 %v3691_v15, %v3690_v49 }
 0x73f   : > { %v6908_v53 = vrot.slane %v6907_v19, 1  ;;  %vm6659_vm3 = vcmp.eq.s32.totalorder %v6350_v26, %v13773_v12 }
 0x740   : > { %v6926_v2 = vadd.f32 %v6925_v42, %v6924_v59  ;;  %v6788_v60 = vsel %vm6659_vm3, %v16091_v33, 0.0  ;;  %v6542_v18 = vadd.s32 %v6541_v37, %v6539_v54 }
 0x741   : > { %v6909_v6 = vadd.f32 %v6908_v53, %v6907_v19  ;;  %v6945_v0 = vadd.f32 %v6944_v30, %v6788_v60 }
 0x742   : > { %v6927_v50 = vrot.slane %v6926_v2, 2  ;;  %vm6675_vm7 = vcmp.eq.s32.totalorder %v6542_v18, %v13773_v12  ;;  %v3670_v12 = vrot.slane %v3669_v29, 1 }
 0x743   : > { %v6984_v11 = vsel %vm16093_vm0, %v6909_v6, %v16092_v34  ;;  %v6946_v14 = vrot.slane %v6945_v0, 4  ;;  %v6804_v39 = vsel %vm6675_vm7, %v15933_v58, 0.0 }
 0x744   : > { %v6928_v10 = vadd.f32 %v6927_v50, %v6926_v2  ;;  %v6966_v23 = vadd.f32 %v6965_v28, %v6804_v39  ;;  %v3671_v56 = vadd.f32 %v3670_v12, %v3669_v29 }
 0x745   : > { %v6947_v43 = vadd.f32 %v6946_v14, %v6945_v0 }
 0x746   : > { %v6929_v48 = vrot.slane %v6928_v10, 1  ;;  %v6967_v45 = vrot.slane %v6966_v23, 4  ;;  %v3731_v7 = vsel %vm3730_vm11, %v3671_v56, %v16094_v62 }
 0x747   : > { %v6948_v21 = vrot.slane %v6947_v43, 2  ;;  %v3733_v20 = vsel %vm3732_vm5, %v3692_v22, %v3731_v7 }
 0x748   : > { %v6930_v61 = vadd.f32 %v6929_v48, %v6928_v10  ;;  %v6968_v63 = vadd.f32 %v6967_v45, %v6966_v23  ;;  %v3735_v55 = vsel %vm3734_vm1, %v3713_v57, %v3733_v20 }
 0x749   : > { %v6949_v17 = vadd.f32 %v6948_v21, %v6947_v43 }
 0x74a   : > { %v6969_v58 = vrot.slane %v6968_v63, 2  ;;  %v6985_v47 = vsel %vm3730_vm11, %v6930_v61, %v6984_v11 }
 0x74b   : > { %v6950_v38 = vrot.slane %v6949_v17, 1 }
 0x74c   : > { %v6970_v8 = vadd.f32 %v6969_v58, %v6968_v63 }
 0x74d   : > { %v6951_v16 = vadd.f32 %v6950_v38, %v6949_v17 }
 0x74e   : > { %v6971_v32 = vrot.slane %v6970_v8, 1 }
 0x74f   : > { %v6986_v3 = vsel %vm3732_vm5, %v6951_v16, %v6985_v47 }
 0x750   : > { %v6972_v25 = vadd.f32 %v6971_v32, %v6970_v8 }
 0x752   : > { %v6987_v36 = vsel %vm3734_vm1, %v6972_v25, %v6986_v3 }
 0x753   : > { %v6993_v35 = vsub.f32 %v3735_v55, %v6987_v36 }
 0x755   : > { %v6994_v27 = vand.u32 2147483647, %v6993_v35 }
 0x757   : > { %6995 = vadd.xlane.f32.xlu1 %v6994_v27 }
 0x7e0   : > { %v6996_v19 = vpop.xlane.xlu1 %6995 }
 0x7e1   : > { %6997 = vst [vmem:[%s392_s20] sm:$0xff] %v6996_v19 }
 0x7e2   : > { %7399 = shalt.err (!%p7396_p12)
}
 0x7e3   : > { %s7400_s15 = scalar_lea.hbm %s7010_s18, 128  ;;  %s7404_s8 = scalar_lea.hbm %s14126_s6, 384 }
 0x7e4   : > { %p7401_p4 = scmp.ne.s32.totalorder %s7010_s18, %s7400_s15  ;;  %p7405_p5 = scmp.lt.s32.totalorder %s7010_s18, %s14126_s6 }
 0x7e5   : > { %p7406_p6 = scmp.lt.s32.totalorder %s7404_s8, %s7400_s15 }
 0x7e6   : > { %p7402_p0 = pnand %p7401_p4, %p7573_p9 }
 0x7e7   : > { %p7407_p8 = por %p7406_p6, %p7405_p5 }
 0x7e8   : > { %p7403_p1 = pneg %p7402_p0 }
 0x7ea   : > { %p7408_p13 = pnand %p7407_p8, %p7403_p1 }
 0x7ec   : > { %7411 = shalt.err (!%p7408_p13)
}
 0x7ed   : > { %7190 = dma.vmem_to_hbm [thread:$0]  (%p7573_p9), %s14076_s30, 128, %s7010_s18, %s6999_s21  }
 0x7ee PF: > { %s16095_s12 = sld [smem:[#allocation17_spill]]  ;;  %p7210_p2 = scmp.ge.s32.totalorder %s7474_s26, 2 }
 0x7f0   : > { %p7206_p3 = pnand %p7210_p2, %p7580_p11 }
 0x7f2   : > { %p7207_p7 = pneg %p7206_p3 }
 0x7f4   : > { %s7024_s27 = sand.u32 1, %s16095_s12  }
 0x7f5   : > { %s7025_s9 = scalar_lea.sflag [#allocation6], %s7024_s27 }
 0x7f6   : > { %7449 = dma.done.wait (%p7207_p7), %s7025_s9, 128  }
 0x7f7   : > { %7451 = vsyncadd (%p7207_p7), %s7025_s9, 4294967168  ;;  %s28_s26 = sadd.s32 1, %s7474_s26   ;;  %s16097_s7 = sld [smem:[#allocation18_spill]] }
 0x7f8   : > { %p25_p10 = scmp.ge.s32.totalorder %s28_s26, 5   ;;  %s16098_s23 = sld [smem:[#allocation21_spill]] }
 0x7f9   : > { %s16099_s24 = sld [smem:[#allocation19_spill]]  ;;  %s16101_s21 = smov %s7458_s22 }
 0x7fa   : > { %s16100_s25 = sld [smem:[#allocation20_spill]]  ;;  %27 = sbr.rel (!%p25_p10) target bundleno = 12 (0xc), region = 126 }
 0x7fd   : > { %s16102_s22 = smov %s16097_s7 }
 0x7ff   :  { %7030 = vsyncpa [#allocation5], 1 }
 0x800   :  { %7032 = vsyncpa [#allocation5 + $0x1], 1 }
 0x801   :  { %7033 = vsyncpa [#allocation8], 1 }
 0x802   :  { %7035 = vsyncpa [#allocation8 + $0x1], 1 }
 0x803   :  { %7036 = vsyncpa [#allocation11], 1 }
 0x804   :  { %7038 = vsyncpa [#allocation11 + $0x1], 1 }
 0x805   :  { %7039 = vsyncpa [#allocation6], 1 }
 0x806   :  { %7041 = vsyncpa [#allocation6 + $0x1], 1 }

</bundles_post_ra>
